<compile_context>
chip_gen: v7x
topology: tpu7x:2x2x1
jax: 0.10.0
libtpu: 0.0.40
codegen_flags: <defaults>
</compile_context>

<pallas_src>
import functools

import jax
import jax.numpy as jnp
from jax import lax
from jax.experimental import pallas as pl
from jax.experimental.pallas import tpu as pltpu

_LANE = 128


def _round_up(n, m):
    return ((n + m - 1) // m) * m


def _resblock_kernel(d1, d2, same_shape, want_xbr, *refs):
    it = iter(refs)
    x_ref = next(it)                              # (1, H, W, Cin)   f32
    s2a_ref = next(it)                            # (1, Cin)         f32
    b2a_ref = next(it)                            # (1, Cin)         f32
    w1_ref = None if same_shape else next(it)     # (Cin, Cout)      bf16
    w2a_ref = next(it)                            # (9*Cin, Cm)      bf16
    s2b1_ref = next(it)                           # (1, Cm)          f32
    b2b1_ref = next(it)                           # (1, Cm)          f32
    w2b1_ref = next(it)                           # (9*Cm, Cout)     bf16
    out_ref = next(it)                            # (1, H, W, Cout)  f32
    xbr_ref = next(it) if want_xbr else None      # (1, H, W, Cin)   f32
    hpad_ref = next(it)                           # (H+2d1, W+2d1, Cin) bf16 scratch
    bpad_ref = next(it)                           # (H+2d2, W+2d2, Cm)  bf16 scratch

    _, H, W, Cin = x_ref.shape
    Cm = w2a_ref.shape[1]
    Cout = w2b1_ref.shape[1]

    # Zero the padded scratches: the borders are the convolutions' zero padding;
    # the interiors are fully overwritten below.
    hpad_ref[...] = jnp.zeros_like(hpad_ref)
    bpad_ref[...] = jnp.zeros_like(bpad_ref)

    # bn_branch2a + relu (f32 on the VPU).
    h = jnp.maximum(x_ref[0] * s2a_ref[...] + b2a_ref[...], 0.0)
    if want_xbr:
        xbr_ref[0] = h.astype(xbr_ref.dtype)
    hpad_ref[d1:d1 + H, d1:d1 + W, :] = h.astype(jnp.bfloat16)

    # conv_branch2a: 3x3, dilation d1, padding d1.  The 9 taps are static slices
    # of the padded scratch (pure address arithmetic), stacked along the
    # contraction axis so the conv is a single wide MXU matmul with K = 9*Cin.
    taps_a = [hpad_ref[ky * d1:ky * d1 + H, kx * d1:kx * d1 + W, :]
              for ky in range(3) for kx in range(3)]
    col_a = jnp.concatenate(taps_a, axis=-1).reshape(H * W, 9 * Cin)
    b2 = jnp.dot(col_a, w2a_ref[...], preferred_element_type=jnp.float32)

    # bn_branch2b1 + relu (f32), then stage into the second padded scratch (bf16).
    b2 = jnp.maximum(b2 * s2b1_ref[...] + b2b1_ref[...], 0.0)
    bpad_ref[d2:d2 + H, d2:d2 + W, :] = b2.reshape(H, W, Cm).astype(jnp.bfloat16)

    # conv_branch2b1: 3x3, dilation d2, padding d2 -> branch2 accumulator (f32).
    taps_b = [bpad_ref[ky * d2:ky * d2 + H, kx * d2:kx * d2 + W, :]
              for ky in range(3) for kx in range(3)]
    col_b = jnp.concatenate(taps_b, axis=-1).reshape(H * W, 9 * Cm)
    out = jnp.dot(col_b, w2b1_ref[...], preferred_element_type=jnp.float32)

    # branch1 last, accumulated straight into the branch2 buffer.
    if same_shape:
        out = out + x_ref[0].reshape(H * W, Cout)                 # identity skip
    else:
        center = hpad_ref[d1:d1 + H, d1:d1 + W, :].reshape(H * W, Cin)
        out = out + jnp.dot(center, w1_ref[...], preferred_element_type=jnp.float32)

    out_ref[0] = out.reshape(H, W, Cout).astype(out_ref.dtype)


def resblock_forward(x, params, *, stride=1, first_dilation=None, dilation=1,
                     get_x_bn_relu=False):
    """ResBlock forward.  x: (N, H, W, Cin) f32 NHWC.

    params (natural, unpadded shapes):
      s2a, b2a   : (Cin,)   folded eval-mode BN scale/bias
      s2b1, b2b1 : (Cm,)
      w2a        : (3, 3, Cin, Cm)   HWIO
      w2b1       : (3, 3, Cm, Cout)  HWIO
      w1         : (Cin, Cout)       present only when in_channels != out_channels
    """
    if stride != 1:
        # TODO(synk): stride > 1 (spatial subsampling) not implemented.
        raise NotImplementedError("stride > 1 not implemented")
    d1 = int(dilation if first_dilation is None else first_dilation)
    d2 = int(dilation)

    N, H, W, Cin = x.shape
    Cm = params["w2a"].shape[-1]
    Cout = params["w2b1"].shape[-1]
    same_shape = "w1" not in params
    if same_shape:
        assert Cin == Cout, "identity skip requires in_channels == out_channels"
    if W % 8:
        # Keep the (H, W, C) -> (H*W, C) reshapes layout-preserving.
        raise NotImplementedError("W must be a multiple of 8")

    Cin_p = _round_up(Cin, _LANE)
    Cm_p = _round_up(Cm, _LANE)
    Cout_p = _round_up(Cout, _LANE)
    f32, bf16 = jnp.float32, jnp.bfloat16

    def pad_last(a, tgt):
        pad = tgt - a.shape[-1]
        return a if pad == 0 else jnp.pad(a, [(0, 0)] * (a.ndim - 1) + [(0, pad)])

    # Lane-dense packing: zero-pad every channel dim to a multiple of 128 (zero
    # scale/bias/weights keep the padded channels exactly zero), flatten 3x3
    # weights into im2col layout and cast MXU weights to bf16.
    x_p = pad_last(x.astype(f32), Cin_p)
    s2a = pad_last(params["s2a"].reshape(1, Cin).astype(f32), Cin_p)
    b2a = pad_last(params["b2a"].reshape(1, Cin).astype(f32), Cin_p)
    s2b1 = pad_last(params["s2b1"].reshape(1, Cm).astype(f32), Cm_p)
    b2b1 = pad_last(params["b2b1"].reshape(1, Cm).astype(f32), Cm_p)
    w2a = jnp.pad(params["w2a"].astype(f32),
                  ((0, 0), (0, 0), (0, Cin_p - Cin), (0, Cm_p - Cm))
                  ).astype(bf16).reshape(9 * Cin_p, Cm_p)
    w2b1 = jnp.pad(params["w2b1"].astype(f32),
                   ((0, 0), (0, 0), (0, Cm_p - Cm), (0, Cout_p - Cout))
                   ).astype(bf16).reshape(9 * Cm_p, Cout_p)

    inputs = [x_p, s2a, b2a]
    in_specs = [
        pl.BlockSpec((1, H, W, Cin_p), lambda n: (n, 0, 0, 0)),
        pl.BlockSpec((1, Cin_p), lambda n: (0, 0)),
        pl.BlockSpec((1, Cin_p), lambda n: (0, 0)),
    ]
    if not same_shape:
        w1 = jnp.pad(params["w1"].astype(f32),
                     ((0, Cin_p - Cin), (0, Cout_p - Cout))).astype(bf16)
        inputs.append(w1)
        in_specs.append(pl.BlockSpec((Cin_p, Cout_p), lambda n: (0, 0)))
    inputs += [w2a, s2b1, b2b1, w2b1]
    in_specs += [
        pl.BlockSpec((9 * Cin_p, Cm_p), lambda n: (0, 0)),
        pl.BlockSpec((1, Cm_p), lambda n: (0, 0)),
        pl.BlockSpec((1, Cm_p), lambda n: (0, 0)),
        pl.BlockSpec((9 * Cm_p, Cout_p), lambda n: (0, 0)),
    ]

    out_spec_y = pl.BlockSpec((1, H, W, Cout_p), lambda n: (n, 0, 0, 0))
    shape_y = jax.ShapeDtypeStruct((N, H, W, Cout_p), x.dtype)
    if get_x_bn_relu:
        out_shape = (shape_y, jax.ShapeDtypeStruct((N, H, W, Cin_p), x.dtype))
        out_specs = (out_spec_y,
                     pl.BlockSpec((1, H, W, Cin_p), lambda n: (n, 0, 0, 0)))
    else:
        out_shape = shape_y
        out_specs = out_spec_y

    scratch_shapes = [
        pltpu.VMEM((H + 2 * d1, W + 2 * d1, Cin_p), bf16),
        pltpu.VMEM((H + 2 * d2, W + 2 * d2, Cm_p), bf16),
    ]

    # Scoped-VMEM budget + advisory cost estimate.
    hw = H * W
    matmul_flops = (9 * Cin_p * Cm_p + 9 * Cm_p * Cout_p
                    + (0 if same_shape else Cin_p * Cout_p))
    weight_bytes = (2 * (9 * Cin_p * Cm_p + 9 * Cm_p * Cout_p
                         + (0 if same_shape else Cin_p * Cout_p))
                    + 8 * (Cin_p + Cm_p))
    io_block_bytes = 4 * hw * (Cin_p + Cout_p + (Cin_p if get_x_bn_relu else 0))
    scratch_bytes = 2 * ((H + 2 * d1) * (W + 2 * d1) * Cin_p
                         + (H + 2 * d2) * (W + 2 * d2) * Cm_p)
    temp_bytes = 3 * hw * 9 * max(Cin_p, Cm_p) * 2 + 6 * hw * max(Cm_p, Cout_p) * 4
    est = 2 * (io_block_bytes + weight_bytes) + scratch_bytes + temp_bytes + (4 << 20)
    vmem_limit = int(min(max(est, 32 << 20), 64 << 20))
    cost = pl.CostEstimate(flops=2 * N * hw * matmul_flops, transcendentals=0,
                           bytes_accessed=N * io_block_bytes + weight_bytes)

    kernel = functools.partial(_resblock_kernel, d1, d2, same_shape, get_x_bn_relu)
    result = pl.pallas_call(
        kernel,
        out_shape=out_shape,
        grid_spec=pltpu.PrefetchScalarGridSpec(
            num_scalar_prefetch=0,
            grid=(N,),
            in_specs=in_specs,
            out_specs=out_specs,
            scratch_shapes=scratch_shapes,
        ),
        compiler_params=pltpu.CompilerParams(
            dimension_semantics=("parallel",),
            vmem_limit_bytes=vmem_limit,
        ),
        cost_estimate=cost,
    )(*inputs)

    if get_x_bn_relu:
        y_p, xbr_p = result
        return y_p[..., :Cout], xbr_p[..., :Cin]
    return result[..., :Cout]


def init_params(key, in_channels, mid_channels, out_channels, *, same_shape):
    ks = jax.random.split(key, 5)

    def folded_bn(k, c):
        k1, k2, k3, k4 = jax.random.split(k, 4)
        gamma = 1.0 + 0.1 * jax.random.normal(k1, (c,), jnp.float32)
        beta = 0.1 * jax.random.normal(k2, (c,), jnp.float32)
        mean = 0.1 * jax.random.normal(k3, (c,), jnp.float32)
        var = jax.random.uniform(k4, (c,), jnp.float32, minval=0.5, maxval=1.5)
        scale = gamma * lax.rsqrt(var + 1e-5)
        return scale, beta - mean * scale

    s2a, b2a = folded_bn(ks[0], in_channels)
    s2b1, b2b1 = folded_bn(ks[1], mid_channels)
    p = dict(
        s2a=s2a, b2a=b2a, s2b1=s2b1, b2b1=b2b1,
        w2a=0.1 * jax.random.normal(ks[2], (3, 3, in_channels, mid_channels), jnp.float32),
        w2b1=0.1 * jax.random.normal(ks[3], (3, 3, mid_channels, out_channels), jnp.float32),
    )
    if not same_shape:
        p["w1"] = 0.1 * jax.random.normal(ks[4], (in_channels, out_channels), jnp.float32)
    return p


def resblock_reference(x, p, *, first_dilation=None, dilation=1, get_x_bn_relu=False):
    """Pure-JAX reference (eval mode, stride=1) with the same bf16-operand /
    f32-accumulate matmul precision as the kernel."""
    d1 = dilation if first_dilation is None else first_dilation
    dn = ("NHWC", "HWIO", "NHWC")
    bf16 = jnp.bfloat16

    h = jnp.maximum(x * p["s2a"] + p["b2a"], 0.0)
    h_bf = h.astype(bf16)
    if "w1" in p:
        branch1 = lax.conv_general_dilated(
            h_bf, p["w1"].astype(bf16)[None, None], (1, 1), "VALID",
            dimension_numbers=dn, preferred_element_type=jnp.float32)
    else:
        branch1 = x
    b2 = lax.conv_general_dilated(
        h_bf, p["w2a"].astype(bf16), (1, 1), ((d1, d1), (d1, d1)),
        rhs_dilation=(d1, d1), dimension_numbers=dn,
        preferred_element_type=jnp.float32)
    b2 = jnp.maximum(b2 * p["s2b1"] + p["b2b1"], 0.0)
    b2 = lax.conv_general_dilated(
        b2.astype(bf16), p["w2b1"].astype(bf16), (1, 1),
        ((dilation, dilation), (dilation, dilation)),
        rhs_dilation=(dilation, dilation), dimension_numbers=dn,
        preferred_element_type=jnp.float32)
    out = branch1 + b2
    if get_x_bn_relu:
        return out, h
    return out


if __name__ == "__main__":
    key = jax.random.PRNGKey(0)
    k1, k2, k3, k4 = jax.random.split(key, 4)

    # Config A: in_channels != out_channels (conv_branch1 path), dilation 1,
    # also exercises the optional x_bn_relu output.
    N, H, W = 2, 16, 16
    cin, cmid, cout = 16, 16, 32
    x = jax.random.normal(k1, (N, H, W, cin), jnp.float32)
    params = init_params(k2, cin, cmid, cout, same_shape=False)

    y, xbr = resblock_forward(x, params, dilation=1, get_x_bn_relu=True)
    y = jax.block_until_ready(y)
    y_ref, xbr_expect = resblock_reference(x, params, dilation=1, get_x_bn_relu=True)
    assert y.shape == (N, H, W, cout) and xbr.shape == x.shape
    err_y = float(jnp.max(jnp.abs(y - y_ref)))
    err_x = float(jnp.max(jnp.abs(xbr - xbr_expect)))
    assert jnp.allclose(y, y_ref, rtol=2e-3, atol=2e-3), f"out err {err_y}"
    assert jnp.allclose(xbr, xbr_expect, rtol=1e-5, atol=1e-5), f"x_bn_relu err {err_x}"

    # Config B: same_shape identity skip, first_dilation=1, dilation=2,
    # x_bn_relu output elided (no extra writeback DMA).
    cin2 = cout2 = 32
    cmid2 = 16
    x2 = jax.random.normal(k3, (1, H, W, cin2), jnp.float32)
    params2 = init_params(k4, cin2, cmid2, cout2, same_shape=True)

    y2 = resblock_forward(x2, params2, first_dilation=1, dilation=2)
    y2 = jax.block_until_ready(y2)
    y2_ref = resblock_reference(x2, params2, first_dilation=1, dilation=2)
    err2 = float(jnp.max(jnp.abs(y2 - y2_ref)))
    assert jnp.allclose(y2, y2_ref, rtol=2e-3, atol=2e-3), f"same_shape err {err2}"

    print("KERNEL_OK")
</pallas_src>

<mosaic_0001>
module attributes {stable_mosaic.version = 11 : i64} {
  func.func @_resblock_kernel(%arg0: i32, %arg1: memref<1x16x16x128xf32, #tpu.memory_space<vmem>>, %arg2: memref<1x128xf32, #tpu.memory_space<vmem>>, %arg3: memref<1x128xf32, #tpu.memory_space<vmem>>, %arg4: memref<128x128xbf16, #tpu.memory_space<vmem>>, %arg5: memref<1152x128xbf16, #tpu.memory_space<vmem>>, %arg6: memref<1x128xf32, #tpu.memory_space<vmem>>, %arg7: memref<1x128xf32, #tpu.memory_space<vmem>>, %arg8: memref<1152x128xbf16, #tpu.memory_space<vmem>>, %arg9: memref<1x16x16x128xf32, #tpu.memory_space<vmem>>, %arg10: memref<1x16x16x128xf32, #tpu.memory_space<vmem>>, %arg11: memref<18x18x128xbf16, #tpu.memory_space<vmem>>, %arg12: memref<18x18x128xbf16, #tpu.memory_space<vmem>>) attributes {dimension_semantics = [#tpu.dimension_semantics<parallel>], iteration_bounds = array<i64: 2>, scalar_prefetch = 0 : i64, scratch_operands = 2 : i64, tpu.core_type = #tpu.core_type<tc>, window_params = [{transform_indices = @transform_0, window_bounds = array<i64: 1, 16, 16, 128>}, {pipeline_mode = #tpu.pipeline_mode<synchronous>, transform_indices = @transform_1, window_bounds = array<i64: 1, 128>}, {pipeline_mode = #tpu.pipeline_mode<synchronous>, transform_indices = @transform_2, window_bounds = array<i64: 1, 128>}, {pipeline_mode = #tpu.pipeline_mode<synchronous>, transform_indices = @transform_3, window_bounds = array<i64: 128, 128>}, {pipeline_mode = #tpu.pipeline_mode<synchronous>, transform_indices = @transform_4, window_bounds = array<i64: 1152, 128>}, {pipeline_mode = #tpu.pipeline_mode<synchronous>, transform_indices = @transform_5, window_bounds = array<i64: 1, 128>}, {pipeline_mode = #tpu.pipeline_mode<synchronous>, transform_indices = @transform_6, window_bounds = array<i64: 1, 128>}, {pipeline_mode = #tpu.pipeline_mode<synchronous>, transform_indices = @transform_7, window_bounds = array<i64: 1152, 128>}, {transform_indices = @transform_8, window_bounds = array<i64: 1, 16, 16, 128>}, {transform_indices = @transform_9, window_bounds = array<i64: 1, 16, 16, 128>}]} {
    %cst = arith.constant 0.000000e+00 : bf16
    %0 = vector.broadcast %cst : bf16 to vector<18x18x128xbf16>
    %c0 = arith.constant 0 : index
    %c0_0 = arith.constant 0 : index
    %c0_1 = arith.constant 0 : index
    %1 = vector.load %arg11[%c0, %c0_0, %c0_1] : memref<18x18x128xbf16, #tpu.memory_space<vmem>>, vector<18x18x128xbf16>
    tpu.vector_store %arg11[%c0, %c0_0, %c0_1], %0 {strides = array<i32>} : memref<18x18x128xbf16, #tpu.memory_space<vmem>>, vector<18x18x128xbf16>,
    %cst_2 = arith.constant 0.000000e+00 : bf16
    %2 = vector.broadcast %cst_2 : bf16 to vector<18x18x128xbf16>
    %c0_3 = arith.constant 0 : index
    %c0_4 = arith.constant 0 : index
    %c0_5 = arith.constant 0 : index
    %3 = vector.load %arg12[%c0_3, %c0_4, %c0_5] : memref<18x18x128xbf16, #tpu.memory_space<vmem>>, vector<18x18x128xbf16>
    tpu.vector_store %arg12[%c0_3, %c0_4, %c0_5], %2 {strides = array<i32>} : memref<18x18x128xbf16, #tpu.memory_space<vmem>>, vector<18x18x128xbf16>,
    %c0_6 = arith.constant 0 : index
    %c0_7 = arith.constant 0 : index
    %c0_8 = arith.constant 0 : index
    %c0_9 = arith.constant 0 : index
    %4 = vector.load %arg1[%c0_6, %c0_7, %c0_8, %c0_9] : memref<1x16x16x128xf32, #tpu.memory_space<vmem>>, vector<1x16x16x128xf32>
    %5 = vector.shape_cast %4 : vector<1x16x16x128xf32> to vector<16x16x128xf32>
    %c0_10 = arith.constant 0 : index
    %c0_11 = arith.constant 0 : index
    %6 = vector.load %arg2[%c0_10, %c0_11] : memref<1x128xf32, #tpu.memory_space<vmem>>, vector<1x128xf32>
    %7 = vector.shape_cast %6 : vector<1x128xf32> to vector<1x1x128xf32>
    %8 = vector.broadcast %7 : vector<1x1x128xf32> to vector<16x16x128xf32>
    %9 = arith.mulf %5, %8 : vector<16x16x128xf32>
    %c0_12 = arith.constant 0 : index
    %c0_13 = arith.constant 0 : index
    %10 = vector.load %arg3[%c0_12, %c0_13] : memref<1x128xf32, #tpu.memory_space<vmem>>, vector<1x128xf32>
    %11 = vector.shape_cast %10 : vector<1x128xf32> to vector<1x1x128xf32>
    %12 = vector.broadcast %11 : vector<1x1x128xf32> to vector<16x16x128xf32>
    %13 = arith.addf %9, %12 : vector<16x16x128xf32>
    %cst_14 = arith.constant 0.000000e+00 : f32
    %14 = vector.broadcast %cst_14 : f32 to vector<16x16x128xf32>
    %15 = arith.maximumf %13, %14 : vector<16x16x128xf32>
    %c0_15 = arith.constant 0 : index
    %c0_16 = arith.constant 0 : index
    %c0_17 = arith.constant 0 : index
    %c0_18 = arith.constant 0 : index
    %16 = vector.load %arg10[%c0_15, %c0_16, %c0_17, %c0_18] : memref<1x16x16x128xf32, #tpu.memory_space<vmem>>, vector<1x16x16x128xf32>
    %17 = vector.shape_cast %16 : vector<1x16x16x128xf32> to vector<16x16x128xf32>
    %18 = vector.shape_cast %15 : vector<16x16x128xf32> to vector<1x16x16x128xf32>
    tpu.vector_store %arg10[%c0_15, %c0_16, %c0_17, %c0_18], %18 {strides = array<i32>} : memref<1x16x16x128xf32, #tpu.memory_space<vmem>>, vector<1x16x16x128xf32>,
    %19 = arith.truncf %15 : vector<16x16x128xf32> to vector<16x16x128xbf16>
    %c1 = arith.constant 1 : index
    %c1_19 = arith.constant 1 : index
    %c0_20 = arith.constant 0 : index
    %20 = vector.load %arg11[%c1, %c1_19, %c0_20] : memref<18x18x128xbf16, #tpu.memory_space<vmem>>, vector<16x16x128xbf16>
    tpu.vector_store %arg11[%c1, %c1_19, %c0_20], %19 {strides = array<i32>} : memref<18x18x128xbf16, #tpu.memory_space<vmem>>, vector<16x16x128xbf16>,
    %c0_21 = arith.constant 0 : index
    %c0_22 = arith.constant 0 : index
    %c0_23 = arith.constant 0 : index
    %21 = vector.load %arg11[%c0_21, %c0_22, %c0_23] : memref<18x18x128xbf16, #tpu.memory_space<vmem>>, vector<16x16x128xbf16>
    %c0_24 = arith.constant 0 : index
    %c1_25 = arith.constant 1 : index
    %c0_26 = arith.constant 0 : index
    %22 = vector.load %arg11[%c0_24, %c1_25, %c0_26] : memref<18x18x128xbf16, #tpu.memory_space<vmem>>, vector<16x16x128xbf16>
    %c0_27 = arith.constant 0 : index
    %c2 = arith.constant 2 : index
    %c0_28 = arith.constant 0 : index
    %23 = vector.load %arg11[%c0_27, %c2, %c0_28] : memref<18x18x128xbf16, #tpu.memory_space<vmem>>, vector<16x16x128xbf16>
    %c1_29 = arith.constant 1 : index
    %c0_30 = arith.constant 0 : index
    %c0_31 = arith.constant 0 : index
    %24 = vector.load %arg11[%c1_29, %c0_30, %c0_31] : memref<18x18x128xbf16, #tpu.memory_space<vmem>>, vector<16x16x128xbf16>
    %c1_32 = arith.constant 1 : index
    %c1_33 = arith.constant 1 : index
    %c0_34 = arith.constant 0 : index
    %25 = vector.load %arg11[%c1_32, %c1_33, %c0_34] : memref<18x18x128xbf16, #tpu.memory_space<vmem>>, vector<16x16x128xbf16>
    %c1_35 = arith.constant 1 : index
    %c2_36 = arith.constant 2 : index
    %c0_37 = arith.constant 0 : index
    %26 = vector.load %arg11[%c1_35, %c2_36, %c0_37] : memref<18x18x128xbf16, #tpu.memory_space<vmem>>, vector<16x16x128xbf16>
    %c2_38 = arith.constant 2 : index
    %c0_39 = arith.constant 0 : index
    %c0_40 = arith.constant 0 : index
    %27 = vector.load %arg11[%c2_38, %c0_39, %c0_40] : memref<18x18x128xbf16, #tpu.memory_space<vmem>>, vector<16x16x128xbf16>
    %c2_41 = arith.constant 2 : index
    %c1_42 = arith.constant 1 : index
    %c0_43 = arith.constant 0 : index
    %28 = vector.load %arg11[%c2_41, %c1_42, %c0_43] : memref<18x18x128xbf16, #tpu.memory_space<vmem>>, vector<16x16x128xbf16>
    %c2_44 = arith.constant 2 : index
    %c2_45 = arith.constant 2 : index
    %c0_46 = arith.constant 0 : index
    %29 = vector.load %arg11[%c2_44, %c2_45, %c0_46] : memref<18x18x128xbf16, #tpu.memory_space<vmem>>, vector<16x16x128xbf16>
    %30 = tpu.concatenate %21, %22, %23, %24, %25, %26, %27, %28, %29 in 2 : vector<16x16x128xbf16>, vector<16x16x128xbf16>, vector<16x16x128xbf16>, vector<16x16x128xbf16>, vector<16x16x128xbf16>, vector<16x16x128xbf16>, vector<16x16x128xbf16>, vector<16x16x128xbf16>, vector<16x16x128xbf16> -> vector<16x16x1152xbf16>
    %31 = vector.shape_cast %30 : vector<16x16x1152xbf16> to vector<256x1152xbf16>
    %c0_47 = arith.constant 0 : index
    %c0_48 = arith.constant 0 : index
    %32 = vector.load %arg5[%c0_47, %c0_48] : memref<1152x128xbf16, #tpu.memory_space<vmem>>, vector<1152x128xbf16>
    %cst_49 = arith.constant dense<0.000000e+00> : vector<256x128xf32>
    %33 = tpu.matmul %31, %32, %cst_49 {dimension_numbers = #tpu.dot_dimension_numbers<[1], [0], [0], [1], [0, 0, 1, 1], [], []>} : vector<256x1152xbf16>, vector<1152x128xbf16>, vector<256x128xf32> -> vector<256x128xf32>
    %c0_50 = arith.constant 0 : index
    %c0_51 = arith.constant 0 : index
    %34 = vector.load %arg6[%c0_50, %c0_51] : memref<1x128xf32, #tpu.memory_space<vmem>>, vector<1x128xf32>
    %35 = vector.broadcast %34 : vector<1x128xf32> to vector<256x128xf32>
    %36 = arith.mulf %33, %35 : vector<256x128xf32>
    %c0_52 = arith.constant 0 : index
    %c0_53 = arith.constant 0 : index
    %37 = vector.load %arg7[%c0_52, %c0_53] : memref<1x128xf32, #tpu.memory_space<vmem>>, vector<1x128xf32>
    %38 = vector.broadcast %37 : vector<1x128xf32> to vector<256x128xf32>
    %39 = arith.addf %36, %38 : vector<256x128xf32>
    %cst_54 = arith.constant 0.000000e+00 : f32
    %40 = vector.broadcast %cst_54 : f32 to vector<256x128xf32>
    %41 = arith.maximumf %39, %40 : vector<256x128xf32>
    %42 = vector.shape_cast %41 : vector<256x128xf32> to vector<16x16x128xf32>
    %43 = arith.truncf %42 : vector<16x16x128xf32> to vector<16x16x128xbf16>
    %c1_55 = arith.constant 1 : index
    %c1_56 = arith.constant 1 : index
    %c0_57 = arith.constant 0 : index
    %44 = vector.load %arg12[%c1_55, %c1_56, %c0_57] : memref<18x18x128xbf16, #tpu.memory_space<vmem>>, vector<16x16x128xbf16>
    tpu.vector_store %arg12[%c1_55, %c1_56, %c0_57], %43 {strides = array<i32>} : memref<18x18x128xbf16, #tpu.memory_space<vmem>>, vector<16x16x128xbf16>,
    %c0_58 = arith.constant 0 : index
    %c0_59 = arith.constant 0 : index
    %c0_60 = arith.constant 0 : index
    %45 = vector.load %arg12[%c0_58, %c0_59, %c0_60] : memref<18x18x128xbf16, #tpu.memory_space<vmem>>, vector<16x16x128xbf16>
    %c0_61 = arith.constant 0 : index
    %c1_62 = arith.constant 1 : index
    %c0_63 = arith.constant 0 : index
    %46 = vector.load %arg12[%c0_61, %c1_62, %c0_63] : memref<18x18x128xbf16, #tpu.memory_space<vmem>>, vector<16x16x128xbf16>
    %c0_64 = arith.constant 0 : index
    %c2_65 = arith.constant 2 : index
    %c0_66 = arith.constant 0 : index
    %47 = vector.load %arg12[%c0_64, %c2_65, %c0_66] : memref<18x18x128xbf16, #tpu.memory_space<vmem>>, vector<16x16x128xbf16>
    %c1_67 = arith.constant 1 : index
    %c0_68 = arith.constant 0 : index
    %c0_69 = arith.constant 0 : index
    %48 = vector.load %arg12[%c1_67, %c0_68, %c0_69] : memref<18x18x128xbf16, #tpu.memory_space<vmem>>, vector<16x16x128xbf16>
    %c1_70 = arith.constant 1 : index
    %c1_71 = arith.constant 1 : index
    %c0_72 = arith.constant 0 : index
    %49 = vector.load %arg12[%c1_70, %c1_71, %c0_72] : memref<18x18x128xbf16, #tpu.memory_space<vmem>>, vector<16x16x128xbf16>
    %c1_73 = arith.constant 1 : index
    %c2_74 = arith.constant 2 : index
    %c0_75 = arith.constant 0 : index
    %50 = vector.load %arg12[%c1_73, %c2_74, %c0_75] : memref<18x18x128xbf16, #tpu.memory_space<vmem>>, vector<16x16x128xbf16>
    %c2_76 = arith.constant 2 : index
    %c0_77 = arith.constant 0 : index
    %c0_78 = arith.constant 0 : index
    %51 = vector.load %arg12[%c2_76, %c0_77, %c0_78] : memref<18x18x128xbf16, #tpu.memory_space<vmem>>, vector<16x16x128xbf16>
    %c2_79 = arith.constant 2 : index
    %c1_80 = arith.constant 1 : index
    %c0_81 = arith.constant 0 : index
    %52 = vector.load %arg12[%c2_79, %c1_80, %c0_81] : memref<18x18x128xbf16, #tpu.memory_space<vmem>>, vector<16x16x128xbf16>
    %c2_82 = arith.constant 2 : index
    %c2_83 = arith.constant 2 : index
    %c0_84 = arith.constant 0 : index
    %53 = vector.load %arg12[%c2_82, %c2_83, %c0_84] : memref<18x18x128xbf16, #tpu.memory_space<vmem>>, vector<16x16x128xbf16>
    %54 = tpu.concatenate %45, %46, %47, %48, %49, %50, %51, %52, %53 in 2 : vector<16x16x128xbf16>, vector<16x16x128xbf16>, vector<16x16x128xbf16>, vector<16x16x128xbf16>, vector<16x16x128xbf16>, vector<16x16x128xbf16>, vector<16x16x128xbf16>, vector<16x16x128xbf16>, vector<16x16x128xbf16> -> vector<16x16x1152xbf16>
    %55 = vector.shape_cast %54 : vector<16x16x1152xbf16> to vector<256x1152xbf16>
    %c0_85 = arith.constant 0 : index
    %c0_86 = arith.constant 0 : index
    %56 = vector.load %arg8[%c0_85, %c0_86] : memref<1152x128xbf16, #tpu.memory_space<vmem>>, vector<1152x128xbf16>
    %cst_87 = arith.constant dense<0.000000e+00> : vector<256x128xf32>
    %57 = tpu.matmul %55, %56, %cst_87 {dimension_numbers = #tpu.dot_dimension_numbers<[1], [0], [0], [1], [0, 0, 1, 1], [], []>} : vector<256x1152xbf16>, vector<1152x128xbf16>, vector<256x128xf32> -> vector<256x128xf32>
    %c1_88 = arith.constant 1 : index
    %c1_89 = arith.constant 1 : index
    %c0_90 = arith.constant 0 : index
    %58 = vector.load %arg11[%c1_88, %c1_89, %c0_90] : memref<18x18x128xbf16, #tpu.memory_space<vmem>>, vector<16x16x128xbf16>
    %59 = vector.shape_cast %58 : vector<16x16x128xbf16> to vector<256x128xbf16>
    %c0_91 = arith.constant 0 : index
    %c0_92 = arith.constant 0 : index
    %60 = vector.load %arg4[%c0_91, %c0_92] : memref<128x128xbf16, #tpu.memory_space<vmem>>, vector<128x128xbf16>
    %cst_93 = arith.constant dense<0.000000e+00> : vector<256x128xf32>
    %61 = tpu.matmul %59, %60, %cst_93 {dimension_numbers = #tpu.dot_dimension_numbers<[1], [0], [0], [1], [0, 0, 1, 1], [], []>} : vector<256x128xbf16>, vector<128x128xbf16>, vector<256x128xf32> -> vector<256x128xf32>
    %62 = arith.addf %57, %61 : vector<256x128xf32>
    %63 = vector.shape_cast %62 : vector<256x128xf32> to vector<16x16x128xf32>
    %c0_94 = arith.constant 0 : index
    %c0_95 = arith.constant 0 : index
    %c0_96 = arith.constant 0 : index
    %c0_97 = arith.constant 0 : index
    %64 = vector.load %arg9[%c0_94, %c0_95, %c0_96, %c0_97] : memref<1x16x16x128xf32, #tpu.memory_space<vmem>>, vector<1x16x16x128xf32>
    %65 = vector.shape_cast %64 : vector<1x16x16x128xf32> to vector<16x16x128xf32>
    %66 = vector.shape_cast %63 : vector<16x16x128xf32> to vector<1x16x16x128xf32>
    tpu.vector_store %arg9[%c0_94, %c0_95, %c0_96, %c0_97], %66 {strides = array<i32>} : memref<1x16x16x128xf32, #tpu.memory_space<vmem>>, vector<1x16x16x128xf32>,
    return
  }
  func.func @transform_0(%arg0: i32) -> (i32, i32, i32, i32) {
    %c0_i32 = arith.constant 0 : i32
    %c0_i32_0 = arith.constant 0 : i32
    %c0_i32_1 = arith.constant 0 : i32
    %c0_i32_2 = arith.constant 0 : i32
    return %arg0, %c0_i32, %c0_i32_0, %c0_i32_1 : i32, i32, i32, i32
  }
  func.func @transform_1(%arg0: i32) -> (i32, i32) {
    %c0_i32 = arith.constant 0 : i32
    %c0_i32_0 = arith.constant 0 : i32
    %c0_i32_1 = arith.constant 0 : i32
    return %c0_i32, %c0_i32_0 : i32, i32
  }
  func.func @transform_2(%arg0: i32) -> (i32, i32) {
    %c0_i32 = arith.constant 0 : i32
    %c0_i32_0 = arith.constant 0 : i32
    %c0_i32_1 = arith.constant 0 : i32
    return %c0_i32, %c0_i32_0 : i32, i32
  }
  func.func @transform_3(%arg0: i32) -> (i32, i32) {
    %c0_i32 = arith.constant 0 : i32
    %c0_i32_0 = arith.constant 0 : i32
    %c0_i32_1 = arith.constant 0 : i32
    return %c0_i32, %c0_i32_0 : i32, i32
  }
  func.func @transform_4(%arg0: i32) -> (i32, i32) {
    %c0_i32 = arith.constant 0 : i32
    %c0_i32_0 = arith.constant 0 : i32
    %c0_i32_1 = arith.constant 0 : i32
    return %c0_i32, %c0_i32_0 : i32, i32
  }
  func.func @transform_5(%arg0: i32) -> (i32, i32) {
    %c0_i32 = arith.constant 0 : i32
    %c0_i32_0 = arith.constant 0 : i32
    %c0_i32_1 = arith.constant 0 : i32
    return %c0_i32, %c0_i32_0 : i32, i32
  }
  func.func @transform_6(%arg0: i32) -> (i32, i32) {
    %c0_i32 = arith.constant 0 : i32
    %c0_i32_0 = arith.constant 0 : i32
    %c0_i32_1 = arith.constant 0 : i32
    return %c0_i32, %c0_i32_0 : i32, i32
  }
  func.func @transform_7(%arg0: i32) -> (i32, i32) {
    %c0_i32 = arith.constant 0 : i32
    %c0_i32_0 = arith.constant 0 : i32
    %c0_i32_1 = arith.constant 0 : i32
    return %c0_i32, %c0_i32_0 : i32, i32
  }
  func.func @transform_8(%arg0: i32) -> (i32, i32, i32, i32) {
    %c0_i32 = arith.constant 0 : i32
    %c0_i32_0 = arith.constant 0 : i32
    %c0_i32_1 = arith.constant 0 : i32
    %c0_i32_2 = arith.constant 0 : i32
    return %arg0, %c0_i32, %c0_i32_0, %c0_i32_1 : i32, i32, i32, i32
  }
  func.func @transform_9(%arg0: i32) -> (i32, i32, i32, i32) {
    %c0_i32 = arith.constant 0 : i32
    %c0_i32_0 = arith.constant 0 : i32
    %c0_i32_1 = arith.constant 0 : i32
    %c0_i32_2 = arith.constant 0 : i32
    return %arg0, %c0_i32, %c0_i32_0, %c0_i32_1 : i32, i32, i32, i32
  }
}

</mosaic_0001>

<bundles_post_ra>
// kernel: tpu_custom_call.1
= control target key start
LH: loop header
LB: loop body
LE: loop exit
PB: predicated region body
PF: predicated region fallthrough
CT: control target
= control target key end

     0   :  { %s14555_s0 = inlined_call_operand.hbm [shape: f32[2,16,16,128], index: 0, kind: input, shape index: {}]   ;;  %s14556_s1 = inlined_call_operand.vmem [shape: f32[1,128], index: 1, kind: input, shape index: {}]   ;;  %s14557_s2 = inlined_call_operand.vmem [shape: f32[1,128], index: 2, kind: input, shape index: {}]   ;;  %s14558_s3 = inlined_call_operand.hbm [shape: bf16[128,128], index: 3, kind: input, shape index: {}]   ;;  %s14559_s4 = inlined_call_operand.hbm [shape: bf16[1152,128], index: 4, kind: input, shape index: {}]   ;;  %s14560_s5 = inlined_call_operand.vmem [shape: f32[1,128], index: 5, kind: input, shape index: {}]   ;;  %s14561_s6 = inlined_call_operand.vmem [shape: f32[1,128], index: 6, kind: input, shape index: {}]   ;;  %s14562_s7 = inlined_call_operand.hbm [shape: bf16[1152,128], index: 7, kind: input, shape index: {}]   ;;  %s14563_s8 = inlined_call_operand.hbm [shape: f32[2,16,16,128], index: 8, kind: output, shape index: {0}]   ;;  %s14564_s9 = inlined_call_operand.hbm [shape: f32[2,16,16,128], index: 9, kind: output, shape index: {1}]  }
   0x1   :  { %14595 = sst [smem:[#allocation51_spill]] %s14563_s8 }
   0x2   :  { %15 = vsyncpa [#allocation5], 0 }
   0x3   :  { %17 = vsyncpa [#allocation5 + $0x1], 0 }
   0x4   :  { %18 = vsyncpa [#allocation8], 0 }
   0x5   :  { %19 = vsyncpa [#allocation11], 0 }
   0x6   :  { %20 = vsyncpa [#allocation6], 0 }
   0x7   :  { %22 = vsyncpa [#allocation6 + $0x1], 0 }
   0x8   :  { %23 = vsyncpa [#allocation14], 0 }
   0x9   :  { %25 = vsyncpa [#allocation14 + $0x1], 0  ;;  %s11483_s30 = smov 0   ;;  %s11485_s10 = smov 0  }
   0xa   :  { %s11487_s11 = smov 0   ;;  %s11489_s12 = smov 0  }
   0xb LB: > { %14596 = sst [smem:[#allocation20_spill]] %s11406_s30  ;;  %s11504_s13 = sadd.s32 4294967295, %s11418_s12   ;;  %s11418_s12 = sphi %s11489_s12, %s14767_s12   ;;  %s11414_s11 = sphi %s11487_s11, %s14766_s11   ;;  %s11410_s10 = sphi %s11485_s10, %s14765_s10   ;;  %s11406_s30 = sphi %s11483_s30, %s14764_s30  }
   0xc   : > { %s8724_s14 = sadd.s32 4294967294, %s11418_s12   ;;  %p51_p0 = scmp.ne.s32.totalorder %s11410_s10, %s11406_s30 }
   0xd   : > { %p14565_p1 = scmp.eq.s32.totalorder %s11504_s13, 0  ;;  %p228_p3 = scmp.eq.s32.totalorder %s8724_s14, 1 }
   0xe   : > { %p8725_p5 = scmp.ge.s32.totalorder %s11418_s12, 1  ;;  %p261_p7 = scmp.lt.s32.totalorder %s11418_s12, 3 }
   0xf   : > { %p11513_p4 = por %p14565_p1, %p51_p0  ;;  %p11518_p6 = por %p228_p3, %p51_p0 }
  0x10   : > { %p11523_p8 = pnand %p8725_p5, %p261_p7  ;;  %s11420_s18 = smov [#allocation7]  }
  0x11   : > { %s14597_s15 = scalar_select %p11513_p4, 1, 0 }
  0x12   : > { %s14598_s16 = scalar_select %p11518_p6, 1, 0 }
  0x13   : > { %s14600_s17 = scalar_select %p11523_p8, 1, 0 }
  0x14   : > { %14599 = sst [smem:[#allocation21_spill]] %s14598_s16  ;;  %s279_s19 = sshll.u32 %s11420_s18, 4  ;;  %s11527_s19 = int_to_ptr.vmem [resolvable:$true] %s279_s19 }
  0x15   : > { %p10645_p9 = pneg %p11523_p8  ;;  %s11421_s21 = smov [#allocation9]  }
  0x16   : > { %s292_s22 = sshll.u32 %s11421_s21, 4  ;;  %s11422_s23 = smov [#allocation10]   ;;  %s11538_s22 = int_to_ptr.vmem [resolvable:$true] %s292_s22 }
  0x17   : > { %p11534_p11 = pnand %p10645_p9, %p14565_p1  ;;  %s11540_s24 = sshll.u32 %s11422_s23, 4  ;;  %s312_s24 = int_to_ptr.vmem [resolvable:$true] %s11540_s24 }
  0x18   : > { %s11198_s27 = scalar_lea.hbm %s14558_s3, 1024 }
  0x19   : > { %p11199_p12 = scmp.ne.s32.totalorder %s14558_s3, %s11198_s27  ;;  %p11550_p13 = pneg %p11534_p11 }
  0x1a   : > { %p11205_p5 = scmp.lt.u32.totalorder %s11198_s27, %s14558_s3 }
  0x1b   : > { %p11201_p0 = pnand %p11550_p13, %p11199_p12 }
  0x1d   : > { %p11202_p3 = pneg %p11201_p0 }
  0x1f   : > { %p11207_p7 = pnand %p11205_p5, %p11202_p3 }
  0x21   : > { %11210 = shalt.err (!%p11207_p7)
}
  0x22   : > { %s11211_s23 = scalar_lea.vmem %s11527_s19, 1024  ;;  %p11219_p2 = scmp.lt.s32.totalorder %s11527_s19, %s11527_s19 }
  0x23   : > { %p11212_p9 = scmp.ne.s32.totalorder %s11527_s19, %s11211_s23  ;;  %p11220_p6 = scmp.lt.s32.totalorder %s11211_s23, %s11211_s23 }
  0x25   : > { %p11214_p10 = pnand %p11212_p9, %p11550_p13  ;;  %p11221_p12 = por %p11220_p6, %p11219_p2 }
  0x27   : > { %p11215_p1 = pneg %p11214_p10 }
  0x29   : > { %p11222_p0 = pnand %p11221_p12, %p11215_p1 }
  0x2b   : > { %11225 = shalt.err (!%p11222_p0)
}
  0x2c   : > { %s11423_s25 = smov 64   ;;  %s11424_s26 = smov 4  }
  0x2d   : > { %10648 = dma.hbm_to_vmem [thread:$0]  (!%p11534_p11), %s14558_s3, 1024, %s11527_s19, [#allocation8], %s11423_s25, %s11423_s25, %s11424_s26  }
  0x2e   : > { %s11226_s21 = scalar_lea.hbm %s14559_s4, 9216 }
  0x2f   : > { %p11227_p1 = scmp.ne.s32.totalorder %s14559_s4, %s11226_s21  ;;  %p11233_p10 = scmp.lt.u32.totalorder %s11226_s21, %s14559_s4 }
  0x31   : > { %p11229_p2 = pnand %p11227_p1, %p11550_p13 }
  0x33   : > { %p11230_p6 = pneg %p11229_p2 }
  0x35   : > { %p11235_p3 = pnand %p11233_p10, %p11230_p6 }
  0x37   : > { %11238 = shalt.err (!%p11235_p3)
}
  0x38   : > { %s11239_s19 = scalar_lea.vmem %s11538_s22, 9216  ;;  %p11247_p12 = scmp.lt.s32.totalorder %s11538_s22, %s11538_s22 }
  0x39   : > { %p11240_p5 = scmp.ne.s32.totalorder %s11538_s22, %s11239_s19  ;;  %p11248_p0 = scmp.lt.s32.totalorder %s11239_s19, %s11239_s19 }
  0x3b   : > { %p11242_p7 = pnand %p11240_p5, %p11550_p13  ;;  %p11249_p1 = por %p11248_p0, %p11247_p12 }
  0x3d   : > { %p11243_p9 = pneg %p11242_p7 }
  0x3f   : > { %p11250_p2 = pnand %p11249_p1, %p11243_p9 }
  0x41   : > { %11253 = shalt.err (!%p11250_p2)
}
  0x42   : > { %10651 = dma.hbm_to_vmem [thread:$0]  (!%p11534_p11), %s14559_s4, 9216, %s11538_s22, [#allocation8], %s11423_s25, %s11423_s25, %s11424_s26  }
  0x43   : > { %s11254_s28 = scalar_lea.hbm %s14562_s7, 9216 }
  0x44   : > { %p11255_p6 = scmp.ne.s32.totalorder %s14562_s7, %s11254_s28  ;;  %p11261_p5 = scmp.lt.u32.totalorder %s11254_s28, %s14562_s7 }
  0x46   : > { %p11257_p10 = pnand %p11255_p6, %p11550_p13 }
  0x48   : > { %p11258_p3 = pneg %p11257_p10 }
  0x4a   : > { %p11263_p7 = pnand %p11261_p5, %p11258_p3 }
  0x4c   : > { %11266 = shalt.err (!%p11263_p7)
}
  0x4d   : > { %s11267_s19 = scalar_lea.vmem %s312_s24, 9216  ;;  %p11275_p1 = scmp.lt.s32.totalorder %s312_s24, %s312_s24 }
  0x4e   : > { %p11268_p9 = scmp.ne.s32.totalorder %s312_s24, %s11267_s19  ;;  %p11276_p2 = scmp.lt.s32.totalorder %s11267_s19, %s11267_s19 }
  0x50   : > { %p11270_p12 = pnand %p11268_p9, %p11550_p13  ;;  %p11277_p4 = por %p11276_p2, %p11275_p1 }
  0x52   : > { %p11271_p0 = pneg %p11270_p12 }
  0x54   : > { %p11278_p8 = pnand %p11277_p4, %p11271_p0 }
  0x56   : > { %11281 = shalt.err (!%p11278_p8)
}
  0x57   : > { %10654 = dma.hbm_to_vmem [thread:$0]  (!%p11534_p11), %s14562_s7, 9216, %s312_s24, [#allocation11], %s11423_s25, %s11423_s25, %s11424_s26  }
  0x58   : > { %s11623_s14 = sadd.s32 1, %s11418_s12   ;;  %s38_s30 = sadd.s32 1, %s11414_s11 }
  0x59   : > { %s35_s20 = ssub.s32 %s11418_s12, %s11623_s14  ;;  %p45_p8 = scmp.ne.s32.totalorder %s11414_s11, %s11410_s10 }
  0x5a   : > { %p36_p4 = scmp.eq.s32.totalorder %s35_s20, 0  ;;  %p46_p13 = scmp.eq.s32.totalorder %s11418_s12, 0 }
  0x5b   : > { %p10669_p6 = scmp.lt.s32.totalorder %s11418_s12, 2  ;;  %p14603_p3 = scmp.eq.s32.totalorder %s11504_s13, 1 }
  0x5c   : > { %s11633_s16 = scalar_select %p36_p4, %s11414_s11, %s38_s30  }
  0x5d   : > { %p47_p10 = por %p46_p13, %p45_p8  ;;  %p11637_p5 = por %p14603_p3, %p45_p8 }
  0x5e   : > { %s325_s28 = sand.u32 1, %s11414_s11   ;;  %s9272_s29 = sshll.u32 %s11418_s12, 12 }
  0x5f   : > { %s8730_s24 = sshll.u32 %s325_s28, 8  ;;  %s11646_s18 = scalar_lea.hbm %s14555_s0, %s9272_s29 }
  0x60   : > { %s329_s21 = scalar_lea.vmem [#allocation4], %s8730_s24  ;;  %p11648_p11 = pnand %p10669_p6, %p47_p10 }
  0x61   : > { %s336_s23 = sshll.u32 %s329_s21, 4  ;;  %s11654_s22 = scalar_lea.sflag [#allocation5], %s325_s28  ;;  %s11652_s23 = int_to_ptr.vmem [resolvable:$true] %s336_s23 }
  0x62   : > { %s11282_s8 = scalar_lea.hbm %s11646_s18, 4096  ;;  %p11284_p9 = pneg %p11648_p11 }
  0x63   : > { %p11283_p7 = scmp.ne.s32.totalorder %s11646_s18, %s11282_s8  ;;  %s11287_s29 = scalar_lea.hbm %s14555_s0, 8192 }
  0x64   : > { %p11288_p1 = scmp.lt.u32.totalorder %s11646_s18, %s14555_s0  ;;  %p11289_p2 = scmp.lt.u32.totalorder %s11287_s29, %s11282_s8 }
  0x65   : > { %p11285_p12 = pnand %p11284_p9, %p11283_p7  ;;  %p11291_p8 = scmp.lt.u32.totalorder %s11282_s8, %s11646_s18 }
  0x66   : > { %p11290_p4 = por %p11289_p2, %p11288_p1 }
  0x67   : > { %p11286_p0 = pneg %p11285_p12 }
  0x68   : > { %p11292_p13 = por %p11291_p8, %p11290_p4 }
  0x6a   : > { %p11293_p6 = pnand %p11292_p13, %p11286_p0 }
  0x6c   : > { %11296 = shalt.err (!%p11293_p6)
}
  0x6d   : > { %s11297_s28 = scalar_lea.vmem %s11652_s23, 4096  ;;  %s11425_s26 = smov [#allocation4]  }
  0x6e   : > { %p11298_p10 = scmp.ne.s32.totalorder %s11652_s23, %s11297_s28  ;;  %s11302_s21 = sshll.u32 %s11425_s26, 4  ;;  %s11303_s21 = int_to_ptr.vmem [resolvable:$false] %s11302_s21 }
  0x6f   : > { %s11304_s20 = scalar_lea.vmem %s11303_s21, 8192  ;;  %p11305_p12 = scmp.lt.s32.totalorder %s11652_s23, %s11303_s21 }
  0x70   : > { %p11300_p3 = pnand %p11298_p10, %p11284_p9  ;;  %p11306_p1 = scmp.lt.s32.totalorder %s11304_s20, %s11297_s28 }
  0x72   : > { %p11301_p7 = pneg %p11300_p3  ;;  %p11307_p2 = por %p11306_p1, %p11305_p12 }
  0x74   : > { %p11308_p4 = pnand %p11307_p2, %p11301_p7 }
  0x76   : > { %11311 = shalt.err (!%p11308_p4)
}
  0x77   : > { %s11426_s8 = smov 128   ;;  %s11427_s30 = smov 8  }
  0x78   : > { %10658 = dma.hbm_to_vmem [thread:$0]  (!%p11648_p11), %s11646_s18, 4096, %s11652_s23, %s11654_s22, %s11426_s8, %s11426_s8, %s11427_s30  }
  0x79   : > { %p14606_p9 = scmp.ne.s32.totalorder %s14600_s17, 0 }
  0x7b   : > { %348 = sbr.rel (%p14606_p9) target bundleno = 1338 (0x53a), region = 52 }
  0x82   : > { %s11685_s29 = sand.u32 1, %s11410_s10   ;;  %p14607_p0 = scmp.ne.s32.totalorder %s14597_s15, 0 }
  0x83   : > { %s11688_s24 = sshll.u32 %s11685_s29, 8  ;;  %s351_s25 = scalar_lea.sflag [#allocation5], %s11685_s29 }
  0x84   : > { %s11692_s28 = scalar_lea.vmem [#allocation4], %s11688_s24 }
  0x85   : > { %11385 = dma.done.wait (%p14607_p0), %s351_s25, 4096  }
  0x86   : > { %11387 = vsyncadd (%p14607_p0), %s351_s25, 4294963200  ;;  %p14608_p11 = scmp.eq.s32.totalorder %s11504_s13, 0 }
  0x88   : > { %11389 = dma.done.wait (%p14608_p11), [#allocation8], 10240   ;;  %p14609_p8 = pmov %p14608_p11 }
  0x8a   : > { %11391 = vsyncadd (%p14609_p8), [#allocation8], 4294957056  ;;  %p14610_p13 = pmov %p14609_p8 }
  0x8b   : > { %p14611_p6 = pmov %p14609_p8 }
  0x8c   : > { %11393 = dma.done.wait (%p14610_p13), [#allocation11], 9216  }
  0x8d   : > { %11395 = vsyncadd (%p14611_p6), [#allocation11], 4294958080  ;;  %v11428_v0 = vmov 0   ;;  %v10716_v1 = vld [vmem:[#allocation9 + $0x40] sm:$0xff]   ;;  %v10718_v3 = vld [vmem:[#allocation9 + $0x48] sm:$0xff]   ;;  %v14612_v46 = vmov 0 }
  0x8e   : > { %407 = vst [vmem:[#allocation2] sm:$0xf] %v11428_v0  ;;  %408 = vst [vmem:[#allocation2 + $0x4] sm:$0xf] %v11428_v0  ;;  %v10717_v2 = vld [vmem:[#allocation9] sm:$0xff]   ;;  %9339 = vmatprep.subr.bf16.mxu0 %v10716_v1  ;;  %v10719_v4 = vld [vmem:[#allocation9 + $0x8] sm:$0xff]  }
  0x8f   : > { %409 = vst [vmem:[#allocation2 + $0x8] sm:$0x1] %v11428_v0  ;;  %410 = vst [vmem:[#allocation2 + $0xc] sm:$0xf] %v11428_v0  ;;  %9340 = vmatpush3.bf16.msra.mxu0 %v10717_v2  ;;  %v10720_v5 = vld [vmem:[#allocation9 + $0x50] sm:$0xff]   ;;  %v10722_v7 = vld [vmem:[#allocation9 + $0x58] sm:$0xff]  }
  0x90   : > { %411 = vst [vmem:[#allocation2 + $0x10] sm:$0xf] %v11428_v0  ;;  %412 = vst [vmem:[#allocation2 + $0x14] sm:$0x1] %v11428_v0  ;;  %9341 = vmatprep.subr.bf16.mxu0 %v10718_v3  ;;  %v10721_v6 = vld [vmem:[#allocation9 + $0x10] sm:$0xff]   ;;  %v10723_v8 = vld [vmem:[#allocation9 + $0x18] sm:$0xff]  }
  0x91   : > { %413 = vst [vmem:[#allocation2 + $0x18] sm:$0xf] %v11428_v0  ;;  %414 = vst [vmem:[#allocation2 + $0x1c] sm:$0xf] %v11428_v0  ;;  %v10724_v9 = vld [vmem:[#allocation9 + $0x60] sm:$0xff]   ;;  %v10726_v11 = vld [vmem:[#allocation9 + $0x68] sm:$0xff]  }
  0x92   : > { %415 = vst [vmem:[#allocation2 + $0x20] sm:$0x1] %v11428_v0  ;;  %416 = vst [vmem:[#allocation2 + $0x24] sm:$0xf] %v11428_v0  ;;  %v10725_v10 = vld [vmem:[#allocation9 + $0x20] sm:$0xff]   ;;  %v10727_v14 = vld [vmem:[#allocation9 + $0x28] sm:$0xff]  }
  0x93   : > { %417 = vst [vmem:[#allocation2 + $0x28] sm:$0xf] %v11428_v0  ;;  %418 = vst [vmem:[#allocation2 + $0x2c] sm:$0x1] %v11428_v0  ;;  %9342 = vmatpush3.bf16.msra.mxu0 %v10719_v4  ;;  %vm1563_vm0 = vsmask.f32 7424 }
  0x94   : > { %419 = vst [vmem:[#allocation2 + $0x30] sm:$0xf] %v11428_v0  ;;  %420 = vst [vmem:[#allocation2 + $0x34] sm:$0xf] %v11428_v0  ;;  %9343 = vmatprep.subr.bf16.mxu0 %v10720_v5  ;;  %v11816_v17 = vld [vmem:[#allocation9 + $0xc0] sm:$0xff]   ;;  %v10728_v18 = vld [vmem:[#allocation9 + $0x70] sm:$0xff]  }
  0x95   : > { %421 = vst [vmem:[#allocation2 + $0x38] sm:$0x1] %v11428_v0  ;;  %422 = vst [vmem:[#allocation2 + $0x3c] sm:$0xf] %v11428_v0  ;;  %v1226_v12 = vld [vmem:[#allocation2] sm:$0xf]  ;;  %10451 = vmatprep.subr.bf16.mxu1 %v11816_v17 }
  0x96   : > { %423 = vst [vmem:[#allocation2 + $0x40] sm:$0xf] %v11428_v0  ;;  %424 = vst [vmem:[#allocation2 + $0x44] sm:$0x1] %v11428_v0  ;;  %v1227_v13 = vld [vmem:[#allocation2 + $0x4] sm:$0xf] }
  0x97   : > { %425 = vst [vmem:[#allocation2 + $0x48] sm:$0xf] %v11428_v0  ;;  %426 = vst [vmem:[#allocation2 + $0x4c] sm:$0xf] %v11428_v0  ;;  %9344 = vmatpush3.bf16.msra.mxu0 %v10721_v6  ;;  %v11814_v15 = vcombine.low %v1226_v12, %v1227_v13  ;;  %vm785_vm1 = vsmask.f32 256 }
  0x98   : > { %427 = vst [vmem:[#allocation2 + $0x50] sm:$0x1] %v11428_v0  ;;  %428 = vst [vmem:[#allocation2 + $0x54] sm:$0xf] %v11428_v0  ;;  %9345 = vmatprep.subr.bf16.mxu0 %v10722_v7  ;;  %v11821_v22 = vld [vmem:[#allocation9 + $0x80] sm:$0xff]   ;;  %v11823_v23 = vld [vmem:[#allocation9 + $0xc8] sm:$0xff]  }
  0x99   : > { %429 = vst [vmem:[#allocation2 + $0x58] sm:$0xf] %v11428_v0  ;;  %430 = vst [vmem:[#allocation2 + $0x5c] sm:$0x1] %v11428_v0  ;;  %v1565_v19 = vshrl.u32 %v11814_v15, 16  ;;  %v1567_v20 = vshll.u32 %v11814_v15, 16  ;;  %10459 = vmatpush3.bf16.msra.mxu1 %v11821_v22 }
  0x9a   : > { %431 = vst [vmem:[#allocation2 + $0x60] sm:$0xf] %v11428_v0  ;;  %432 = vst [vmem:[#allocation2 + $0x64] sm:$0xf] %v11428_v0  ;;  %v11826_v26 = vld [vmem:[#allocation9 + $0x88] sm:$0xff]   ;;  %v515_v27 = vld [vmem:[%s11692_s28] sm:$0xff]  ;;  %10452 = vmatprep.subr.bf16.mxu1 %v11823_v23 }
  0x9b   : > { %433 = vst [vmem:[#allocation2 + $0x68] sm:$0x1] %v11428_v0  ;;  %434 = vst [vmem:[#allocation2 + $0x6c] sm:$0xf] %v11428_v0  ;;  %9346 = vmatpush3.bf16.msra.mxu0 %v10723_v8  ;;  %v1569_v24 = vrot.slane %v1567_v20, 1  ;;  %v516_v28 = vld [vmem:[%s11692_s28 + $0x8] sm:$0xff] }
  0x9c   : > { %435 = vst [vmem:[#allocation2 + $0x70] sm:$0xf] %v11428_v0  ;;  %436 = vst [vmem:[#allocation2 + $0x74] sm:$0x1] %v11428_v0  ;;  %9347 = vmatprep.subr.bf16.mxu0 %v10724_v9  ;;  %v11834_v29 = vld [vmem:[%s14556_s1] ss:$0 sm:$0xff] }
  0x9d   : > { %437 = vst [vmem:[#allocation2 + $0x78] sm:$0xf] %v11428_v0  ;;  %438 = vst [vmem:[#allocation2 + $0x7c] sm:$0xf] %v11428_v0  ;;  %v11839_v30 = vld [vmem:[%s14557_s2] ss:$0 sm:$0xff]  ;;  %v1570_v33 = vor.u32 %v1569_v24, %v1565_v19  ;;  %v554_v34 = vmul.f32 %v11834_v29, %v515_v27  ;;  %v555_v35 = vmul.f32 %v11834_v29, %v516_v28  ;;  %10460 = vmatpush3.bf16.msra.mxu1 %v11826_v26 }
  0x9e   : > { %439 = vst [vmem:[#allocation2 + $0x80] sm:$0x1] %v11428_v0  ;;  %440 = vst [vmem:[#allocation2 + $0x84] sm:$0xf] %v11428_v0  ;;  %v10729_v31 = vld [vmem:[#allocation9 + $0x30] sm:$0xff]   ;;  %v10730_v32 = vld [vmem:[#allocation9 + $0x78] sm:$0xff]  }
  0x9f   : > { %441 = vst [vmem:[#allocation2 + $0x88] sm:$0xf] %v11428_v0  ;;  %442 = vst [vmem:[#allocation2 + $0x8c] sm:$0x1] %v11428_v0  ;;  %9348 = vmatpush3.bf16.msra.mxu0 %v10725_v10  ;;  %vm786_vm2 = vsmask.f32 4368  ;;  %v593_v38 = vadd.f32 %v11839_v30, %v554_v34  ;;  %v594_v39 = vadd.f32 %v11839_v30, %v555_v35 }
  0xa0   : > { %443 = vst [vmem:[#allocation2 + $0x90] sm:$0xf] %v11428_v0  ;;  %444 = vst [vmem:[#allocation2 + $0x94] sm:$0xf] %v11428_v0  ;;  %9349 = vmatprep.subr.bf16.mxu0 %v10726_v11  ;;  %v11843_v36 = vld [vmem:[#allocation9 + $0xd0] sm:$0xff]   ;;  %v11852_v41 = vld [vmem:[#allocation9 + $0xd8] sm:$0xff]  }
  0xa1   : > { %445 = vst [vmem:[#allocation2 + $0x98] sm:$0x1] %v11428_v0  ;;  %446 = vst [vmem:[#allocation2 + $0x9c] sm:$0xf] %v11428_v0  ;;  %v11849_v40 = vld [vmem:[#allocation9 + $0x90] sm:$0xff]   ;;  %10453 = vmatprep.subr.bf16.mxu1 %v11843_v36  ;;  %v10731_v42 = vld [vmem:[#allocation9 + $0x38] sm:$0xff]  }
  0xa2   : > { %447 = vst [vmem:[#allocation2 + $0xa0] sm:$0xf] %v11428_v0  ;;  %448 = vst [vmem:[#allocation2 + $0xa4] sm:$0x1] %v11428_v0  ;;  %v625_v43 = vmax.f32 %v593_v38, 0.0  ;;  %v626_v44 = vmax.f32 %v594_v39, 0.0  ;;  %10461 = vmatpush3.bf16.msra.mxu1 %v11849_v40 }
  0xa3   : > { %449 = vst [vmem:[#allocation2 + $0xa8] sm:$0xf] %v11428_v0  ;;  %450 = vst [vmem:[#allocation2 + $0xac] sm:$0xf] %v11428_v0  ;;  %9350 = vmatpush3.bf16.msra.mxu0 %v10727_v14  ;;  %v517_v45 = vld [vmem:[%s11692_s28 + $0x10] sm:$0xff]  ;;  %vm1109_vm4 = vcmask 1043456   ;;  %10454 = vmatprep.subr.bf16.mxu1 %v11852_v41 }
  0xa4   : > { %451 = vst [vmem:[#allocation2 + $0xb0] sm:$0x1] %v11428_v0  ;;  %452 = vst [vmem:[#allocation2 + $0xb4] sm:$0xf] %v11428_v0  ;;  %9351 = vmatprep.subr.bf16.mxu0 %v10728_v18  ;;  %vm1110_vm5 = vsmask.f32 7938  ;;  %v556_v48 = vmul.f32 %v11834_v29, %v517_v45  ;;  %v9273_v49 = vpack.c.bf16 %v625_v43, %v625_v43  ;;  %v9274_v50 = vpack.c.bf16 %v626_v44, %v626_v44 }
  0xa5   : > { %453 = vst [vmem:[#allocation2 + $0xb8] sm:$0xf] %v11428_v0  ;;  %454 = vst [vmem:[#allocation2 + $0xbc] sm:$0x1] %v11428_v0  ;;  %v518_v47 = vld [vmem:[%s11692_s28 + $0x18] sm:$0xff]  ;;  %s11864_s19 = scalar_lea.vmem [#allocation13], %s11688_s24 }
  0xa6   : > { %455 = vst [vmem:[#allocation2 + $0xc0] sm:$0xf] %v11428_v0  ;;  %456 = vst [vmem:[#allocation2 + $0xc4] sm:$0xf] %v11428_v0  ;;  %vm1116_vm6 = vcmask 1040384   ;;  %v11869_v51 = vld [vmem:[#allocation9 + $0x98] sm:$0xff]   ;;  %v557_v52 = vmul.f32 %v11834_v29, %v518_v47  ;;  %v595_v53 = vadd.f32 %v11839_v30, %v556_v48 }
  0xa7   : > { %457 = vst [vmem:[#allocation2 + $0xc8] sm:$0x1] %v11428_v0  ;;  %458 = vst [vmem:[#allocation2 + $0xcc] sm:$0xf] %v11428_v0  ;;  %9352 = vmatpush3.bf16.msra.mxu0 %v10729_v31  ;;  %v11874_v54 = vld [vmem:[#allocation9 + $0xe0] sm:$0xff]   ;;  %v789_v55 = vshrl.u32 %v9273_v49, 16  ;;  %10462 = vmatpush3.bf16.msra.mxu1 %v11869_v51 }
  0xa8   : > { %459 = vst [vmem:[#allocation2 + $0xd0] sm:$0xf] %v11428_v0  ;;  %460 = vst [vmem:[#allocation2 + $0xd4] sm:$0x1] %v11428_v0  ;;  %9353 = vmatprep.subr.bf16.mxu0 %v10730_v32  ;;  %v792_v56 = vshll.u32 %v9273_v49, 16  ;;  %v797_v57 = vshrl.u32 %v9274_v50, 16  ;;  %v596_v62 = vadd.f32 %v11839_v30, %v557_v52  ;;  %10455 = vmatprep.subr.bf16.mxu1 %v11874_v54 }
  0xa9   : > { %461 = vst [vmem:[#allocation3] sm:$0xf] %v11428_v0  ;;  %462 = vst [vmem:[#allocation3 + $0x4] sm:$0xf] %v11428_v0  ;;  %v800_v58 = vshll.u32 %v9274_v50, 16  ;;  %v14615_v59 = vmov 0 }
  0xaa   : > { %463 = vst [vmem:[#allocation3 + $0x8] sm:$0x1] %v11428_v0  ;;  %464 = vst [vmem:[#allocation3 + $0xc] sm:$0xf] %v11428_v0  ;;  %v1112_v60 = vld [vmem:[#allocation2 + $0xc] sm:$0xf] }
  0xab   : > { %465 = vst [vmem:[#allocation3 + $0x10] sm:$0xf] %v11428_v0  ;;  %466 = vst [vmem:[#allocation3 + $0x14] sm:$0x1] %v11428_v0  ;;  %9354 = vmatpush3.bf16.msra.mxu0 %v10731_v42  ;;  %v14618_v61 = vmov 0  ;;  %v627_v63 = vmax.f32 %v595_v53, 0.0 }
  0xac   : > { %467 = vst [vmem:[#allocation3 + $0x18] sm:$0xf] %v11428_v0  ;;  %468 = vst [vmem:[#allocation3 + $0x1c] sm:$0xf] %v11428_v0  ;;  %9451 = vmatprep.subr.bf16.mxu0 %v11816_v17  ;;  %v799_v1 = vrot.slane %v797_v57, 7  ;;  %v11891_v2 = vld [vmem:[#allocation9 + $0xa0] sm:$0xff]  }
  0xad   : > { %469 = vst [vmem:[#allocation3 + $0x20] sm:$0x1] %v11428_v0  ;;  %470 = vst [vmem:[#allocation3 + $0x24] sm:$0xf] %v11428_v0  ;;  %v519_v3 = vld [vmem:[%s11692_s28 + $0x20] sm:$0xff]  ;;  %v628_v5 = vmax.f32 %v596_v62, 0.0  ;;  %v9275_v6 = vpack.c.bf16 %v627_v63, %v627_v63  ;;  %10463 = vmatpush3.bf16.msra.mxu1 %v11891_v2 }
  0xae   : > { %471 = vst [vmem:[#allocation3 + $0x28] sm:$0xf] %v11428_v0  ;;  %472 = vst [vmem:[#allocation3 + $0x2c] sm:$0x1] %v11428_v0  ;;  %v1118_v4 = vld [vmem:[#allocation2 + $0x14] sm:$0x1]  ;;  %v558_v9 = vmul.f32 %v11834_v29, %v519_v3  ;;  %v802_v12 = vor.u32 %v800_v58, %v799_v1 }
  0xaf   : > { %473 = vst [vmem:[#allocation3 + $0x30] sm:$0xf] %v11428_v0  ;;  %474 = vst [vmem:[#allocation3 + $0x34] sm:$0xf] %v11428_v0  ;;  %v11897_v7 = vld [vmem:[#allocation9 + $0xe8] sm:$0xff]   ;;  %v804_v13 = vrot.slane %v799_v1, 4  ;;  %v9276_v14 = vpack.c.bf16 %v628_v5, %v628_v5 }
  0xb0   : > { %475 = vst [vmem:[#allocation3 + $0x38] sm:$0x1] %v11428_v0  ;;  %476 = vst [vmem:[#allocation3 + $0x3c] sm:$0xf] %v11428_v0  ;;  %v520_v8 = vld [vmem:[%s11692_s28 + $0x28] sm:$0xff]  ;;  %10456 = vmatprep.subr.bf16.mxu1 %v11897_v7  ;;  %v11917_v28 = vld [vmem:[#allocation9 + $0xf0] sm:$0xff]  }
  0xb1   : > { %477 = vst [vmem:[#allocation3 + $0x40] sm:$0xf] %v11428_v0  ;;  %478 = vst [vmem:[#allocation3 + $0x44] sm:$0x1] %v11428_v0  ;;  %v11904_v17 = vld [vmem:[#allocation9 + $0xa8] sm:$0xff]   ;;  %v559_v18 = vmul.f32 %v11834_v29, %v520_v8  ;;  %v814_v24 = vshrl.u32 %v9276_v14, 16 }
  0xb2   : > { %479 = vst [vmem:[#allocation3 + $0x48] sm:$0xf] %v11428_v0  ;;  %480 = vst [vmem:[#allocation3 + $0x4c] sm:$0xf] %v11428_v0  ;;  %v1121_v31 = vld [vmem:[#allocation2 + $0x18] sm:$0xf]  ;;  %10464 = vmatpush3.bf16.msra.mxu1 %v11904_v17 }
  0xb3   : > { %481 = vst [vmem:[#allocation3 + $0x50] sm:$0x1] %v11428_v0  ;;  %482 = vst [vmem:[#allocation3 + $0x54] sm:$0xf] %v11428_v0  ;;  %v598_v27 = vadd.f32 %v11839_v30, %v559_v18  ;;  %v522_v39 = vld [vmem:[%s11692_s28 + $0x38] sm:$0xff]  ;;  %10457 = vmatprep.subr.bf16.mxu1 %v11917_v28  ;;  %v523_v52 = vld [vmem:[%s11692_s28 + $0x40] sm:$0xff] }
  0xb4   : > { %483 = vst [vmem:[#allocation3 + $0x58] sm:$0xf] %v11428_v0  ;;  %484 = vst [vmem:[#allocation3 + $0x5c] sm:$0x1] %v11428_v0  ;;  %v1125_v42 = vld [vmem:[#allocation2 + $0x20] sm:$0x1]  ;;  %v561_v47 = vmul.f32 %v11834_v29, %v522_v39 }
  0xb5   : > { %485 = vst [vmem:[#allocation3 + $0x60] sm:$0xf] %v11428_v0  ;;  %486 = vst [vmem:[#allocation3 + $0x64] sm:$0xf] %v11428_v0  ;;  %v630_v38 = vmax.f32 %v598_v27, 0.0  ;;  %v524_v53 = vld [vmem:[%s11692_s28 + $0x48] sm:$0xff] }
  0xb6   : > { %487 = vst [vmem:[#allocation3 + $0x68] sm:$0x1] %v11428_v0  ;;  %488 = vst [vmem:[#allocation3 + $0x6c] sm:$0xf] %v11428_v0  ;;  %v526_v62 = vld [vmem:[%s11692_s28 + $0x58] sm:$0xff]  ;;  %v563_v8 = vmul.f32 %v11834_v29, %v524_v53  ;;  %vm1820_vm9 = vcmask 1046528  }
  0xb7   : > { %489 = vst [vmem:[#allocation3 + $0x70] sm:$0xf] %v11428_v0  ;;  %490 = vst [vmem:[#allocation3 + $0x74] sm:$0x1] %v11428_v0  ;;  %v9278_v50 = vpack.c.bf16 %v630_v38, %v630_v38  ;;  %vm6610_vm10 = vsmask.f32 3328 }
  0xb8   : > { %491 = vst [vmem:[#allocation3 + $0x78] sm:$0xf] %v11428_v0  ;;  %492 = vst [vmem:[#allocation3 + $0x7c] sm:$0xf] %v11428_v0  ;;  %vm6611_vm11 = vsmask.f32 7440 }
  0xb9   : > { %493 = vst [vmem:[#allocation3 + $0x80] sm:$0x1] %v11428_v0  ;;  %494 = vst [vmem:[#allocation3 + $0x84] sm:$0xf] %v11428_v0  ;;  %v831_v1 = vshrl.u32 %v9278_v50, 16  ;;  %v834_v3 = vshll.u32 %v9278_v50, 16 }
  0xba   : > { %495 = vst [vmem:[#allocation3 + $0x88] sm:$0xf] %v11428_v0  ;;  %496 = vst [vmem:[#allocation3 + $0x8c] sm:$0x1] %v11428_v0  ;;  %s9337_s22 = sshll.u32 %s11504_s13, 12  ;;  %s8590_s8 = sshll.u32 %s11864_s19, 4  ;;  %s14358_s8 = int_to_ptr.vmem [resolvable:$true] %s8590_s8 }
  0xbb   : > { %497 = vst [vmem:[#allocation3 + $0x90] sm:$0xf] %v11428_v0  ;;  %498 = vst [vmem:[#allocation3 + $0x94] sm:$0xf] %v11428_v0  ;;  %s14355_s20 = scalar_lea.hbm %s14564_s9, %s9337_s22  ;;  %s8561_s30 = scalar_lea.sflag [#allocation14], %s11685_s29 }
  0xbc   : > { %499 = vst [vmem:[#allocation3 + $0x98] sm:$0x1] %v11428_v0  ;;  %500 = vst [vmem:[#allocation3 + $0x9c] sm:$0xf] %v11428_v0  ;;  %s11312_s25 = scalar_lea.vmem %s14358_s8, 4096 }
  0xbd   : > { %501 = vst [vmem:[#allocation3 + $0xa0] sm:$0xf] %v11428_v0  ;;  %502 = vst [vmem:[#allocation3 + $0xa4] sm:$0x1] %v11428_v0  ;;  %p11313_p10 = scmp.ne.s32.totalorder %s14358_s8, %s11312_s25 }
  0xbe   : > { %503 = vst [vmem:[#allocation3 + $0xa8] sm:$0xf] %v11428_v0  ;;  %504 = vst [vmem:[#allocation3 + $0xac] sm:$0xf] %v11428_v0 }
  0xbf   : > { %505 = vst [vmem:[#allocation3 + $0xb0] sm:$0x1] %v11428_v0  ;;  %506 = vst [vmem:[#allocation3 + $0xb4] sm:$0xf] %v11428_v0  ;;  %p11314_p3 = pnand %p11313_p10, %p11637_p5 }
  0xc0   : > { %507 = vst [vmem:[#allocation3 + $0xb8] sm:$0xf] %v11428_v0  ;;  %508 = vst [vmem:[#allocation3 + $0xbc] sm:$0x1] %v11428_v0 }
  0xc1   : > { %509 = vst [vmem:[#allocation3 + $0xc0] sm:$0xf] %v11428_v0  ;;  %510 = vst [vmem:[#allocation3 + $0xc4] sm:$0xf] %v11428_v0  ;;  %p11315_p7 = pneg %p11314_p3 }
  0xc2   : > { %511 = vst [vmem:[#allocation3 + $0xc8] sm:$0x1] %v11428_v0  ;;  %512 = vst [vmem:[#allocation3 + $0xcc] sm:$0xf] %v11428_v0 }
  0xc3   : > { %513 = vst [vmem:[#allocation3 + $0xd0] sm:$0xf] %v11428_v0  ;;  %514 = vst [vmem:[#allocation3 + $0xd4] sm:$0x1] %v11428_v0  ;;  %v791_v0 = vrot.slane %v789_v55, 7  ;;  %v525_v55 = vld [vmem:[%s11692_s28 + $0x50] sm:$0xff] }
  0xc4   : > { %v10733_v16 = vld [vmem:[#allocation2 + $0x8] ss:$0 sps:$4 sm:$0x11]   ;;  %vm11857_vm3 = vmor %vm785_vm1, %vm786_vm2  ;;  %657 = vst [vmem:[%s11864_s19] sm:$0xff] %v625_v43 }
  0xc5   : > { %v1572_v21 = vshll.u32 %v10733_v16, 16  ;;  %v14613_v46 = vsel %vm11857_vm3, 4294967295, %v14612_v46  ;;  %658 = vst [vmem:[%s11864_s19 + $0x8] sm:$0xff] %v626_v44  ;;  %vm11878_vm7 = vmand %vm1109_vm4, %vm1110_vm5  ;;  %v794_v10 = vor.u32 %v792_v56, %v791_v0  ;;  %v795_v11 = vrot.slane %v791_v0, 4  ;;  %v11925_v44 = vld [vmem:[#allocation9 + $0xb0] sm:$0xff]  }
  0xc6   : > { %14614 = vst [vmem:[#allocation22_spill] sm:$0xff] %v14613_v46  ;;  %v14616_v59 = vsel %vm11878_vm7, 4294967295, %v14615_v59  ;;  %vm11885_vm8 = vmand %vm1116_vm6, %vm785_vm1  ;;  %v809_v16 = vshll.u32 %v9275_v6, 16  ;;  %10465 = vmatpush3.bf16.msra.mxu1 %v11925_v44 }
  0xc7   : > { %v1574_v25 = vrot.slane %v1572_v21, 1  ;;  %14617 = vst [vmem:[#allocation23_spill] sm:$0xff] %v14616_v59  ;;  %v14619_v61 = vsel %vm11885_vm8, 4294967295, %v14618_v61  ;;  %659 = vst [vmem:[%s11864_s19 + $0x10] sm:$0xff] %v627_v63  ;;  %v803_v19 = vsel %vm11857_vm3, %v795_v11, %v802_v12  ;;  %v1113_v20 = vsel %vm11878_vm7, %v794_v10, %v1112_v60 }
  0xc8   : > { %14620 = vst [vmem:[#allocation24_spill] sm:$0xff] %v14619_v61  ;;  %660 = vst [vmem:[%s11864_s19 + $0x18] sm:$0xff] %v628_v5  ;;  %v1119_v21 = vsel %vm11885_vm8, %v804_v13, %v1118_v4  ;;  %v600_v60 = vadd.f32 %v11839_v30, %v561_v47  ;;  %v11946_v4 = vld [vmem:[#allocation9 + $0xb8] sm:$0xff]   ;;  %v565_v10 = vmul.f32 %v11834_v29, %v526_v62 }
  0xc9   : > { %v1575_v37 = vsel %vm1563_vm0, %v1570_v33, %v1574_v25  ;;  %1114 = vst [vmem:[#allocation2 + $0xc] sm:$0xf] %v1113_v20  ;;  %1115 = vst [vmem:[#allocation2 + $0x10] sm:$0xf] %v803_v19  ;;  %v817_v25 = vshll.u32 %v9276_v14, 16  ;;  %v521_v33 = vld [vmem:[%s11692_s28 + $0x30] sm:$0xff]  ;;  %v602_v19 = vadd.f32 %v11839_v30, %v563_v8 }
  0xca   : > { %3421 = vmatprep.mubr.bf16.mxu0 %v1575_v37  ;;  %1120 = vst [vmem:[#allocation2 + $0x14] sm:$0x1] %v1119_v21  ;;  %v816_v37 = vrot.slane %v814_v24, 7  ;;  %v560_v45 = vmul.f32 %v11834_v29, %v521_v33  ;;  %662 = vst [vmem:[%s11864_s19 + $0x28] sm:$0xff] %v630_v38  ;;  %v833_v14 = vrot.slane %v831_v1, 7 }
  0xcb   : > { %3422 = vmatmul.mubr.bf16.vlgmr.msra.gmra.mrb[0].mxu0 %v11814_v15  ;;  %v806_v15 = vshrl.u32 %v9275_v6, 16  ;;  %vm12935_vm12 = vmor %vm6610_vm10, %vm6611_vm11 }
  0xcc   : > { %9452 = vmatpush3.bf16.msra.mxu0 %v11821_v22  ;;  %v597_v22 = vadd.f32 %v11839_v30, %v558_v9  ;;  %v819_v48 = vor.u32 %v817_v25, %v816_v37  ;;  %v821_v49 = vrot.slane %v816_v37, 4  ;;  %v599_v58 = vadd.f32 %v11839_v30, %v560_v45  ;;  %v1132_v25 = vld [vmem:[#allocation2 + $0x2c] sm:$0x1] }
  0xcd   : > { %9453 = vmatprep.subr.bf16.mxu0 %v11823_v23  ;;  %v808_v23 = vrot.slane %v806_v15, 7  ;;  %v564_v9 = vmul.f32 %v11834_v29, %v525_v55  ;;  %v1128_v15 = vld [vmem:[#allocation2 + $0x24] sm:$0xf] }
  0xce   : > { %v629_v32 = vmax.f32 %v597_v22, 0.0  ;;  %v1126_v0 = vsel %vm11885_vm8, %v821_v49, %v1125_v42 }
  0xcf   : > { %v811_v34 = vor.u32 %v809_v16, %v808_v23  ;;  %v812_v35 = vrot.slane %v808_v23, 4  ;;  %1127 = vst [vmem:[#allocation2 + $0x20] sm:$0x1] %v1126_v0  ;;  %v632_v16 = vmax.f32 %v600_v60, 0.0  ;;  %v603_v20 = vadd.f32 %v11839_v30, %v564_v9 }
  0xd0   : > { %9454 = vmatpush3.bf16.msra.mxu0 %v11826_v26  ;;  %661 = vst [vmem:[%s11864_s19 + $0x20] sm:$0xff] %v629_v32  ;;  %v9277_v43 = vpack.c.bf16 %v629_v32, %v629_v32  ;;  %v11927_v26 = vld [vmem:[#allocation9 + $0xf8] sm:$0xff]   ;;  %v1229_v6 = vld [vmem:[#allocation2 + $0x10] sm:$0xf]  ;;  %v838_v32 = vrot.slane %v833_v14, 4 }
  0xd1   : > { %9455 = vmatprep.subr.bf16.mxu0 %v11843_v36  ;;  %v1122_v36 = vsel %vm11878_vm7, %v811_v34, %v1121_v31  ;;  %v820_v63 = vsel %vm11857_vm3, %v812_v35, %v819_v48  ;;  %v1228_v5 = vld [vmem:[#allocation2 + $0xc] sm:$0xf]  ;;  %v10739_v12 = vld [vmem:[#allocation2 + $0x14] ss:$0 sps:$4 sm:$0x11]   ;;  %10458 = vmatprep.subr.bf16.mxu1 %v11927_v26  ;;  %v836_v31 = vor.u32 %v834_v3, %v833_v14  ;;  %v635_v60 = vmax.f32 %v603_v20, 0.0 }
  0xd2   : > { %1123 = vst [vmem:[#allocation2 + $0x18] sm:$0xf] %v1122_v36  ;;  %v823_v56 = vshrl.u32 %v9277_v43, 16  ;;  %v826_v57 = vshll.u32 %v9277_v43, 16  ;;  %1124 = vst [vmem:[#allocation2 + $0x1c] sm:$0xf] %v820_v63  ;;  %v8775_v11 = vcombine.low %v1228_v5, %v1229_v6  ;;  %10466 = vmatpush3.bf16.msra.mxu1 %v11946_v4  ;;  %v9280_v38 = vpack.c.bf16 %v632_v16, %v632_v16 }
  0xd3   : > { %v1584_v23 = vshll.u32 %v10739_v12, 16  ;;  %664 = vst [vmem:[%s11864_s19 + $0x38] sm:$0xff] %v632_v16  ;;  %v604_v36 = vadd.f32 %v11839_v30, %v565_v10  ;;  %v1139_v3 = vld [vmem:[#allocation2 + $0x38] sm:$0x1]  ;;  %667 = vst [vmem:[%s11864_s19 + $0x50] sm:$0xff] %v635_v60  ;;  %v527_v14 = vld [vmem:[%s11692_s28 + $0x60] sm:$0xff] }
  0xd4   : > { %9456 = vmatpush3.bf16.msra.mxu0 %v11849_v40  ;;  %v562_v40 = vmul.f32 %v11834_v29, %v523_v52  ;;  %v825_v13 = vrot.slane %v823_v56, 7  ;;  %v1577_v21 = vshrl.u32 %v8775_v11, 16  ;;  %v1579_v22 = vshll.u32 %v8775_v11, 16 }
  0xd5   : > { %9457 = vmatprep.subr.bf16.mxu0 %v11852_v41  ;;  %v631_v41 = vmax.f32 %v599_v58, 0.0  ;;  %v1586_v35 = vrot.slane %v1584_v23, 1  ;;  %v848_v48 = vshrl.u32 %v9280_v38, 16  ;;  %v851_v49 = vshll.u32 %v9280_v38, 16  ;;  %v1135_v58 = vld [vmem:[#allocation2 + $0x30] sm:$0xf] }
  0xd6   : > { %v601_v18 = vadd.f32 %v11839_v30, %v562_v40  ;;  %v828_v24 = vor.u32 %v826_v57, %v825_v13  ;;  %v829_v27 = vrot.slane %v825_v13, 4  ;;  %v1581_v34 = vrot.slane %v1579_v22, 1  ;;  %v10745_v52 = vld [vmem:[#allocation2 + $0x20] ss:$0 sps:$4 sm:$0x11]  }
  0xd7   : > { %663 = vst [vmem:[%s11864_s19 + $0x30] sm:$0xff] %v631_v41  ;;  %v9279_v33 = vpack.c.bf16 %v631_v41, %v631_v41  ;;  %v634_v56 = vmax.f32 %v602_v19, 0.0  ;;  %v850_v57 = vrot.slane %v848_v48, 7  ;;  %v636_v62 = vmax.f32 %v604_v36, 0.0 }
  0xd8   : > { %9458 = vmatpush3.bf16.msra.mxu0 %v11869_v51  ;;  %v1129_v51 = vsel %vm11878_vm7, %v828_v24, %v1128_v15  ;;  %v837_v39 = vsel %vm11857_vm3, %v829_v27, %v836_v31  ;;  %v1582_v45 = vor.u32 %v1581_v34, %v1577_v21  ;;  %v633_v55 = vmax.f32 %v601_v18, 0.0 }
  0xd9   : > { %9459 = vmatprep.subr.bf16.mxu0 %v11874_v54  ;;  %v1230_v37 = vld [vmem:[#allocation2 + $0x18] sm:$0xf]  ;;  %1130 = vst [vmem:[#allocation2 + $0x24] sm:$0xf] %v1129_v51  ;;  %v1133_v54 = vsel %vm11885_vm8, %v838_v32, %v1132_v25  ;;  %v840_v42 = vshrl.u32 %v9279_v33, 16  ;;  %v843_v43 = vshll.u32 %v9279_v33, 16  ;;  %v853_v6 = vor.u32 %v851_v49, %v850_v57 }
  0xda   : > { %v1231_v47 = vld [vmem:[#allocation2 + $0x1c] sm:$0xf]  ;;  %1131 = vst [vmem:[#allocation2 + $0x28] sm:$0xf] %v837_v39  ;;  %1134 = vst [vmem:[#allocation2 + $0x2c] sm:$0x1] %v1133_v54  ;;  %v9281_v8 = vpack.c.bf16 %v633_v55, %v633_v55  ;;  %v9282_v13 = vpack.c.bf16 %v634_v56, %v634_v56  ;;  %v9283_v21 = vpack.c.bf16 %v635_v60, %v635_v60 }
  0xdb   : > { %v11972_v50 = vcombine.low %v1230_v37, %v1231_v47  ;;  %v842_v53 = vrot.slane %v840_v42, 7  ;;  %v1596_v0 = vshll.u32 %v10745_v52, 16  ;;  %665 = vst [vmem:[%s11864_s19 + $0x40] sm:$0xff] %v633_v55  ;;  %666 = vst [vmem:[%s11864_s19 + $0x48] sm:$0xff] %v634_v56  ;;  %v855_v40 = vrot.slane %v850_v57, 4 }
  0xdc   : > { %9460 = vmatpush3.bf16.msra.mxu0 %v11891_v2  ;;  %v1587_v2 = vsel %vm1563_vm0, %v1582_v45, %v1586_v35  ;;  %668 = vst [vmem:[%s11864_s19 + $0x58] sm:$0xff] %v636_v62  ;;  %v857_v15 = vshrl.u32 %v9281_v8, 16  ;;  %v860_v16 = vshll.u32 %v9281_v8, 16  ;;  %v868_v20 = vshll.u32 %v9282_v13, 16  ;;  %v1142_v33 = vld [vmem:[#allocation2 + $0x3c] sm:$0xf] }
  0xdd   : > { %9461 = vmatprep.subr.bf16.mxu0 %v11897_v7  ;;  %3429 = vmatprep.mubr.bf16.mxu0 %v1587_v2  ;;  %v1589_v63 = vshrl.u32 %v11972_v50, 16  ;;  %v1591_v7 = vshll.u32 %v11972_v50, 16  ;;  %v845_v1 = vor.u32 %v843_v43, %v842_v53  ;;  %v846_v5 = vrot.slane %v842_v53, 4  ;;  %v1146_v39 = vld [vmem:[#allocation2 + $0x44] sm:$0x1]  ;;  %v528_v45 = vld [vmem:[%s11692_s28 + $0x68] sm:$0xff] }
  0xde   : > { %3430 = vmatmul.mubr.bf16.gmra.mrb[4].mxu0 %v8775_v11  ;;  %v1598_v10 = vrot.slane %v1596_v0, 1  ;;  %v1140_v11 = vsel %vm11885_vm8, %v855_v40, %v1139_v3  ;;  %v859_v24 = vrot.slane %v857_v15, 7  ;;  %v9284_v25 = vpack.c.bf16 %v636_v62, %v636_v62  ;;  %v1149_v52 = vld [vmem:[#allocation2 + $0x48] sm:$0xf]  ;;  %v10819_v40 = vld [vmem:[#allocation9 + $0x140] sm:$0xff]  }
  0xdf   : > { %v1593_v9 = vrot.slane %v1591_v7, 1  ;;  %v1136_v12 = vsel %vm11878_vm7, %v845_v1, %v1135_v58  ;;  %1141 = vst [vmem:[#allocation2 + $0x38] sm:$0x1] %v1140_v11  ;;  %v566_v27 = vmul.f32 %v11834_v29, %v527_v14  ;;  %v874_v34 = vshrl.u32 %v9283_v21, 16 }
  0xe0   : > { %9462 = vmatpush3.bf16.msra.mxu0 %v11904_v17  ;;  %v1232_v41 = vld [vmem:[#allocation2 + $0x24] sm:$0xf]  ;;  %v854_v17 = vsel %vm11857_vm3, %v846_v5, %v853_v6  ;;  %1137 = vst [vmem:[#allocation2 + $0x30] sm:$0xf] %v1136_v12  ;;  %v877_v35 = vshll.u32 %v9283_v21, 16  ;;  %v862_v38 = vor.u32 %v860_v16, %v859_v24  ;;  %v863_v54 = vrot.slane %v859_v24, 4 }
  0xe1   : > { %9463 = vmatprep.subr.bf16.mxu0 %v11917_v28  ;;  %v1594_v18 = vor.u32 %v1593_v9, %v1589_v63  ;;  %v1233_v19 = vld [vmem:[#allocation2 + $0x28] sm:$0xf]  ;;  %1138 = vst [vmem:[#allocation2 + $0x34] sm:$0xf] %v854_v17  ;;  %v865_v28 = vshrl.u32 %v9282_v13, 16  ;;  %v882_v36 = vshrl.u32 %v9284_v25, 16  ;;  %v567_v63 = vmul.f32 %v11834_v29, %v528_v45 }
  0xe2   : > { %v11991_v22 = vcombine.low %v1232_v41, %v1233_v19  ;;  %v10751_v23 = vld [vmem:[#allocation2 + $0x2c] ss:$0 sps:$4 sm:$0x11]   ;;  %v1143_v49 = vsel %vm11878_vm7, %v862_v38, %v1142_v33  ;;  %v885_v62 = vshll.u32 %v9284_v25, 16  ;;  %v1153_v5 = vld [vmem:[#allocation2 + $0x50] sm:$0x1]  ;;  %v605_v6 = vadd.f32 %v11839_v30, %v566_v27 }
  0xe3   : > { %v1599_v31 = vsel %vm1563_vm0, %v1594_v18, %v1598_v10  ;;  %v867_v32 = vrot.slane %v865_v28, 7  ;;  %v1608_v51 = vshll.u32 %v10751_v23, 16  ;;  %1144 = vst [vmem:[#allocation2 + $0x3c] sm:$0xf] %v1143_v49  ;;  %v884_v60 = vrot.slane %v882_v36, 7  ;;  %v529_v19 = vld [vmem:[%s11692_s28 + $0x70] sm:$0xff] }
  0xe4   : > { %9464 = vmatpush3.bf16.msra.mxu0 %v11925_v44  ;;  %3437 = vmatprep.mubr.bf16.mxu0 %v1599_v31  ;;  %v1601_v37 = vshrl.u32 %v11991_v22, 16  ;;  %v1603_v44 = vshll.u32 %v11991_v22, 16  ;;  %v606_v12 = vadd.f32 %v11839_v30, %v567_v63  ;;  %v637_v18 = vmax.f32 %v605_v6, 0.0  ;;  %v530_v23 = vld [vmem:[%s11692_s28 + $0x78] sm:$0xff]  ;;  %v531_v24 = vld [vmem:[%s11692_s28 + $0x80] sm:$0xff]  ;;  %v532_v33 = vld [vmem:[%s11692_s28 + $0x88] sm:$0xff] }
  0xe5   : > { %9465 = vmatprep.subr.bf16.mxu0 %v11927_v26  ;;  %v870_v42 = vor.u32 %v868_v20, %v867_v32  ;;  %v872_v43 = vrot.slane %v867_v32, 4  ;;  %v876_v26 = vrot.slane %v874_v34, 7  ;;  %v1610_v48 = vrot.slane %v1608_v51, 1  ;;  %v10821_v25 = vld [vmem:[#allocation9 + $0x1c0] sm:$0xff]  }
  0xe6   : > { %3438 = vmatmul.mubr.bf16.gmra.mrb[8].mxu0 %v11972_v50  ;;  %v1605_v47 = vrot.slane %v1603_v44, 1  ;;  %v10757_v0 = vld [vmem:[#allocation2 + $0x38] ss:$0 sps:$4 sm:$0x11]   ;;  %v887_v9 = vor.u32 %v885_v62, %v884_v60  ;;  %v889_v10 = vrot.slane %v884_v60, 4  ;;  %v638_v21 = vmax.f32 %v606_v12, 0.0  ;;  %9675 = vmatprep.subr.bf16.mxu1 %v10821_v25 }
  0xe7   : > { %v1234_v53 = vld [vmem:[#allocation2 + $0x30] sm:$0xf]  ;;  %v871_v55 = vsel %vm11857_vm3, %v863_v54, %v870_v42  ;;  %v1147_v2 = vsel %vm11885_vm8, %v872_v43, %v1146_v39  ;;  %v879_v57 = vor.u32 %v877_v35, %v876_v26  ;;  %v1620_v41 = vshll.u32 %v10757_v0, 16  ;;  %669 = vst [vmem:[%s11864_s19 + $0x60] sm:$0xff] %v637_v18 }
  0xe8   : > { %9466 = vmatpush3.bf16.msra.mxu0 %v11946_v4  ;;  %v1278_v56 = vld [vmem:[#allocation2 + $0x30] sm:$0xe]  ;;  %v880_v4 = vrot.slane %v876_v26, 4  ;;  %v1606_v58 = vor.u32 %v1605_v47, %v1601_v37  ;;  %v1235_v50 = vld [vmem:[#allocation2 + $0x34] sm:$0xf]  ;;  %v1834_v11 = vrot.slane %v10757_v0, 1  ;;  %v1154_v16 = vsel %vm11885_vm8, %v889_v10, %v1153_v5 }
  0xe9   : > { %1145 = vst [vmem:[#allocation2 + $0x40] sm:$0xf] %v871_v55  ;;  %1148 = vst [vmem:[#allocation2 + $0x44] sm:$0x1] %v1147_v2  ;;  %v12008_v7 = vcombine.low %v1234_v53, %v1235_v50  ;;  %v8810_v1 = vcombine.low %v1278_v56, %v1235_v50  ;;  %v1150_v3 = vsel %vm11878_vm7, %v879_v57, %v1149_v52  ;;  %9563 = vmatprep.subr.bf16.mxu0 %v10819_v40  ;;  %v1156_v50 = vld [vmem:[#allocation2 + $0x54] sm:$0xf] }
  0xea   : > { %v1611_v8 = vsel %vm1563_vm0, %v1606_v58, %v1610_v48  ;;  %1151 = vst [vmem:[#allocation2 + $0x48] sm:$0xf] %v1150_v3  ;;  %v888_v15 = vsel %vm11857_vm3, %v880_v4, %v887_v9  ;;  %v1622_v20 = vrot.slane %v1620_v41, 1  ;;  %1155 = vst [vmem:[#allocation2 + $0x50] sm:$0x1] %v1154_v16  ;;  %v9285_v32 = vpack.c.bf16 %v637_v18, %v637_v18  ;;  %v10822_v12 = vld [vmem:[#allocation9 + $0x180] sm:$0xff]  }
  0xeb   : > { %3445 = vmatprep.mubr.bf16.mxu0 %v1611_v8  ;;  %v1613_v13 = vshrl.u32 %v12008_v7, 16  ;;  %v1615_v14 = vshll.u32 %v12008_v7, 16  ;;  %v1833_v17 = vrot.slane %v8810_v1, 1  ;;  %1152 = vst [vmem:[#allocation2 + $0x4c] sm:$0xf] %v888_v15  ;;  %670 = vst [vmem:[%s11864_s19 + $0x68] sm:$0xff] %v638_v21  ;;  %v568_v51 = vmul.f32 %v11834_v29, %v529_v19 }
  0xec   : > { %v1298_v27 = vld [vmem:[#allocation2 + $0x3c] sm:$0xf]  ;;  %v891_v42 = vshrl.u32 %v9285_v32, 16  ;;  %v569_v43 = vmul.f32 %v11834_v29, %v530_v23  ;;  %v570_v48 = vmul.f32 %v11834_v29, %v531_v24  ;;  %v571_v49 = vmul.f32 %v11834_v29, %v532_v33 }
  0xed   : > { %v1617_v28 = vrot.slane %v1615_v14, 1  ;;  %v1236_v31 = vld [vmem:[#allocation2 + $0x3c] sm:$0xf]  ;;  %v1835_v37 = vsel %vm1820_vm9, %v1833_v17, %v1834_v11  ;;  %v9286_v56 = vpack.c.bf16 %v638_v21, %v638_v21  ;;  %v894_v58 = vshll.u32 %v9285_v32, 16  ;;  %v533_v11 = vld [vmem:[%s11692_s28 + $0x90] sm:$0xff] }
  0xee   : > { %3446 = vmatmul.mubr.bf16.gmra.mrb[12].mxu0 %v11991_v22  ;;  %v1279_v22 = vld [vmem:[#allocation2 + $0x3c] sm:$0xe]  ;;  %v893_v4 = vrot.slane %v891_v42, 7  ;;  %v607_v3 = vadd.f32 %v11839_v30, %v568_v51  ;;  %v608_v5 = vadd.f32 %v11839_v30, %v569_v43  ;;  %v609_v9 = vadd.f32 %v11839_v30, %v570_v48  ;;  %v534_v51 = vld [vmem:[%s11692_s28 + $0x98] sm:$0xff] }
  0xef   : > { %v1618_v34 = vor.u32 %v1617_v28, %v1613_v13  ;;  %v610_v10 = vadd.f32 %v11839_v30, %v571_v49  ;;  %v899_v17 = vshrl.u32 %v9286_v56, 16 }
  0xf0   : > { %v1299_v35 = vld [vmem:[#allocation2 + $0x40] sm:$0xf]  ;;  %v10762_v54 = vld [vmem:[#allocation2 + $0x44] ss:$0 sps:$4 sm:$0x11]   ;;  %v896_v41 = vor.u32 %v894_v58, %v893_v4  ;;  %v897_v19 = vrot.slane %v893_v4, 4 }
  0xf1   : > { %v1237_v44 = vld [vmem:[#allocation2 + $0x40] sm:$0xf]  ;;  %v12030_v38 = vcombine.low %v1298_v27, %v1299_v35  ;;  %v1623_v26 = vsel %vm1563_vm0, %v1618_v34, %v1622_v20  ;;  %v1300_v45 = vld [vmem:[#allocation2 + $0x48] sm:$0xf]  ;;  %v1632_v53 = vshll.u32 %v10762_v54, 16  ;;  %v1837_v57 = vrot.slane %v10762_v54, 1 }
  0xf2   : > { %v12032_v39 = vcombine.low %v1236_v31, %v1237_v44  ;;  %v8811_v47 = vcombine.low %v1279_v22, %v1237_v44  ;;  %3453 = vmatprep.mubr.bf16.mxu0 %v1623_v26  ;;  %v1238_v55 = vld [vmem:[#allocation2 + $0x48] sm:$0xf]  ;;  %v1301_v63 = vld [vmem:[#allocation2 + $0x4c] sm:$0xf]  ;;  %v901_v20 = vrot.slane %v899_v17, 7  ;;  %v1157_v21 = vsel %vm11878_vm7, %v896_v41, %v1156_v50  ;;  %v10825_v22 = vld [vmem:[#allocation9 + $0x1c8] sm:$0xff]  }
  0xf3   : > { %3614 = vmatprep.mubr.bf16.mxu1 %v12030_v38  ;;  %v1634_v62 = vrot.slane %v1632_v53, 1  ;;  %v1239_v0 = vld [vmem:[#allocation2 + $0x4c] sm:$0xf]  ;;  %v1280_v1 = vld [vmem:[#allocation2 + $0x48] sm:$0xe]  ;;  %v12043_v6 = vcombine.low %v1300_v45, %v1301_v63  ;;  %v639_v33 = vmax.f32 %v607_v3, 0.0  ;;  %v572_v54 = vmul.f32 %v11834_v29, %v533_v11 }
  0xf4   : > { %v1625_v36 = vshrl.u32 %v12032_v39, 16  ;;  %v1627_v52 = vshll.u32 %v12032_v39, 16  ;;  %3615 = vmatmul.mubr.bf16.vlgmr.msra.gmra.mrb[0].mxu1 %v1835_v37  ;;  %v1836_v2 = vrot.slane %v8811_v47, 1  ;;  %v12045_v40 = vcombine.low %v1238_v55, %v1239_v0  ;;  %v12047_v8 = vld [vmem:[#allocation2 + $0x50] ss:$0 sps:$4 sm:$0x11]  }
  0xf5   : > { %3622 = vmatprep.mubr.bf16.mxu1 %v12043_v6  ;;  %v1644_v18 = vshll.u32 %v12047_v8, 16  ;;  %9676 = vmatpush3.bf16.msra.mxu1 %v10822_v12  ;;  %1158 = vst [vmem:[#allocation2 + $0x54] sm:$0xf] %v1157_v21  ;;  %v8812_v25 = vcombine.low %v1280_v1, %v1239_v0  ;;  %v1160_v27 = vld [vmem:[#allocation2 + $0x5c] sm:$0x1]  ;;  %v906_v32 = vrot.slane %v901_v20, 4  ;;  %v9287_v26 = vpack.c.bf16 %v639_v33, %v639_v33 }
  0xf6   : > { %v1629_v60 = vrot.slane %v1627_v52, 1  ;;  %3454 = vmatmul.mubr.bf16.gmra.mrb[16].mxu0 %v12008_v7  ;;  %v1838_v14 = vsel %vm1820_vm9, %v1836_v2, %v1837_v57  ;;  %v1637_v15 = vshrl.u32 %v12045_v40, 16  ;;  %v1639_v16 = vshll.u32 %v12045_v40, 16  ;;  %671 = vst [vmem:[%s11864_s19 + $0x70] sm:$0xff] %v639_v33  ;;  %v535_v52 = vld [vmem:[%s11692_s28 + $0xa0] sm:$0xff]  ;;  %9677 = vmatprep.subr.bf16.mxu1 %v10825_v22  ;;  %v10828_v11 = vld [vmem:[#allocation9 + $0x188] sm:$0xff]  }
  0xf7   : > { %v902_v7 = vshll.u32 %v9286_v56, 16  ;;  %v1646_v24 = vrot.slane %v1644_v18, 1  ;;  %v640_v34 = vmax.f32 %v608_v5, 0.0  ;;  %v641_v37 = vmax.f32 %v609_v9, 0.0  ;;  %v1163_v9 = vld [vmem:[#allocation2 + $0x60] sm:$0xf] }
  0xf8   : > { %v1630_v13 = vor.u32 %v1629_v60, %v1625_v36  ;;  %v1641_v23 = vrot.slane %v1639_v16, 1  ;;  %v642_v44 = vmax.f32 %v610_v10, 0.0  ;;  %v1161_v43 = vsel %vm11885_vm8, %v906_v32, %v1160_v27  ;;  %v536_v60 = vld [vmem:[%s11692_s28 + $0xa8] sm:$0xff]  ;;  %v1167_v10 = vld [vmem:[#allocation2 + $0x68] sm:$0x1] }
  0xf9   : > { %v904_v31 = vor.u32 %v902_v7, %v901_v20  ;;  %672 = vst [vmem:[%s11864_s19 + $0x78] sm:$0xff] %v640_v34  ;;  %v9288_v45 = vpack.c.bf16 %v640_v34, %v640_v34  ;;  %v1840_v48 = vrot.slane %v12047_v8, 1  ;;  %1162 = vst [vmem:[#allocation2 + $0x5c] sm:$0x1] %v1161_v43  ;;  %v9289_v49 = vpack.c.bf16 %v641_v37, %v641_v37  ;;  %v1174_v34 = vld [vmem:[#allocation2 + $0x74] sm:$0x1] }
  0xfa   : > { %v1635_v28 = vsel %vm1563_vm0, %v1630_v13, %v1634_v62  ;;  %v1642_v35 = vor.u32 %v1641_v23, %v1637_v15  ;;  %673 = vst [vmem:[%s11864_s19 + $0x80] sm:$0xff] %v641_v37  ;;  %674 = vst [vmem:[%s11864_s19 + $0x88] sm:$0xff] %v642_v44  ;;  %v9290_v36 = vpack.c.bf16 %v642_v44, %v642_v44  ;;  %v1839_v53 = vrot.slane %v8812_v25, 1 }
  0xfb   : > { %3461 = vmatprep.mubr.bf16.mxu0 %v1635_v28  ;;  %v905_v42 = vsel %vm11857_vm3, %v897_v19, %v904_v31  ;;  %v908_v55 = vshrl.u32 %v9287_v26, 16  ;;  %v911_v56 = vshll.u32 %v9287_v26, 16  ;;  %v916_v2 = vshrl.u32 %v9288_v45, 16  ;;  %9678 = vmatpush3.bf16.msra.mxu1 %v10828_v11  ;;  %v537_v26 = vld [vmem:[%s11692_s28 + $0xb0] sm:$0xff] }
  0xfc   : > { %3623 = vmatmul.mubr.bf16.gmra.mrb[4].mxu1 %v1838_v14  ;;  %v1647_v47 = vsel %vm1563_vm0, %v1642_v35, %v1646_v24  ;;  %1159 = vst [vmem:[#allocation2 + $0x58] sm:$0xf] %v905_v42  ;;  %v919_v57 = vshll.u32 %v9288_v45, 16  ;;  %v925_v4 = vshrl.u32 %v9289_v49, 16  ;;  %v928_v58 = vshll.u32 %v9289_v49, 16 }
  0xfd   : > { %v933_v50 = vshrl.u32 %v9290_v36, 16  ;;  %v1302_v62 = vld [vmem:[#allocation2 + $0x54] sm:$0xf]  ;;  %v936_v63 = vshll.u32 %v9290_v36, 16  ;;  %v573_v0 = vmul.f32 %v11834_v29, %v534_v51  ;;  %v611_v1 = vadd.f32 %v11839_v30, %v572_v54  ;;  %v1170_v24 = vld [vmem:[#allocation2 + $0x6c] sm:$0xf] }
  0xfe   : > { %3462 = vmatmul.mubr.bf16.gmra.mrb[20].mxu0 %v12032_v39  ;;  %v574_v3 = vmul.f32 %v11834_v29, %v535_v52  ;;  %v1240_v5 = vld [vmem:[#allocation2 + $0x54] sm:$0xf]  ;;  %v910_v39 = vrot.slane %v908_v55, 7  ;;  %v918_v8 = vrot.slane %v916_v2, 7  ;;  %v927_v12 = vrot.slane %v925_v4, 7  ;;  %v10832_v36 = vld [vmem:[#allocation9 + $0x1d0] sm:$0xff]  }
  0xff   : > { %3469 = vmatprep.mubr.bf16.mxu0 %v1647_v47  ;;  %v935_v13 = vrot.slane %v933_v50, 7  ;;  %v1841_v14 = vsel %vm1820_vm9, %v1839_v53, %v1840_v48  ;;  %v643_v41 = vmax.f32 %v611_v1, 0.0  ;;  %v575_v17 = vmul.f32 %v11834_v29, %v536_v60  ;;  %v1281_v28 = vld [vmem:[#allocation2 + $0x54] sm:$0xe]  ;;  %v10833_v2 = vld [vmem:[#allocation9 + $0x190] sm:$0xff]   ;;  %9679 = vmatprep.subr.bf16.mxu1 %v10832_v36 }
 0x100   : > { %v913_v15 = vor.u32 %v911_v56, %v910_v39  ;;  %v914_v16 = vrot.slane %v910_v39, 4  ;;  %v921_v18 = vor.u32 %v919_v57, %v918_v8  ;;  %v923_v19 = vrot.slane %v918_v8, 4  ;;  %v10772_v32 = vld [vmem:[#allocation2 + $0x5c] ss:$0 sps:$4 sm:$0x11]   ;;  %v539_v39 = vld [vmem:[%s11692_s28 + $0xc0] sm:$0xff]  ;;  %9680 = vmatpush3.bf16.msra.mxu1 %v10833_v2 }
 0x101   : > { %v930_v21 = vor.u32 %v928_v58, %v927_v12  ;;  %v938_v23 = vor.u32 %v936_v63, %v935_v13  ;;  %v612_v25 = vadd.f32 %v11839_v30, %v573_v0  ;;  %675 = vst [vmem:[%s11864_s19 + $0x90] sm:$0xff] %v643_v41  ;;  %v613_v27 = vadd.f32 %v11839_v30, %v574_v3  ;;  %v12114_v50 = vld [vmem:[%s14556_s1] ss:$0 sm:$0xff]  ;;  %v1177_v0 = vld [vmem:[#allocation2 + $0x78] sm:$0xf] }
 0x102   : > { %v922_v33 = vsel %vm11857_vm3, %v914_v16, %v921_v18  ;;  %v9291_v35 = vpack.c.bf16 %v643_v41, %v643_v41  ;;  %v1164_v37 = vsel %vm11878_vm7, %v913_v15, %v1163_v9  ;;  %v1168_v30 = vsel %vm11885_vm8, %v923_v19, %v1167_v10  ;;  %v10836_v9 = vld [vmem:[#allocation9 + $0x1d8] sm:$0xff]  }
 0x103   : > { %v1303_v20 = vld [vmem:[#allocation2 + $0x58] sm:$0xf]  ;;  %1166 = vst [vmem:[#allocation2 + $0x64] sm:$0xf] %v922_v33  ;;  %v931_v51 = vrot.slane %v927_v12, 4  ;;  %v1656_v42 = vshll.u32 %v10772_v32, 16  ;;  %v1171_v55 = vsel %vm11878_vm7, %v930_v21, %v1170_v24  ;;  %v576_v60 = vmul.f32 %v12114_v50, %v537_v26  ;;  %9681 = vmatprep.subr.bf16.mxu1 %v10836_v9 }
 0x104   : > { %v1241_v7 = vld [vmem:[#allocation2 + $0x58] sm:$0xf]  ;;  %v12084_v31 = vcombine.low %v1302_v62, %v1303_v20  ;;  %1165 = vst [vmem:[#allocation2 + $0x60] sm:$0xf] %v1164_v37  ;;  %1169 = vst [vmem:[#allocation2 + $0x68] sm:$0x1] %v1168_v30  ;;  %v578_v33 = vmul.f32 %v12114_v50, %v539_v39 }
 0x105   : > { %v12086_v29 = vcombine.low %v1240_v5, %v1241_v7  ;;  %v8813_v44 = vcombine.low %v1281_v28, %v1241_v7  ;;  %v1843_v47 = vrot.slane %v10772_v32, 1  ;;  %v939_v48 = vsel %vm11857_vm3, %v931_v51, %v938_v23  ;;  %1172 = vst [vmem:[#allocation2 + $0x6c] sm:$0xf] %v1171_v55  ;;  %v538_v5 = vld [vmem:[%s11692_s28 + $0xb8] sm:$0xff]  ;;  %v1181_v26 = vld [vmem:[#allocation2 + $0x80] sm:$0x1] }
 0x106   : > { %3470 = vmatmul.mubr.bf16.gmra.mrb[24].mxu0 %v12045_v40  ;;  %3630 = vmatprep.mubr.bf16.mxu1 %v12084_v31  ;;  %v12101_v40 = vld [vmem:[%s14557_s2] ss:$0 sm:$0xff]  ;;  %v940_v49 = vrot.slane %v935_v13, 4  ;;  %v1658_v53 = vrot.slane %v1656_v42, 1  ;;  %1173 = vst [vmem:[#allocation2 + $0x70] sm:$0xf] %v939_v48  ;;  %v577_v18 = vmul.f32 %v12114_v50, %v538_v5 }
 0x107   : > { %v1649_v54 = vshrl.u32 %v12086_v29, 16  ;;  %v1651_v22 = vshll.u32 %v12086_v29, 16  ;;  %v614_v43 = vadd.f32 %v12101_v40, %v575_v17  ;;  %3631 = vmatmul.mubr.bf16.gmra.mrb[8].mxu1 %v1841_v14  ;;  %v1842_v45 = vrot.slane %v8813_v44, 1  ;;  %v540_v14 = vld [vmem:[%s11692_s28 + $0xc8] sm:$0xff] }
 0x108   : > { %v644_v56 = vmax.f32 %v612_v25, 0.0  ;;  %v1175_v57 = vsel %vm11885_vm8, %v940_v49, %v1174_v34  ;;  %v942_v4 = vshrl.u32 %v9291_v35, 16  ;;  %v945_v58 = vshll.u32 %v9291_v35, 16 }
 0x109   : > { %v1653_v52 = vrot.slane %v1651_v22, 1  ;;  %1176 = vst [vmem:[#allocation2 + $0x74] sm:$0x1] %v1175_v57  ;;  %v645_v1 = vmax.f32 %v613_v27, 0.0  ;;  %v646_v3 = vmax.f32 %v614_v43, 0.0  ;;  %v1844_v17 = vsel %vm1820_vm9, %v1842_v45, %v1843_v47 }
 0x10a   : > { %676 = vst [vmem:[%s11864_s19 + $0x98] sm:$0xff] %v644_v56  ;;  %v9292_v63 = vpack.c.bf16 %v644_v56, %v644_v56  ;;  %v944_v8 = vrot.slane %v942_v4, 7  ;;  %v1305_v12 = vld [vmem:[#allocation2 + $0x64] sm:$0xf]  ;;  %v12130_v21 = vadd.f32 %v12101_v40, %v576_v60  ;;  %v579_v34 = vmul.f32 %v12114_v50, %v540_v14 }
 0x10b   : > { %v1654_v62 = vor.u32 %v1653_v52, %v1649_v54  ;;  %v1243_v13 = vld [vmem:[#allocation2 + $0x64] sm:$0xf]  ;;  %677 = vst [vmem:[%s11864_s19 + $0xa0] sm:$0xff] %v645_v1  ;;  %678 = vst [vmem:[%s11864_s19 + $0xa8] sm:$0xff] %v646_v3  ;;  %v1304_v41 = vld [vmem:[#allocation2 + $0x60] sm:$0xf]  ;;  %v12134_v32 = vpack.c.bf16 %v645_v1, %v645_v1  ;;  %v9294_v36 = vpack.c.bf16 %v646_v3, %v646_v3 }
 0x10c   : > { %v1242_v11 = vld [vmem:[#allocation2 + $0x60] sm:$0xf]  ;;  %v947_v15 = vor.u32 %v945_v58, %v944_v8  ;;  %v950_v16 = vshrl.u32 %v9292_v63, 16  ;;  %v12126_v19 = vcombine.low %v1304_v41, %v1305_v12  ;;  %v10777_v20 = vld [vmem:[#allocation2 + $0x68] ss:$0 sps:$4 sm:$0x11]   ;;  %v616_v2 = vadd.f32 %v12101_v40, %v577_v18 }
 0x10d   : > { %v1659_v10 = vsel %vm1563_vm0, %v1654_v62, %v1658_v53  ;;  %v8782_v28 = vcombine.low %v1242_v11, %v1243_v13  ;;  %v953_v7 = vshll.u32 %v9292_v63, 16  ;;  %v1307_v23 = vld [vmem:[#allocation2 + $0x70] sm:$0xf]  ;;  %v1282_v24 = vld [vmem:[#allocation2 + $0x60] sm:$0xe]  ;;  %v1668_v37 = vshll.u32 %v10777_v20, 16 }
 0x10e   : > { %3477 = vmatprep.mubr.bf16.mxu0 %v1659_v10  ;;  %v1245_v25 = vld [vmem:[#allocation2 + $0x70] sm:$0xf]  ;;  %v1178_v27 = vsel %vm11878_vm7, %v947_v15, %v1177_v0  ;;  %3638 = vmatprep.mubr.bf16.mxu1 %v12126_v19  ;;  %v1306_v44 = vld [vmem:[#allocation2 + $0x6c] sm:$0xf]  ;;  %v948_v30 = vrot.slane %v944_v8, 4  ;;  %v8814_v54 = vcombine.low %v1282_v24, %v1243_v13  ;;  %v1846_v22 = vrot.slane %v10777_v20, 1 }
 0x10f   : > { %3478 = vmatmul.mubr.bf16.gmra.mrb[28].mxu0 %v12086_v29  ;;  %v1661_v29 = vshrl.u32 %v8782_v28, 16  ;;  %v1663_v35 = vshll.u32 %v8782_v28, 16  ;;  %1179 = vst [vmem:[#allocation2 + $0x78] sm:$0xf] %v1178_v27  ;;  %3639 = vmatmul.mubr.bf16.gmra.mrb[12].mxu1 %v1844_v17  ;;  %v12139_v51 = vcombine.low %v1306_v44, %v1307_v23  ;;  %v1244_v42 = vld [vmem:[#allocation2 + $0x6c] sm:$0xf]  ;;  %v617_v0 = vadd.f32 %v12101_v40, %v578_v33 }
 0x110   : > { %v952_v43 = vrot.slane %v950_v16, 7  ;;  %v1670_v47 = vrot.slane %v1668_v37, 1  ;;  %v12141_v48 = vcombine.low %v1244_v42, %v1245_v25  ;;  %v1283_v49 = vld [vmem:[#allocation2 + $0x6c] sm:$0xe]  ;;  %v1845_v52 = vrot.slane %v8814_v54, 1  ;;  %v541_v15 = vld [vmem:[%s11692_s28 + $0xd0] sm:$0xff] }
 0x111   : > { %14621 = vst [vmem:[#allocation25_spill] sm:$0xff] %v12139_v51  ;;  %v1665_v45 = vrot.slane %v1663_v35, 1  ;;  %3646 = vmatprep.mubr.bf16.mxu1 %v12139_v51  ;;  %v10782_v53 = vld [vmem:[#allocation2 + $0x74] ss:$0 sps:$4 sm:$0x11]   ;;  %v8815_v60 = vcombine.low %v1283_v49, %v1245_v25  ;;  %v618_v1 = vadd.f32 %v12101_v40, %v579_v34  ;;  %v959_v12 = vshrl.u32 %v12134_v32, 16 }
 0x112   : > { %v955_v55 = vor.u32 %v953_v7, %v952_v43  ;;  %v957_v56 = vrot.slane %v952_v43, 4  ;;  %v1673_v4 = vshrl.u32 %v12141_v48, 16  ;;  %v1675_v58 = vshll.u32 %v12141_v48, 16  ;;  %v1184_v11 = vld [vmem:[#allocation2 + $0x84] sm:$0xf]  ;;  %v542_v16 = vld [vmem:[%s11692_s28 + $0xd8] sm:$0xff] }
 0x113   : > { %v1666_v57 = vor.u32 %v1665_v45, %v1661_v29  ;;  %v1680_v62 = vshll.u32 %v10782_v53, 16  ;;  %v1847_v5 = vsel %vm1820_vm9, %v1845_v52, %v1846_v22  ;;  %v1849_v10 = vrot.slane %v10782_v53, 1  ;;  %v1188_v33 = vld [vmem:[#allocation2 + $0x8c] sm:$0x1] }
 0x114   : > { %v956_v63 = vsel %vm11857_vm3, %v948_v30, %v955_v55  ;;  %v1677_v39 = vrot.slane %v1675_v58, 1  ;;  %v1182_v8 = vsel %vm11885_vm8, %v957_v56, %v1181_v26  ;;  %v1848_v14 = vrot.slane %v8815_v60, 1  ;;  %v10839_v35 = vld [vmem:[#allocation9 + $0x198] sm:$0xff]   ;;  %v10843_v58 = vld [vmem:[#allocation9 + $0x1e0] sm:$0xff]  }
 0x115   : > { %v1671_v3 = vsel %vm1563_vm0, %v1666_v57, %v1670_v47  ;;  %1180 = vst [vmem:[#allocation2 + $0x7c] sm:$0xf] %v956_v63  ;;  %v1682_v9 = vrot.slane %v1680_v62, 1  ;;  %1183 = vst [vmem:[#allocation2 + $0x80] sm:$0x1] %v1182_v8  ;;  %v962_v41 = vshll.u32 %v12134_v32, 16  ;;  %v580_v42 = vmul.f32 %v12114_v50, %v541_v15  ;;  %9682 = vmatpush3.bf16.msra.mxu1 %v10839_v35 }
 0x116   : > { %3485 = vmatprep.mubr.bf16.mxu0 %v1671_v3  ;;  %v1678_v13 = vor.u32 %v1677_v39, %v1673_v4  ;;  %v967_v17 = vshrl.u32 %v9294_v36, 16  ;;  %v1308_v18 = vld [vmem:[#allocation2 + $0x78] sm:$0xf]  ;;  %v961_v7 = vrot.slane %v959_v12, 7  ;;  %v970_v23 = vshll.u32 %v9294_v36, 16  ;;  %9683 = vmatprep.subr.bf16.mxu1 %v10843_v58 }
 0x117   : > { %3486 = vmatmul.mubr.bf16.gmra.mrb[32].mxu0 %v8782_v28  ;;  %3647 = vmatmul.mubr.bf16.gmra.mrb[16].mxu1 %v1847_v5  ;;  %v1246_v20 = vld [vmem:[#allocation2 + $0x78] sm:$0xf]  ;;  %v647_v24 = vmax.f32 %v12130_v21, 0.0  ;;  %v648_v25 = vmax.f32 %v616_v2, 0.0  ;;  %v649_v34 = vmax.f32 %v617_v0, 0.0  ;;  %v650_v29 = vmax.f32 %v618_v1, 0.0 }
 0x118   : > { %v1683_v28 = vsel %vm1563_vm0, %v1678_v13, %v1682_v9  ;;  %v969_v27 = vrot.slane %v967_v17, 7  ;;  %v1284_v32 = vld [vmem:[#allocation2 + $0x78] sm:$0xe]  ;;  %v964_v37 = vor.u32 %v962_v41, %v961_v7  ;;  %v965_v44 = vrot.slane %v961_v7, 4  ;;  %v1191_v57 = vld [vmem:[#allocation2 + $0x90] sm:$0xf] }
 0x119   : > { %3493 = vmatprep.mubr.bf16.mxu0 %v1683_v28  ;;  %679 = vst [vmem:[%s11864_s19 + $0xb0] sm:$0xff] %v647_v24  ;;  %680 = vst [vmem:[%s11864_s19 + $0xb8] sm:$0xff] %v648_v25  ;;  %v9295_v30 = vpack.c.bf16 %v647_v24, %v647_v24  ;;  %v9296_v54 = vpack.c.bf16 %v648_v25, %v648_v25  ;;  %v581_v43 = vmul.f32 %v12114_v50, %v542_v16  ;;  %v10844_v13 = vld [vmem:[#allocation9 + $0x1a0] sm:$0xff]   ;;  %v1195_v15 = vld [vmem:[#allocation2 + $0x98] sm:$0x1] }
 0x11a   : > { %v972_v22 = vor.u32 %v970_v23, %v969_v27  ;;  %v974_v21 = vrot.slane %v969_v27, 4  ;;  %681 = vst [vmem:[%s11864_s19 + $0xc0] sm:$0xff] %v649_v34  ;;  %682 = vst [vmem:[%s11864_s19 + $0xc8] sm:$0xff] %v650_v29  ;;  %v1850_v45 = vsel %vm1820_vm9, %v1848_v14, %v1849_v10  ;;  %v1185_v49 = vsel %vm11878_vm7, %v964_v37, %v1184_v11 }
 0x11b   : > { %v976_v36 = vshrl.u32 %v9295_v30, 16  ;;  %v979_v52 = vshll.u32 %v9295_v30, 16  ;;  %1186 = vst [vmem:[#allocation2 + $0x84] sm:$0xf] %v1185_v49  ;;  %v12174_v4 = vpack.c.bf16 %v649_v34, %v649_v34  ;;  %v984_v0 = vshrl.u32 %v9296_v54, 16  ;;  %9684 = vmatpush3.bf16.msra.mxu1 %v10844_v13  ;;  %v544_v34 = vld [vmem:[%s11692_s28 + $0xe8] sm:$0xff] }
 0x11c   : > { %v1309_v26 = vld [vmem:[#allocation2 + $0x7c] sm:$0xf]  ;;  %v10787_v56 = vld [vmem:[#allocation2 + $0x80] ss:$0 sps:$4 sm:$0x11]   ;;  %v973_v2 = vsel %vm11857_vm3, %v965_v44, %v972_v22  ;;  %v1189_v62 = vsel %vm11885_vm8, %v974_v21, %v1188_v33  ;;  %v12180_v39 = vpack.c.bf16 %v650_v29, %v650_v29  ;;  %v987_v11 = vshll.u32 %v9296_v54, 16 }
 0x11d   : > { %v1247_v47 = vld [vmem:[#allocation2 + $0x7c] sm:$0xf]  ;;  %v12170_v53 = vcombine.low %v1308_v18, %v1309_v26  ;;  %1187 = vst [vmem:[#allocation2 + $0x88] sm:$0xf] %v973_v2  ;;  %v978_v63 = vrot.slane %v976_v36, 7  ;;  %v1692_v5 = vshll.u32 %v10787_v56, 16  ;;  %v619_v18 = vadd.f32 %v12101_v40, %v580_v42 }
 0x11e   : > { %v8784_v55 = vcombine.low %v1246_v20, %v1247_v47  ;;  %v8816_v60 = vcombine.low %v1284_v32, %v1247_v47  ;;  %1190 = vst [vmem:[#allocation2 + $0x8c] sm:$0x1] %v1189_v62  ;;  %v1852_v9 = vrot.slane %v10787_v56, 1  ;;  %v986_v17 = vrot.slane %v984_v0, 7  ;;  %v543_v20 = vld [vmem:[%s11692_s28 + $0xe0] sm:$0xff]  ;;  %v10847_v49 = vld [vmem:[#allocation9 + $0x1e8] sm:$0xff]  }
 0x11f   : > { %14622 = vst [vmem:[#allocation26_spill] sm:$0xff] %v12170_v53  ;;  %3654 = vmatprep.mubr.bf16.mxu1 %v12170_v53  ;;  %3494 = vmatmul.mubr.bf16.gmra.mrb[36].mxu0 %v12141_v48  ;;  %v981_v10 = vor.u32 %v979_v52, %v978_v63  ;;  %v982_v12 = vrot.slane %v978_v63, 4  ;;  %v1694_v41 = vrot.slane %v1692_v5, 1  ;;  %v993_v16 = vshrl.u32 %v12174_v4, 16  ;;  %v545_v62 = vld [vmem:[%s11692_s28 + $0xf0] sm:$0xff] }
 0x120   : > { %v1685_v1 = vshrl.u32 %v8784_v55, 16  ;;  %v1687_v3 = vshll.u32 %v8784_v55, 16  ;;  %3655 = vmatmul.mubr.bf16.gmra.mrb[20].mxu1 %v1850_v45  ;;  %v1851_v8 = vrot.slane %v8816_v60, 1  ;;  %v989_v23 = vor.u32 %v987_v11, %v986_v17  ;;  %v1198_v45 = vld [vmem:[#allocation2 + $0x9c] sm:$0xf]  ;;  %9685 = vmatprep.subr.bf16.mxu1 %v10847_v49 }
 0x121   : > { %v1192_v48 = vsel %vm11878_vm7, %v981_v10, %v1191_v57  ;;  %v991_v24 = vrot.slane %v986_v17, 4  ;;  %v1001_v25 = vshrl.u32 %v12180_v39, 16  ;;  %v996_v32 = vshll.u32 %v12174_v4, 16  ;;  %v1205_v49 = vld [vmem:[#allocation2 + $0xa8] sm:$0xf] }
 0x122   : > { %v1689_v14 = vrot.slane %v1687_v3, 1  ;;  %1193 = vst [vmem:[#allocation2 + $0x90] sm:$0xf] %v1192_v48  ;;  %v1310_v28 = vld [vmem:[#allocation2 + $0x84] sm:$0xf]  ;;  %v620_v33 = vadd.f32 %v12101_v40, %v581_v43  ;;  %v1853_v37 = vsel %vm1820_vm9, %v1851_v8, %v1852_v9  ;;  %v990_v30 = vsel %vm11857_vm3, %v982_v12, %v989_v23  ;;  %v10850_v3 = vld [vmem:[#allocation9 + $0x1a8] sm:$0xff]  }
 0x123   : > { %v1248_v27 = vld [vmem:[#allocation2 + $0x84] sm:$0xf]  ;;  %v1196_v22 = vsel %vm11885_vm8, %v991_v24, %v1195_v15  ;;  %1194 = vst [vmem:[#allocation2 + $0x94] sm:$0xf] %v990_v30  ;;  %v582_v47 = vmul.f32 %v12114_v50, %v543_v20  ;;  %v995_v36 = vrot.slane %v993_v16, 7  ;;  %v1003_v52 = vrot.slane %v1001_v25, 7  ;;  %9686 = vmatpush3.bf16.msra.mxu1 %v10850_v3 }
 0x124   : > { %v1690_v7 = vor.u32 %v1689_v14, %v1685_v1  ;;  %v1311_v35 = vld [vmem:[#allocation2 + $0x88] sm:$0xf]  ;;  %v1285_v54 = vld [vmem:[#allocation2 + $0x84] sm:$0xe]  ;;  %1197 = vst [vmem:[#allocation2 + $0x98] sm:$0x1] %v1196_v22  ;;  %v583_v60 = vmul.f32 %v12114_v50, %v544_v34  ;;  %v584_v48 = vmul.f32 %v12114_v50, %v545_v62 }
 0x125   : > { %v1249_v44 = vld [vmem:[#allocation2 + $0x88] sm:$0xf]  ;;  %v12197_v21 = vcombine.low %v1310_v28, %v1311_v35  ;;  %v10792_v43 = vld [vmem:[#allocation2 + $0x8c] ss:$0 sps:$4 sm:$0x11]   ;;  %v1004_v56 = vshll.u32 %v12180_v39, 16  ;;  %v998_v0 = vor.u32 %v996_v32, %v995_v36 }
 0x126   : > { %v1695_v29 = vsel %vm1563_vm0, %v1690_v7, %v1694_v41  ;;  %v12199_v42 = vcombine.low %v1248_v27, %v1249_v44  ;;  %v8817_v26 = vcombine.low %v1285_v54, %v1249_v44  ;;  %v651_v2 = vmax.f32 %v619_v18, 0.0  ;;  %v1202_v9 = vld [vmem:[#allocation2 + $0xa4] sm:$0x1]  ;;  %v546_v12 = vld [vmem:[%s11692_s28 + $0xf8] sm:$0xff]  ;;  %s11429_s28 = smov [#allocation13]  }
 0x127   : > { %3501 = vmatprep.mubr.bf16.mxu0 %v1695_v29  ;;  %14623 = vst [vmem:[#allocation27_spill] sm:$0xff] %v12197_v21  ;;  %3662 = vmatprep.mubr.bf16.mxu1 %v12197_v21  ;;  %v1704_v58 = vshll.u32 %v10792_v43, 16  ;;  %v1855_v63 = vrot.slane %v10792_v43, 1  ;;  %v999_v1 = vrot.slane %v995_v36, 4  ;;  %v1006_v8 = vor.u32 %v1004_v56, %v1003_v52  ;;  %s11316_s15 = sshll.u32 %s11429_s28, 4  ;;  %s11317_s15 = int_to_ptr.vmem [resolvable:$false] %s11316_s15 }
 0x128   : > { %3502 = vmatmul.mubr.bf16.gmra.mrb[40].mxu0 %v8784_v55  ;;  %v1697_v57 = vshrl.u32 %v12199_v42, 16  ;;  %v1699_v4 = vshll.u32 %v12199_v42, 16  ;;  %3663 = vmatmul.mubr.bf16.gmra.mrb[24].mxu1 %v1853_v37  ;;  %v1854_v55 = vrot.slane %v8817_v26, 1  ;;  %683 = vst [vmem:[%s11864_s19 + $0xd0] sm:$0xff] %v651_v2  ;;  %v9299_v10 = vpack.c.bf16 %v651_v2, %v651_v2  ;;  %v10854_v2 = vld [vmem:[#allocation9 + $0x1f0] sm:$0xff]   ;;  %p11319_p12 = scmp.lt.s32.totalorder %s14358_s8, %s11317_s15 }
 0x129   : > { %v1706_v39 = vrot.slane %v1704_v58, 1  ;;  %v1312_v13 = vld [vmem:[#allocation2 + $0x90] sm:$0xf]  ;;  %v1008_v41 = vrot.slane %v1003_v52, 4  ;;  %v1199_v17 = vsel %vm11878_vm7, %v998_v0, %v1198_v45  ;;  %v652_v11 = vmax.f32 %v620_v33, 0.0  ;;  %9687 = vmatprep.subr.bf16.mxu1 %v10854_v2 }
 0x12a   : > { %v1701_v5 = vrot.slane %v1699_v4, 1  ;;  %v1250_v14 = vld [vmem:[#allocation2 + $0x90] sm:$0xf]  ;;  %v1007_v16 = vsel %vm11857_vm3, %v999_v1, %v1006_v8  ;;  %1200 = vst [vmem:[#allocation2 + $0x9c] sm:$0xf] %v1199_v17  ;;  %v1010_v20 = vshrl.u32 %v9299_v10, 16  ;;  %v1856_v24 = vsel %vm1820_vm9, %v1854_v55, %v1855_v63 }
 0x12b   : > { %v1286_v18 = vld [vmem:[#allocation2 + $0x90] sm:$0xe]  ;;  %v1013_v7 = vshll.u32 %v9299_v10, 16  ;;  %v1313_v23 = vld [vmem:[#allocation2 + $0x94] sm:$0xf]  ;;  %v1203_v28 = vsel %vm11885_vm8, %v1008_v41, %v1202_v9  ;;  %684 = vst [vmem:[%s11864_s19 + $0xd8] sm:$0xff] %v652_v11  ;;  %v9300_v27 = vpack.c.bf16 %v652_v11, %v652_v11  ;;  %v585_v32 = vmul.f32 %v12114_v50, %v546_v12 }
 0x12c   : > { %v1702_v15 = vor.u32 %v1701_v5, %v1697_v57  ;;  %v1251_v25 = vld [vmem:[#allocation2 + $0x94] sm:$0xf]  ;;  %1201 = vst [vmem:[#allocation2 + $0xa0] sm:$0xf] %v1007_v16  ;;  %v12221_v34 = vcombine.low %v1312_v13, %v1313_v23  ;;  %1204 = vst [vmem:[#allocation2 + $0xa4] sm:$0x1] %v1203_v28  ;;  %v621_v37 = vadd.f32 %v12101_v40, %v582_v47 }
 0x12d   : > { %v8786_v29 = vcombine.low %v1250_v14, %v1251_v25  ;;  %v10797_v35 = vld [vmem:[#allocation2 + $0x98] ss:$0 sps:$4 sm:$0x11]   ;;  %v8818_v44 = vcombine.low %v1286_v18, %v1251_v25  ;;  %v1012_v30 = vrot.slane %v1010_v20, 7  ;;  %v1018_v54 = vshrl.u32 %v9300_v27, 16  ;;  %v10855_v11 = vld [vmem:[#allocation9 + $0x1b0] sm:$0xff]  }
 0x12e   : > { %v1707_v33 = vsel %vm1563_vm0, %v1702_v15, %v1706_v39  ;;  %v622_v22 = vadd.f32 %v12101_v40, %v583_v60  ;;  %3670 = vmatprep.mubr.bf16.mxu1 %v12221_v34  ;;  %v1716_v26 = vshll.u32 %v10797_v35, 16  ;;  %v1021_v45 = vshll.u32 %v9300_v27, 16  ;;  %v1209_v0 = vld [vmem:[#allocation2 + $0xb0] sm:$0x1]  ;;  %9688 = vmatpush3.bf16.msra.mxu1 %v10855_v11 }
 0x12f   : > { %3509 = vmatprep.mubr.bf16.mxu0 %v1707_v33  ;;  %v1709_v50 = vshrl.u32 %v8786_v29, 16  ;;  %v1711_v43 = vshll.u32 %v8786_v29, 16  ;;  %v1857_v36 = vrot.slane %v8818_v44, 1  ;;  %v1858_v52 = vrot.slane %v10797_v35, 1 }
 0x130   : > { %3510 = vmatmul.mubr.bf16.gmra.mrb[44].mxu0 %v12199_v42  ;;  %3671 = vmatmul.mubr.bf16.gmra.mrb[28].mxu1 %v1856_v24  ;;  %v1015_v56 = vor.u32 %v1013_v7, %v1012_v30  ;;  %v1016_v47 = vrot.slane %v1012_v30, 4  ;;  %v1718_v4 = vrot.slane %v1716_v26, 1  ;;  %v1020_v58 = vrot.slane %v1018_v54, 7  ;;  %v1212_v26 = vld [vmem:[#allocation2 + $0xb4] sm:$0xf] }
 0x131   : > { %v1713_v57 = vrot.slane %v1711_v43, 1  ;;  %v653_v60 = vmax.f32 %v621_v37, 0.0  ;;  %v1314_v62 = vld [vmem:[#allocation2 + $0x9c] sm:$0xf]  ;;  %v1859_v55 = vsel %vm1820_vm9, %v1857_v36, %v1858_v52  ;;  %v623_v1 = vadd.f32 %v12101_v40, %v584_v48 }
 0x132   : > { %v1252_v42 = vld [vmem:[#allocation2 + $0x9c] sm:$0xf]  ;;  %v1206_v63 = vsel %vm11878_vm7, %v1015_v56, %v1205_v49  ;;  %v1023_v8 = vor.u32 %v1021_v45, %v1020_v58  ;;  %v1025_v9 = vrot.slane %v1020_v58, 4  ;;  %v654_v10 = vmax.f32 %v622_v22, 0.0 }
 0x133   : > { %v1714_v3 = vor.u32 %v1713_v57, %v1709_v50  ;;  %v1315_v5 = vld [vmem:[#allocation2 + $0xa0] sm:$0xf]  ;;  %1207 = vst [vmem:[#allocation2 + $0xa8] sm:$0xf] %v1206_v63  ;;  %685 = vst [vmem:[%s11864_s19 + $0xe0] sm:$0xff] %v653_v60  ;;  %v9301_v41 = vpack.c.bf16 %v653_v60, %v653_v60  ;;  %v624_v17 = vadd.f32 %v12101_v40, %v585_v32  ;;  %v655_v54 = vmax.f32 %v623_v1, 0.0 }
 0x134   : > { %v1253_v39 = vld [vmem:[#allocation2 + $0xa0] sm:$0xf]  ;;  %v12232_v12 = vcombine.low %v1314_v62, %v1315_v5  ;;  %v10802_v14 = vld [vmem:[#allocation2 + $0xa4] ss:$0 sps:$4 sm:$0x11]   ;;  %v1024_v15 = vsel %vm11857_vm3, %v1016_v47, %v1023_v8  ;;  %v1210_v18 = vsel %vm11885_vm8, %v1025_v9, %v1209_v0  ;;  %686 = vst [vmem:[%s11864_s19 + $0xe8] sm:$0xff] %v654_v10  ;;  %v9302_v20 = vpack.c.bf16 %v654_v10, %v654_v10 }
 0x135   : > { %v8787_v13 = vcombine.low %v1252_v42, %v1253_v39  ;;  %v1719_v48 = vsel %vm1563_vm0, %v1714_v3, %v1718_v4  ;;  %v1287_v16 = vld [vmem:[#allocation2 + $0x9c] sm:$0xe]  ;;  %v1728_v24 = vshll.u32 %v10802_v14, 16  ;;  %1208 = vst [vmem:[#allocation2 + $0xac] sm:$0xf] %v1024_v15  ;;  %v1861_v25 = vrot.slane %v10802_v14, 1 }
 0x136   : > { %3517 = vmatprep.mubr.bf16.mxu0 %v1719_v48  ;;  %3678 = vmatprep.mubr.bf16.mxu1 %v12232_v12  ;;  %1211 = vst [vmem:[#allocation2 + $0xb0] sm:$0x1] %v1210_v18  ;;  %v8819_v40 = vcombine.low %v1287_v16, %v1253_v39  ;;  %v1027_v28 = vshrl.u32 %v9301_v41, 16  ;;  %v1030_v27 = vshll.u32 %v9301_v41, 16  ;;  %v1035_v35 = vshrl.u32 %v9302_v20, 16  ;;  %687 = vst [vmem:[%s11864_s19 + $0xf0] sm:$0xff] %v655_v54 }
 0x137   : > { %v1721_v7 = vshrl.u32 %v8787_v13, 16  ;;  %v1723_v23 = vshll.u32 %v8787_v13, 16  ;;  %v1730_v33 = vrot.slane %v1728_v24, 1  ;;  %v1038_v37 = vshll.u32 %v9302_v20, 16  ;;  %v1216_v47 = vld [vmem:[#allocation2 + $0xbc] sm:$0x1] }
 0x138   : > { %3518 = vmatmul.mubr.bf16.gmra.mrb[48].mxu0 %v8786_v29  ;;  %3679 = vmatmul.mubr.bf16.gmra.mrb[32].mxu1 %v1859_v55  ;;  %v1860_v44 = vrot.slane %v8819_v40, 1  ;;  %v1029_v30 = vrot.slane %v1027_v28, 7  ;;  %v656_v22 = vmax.f32 %v624_v17, 0.0  ;;  %v1037_v36 = vrot.slane %v1035_v35, 7  ;;  %v10858_v41 = vld [vmem:[#allocation9 + $0x1f8] sm:$0xff]  }
 0x139   : > { %v1725_v32 = vrot.slane %v1723_v23, 1  ;;  %v9303_v2 = vpack.c.bf16 %v655_v54, %v655_v54  ;;  %v10860_v17 = vld [vmem:[#allocation9 + $0x1b8] sm:$0xff]   ;;  %9689 = vmatprep.subr.bf16.mxu1 %v10858_v41 }
 0x13a   : > { %v1316_v43 = vld [vmem:[#allocation2 + $0xa8] sm:$0xf]  ;;  %v1032_v45 = vor.u32 %v1030_v27, %v1029_v30  ;;  %v1033_v49 = vrot.slane %v1029_v30, 4  ;;  %688 = vst [vmem:[%s11864_s19 + $0xf8] sm:$0xff] %v656_v22  ;;  %v1862_v4 = vsel %vm1820_vm9, %v1860_v44, %v1861_v25  ;;  %v1040_v60 = vor.u32 %v1038_v37, %v1037_v36  ;;  %9690 = vmatpush3.bf16.msra.mxu1 %v10860_v17  ;;  %s11318_s19 = scalar_lea.vmem %s11317_s15, 8192 }
 0x13b   : > { %v1726_v50 = vor.u32 %v1725_v32, %v1721_v7  ;;  %v1254_v29 = vld [vmem:[#allocation2 + $0xa8] sm:$0xf]  ;;  %v1042_v0 = vrot.slane %v1037_v36, 4  ;;  %v9304_v1 = vpack.c.bf16 %v656_v22, %v656_v22  ;;  %v1044_v39 = vshrl.u32 %v9303_v2, 16  ;;  %p11320_p1 = scmp.lt.s32.totalorder %s11318_s19, %s11312_s25 }
 0x13c   : > { %v1288_v56 = vld [vmem:[#allocation2 + $0xa8] sm:$0xe]  ;;  %v1317_v57 = vld [vmem:[#allocation2 + $0xac] sm:$0xf]  ;;  %v1213_v62 = vsel %vm11878_vm7, %v1032_v45, %v1212_v26  ;;  %v1041_v3 = vsel %vm11857_vm3, %v1033_v49, %v1040_v60  ;;  %v1047_v8 = vshll.u32 %v9303_v2, 16 }
 0x13d   : > { %v1731_v52 = vsel %vm1563_vm0, %v1726_v50, %v1730_v33  ;;  %v1255_v58 = vld [vmem:[#allocation2 + $0xac] sm:$0xf]  ;;  %v12248_v55 = vcombine.low %v1316_v43, %v1317_v57  ;;  %v10807_v63 = vld [vmem:[#allocation2 + $0xb0] ss:$0 sps:$4 sm:$0x11]   ;;  %v1217_v11 = vsel %vm11885_vm8, %v1042_v0, %v1216_v47  ;;  %v1046_v48 = vrot.slane %v1044_v39, 7  ;;  %p11321_p2 = por %p11320_p1, %p11319_p12 }
 0x13e   : > { %3525 = vmatprep.mubr.bf16.mxu0 %v1731_v52  ;;  %v8788_v42 = vcombine.low %v1254_v29, %v1255_v58  ;;  %1214 = vst [vmem:[#allocation2 + $0xb4] sm:$0xf] %v1213_v62  ;;  %v8820_v5 = vcombine.low %v1288_v56, %v1255_v58  ;;  %v1740_v14 = vshll.u32 %v10807_v63, 16  ;;  %1215 = vst [vmem:[#allocation2 + $0xb8] sm:$0xf] %v1041_v3  ;;  %v1052_v18 = vshrl.u32 %v9304_v1, 16 }
 0x13f   : > { %14624 = vst [vmem:[#allocation28_spill] sm:$0xff] %v12248_v55  ;;  %3686 = vmatprep.mubr.bf16.mxu1 %v12248_v55  ;;  %1218 = vst [vmem:[#allocation2 + $0xbc] sm:$0x1] %v1217_v11  ;;  %v1055_v20 = vshll.u32 %v9304_v1, 16  ;;  %v1049_v23 = vor.u32 %v1047_v8, %v1046_v48  ;;  %v1864_v40 = vrot.slane %v10807_v63, 1  ;;  %v1050_v25 = vrot.slane %v1046_v48, 4  ;;  %p11322_p4 = pnand %p11321_p2, %p11315_p7 }
 0x140   : > { %3526 = vmatmul.mubr.bf16.gmra.mrb[52].mxu0 %v8787_v13  ;;  %v1733_v9 = vshrl.u32 %v8788_v42, 16  ;;  %v1735_v10 = vshll.u32 %v8788_v42, 16  ;;  %3687 = vmatmul.mubr.bf16.gmra.mrb[36].mxu1 %v1862_v4  ;;  %v1219_v13 = vld [vmem:[#allocation2 + $0xc0] sm:$0xf]  ;;  %v1742_v16 = vrot.slane %v1740_v14, 1  ;;  %v1863_v7 = vrot.slane %v8820_v5, 1 }
 0x141   : > { %v12255_v28 = vrot.slane %v1052_v18, 7  ;;  %v1220_v33 = vsel %vm11878_vm7, %v1049_v23, %v1219_v13  ;;  %v1290_v52 = vld [vmem:[#allocation2 + $0xc] sm:$0xf]  ;;  %v12267_v56 = vld [vmem:[#allocation2 + $0x10] sm:$0xf] }
 0x142   : > { %v1737_v15 = vrot.slane %v1735_v10, 1  ;;  %1221 = vst [vmem:[#allocation2 + $0xc0] sm:$0xf] %v1220_v33  ;;  %v1865_v50 = vsel %vm1820_vm9, %v1863_v7, %v1864_v40  ;;  %v1274_v47 = vld [vmem:[#allocation2] sm:$0xe]  ;;  %v12270_v3 = vcombine.low %v1290_v52, %v12267_v56  ;;  %v10823_v52 = vld [vmem:[#allocation9 + $0x148] sm:$0xff]  }
 0x143   : > { %v1057_v37 = vor.u32 %v1055_v20, %v12255_v28  ;;  %v1355_v57 = vld [vmem:[#allocation2 + $0x18] sm:$0xf]  ;;  %v1356_v58 = vld [vmem:[#allocation2 + $0x1c] sm:$0xf]  ;;  %v11158_v5 = vld [vmem:[#allocation2 + $0x4] sm:$0xf] }
 0x144   : > { %v1738_v24 = vor.u32 %v1737_v15, %v1733_v9  ;;  %v10863_v60 = vld [vmem:[#allocation2 + $0x20] ss:$0 sps:$4 sm:$0x11]   ;;  %v8806_v39 = vcombine.low %v1274_v47, %v11158_v5  ;;  %v8870_v8 = vcombine.low %v1355_v57, %v1356_v58  ;;  %v1357_v10 = vld [vmem:[#allocation2 + $0x24] sm:$0xf]  ;;  %v10824_v58 = vld [vmem:[#allocation9 + $0x108] sm:$0xff]  }
 0x145   : > { %v1318_v27 = vld [vmem:[#allocation2 + $0xb4] sm:$0xf]  ;;  %v1319_v30 = vld [vmem:[#allocation2 + $0xb8] sm:$0xf]  ;;  %v1058_v26 = vsel %vm11857_vm3, %v1050_v25, %v1057_v37  ;;  %v2501_v9 = vshll.u32 %v10863_v60, 16 }
 0x146   : > { %v1256_v32 = vld [vmem:[#allocation2 + $0xb4] sm:$0xf]  ;;  %v1743_v35 = vsel %vm1563_vm0, %v1738_v24, %v1742_v16  ;;  %v1257_v54 = vld [vmem:[#allocation2 + $0xb8] sm:$0xf]  ;;  %v12261_v22 = vcombine.low %v1318_v27, %v1319_v30  ;;  %1222 = vst [vmem:[#allocation2 + $0xc4] sm:$0xf] %v1058_v26 }
 0x147   : > { %v1289_v44 = vld [vmem:[#allocation2 + $0xb4] sm:$0xe]  ;;  %3533 = vmatprep.mubr.bf16.mxu0 %v1743_v35  ;;  %v8789_v43 = vcombine.low %v1256_v32, %v1257_v54  ;;  %v10812_v29 = vld [vmem:[#allocation2 + $0xbc] ss:$0 sps:$4 sm:$0x11]   ;;  %v2494_v16 = vshrl.u32 %v8870_v8, 16 }
 0x148   : > { %14625 = vst [vmem:[#allocation29_spill] sm:$0xff] %v12261_v22  ;;  %3534 = vmatmul.mubr.bf16.gmra.mrb[56].mxu0 %v8788_v42  ;;  %v8821_v45 = vcombine.low %v1289_v44, %v1257_v54  ;;  %3694 = vmatprep.mubr.bf16.mxu1 %v12261_v22  ;;  %v1752_v2 = vshll.u32 %v10812_v29, 16  ;;  %v1867_v63 = vrot.slane %v10812_v29, 1  ;;  %v1358_v17 = vld [vmem:[#allocation2 + $0x28] sm:$0xf]  ;;  %v2496_v18 = vshll.u32 %v8870_v8, 16 }
 0x149   : > { %v1745_v49 = vshrl.u32 %v8789_v43, 16  ;;  %v1747_v36 = vshll.u32 %v8789_v43, 16  ;;  %3695 = vmatmul.mubr.bf16.gmra.mrb[40].mxu1 %v1865_v50  ;;  %v1320_v1 = vld [vmem:[#allocation2 + $0xc0] sm:$0xf]  ;;  %v1292_v15 = vld [vmem:[#allocation2 + $0x18] sm:$0xf]  ;;  %v12280_v25 = vcombine.low %v1357_v10, %v1358_v17 }
 0x14a   : > { %v1754_v62 = vrot.slane %v1752_v2, 1  ;;  %v1866_v42 = vrot.slane %v8821_v45, 1  ;;  %v10866_v13 = vld [vmem:[#allocation2 + $0x2c] ss:$0 sps:$4 sm:$0x11]   ;;  %v1821_v23 = vrot.slane %v8806_v39, 1 }
 0x14b   : > { %v1749_v4 = vrot.slane %v1747_v36, 1  ;;  %v11159_v20 = vld [vmem:[#allocation2 + $0x8] ss:$0 sps:$4 sm:$0x11]   ;;  %v12278_v24 = vld [vmem:[#allocation2 + $0x1c] sm:$0xf] }
 0x14c   : > { %v1868_v48 = vsel %vm1820_vm9, %v1866_v42, %v1867_v63  ;;  %v1822_v7 = vrot.slane %v11159_v20, 1  ;;  %v1275_v40 = vld [vmem:[#allocation2 + $0xc] sm:$0xe]  ;;  %v2498_v27 = vrot.slane %v2496_v18, 1  ;;  %v2503_v32 = vrot.slane %v2501_v9, 1  ;;  %v10820_v26 = vld [vmem:[#allocation9 + $0x100] sm:$0xff]  }
 0x14d   : > { %v1750_v0 = vor.u32 %v1749_v4, %v1745_v49  ;;  %v1321_v41 = vld [vmem:[#allocation2 + $0xc4] sm:$0xf]  ;;  %v2513_v33 = vshll.u32 %v10866_v13, 16  ;;  %v2506_v35 = vshrl.u32 %v12280_v25, 16  ;;  %v2508_v37 = vshll.u32 %v12280_v25, 16 }
 0x14e   : > { %v12273_v11 = vcombine.low %v1320_v1, %v1321_v41  ;;  %v1359_v44 = vld [vmem:[#allocation2 + $0x30] sm:$0xf]  ;;  %v12285_v30 = vcombine.low %v1292_v15, %v12278_v24  ;;  %v2499_v54 = vor.u32 %v2498_v27, %v2494_v16  ;;  %v12287_v50 = vld [vmem:[#allocation2 + $0x34] sm:$0xf]  ;;  %v1294_v60 = vld [vmem:[#allocation2 + $0x24] sm:$0xf] }
 0x14f   : > { %v1755_v14 = vsel %vm1563_vm0, %v1750_v0, %v1754_v62  ;;  %v11160_v29 = vld [vmem:[#allocation2 + $0x10] sm:$0xf]  ;;  %v2510_v49 = vrot.slane %v2508_v37, 1  ;;  %v2515_v36 = vrot.slane %v2513_v33, 1  ;;  %v12292_v2 = vcombine.low %v1359_v44, %v12287_v50  ;;  %v1361_v0 = vld [vmem:[#allocation2 + $0x3c] sm:$0xf] }
 0x150   : > { %3541 = vmatprep.mubr.bf16.mxu0 %v1755_v14  ;;  %14626 = vst [vmem:[#allocation30_spill] sm:$0xff] %v12273_v11  ;;  %3702 = vmatprep.mubr.bf16.mxu1 %v12273_v11  ;;  %v8807_v45 = vcombine.low %v1275_v40, %v11160_v29  ;;  %v2504_v47 = vsel %vm1563_vm0, %v2499_v54, %v2503_v32  ;;  %v12294_v57 = vld [vmem:[#allocation2 + $0x38] ss:$0 sps:$4 sm:$0x11]   ;;  %v12301_v10 = vld [vmem:[#allocation2 + $0x40] sm:$0xf] }
 0x151   : > { %3542 = vmatmul.mubr.bf16.gmra.mrb[60].mxu0 %v8789_v43  ;;  %3703 = vmatmul.mubr.bf16.gmra.mrb[44].mxu1 %v1868_v48  ;;  %v1823_v43 = vsel %vm1820_vm9, %v1821_v23, %v1822_v7  ;;  %v2511_v4 = vor.u32 %v2510_v49, %v2506_v35  ;;  %v2518_v62 = vshrl.u32 %v12292_v2, 16  ;;  %v2520_v42 = vshll.u32 %v12292_v2, 16  ;;  %v11161_v5 = vld [vmem:[#allocation2 + $0x14] ss:$0 sps:$4 sm:$0x11]   ;;  %v10830_v14 = vld [vmem:[#allocation9 + $0x150] sm:$0xff]  }
 0x152   : > { %3582 = vmatprep.mubr.bf16.mxu0 %v12270_v3  ;;  %3904 = vmatprep.mubr.bf16.mxu1 %v2504_v47  ;;  %v2525_v63 = vshll.u32 %v12294_v57, 16  ;;  %v1824_v1 = vrot.slane %v8807_v45, 1  ;;  %v1825_v39 = vrot.slane %v11161_v5, 1  ;;  %v12303_v41 = vld [vmem:[#allocation2 + $0x28] sm:$0xf]  ;;  %v12306_v13 = vcombine.low %v1361_v0, %v12301_v10  ;;  %v10831_v27 = vld [vmem:[#allocation9 + $0x110] sm:$0xff]  }
 0x153   : > { %v2516_v9 = vsel %vm1563_vm0, %v2511_v4, %v2515_v36  ;;  %v1276_v17 = vld [vmem:[#allocation2 + $0x18] sm:$0xe]  ;;  %v2522_v48 = vrot.slane %v2520_v42, 1  ;;  %v12309_v16 = vld [vmem:[#allocation2 + $0x44] ss:$0 sps:$4 sm:$0x11]   ;;  %v12316_v32 = vcombine.low %v1294_v60, %v12303_v41 }
 0x154   : > { %14627 = vst [vmem:[#allocation31_spill] sm:$0xff] %v12309_v16  ;;  %v2527_v7 = vrot.slane %v2525_v63, 1  ;;  %v2532_v23 = vshll.u32 %v12306_v13, 16  ;;  %v11162_v33 = vld [vmem:[#allocation2 + $0x1c] sm:$0xf]  ;;  %v10834_v54 = vld [vmem:[#allocation9 + $0x158] sm:$0xff]  }
 0x155   : > { %v2523_v20 = vor.u32 %v2522_v48, %v2518_v62  ;;  %v8808_v35 = vcombine.low %v1276_v17, %v11162_v33  ;;  %v10835_v29 = vld [vmem:[#allocation9 + $0x118] sm:$0xff]   ;;  %v2537_v49 = vshll.u32 %v12309_v16, 16  ;;  %v1296_v60 = vld [vmem:[#allocation2 + $0x30] sm:$0xf]  ;;  %v12333_v5 = vld [vmem:[#allocation2 + $0x34] sm:$0xf] }
 0x156   : > { %v2534_v45 = vrot.slane %v2532_v23, 1  ;;  %v12322_v36 = vld [vmem:[#allocation2 + $0x4c] sm:$0xf]  ;;  %v11163_v0 = vld [vmem:[#allocation2 + $0x20] ss:$0 sps:$4 sm:$0x11]  }
 0x157   : > { %v12326_v4 = vld [vmem:[#allocation2 + $0xc] sm:$0xe]  ;;  %v2528_v62 = vsel %vm1563_vm0, %v2523_v20, %v2527_v7  ;;  %v1827_v63 = vrot.slane %v8808_v35, 1  ;;  %v2032_v17 = vshll.u32 %v12270_v3, 16  ;;  %v1339_v48 = vld [vmem:[#allocation2 + $0x18] sm:$0xe] }
 0x158   : > { %v12338_v20 = vld [vmem:[#allocation2 + $0x14] ss:$0 sps:$4 sm:$0x11]   ;;  %v2539_v33 = vrot.slane %v2537_v49, 1  ;;  %v1340_v7 = vld [vmem:[#allocation2 + $0x24] sm:$0xe] }
 0x159   : > { %3583 = vmatmul.mubr.bf16.vlgmr.msra.gmra.mrb[64].mxu0 %v1823_v43  ;;  %3905 = vmatmul.mubr.bf16.vlgmr.msra.gmra.mrb[48].mxu1 %v8870_v8  ;;  %v1826_v8 = vsel %vm1820_vm9, %v1824_v1, %v1825_v39  ;;  %v2530_v43 = vshrl.u32 %v12306_v13, 16  ;;  %v1828_v1 = vrot.slane %v11163_v0, 1  ;;  %v1277_v39 = vld [vmem:[#allocation2 + $0x24] sm:$0xe]  ;;  %v10845_v0 = vld [vmem:[#allocation9 + $0x168] sm:$0xff]   ;;  %v2286_v18 = vrot.slane %v12338_v20, 1 }
 0x15a   : > { %9564 = vmatpush3.bf16.msra.mxu0 %v10820_v26  ;;  %3590 = vmatprep.mubr.bf16.mxu0 %v12285_v30  ;;  %v1363_v26 = vld [vmem:[#allocation2 + $0x48] sm:$0xf]  ;;  %v1365_v49 = vld [vmem:[#allocation2 + $0x54] sm:$0xf]  ;;  %v12354_v35 = vld [vmem:[#allocation2 + $0x58] sm:$0xf]  ;;  %v8856_v15 = vcombine.low %v1340_v7, %v12303_v41 }
 0x15b   : > { %9565 = vmatprep.subr.bf16.mxu0 %v10823_v52  ;;  %3912 = vmatprep.mubr.bf16.mxu1 %v2516_v9  ;;  %v12330_v42 = vcombine.low %v1363_v26, %v12322_v36  ;;  %v1829_v9 = vsel %vm1820_vm9, %v1827_v63, %v1828_v1  ;;  %v2034_v52 = vrot.slane %v2032_v17, 1  ;;  %v10852_v17 = vld [vmem:[#allocation9 + $0x170] sm:$0xff]   ;;  %v12368_v47 = vld [vmem:[#allocation2 + $0x2c] ss:$0 sps:$4 sm:$0x11]  }
 0x15c   : > { %v2061_v41 = vshll.u32 %v12368_v47, 16  ;;  %v1367_v23 = vld [vmem:[#allocation2 + $0x60] sm:$0xf]  ;;  %v12397_v26 = vld [vmem:[#allocation2 + $0x64] sm:$0xf]  ;;  %v12402_v59 = vrot.slane %v8856_v15, 1 }
 0x15d   : > { %v12441_v11 = vld [vmem:[#allocation2 + $0x68] ss:$0 sps:$4 sm:$0x11]   ;;  %v11169_v16 = vld [vmem:[#allocation2 + $0x64] sm:$0xf] }
 0x15e   : > { %9566 = vmatpush3.bf16.msra.mxu0 %v10824_v58  ;;  %v10841_v58 = vld [vmem:[#allocation9 + $0x160] sm:$0xff]   ;;  %14634 = vst [vmem:[#allocation34_spill] sm:$0xff] %v12441_v11 }
 0x15f   : > { %9567 = vmatprep.subr.bf16.mxu0 %v10830_v14  ;;  %v12345_v14 = vld [vmem:[#allocation2 + $0x50] ss:$0 sps:$4 sm:$0x11]  }
 0x160   : > { %14628 = vst [vmem:[#allocation32_spill] sm:$0xff] %v12345_v14 }
 0x161   : > { %3591 = vmatmul.mubr.bf16.gmra.mrb[68].mxu0 %v1826_v8  ;;  %3913 = vmatmul.mubr.bf16.gmra.mrb[52].mxu1 %v12280_v25  ;;  %v10842_v8 = vld [vmem:[#allocation9 + $0x120] sm:$0xff]   ;;  %v8854_v25 = vcombine.low %v12326_v4, %v12267_v56  ;;  %v2037_v56 = vshll.u32 %v12338_v20, 16  ;;  %v10846_v4 = vld [vmem:[#allocation9 + $0x128] sm:$0xff]   ;;  %v10856_v20 = vld [vmem:[#allocation9 + $0x178] sm:$0xff]  }
 0x162   : > { %9568 = vmatpush3.bf16.msra.mxu0 %v10831_v27  ;;  %3598 = vmatprep.mubr.bf16.mxu0 %v12316_v32  ;;  %v2535_v27 = vor.u32 %v2534_v45, %v2530_v43  ;;  %v11164_v43 = vld [vmem:[#allocation2 + $0x28] sm:$0xf] }
 0x163   : > { %9569 = vmatprep.subr.bf16.mxu0 %v10834_v54  ;;  %3920 = vmatprep.mubr.bf16.mxu1 %v2528_v62  ;;  %v2544_v54 = vshll.u32 %v12330_v42, 16  ;;  %v12352_v62 = vcombine.low %v1296_v60, %v12333_v5  ;;  %v8809_v45 = vcombine.low %v1277_v39, %v11164_v43  ;;  %v12361_v60 = vld [vmem:[#allocation2 + $0x20] ss:$0 sps:$4 sm:$0x11]   ;;  %v12364_v39 = vld [vmem:[#allocation2 + $0x3c] sm:$0xe] }
 0x164   : > { %v2540_v1 = vsel %vm1563_vm0, %v2535_v27, %v2539_v33  ;;  %v12366_v43 = vld [vmem:[#allocation2 + $0x30] sm:$0xe]  ;;  %v11165_v33 = vld [vmem:[#allocation2 + $0x2c] ss:$0 sps:$4 sm:$0x11]   ;;  %v12378_v63 = vrot.slane %v2037_v56, 1 }
 0x165   : > { %v2546_v37 = vrot.slane %v2544_v54, 1  ;;  %v1830_v27 = vrot.slane %v8809_v45, 1  ;;  %v1831_v40 = vrot.slane %v11165_v33, 1  ;;  %v12381_v54 = vld [vmem:[#allocation2 + $0x38] ss:$0 sps:$4 sm:$0x11]  }
 0x166   : > { %9570 = vmatpush3.bf16.msra.mxu0 %v10835_v29  ;;  %v8855_v29 = vcombine.low %v1339_v48, %v12278_v24  ;;  %v2549_v24 = vshll.u32 %v12345_v14, 16  ;;  %v12373_v48 = vcombine.low %v1365_v49, %v12354_v35  ;;  %v10853_v49 = vld [vmem:[#allocation9 + $0x130] sm:$0xff]   ;;  %v12389_v56 = vld [vmem:[#allocation2 + $0x5c] ss:$0 sps:$4 sm:$0x11]  }
 0x167   : > { %9571 = vmatprep.subr.bf16.mxu0 %v10841_v58  ;;  %v2542_v58 = vshrl.u32 %v12330_v42, 16  ;;  %14629 = vst [vmem:[#allocation33_spill] sm:$0xff] %v12389_v56  ;;  %v11166_v33 = vld [vmem:[#allocation2 + $0x40] sm:$0xf]  ;;  %v1832_v45 = vsel %vm1820_vm9, %v1830_v27, %v1831_v40 }
 0x168   : > { %v12383_v44 = vrot.slane %v8855_v29, 1  ;;  %v8858_v29 = vcombine.low %v12364_v39, %v11166_v33  ;;  %v2554_v27 = vshrl.u32 %v12373_v48, 16  ;;  %v10861_v33 = vld [vmem:[#allocation9 + $0x200] sm:$0xff]  }
 0x169   : > { %3599 = vmatmul.mubr.bf16.gmra.mrb[72].mxu0 %v1829_v9  ;;  %v2285_v9 = vrot.slane %v8854_v25, 1  ;;  %3921 = vmatmul.mubr.bf16.gmra.mrb[56].mxu1 %v12292_v2  ;;  %v2049_v25 = vshll.u32 %v12361_v60, 16  ;;  %v2547_v7 = vor.u32 %v2546_v37, %v2542_v58  ;;  %v2556_v2 = vshll.u32 %v12373_v48, 16  ;;  %v1343_v37 = vld [vmem:[#allocation2 + $0x48] sm:$0xe] }
 0x16a   : > { %9572 = vmatpush3.bf16.msra.mxu0 %v10842_v8  ;;  %3606 = vmatprep.mubr.bf16.mxu0 %v12352_v62  ;;  %v8857_v8 = vcombine.low %v12366_v43, %v12333_v5  ;;  %v14631_v5 = vshrl.u32 %v12270_v3, 16  ;;  %v12410_v43 = vld [vmem:[#allocation2 + $0x44] ss:$0 sps:$4 sm:$0x11]   ;;  %v2561_v58 = vshll.u32 %v12389_v56, 16  ;;  %v12416_v3 = vcombine.low %v1367_v23, %v12397_v26 }
 0x16b   : > { %9573 = vmatprep.subr.bf16.mxu0 %v10845_v0  ;;  %3928 = vmatprep.mubr.bf16.mxu1 %v2540_v1  ;;  %v2551_v0 = vrot.slane %v2549_v24, 1  ;;  %v2287_v1 = vsel %vm1820_vm9, %v2285_v9, %v2286_v18  ;;  %v14630_v24 = vshll.u32 %v12285_v30, 16  ;;  %v12407_v40 = vrot.slane %v2049_v25, 1  ;;  %v1344_v9 = vld [vmem:[#allocation2 + $0x54] sm:$0xe] }
 0x16c   : > { %v2035_v39 = vor.u32 %v2034_v52, %v14631_v5  ;;  %v14632_v25 = vshll.u32 %v12316_v32, 16  ;;  %v12423_v18 = vrot.slane %v2061_v41, 1  ;;  %v14633_v23 = vshll.u32 %v12352_v62, 16  ;;  %v1346_v56 = vld [vmem:[#allocation2 + $0x6c] sm:$0xe] }
 0x16d   : > { %v2046_v46 = vrot.slane %v14630_v24, 1  ;;  %v2552_v15 = vsel %vm1563_vm0, %v2547_v7, %v2551_v0  ;;  %v2558_v24 = vrot.slane %v2556_v2, 1  ;;  %v12436_v52 = vrot.slane %v8858_v29, 1 }
 0x16e   : > { %9574 = vmatpush3.bf16.msra.mxu0 %v10846_v4  ;;  %v2073_v4 = vshll.u32 %v12381_v54, 16  ;;  %v12421_v5 = vrot.slane %v14632_v25, 1  ;;  %v12431_v2 = vrot.slane %v14633_v23, 1  ;;  %v2563_v0 = vrot.slane %v2561_v58, 1 }
 0x16f   : > { %9575 = vmatprep.subr.bf16.mxu0 %v10852_v17  ;;  %v10857_v17 = vld [vmem:[#allocation9 + $0x138] sm:$0xff]   ;;  %v2559_v7 = vor.u32 %v2558_v24, %v2554_v27  ;;  %v2568_v23 = vshll.u32 %v12416_v3, 16  ;;  %v14636_v58 = vrot.slane %v12361_v60, 1  ;;  %v14637_v24 = vshrl.u32 %v12285_v30, 16 }
 0x170   : > { %v2566_v60 = vshrl.u32 %v12416_v3, 16  ;;  %v14639_v41 = vshll.u32 %v12043_v6, 16 }
 0x171   : > { %3607 = vmatmul.mubr.bf16.gmra.mrb[76].mxu0 %v1832_v45  ;;  %v12425_v45 = vrot.slane %v8857_v8, 1  ;;  %3929 = vmatmul.mubr.bf16.gmra.mrb[60].mxu1 %v12306_v13  ;;  %v12438_v8 = vld [vmem:[#allocation2 + $0x50] ss:$0 sps:$4 sm:$0x11]   ;;  %v2040_v13 = vsel %vm1563_vm0, %v2035_v39, %v12378_v63  ;;  %v2290_v27 = vsel %vm1820_vm9, %v12383_v44, %v14636_v58  ;;  %v1345_v39 = vld [vmem:[#allocation2 + $0x60] sm:$0xe] }
 0x172   : > { %9576 = vmatpush3.bf16.msra.mxu0 %v10853_v49  ;;  %3743 = vmatprep.mubr.bf16.mxu0 %v2287_v1  ;;  %v12433_v49 = vrot.slane %v2073_v4, 1  ;;  %v11167_v1 = vld [vmem:[#allocation2 + $0x4c] sm:$0xf]  ;;  %v11168_v4 = vld [vmem:[#allocation2 + $0x58] sm:$0xf]  ;;  %v2097_v55 = vshll.u32 %v12438_v8, 16 }
 0x173   : > { %9577 = vmatprep.subr.bf16.mxu0 %v10856_v20  ;;  %v8859_v25 = vcombine.low %v1343_v37, %v11167_v1  ;;  %3936 = vmatprep.mubr.bf16.mxu1 %v2552_v15  ;;  %v10868_v20 = vld [vmem:[#allocation9 + $0x208] sm:$0xff]   ;;  %v8860_v22 = vcombine.low %v1344_v9, %v11168_v4  ;;  %v2085_v37 = vshll.u32 %v12410_v43, 16  ;;  %v1369_v15 = vld [vmem:[#allocation2 + $0x6c] sm:$0xf]  ;;  %v12448_v1 = vld [vmem:[#allocation2 + $0x70] sm:$0xf]  ;;  %v2047_v9 = vor.u32 %v2046_v46, %v14637_v24 }
 0x174   : > { %14635 = vst [vmem:[#allocation35_spill] sm:$0xff] %v12448_v1  ;;  %v12460_v63 = vld [vmem:[#allocation2 + $0x5c] ss:$0 sps:$4 sm:$0x11]   ;;  %v10875_v44 = vld [vmem:[#allocation9 + $0x210] sm:$0xff]   ;;  %v2564_v46 = vsel %vm1563_vm0, %v2559_v7, %v2563_v0  ;;  %v2570_v30 = vrot.slane %v2568_v23, 1  ;;  %v12470_v24 = vcombine.low %v1369_v15, %v12448_v1  ;;  %v8861_v7 = vcombine.low %v1345_v39, %v11169_v16 }
 0x175   : > { %v12462_v29 = vrot.slane %v8859_v25, 1  ;;  %v2573_v58 = vshll.u32 %v12441_v11, 16  ;;  %v12472_v25 = vrot.slane %v2085_v37, 1  ;;  %v12477_v14 = vrot.slane %v14639_v41, 1  ;;  %v1347_v0 = vld [vmem:[#allocation2 + $0x78] sm:$0xe] }
 0x176   : > { %9578 = vmatpush3.bf16.msra.mxu0 %v10857_v17  ;;  %v14638_v17 = vshll.u32 %v12030_v38, 16  ;;  %v2109_v23 = vshll.u32 %v12460_v63, 16  ;;  %v12485_v37 = vrot.slane %v2097_v55, 1  ;;  %v2571_v39 = vor.u32 %v2570_v30, %v2566_v60  ;;  %v11170_v1 = vld [vmem:[#allocation2 + $0x70] sm:$0xf]  ;;  %v10882_v60 = vld [vmem:[#allocation9 + $0x218] sm:$0xff]  }
 0x177   : > { %10307 = vmatprep.subr.bf16.mxu0 %v10861_v33  ;;  %v8862_v11 = vcombine.low %v1346_v56, %v11170_v1  ;;  %v2052_v55 = vsel %vm1563_vm0, %v2047_v9, %v12407_v40  ;;  %v1371_v15 = vld [vmem:[#allocation2 + $0x78] sm:$0xf]  ;;  %v12506_v30 = vrot.slane %v8861_v7, 1  ;;  %v11171_v40 = vld [vmem:[#allocation2 + $0x7c] sm:$0xf]  ;;  %v2578_v56 = vshrl.u32 %v12470_v24, 16 }
 0x178   : > { %v12458_v4 = vrot.slane %v14638_v17, 1  ;;  %v2575_v17 = vrot.slane %v2573_v58, 1  ;;  %v8863_v9 = vcombine.low %v1347_v0, %v11171_v40  ;;  %v14648_v40 = vshrl.u32 %v12316_v32, 16 }
 0x179   : > { %3744 = vmatmul.mubr.bf16.vlgmr.msra.gmra.mrb[80].mxu0 %v2040_v13  ;;  %v12479_v13 = vrot.slane %v8860_v22, 1  ;;  %3937 = vmatmul.mubr.bf16.gmra.mrb[64].mxu1 %v12330_v42  ;;  %v14642_v22 = vshll.u32 %v12084_v31, 16  ;;  %v2580_v42 = vshll.u32 %v12470_v24, 16  ;;  %14644 = vst [vmem:[#allocation38_spill] sm:$0xff] %v12506_v30  ;;  %v14651_v32 = vshll.u32 %v12139_v51, 16 }
 0x17a   : > { %10308 = vmatpush3.bf16.msra.mxu0 %v10861_v33  ;;  %3751 = vmatprep.mubr.bf16.mxu0 %v2290_v27  ;;  %v12483_v33 = vld [vmem:[#allocation2 + $0x68] ss:$0 sps:$4 sm:$0x11]   ;;  %v12489_v27 = vld [vmem:[#allocation2 + $0x74] ss:$0 sps:$4 sm:$0x11]   ;;  %v2576_v7 = vsel %vm1563_vm0, %v2571_v39, %v2575_v17 }
 0x17b   : > { %14640 = vst [vmem:[#allocation36_spill] sm:$0xff] %v12479_v13  ;;  %10309 = vmatprep.subr.bf16.mxu0 %v10868_v20  ;;  %14641 = vst [vmem:[#allocation37_spill] sm:$0xff] %v12483_v33  ;;  %3944 = vmatprep.mubr.bf16.mxu1 %v2564_v46  ;;  %v12493_v16 = vrot.slane %v14642_v22, 1  ;;  %v14643_v46 = vrot.slane %v12368_v47, 1  ;;  %v12502_v13 = vld [vmem:[#allocation2 + $0x7c] sm:$0xf] }
 0x17c   : > { %v12504_v22 = vrot.slane %v2109_v23, 1  ;;  %v2121_v1 = vshll.u32 %v12483_v33, 16  ;;  %v2585_v58 = vshll.u32 %v12489_v27, 16  ;;  %v1348_v23 = vld [vmem:[#allocation2 + $0x84] sm:$0xe]  ;;  %v2582_v30 = vrot.slane %v2580_v42, 1 }
 0x17d   : > { %v2293_v41 = vsel %vm1820_vm9, %v12402_v59, %v14643_v46  ;;  %v14645_v59 = vshll.u32 %v12126_v19, 16  ;;  %v12516_v46 = vld [vmem:[#allocation2 + $0x74] ss:$0 sps:$4 sm:$0x11]   ;;  %v12521_v0 = vcombine.low %v1371_v15, %v12502_v13  ;;  %v12526_v47 = vrot.slane %v8862_v11, 1 }
 0x17e   : > { %10310 = vmatpush3.bf16.msra.mxu0 %v10868_v20  ;;  %14647 = vst [vmem:[#allocation40_spill] sm:$0xff] %v12516_v46  ;;  %v10889_v33 = vld [vmem:[#allocation9 + $0x220] sm:$0xff]   ;;  %v12531_v17 = vrot.slane %v2121_v1, 1  ;;  %v1373_v42 = vld [vmem:[#allocation2 + $0x84] sm:$0xf]  ;;  %v2133_v11 = vshll.u32 %v12516_v46, 16 }
 0x17f   : > { %10311 = vmatprep.subr.bf16.mxu0 %v10875_v44  ;;  %v12513_v20 = vrot.slane %v14645_v59, 1  ;;  %v2059_v59 = vor.u32 %v12421_v5, %v14648_v40  ;;  %14649 = vst [vmem:[#allocation41_spill] sm:$0xff] %v12526_v47  ;;  %v12534_v15 = vld [vmem:[#allocation2 + $0x88] sm:$0xf]  ;;  %v12538_v5 = vrot.slane %v14651_v32, 1  ;;  %v10896_v40 = vld [vmem:[#allocation9 + $0x228] sm:$0xff]  }
 0x180   : > { %14650 = vst [vmem:[#allocation42_spill] sm:$0xff] %v12531_v17  ;;  %v12544_v1 = vld [vmem:[#allocation2 + $0x80] ss:$0 sps:$4 sm:$0x11]   ;;  %v11172_v39 = vld [vmem:[#allocation2 + $0x88] sm:$0xf]  ;;  %v12550_v32 = vcombine.low %v1373_v42, %v12534_v15 }
 0x181   : > { %14646 = vst [vmem:[#allocation39_spill] sm:$0xff] %v12513_v20  ;;  %3752 = vmatmul.mubr.bf16.gmra.mrb[84].mxu0 %v2052_v55  ;;  %v12528_v20 = vld [vmem:[#allocation2 + $0x80] ss:$0 sps:$4 sm:$0x11]   ;;  %3945 = vmatmul.mubr.bf16.gmra.mrb[68].mxu1 %v12373_v48  ;;  %14652 = vst [vmem:[#allocation43_spill] sm:$0xff] %v12538_v5  ;;  %v2583_v55 = vor.u32 %v2582_v30, %v2578_v56  ;;  %v2592_v48 = vshll.u32 %v12521_v0, 16  ;;  %v8864_v47 = vcombine.low %v1348_v23, %v11172_v39 }
 0x182   : > { %3759 = vmatprep.mubr.bf16.mxu0 %v2293_v41  ;;  %10312 = vmatpush3.bf16.msra.mxu0 %v10875_v44  ;;  %v2587_v41 = vrot.slane %v2585_v58, 1  ;;  %v12541_v44 = vrot.slane %v8863_v9, 1  ;;  %14654 = vst [vmem:[#allocation45_spill] sm:$0xff] %v12544_v1  ;;  %v12552_v5 = vld [vmem:[#allocation2 + $0x8c] ss:$0 sps:$4 sm:$0x11]  }
 0x183   : > { %10313 = vmatprep.subr.bf16.mxu0 %v10882_v60  ;;  %3952 = vmatprep.mubr.bf16.mxu1 %v2576_v7  ;;  %v2064_v7 = vsel %vm1563_vm0, %v2059_v59, %v12423_v18  ;;  %v14655_v30 = vrot.slane %v12381_v54, 1  ;;  %v2597_v9 = vshll.u32 %v12528_v20, 16  ;;  %v12559_v23 = vld [vmem:[#allocation2 + $0x8c] ss:$0 sps:$4 sm:$0x11]   ;;  %v14657_v18 = vshrl.u32 %v12352_v62, 16 }
 0x184   : > { %14653 = vst [vmem:[#allocation44_spill] sm:$0xff] %v12541_v44  ;;  %14656 = vst [vmem:[#allocation46_spill] sm:$0xff] %v12559_v23  ;;  %v12564_v59 = vrot.slane %v2133_v11, 1  ;;  %v1375_v42 = vld [vmem:[#allocation2 + $0x90] sm:$0xf]  ;;  %v2588_v54 = vsel %vm1563_vm0, %v2583_v55, %v2587_v41  ;;  %v14659_v44 = vshll.u32 %v12170_v53, 16 }
 0x185   : > { %v2296_v56 = vsel %vm1820_vm9, %v12425_v45, %v14655_v30  ;;  %v12567_v58 = vld [vmem:[#allocation2 + $0x94] sm:$0xf]  ;;  %v2590_v45 = vshrl.u32 %v12521_v0, 16  ;;  %v2594_v30 = vrot.slane %v2592_v48, 1  ;;  %v2604_v11 = vshll.u32 %v12550_v32, 16 }
 0x186   : > { %10314 = vmatpush3.bf16.msra.mxu0 %v10882_v60  ;;  %v2071_v60 = vor.u32 %v12431_v2, %v14657_v18  ;;  %14658 = vst [vmem:[#allocation47_spill] sm:$0xff] %v12564_v59  ;;  %v12573_v51 = vrot.slane %v14659_v44, 1  ;;  %v2145_v2 = vshll.u32 %v12544_v1, 16  ;;  %v12578_v18 = vrot.slane %v8864_v47, 1 }
 0x187   : > { %10315 = vmatprep.subr.bf16.mxu0 %v10889_v33  ;;  %v2599_v41 = vrot.slane %v2597_v9, 1  ;;  %v2602_v55 = vshrl.u32 %v12550_v32, 16  ;;  %v2609_v48 = vshll.u32 %v12552_v5, 16  ;;  %v12584_v44 = vcombine.low %v1375_v42, %v12567_v58  ;;  %v12587_v62 = vld [vmem:[#allocation2 + $0x98] ss:$0 sps:$4 sm:$0x11]  }
 0x188   : > { %14660 = vst [vmem:[#allocation48_spill] sm:$0xff] %v12573_v51  ;;  %14661 = vst [vmem:[#allocation49_spill] sm:$0xff] %v12578_v18  ;;  %v2157_v39 = vshll.u32 %v12559_v23, 16  ;;  %v2595_v47 = vor.u32 %v2594_v30, %v2590_v45  ;;  %v1377_v18 = vld [vmem:[#allocation2 + $0x9c] sm:$0xf]  ;;  %v2076_v1 = vsel %vm1563_vm0, %v2071_v60, %v12433_v49  ;;  %v14662_v42 = vrot.slane %v12410_v43, 1 }
 0x189   : > { %3760 = vmatmul.mubr.bf16.gmra.mrb[88].mxu0 %v2064_v7  ;;  %v1349_v7 = vld [vmem:[#allocation2 + $0x90] sm:$0xe]  ;;  %3953 = vmatmul.mubr.bf16.gmra.mrb[72].mxu1 %v12416_v3  ;;  %v12589_v51 = vld [vmem:[#allocation2 + $0xa0] sm:$0xf]  ;;  %v10910_v3 = vld [vmem:[#allocation9 + $0x238] sm:$0xff]   ;;  %v12599_v17 = vrot.slane %v2145_v2, 1 }
 0x18a   : > { %3767 = vmatprep.mubr.bf16.mxu0 %v2296_v56  ;;  %10316 = vmatpush3.bf16.msra.mxu0 %v10889_v33  ;;  %v10903_v33 = vld [vmem:[#allocation9 + $0x230] sm:$0xff]   ;;  %v1350_v56 = vld [vmem:[#allocation2 + $0x9c] sm:$0xe]  ;;  %v11173_v9 = vld [vmem:[#allocation2 + $0x94] sm:$0xf]  ;;  %v2299_v59 = vsel %vm1820_vm9, %v12436_v52, %v14662_v42  ;;  %v14663_v49 = vshll.u32 %v12197_v21, 16 }
 0x18b   : > { %10317 = vmatprep.subr.bf16.mxu0 %v10896_v40  ;;  %3960 = vmatprep.mubr.bf16.mxu1 %v2588_v54  ;;  %v8865_v53 = vcombine.low %v1349_v7, %v11173_v9  ;;  %v2606_v54 = vrot.slane %v2604_v11, 1  ;;  %v12597_v46 = vld [vmem:[#allocation2 + $0x98] ss:$0 sps:$4 sm:$0x11]   ;;  %v2616_v7 = vshll.u32 %v12584_v44, 16  ;;  %v2621_v52 = vshll.u32 %v12587_v62, 16 }
 0x18c   : > { %v1223_v9 = vld [vmem:[#allocation2 + $0xc8] sm:$0x1]  ;;  %v12606_v43 = vrot.slane %v14663_v49, 1  ;;  %v14665_v60 = vrot.slane %v12255_v28, 4  ;;  %v11174_v11 = vld [vmem:[#allocation2 + $0xa0] sm:$0xf]  ;;  %v2600_v49 = vsel %vm1563_vm0, %v2595_v47, %v2599_v41 }
 0x18d   : > { %v8866_v42 = vcombine.low %v1350_v56, %v11174_v11  ;;  %v14666_v30 = vshrl.u32 %v12030_v38, 16  ;;  %v12620_v21 = vld [vmem:[#allocation2 + $0xa4] ss:$0 sps:$4 sm:$0x11]   ;;  %v12622_v23 = vrot.slane %v2157_v39, 1  ;;  %v2169_v28 = vshll.u32 %v12597_v46, 16 }
 0x18e   : > { %10318 = vmatpush3.bf16.msra.mxu0 %v10896_v40  ;;  %14664 = vst [vmem:[#allocation50_spill] sm:$0xff] %v12606_v43  ;;  %v12610_v40 = vcombine.low %v1377_v18, %v12589_v51  ;;  %v1224_v2 = vsel %vm11885_vm8, %v14665_v60, %v1223_v9  ;;  %v2611_v43 = vrot.slane %v2609_v48, 1  ;;  %v2607_v18 = vor.u32 %v2606_v54, %v2602_v55  ;;  %v1379_v9 = vld [vmem:[#allocation2 + $0xa8] sm:$0xf]  ;;  %v12625_v60 = vld [vmem:[#allocation2 + $0xac] sm:$0xf] }
 0x18f   : > { %10319 = vmatprep.subr.bf16.mxu0 %v10903_v33  ;;  %v2083_v45 = vor.u32 %v12458_v4, %v14666_v30  ;;  %1225 = vst [vmem:[#allocation2 + $0xc8] sm:$0x1] %v1224_v2  ;;  %v2614_v38 = vshrl.u32 %v12584_v44, 16  ;;  %v2618_v4 = vrot.slane %v2616_v7, 1  ;;  %v2623_v39 = vrot.slane %v2621_v52, 1 }
 0x190   : > { %v14667_v48 = vshll.u32 %v12221_v34, 16  ;;  %v12641_v47 = vrot.slane %v8866_v42, 1  ;;  %v12644_v54 = vcombine.low %v1379_v9, %v12625_v60  ;;  %v1406_v30 = vld [vmem:[#allocation2 + $0x3c] sm:$0xe]  ;;  %v1407_v7 = vld [vmem:[#allocation2 + $0x48] sm:$0xe] }
 0x191   : > { %3768 = vmatmul.mubr.bf16.gmra.mrb[92].mxu0 %v2076_v1  ;;  %3961 = vmatmul.mubr.bf16.gmra.mrb[76].mxu1 %v12470_v24  ;;  %v12629_v1 = vrot.slane %v8865_v53, 1  ;;  %v2088_v24 = vsel %vm1563_vm0, %v2083_v45, %v12472_v25  ;;  %v2633_v53 = vshll.u32 %v12620_v21, 16  ;;  %v12646_v52 = vrot.slane %v2169_v28, 1  ;;  %v12659_v2 = vld [vmem:[#allocation2 + $0xb0] ss:$0 sps:$4 sm:$0x11]  }
 0x192   : > { %3775 = vmatprep.mubr.bf16.mxu0 %v2299_v59  ;;  %10320 = vmatpush3.bf16.msra.mxu0 %v10903_v33  ;;  %v1405_v59 = vld [vmem:[#allocation2 + $0x30] sm:$0xe]  ;;  %v12635_v56 = vrot.slane %v14667_v48, 1  ;;  %v2628_v33 = vshll.u32 %v12610_v40, 16  ;;  %v1408_v48 = vld [vmem:[#allocation2 + $0x54] sm:$0xe]  ;;  %v2612_v28 = vsel %vm1563_vm0, %v2607_v18, %v2611_v43  ;;  %v2619_v41 = vor.u32 %v2618_v4, %v2614_v38 }
 0x193   : > { %10321 = vmatprep.subr.bf16.mxu0 %v10910_v3  ;;  %3968 = vmatprep.mubr.bf16.mxu1 %v2600_v49  ;;  %v8904_v49 = vcombine.low %v1405_v59, %v12287_v50  ;;  %v14668_v25 = vrot.slane %v12438_v8, 1  ;;  %v14669_v42 = vshrl.u32 %v12043_v6, 16  ;;  %v1409_v11 = vld [vmem:[#allocation2 + $0x60] sm:$0xe]  ;;  %v2756_v50 = vrot.slane %v12294_v57, 1 }
 0x194   : > { %v12661_v61 = vrot.slane %v2628_v33, 1  ;;  %v8905_v8 = vcombine.low %v1406_v30, %v12301_v10  ;;  %v12668_v59 = vrot.slane %v2633_v53, 1  ;;  %v2640_v43 = vshll.u32 %v12644_v54, 16  ;;  %v1381_v33 = vld [vmem:[#allocation2 + $0xb4] sm:$0xf] }
 0x195   : > { %v2302_v45 = vsel %vm1820_vm9, %v12462_v29, %v14668_v25  ;;  %v2095_v9 = vor.u32 %v12477_v14, %v14669_v42  ;;  %v8906_v29 = vcombine.low %v1407_v7, %v12322_v36  ;;  %v8907_v18 = vcombine.low %v1408_v48, %v12354_v35  ;;  %v1382_v53 = vld [vmem:[#allocation2 + $0xb8] sm:$0xf]  ;;  %v1410_v7 = vld [vmem:[#allocation2 + $0x6c] sm:$0xe] }
 0x196   : > { %10322 = vmatpush3.bf16.msra.mxu0 %v10910_v3  ;;  %v2638_v4 = vshrl.u32 %v12644_v54, 16  ;;  %v2755_v57 = vrot.slane %v8904_v49, 1  ;;  %v2758_v25 = vrot.slane %v8905_v8, 1  ;;  %v8908_v10 = vcombine.low %v1409_v11, %v12397_v26  ;;  %v14670_v35 = vld [vmem:[#allocation31_spill] sm:$0xff]  ;;  %v14673_v11 = vld [vmem:[#allocation32_spill] sm:$0xff] }
 0x197   : > { %v2100_v36 = vsel %vm1563_vm0, %v2095_v9, %v12485_v37  ;;  %v2759_v30 = vrot.slane %v14670_v35, 1  ;;  %v14671_v48 = vrot.slane %v12460_v63, 1  ;;  %v2761_v37 = vrot.slane %v8906_v29, 1  ;;  %v1411_v9 = vld [vmem:[#allocation2 + $0x78] sm:$0xe] }
 0x198   : > { %v12686_v26 = vsel %vm1820_vm9, %v2755_v57, %v2756_v50  ;;  %v2762_v42 = vrot.slane %v14673_v11, 1  ;;  %v1413_v35 = vld [vmem:[#allocation2 + $0x90] sm:$0xe]  ;;  %v2624_v50 = vsel %vm1563_vm0, %v2619_v41, %v2623_v39  ;;  %v14675_v57 = vld [vmem:[#allocation33_spill] sm:$0xff]  ;;  %v12702_v11 = vcombine.low %v1381_v33, %v1382_v53 }
 0x199   : > { %3776 = vmatmul.mubr.bf16.gmra.mrb[96].mxu0 %v2088_v24  ;;  %3969 = vmatmul.mubr.bf16.gmra.mrb[80].mxu1 %v12521_v0  ;;  %v2645_v24 = vshll.u32 %v12659_v2, 16  ;;  %v1412_v0 = vld [vmem:[#allocation2 + $0x84] sm:$0xe]  ;;  %v12695_v63 = vsel %vm1820_vm9, %v2758_v25, %v2759_v30  ;;  %v2771_v25 = vrot.slane %v12489_v27, 1  ;;  %v8910_v30 = vcombine.low %v1411_v9, %v12502_v13 }
 0x19a   : > { %3783 = vmatprep.mubr.bf16.mxu0 %v2302_v45  ;;  %v14672_v45 = vld [vmem:[#allocation36_spill] sm:$0xff]  ;;  %3976 = vmatprep.mubr.bf16.mxu1 %v2612_v28  ;;  %v1414_v28 = vld [vmem:[#allocation2 + $0x9c] sm:$0xe]  ;;  %v12699_v29 = vsel %vm1820_vm9, %v2761_v37, %v2762_v42  ;;  %v2774_v41 = vrot.slane %v12528_v20, 1  ;;  %v8911_v39 = vcombine.low %v1412_v0, %v12534_v15  ;;  %v2777_v37 = vrot.slane %v12552_v5, 1 }
 0x19b   : > { %v2305_v49 = vsel %vm1820_vm9, %v14672_v45, %v14671_v48  ;;  %v2765_v48 = vrot.slane %v14675_v57, 1  ;;  %v2767_v45 = vrot.slane %v8908_v10, 1  ;;  %v2773_v27 = vrot.slane %v8910_v30, 1  ;;  %v12725_v9 = vld [vmem:[#allocation2 + $0xbc] ss:$0 sps:$4 sm:$0x11]  }
 0x19c   : > { %v2776_v42 = vrot.slane %v8911_v39, 1  ;;  %v8913_v13 = vcombine.low %v1414_v28, %v12589_v51  ;;  %v2652_v5 = vshll.u32 %v12702_v11, 16  ;;  %v1416_v28 = vld [vmem:[#allocation2 + $0xb4] sm:$0xe]  ;;  %v2786_v30 = vrot.slane %v12659_v2, 1  ;;  %v14683_v39 = vld [vmem:[#allocation39_spill] sm:$0xff] }
 0x19e   : > { %v9355_v55 = vpop.f32.mrb[0].mxu0  ;;  %v2782_v51 = vrot.slane %v8913_v13, 1  ;;  %v10930_v13 = vld [vmem:[#allocation7] sm:$0xff]  }
 0x19f   : > { %v9356_v3 = vpop.f32.mrb[1].mxu0  ;;  %10355 = vmatprep.subr.bf16.mxu1 %v10930_v13 }
 0x1a0   : > { %v12666_v6 = vadd.f32 %v9356_v3, %v9355_v55  ;;  %v9358_v14 = vpop.f32.mrb[2].mxu0  ;;  %v14674_v3 = vshrl.u32 %v12084_v31, 16  ;;  %v14676_v31 = vld [vmem:[#allocation34_spill] sm:$0xff]  ;;  %10356 = vmatpush3.bf16.msra.mxu1 %v10930_v13  ;;  %v1385_v13 = vld [vmem:[#allocation2 + $0xcc] sm:$0xf] }
 0x1a1   : > { %v9359_v38 = vpop.f32.mrb[3].mxu0  ;;  %3784 = vmatmul.mubr.bf16.gmra.mrb[100].mxu0 %v2100_v36  ;;  %3977 = vmatmul.mubr.bf16.gmra.mrb[84].mxu1 %v12550_v32  ;;  %v2783_v36 = vrot.slane %v12620_v21, 1  ;;  %v14678_v32 = vshrl.u32 %v12610_v40, 16 }
 0x1a2   : > { %v12676_v55 = vadd.f32 %v9359_v38, %v9358_v14  ;;  %v2107_v8 = vor.u32 %v12493_v16, %v14674_v3  ;;  %v12692_v14 = vrot.slane %v2640_v43, 1  ;;  %v2764_v38 = vrot.slane %v8907_v18, 1  ;;  %v14677_v43 = vld [vmem:[#allocation35_spill] sm:$0xff]  ;;  %3791 = vmatprep.mubr.bf16.mxu0 %v2305_v49  ;;  %3984 = vmatprep.mubr.bf16.mxu1 %v2624_v50  ;;  %v1415_v49 = vld [vmem:[#allocation2 + $0xa8] sm:$0xe] }
 0x1a3   : > { %v2768_v16 = vrot.slane %v14676_v31, 1  ;;  %v8909_v3 = vcombine.low %v1410_v7, %v14677_v43  ;;  %v8912_v7 = vcombine.low %v1413_v35, %v12567_v58  ;;  %v12729_v58 = vsel %vm1820_vm9, %v2773_v27, %v2774_v41  ;;  %v1386_v27 = vld [vmem:[#allocation2 + $0xd0] sm:$0xf] }
 0x1a4   : > { %v12708_v18 = vsel %vm1820_vm9, %v2764_v38, %v2765_v48  ;;  %v2780_v38 = vrot.slane %v12587_v62, 1  ;;  %v12732_v62 = vsel %vm1820_vm9, %v2776_v42, %v2777_v37  ;;  %v2631_v0 = vor.u32 %v12661_v61, %v14678_v32  ;;  %v1384_v61 = vld [vmem:[#allocation2 + $0xc4] sm:$0xf]  ;;  %v14684_v32 = vld [vmem:[#allocation42_spill] sm:$0xff] }
 0x1a5   : > { %v12714_v10 = vsel %vm1820_vm9, %v2767_v45, %v2768_v16  ;;  %v2770_v33 = vrot.slane %v8909_v3, 1  ;;  %v2779_v15 = vrot.slane %v8912_v7, 1  ;;  %v8914_v21 = vcombine.low %v1415_v49, %v12625_v60  ;;  %v14679_v45 = vld [vmem:[#allocation37_spill] sm:$0xff]  ;;  %v14681_v16 = vld [vmem:[#allocation38_spill] sm:$0xff]  ;;  %v1383_v3 = vld [vmem:[#allocation2 + $0xc0] sm:$0xf] }
 0x1a6   : > { %v2112_v50 = vsel %vm1563_vm0, %v2107_v8, %v12504_v22  ;;  %v12744_v57 = vsel %vm1820_vm9, %v2782_v51, %v2783_v36  ;;  %v8915_v48 = vcombine.low %v1416_v28, %v1382_v53  ;;  %v14680_v31 = vrot.slane %v14679_v45, 1  ;;  %v12764_v7 = vld [vmem:[#allocation2 + $0xc8] ss:$0 sps:$4 sm:$0x11]   ;;  %v1418_v49 = vld [vmem:[#allocation2 + $0xcc] sm:$0xe] }
 0x1a7   : > { %v12722_v20 = vsel %vm1820_vm9, %v2770_v33, %v2771_v25  ;;  %v12738_v35 = vsel %vm1820_vm9, %v2779_v15, %v2780_v38  ;;  %v2785_v25 = vrot.slane %v8914_v21, 1  ;;  %v2789_v60 = vrot.slane %v12725_v9, 1  ;;  %v12770_v38 = vld [vmem:[#allocation2 + $0xd4] ss:$0 sps:$4 sm:$0x11]   ;;  %v14687_v28 = vld [vmem:[#allocation41_spill] sm:$0xff] }
 0x1a8   : > { %v2308_v43 = vsel %vm1820_vm9, %v14681_v16, %v14680_v31  ;;  %v2788_v41 = vrot.slane %v8915_v48, 1  ;;  %v2636_v22 = vsel %vm1563_vm0, %v2631_v0, %v12668_v59  ;;  %v14682_v53 = vshrl.u32 %v12126_v19, 16  ;;  %v1417_v19 = vld [vmem:[#allocation2 + $0xc0] sm:$0xe] }
 0x1a9   : > { %3792 = vmatmul.mubr.bf16.gmra.mrb[104].mxu0 %v2112_v50  ;;  %v12755_v8 = vsel %vm1820_vm9, %v2785_v25, %v2786_v30  ;;  %3985 = vmatmul.mubr.bf16.gmra.mrb[88].mxu1 %v12584_v44  ;;  %v2647_v59 = vrot.slane %v2645_v24, 1  ;;  %v12768_v42 = vcombine.low %v1383_v3, %v1384_v61  ;;  %v2643_v36 = vor.u32 %v12692_v14, %v2638_v4  ;;  %v14685_v24 = vld [vmem:[#allocation40_spill] sm:$0xff] }
 0x1aa   : > { %3799 = vmatprep.mubr.bf16.mxu0 %v2308_v43  ;;  %v2119_v33 = vor.u32 %v14683_v39, %v14682_v53  ;;  %v12761_v37 = vsel %vm1820_vm9, %v2788_v41, %v2789_v60  ;;  %3992 = vmatprep.mubr.bf16.mxu1 %v2636_v22  ;;  %v2650_v44 = vshrl.u32 %v12702_v11, 16  ;;  %v8916_v51 = vcombine.low %v1417_v19, %v1384_v61  ;;  %v14690_v53 = vld [vmem:[#allocation43_spill] sm:$0xff] }
 0x1ab   : > { %v14686_v21 = vrot.slane %v14685_v24, 1  ;;  %v2657_v48 = vshll.u32 %v12725_v9, 16  ;;  %v8917_v45 = vcombine.low %v1418_v49, %v1386_v27  ;;  %v2654_v14 = vrot.slane %v2652_v5, 1  ;;  %v14688_v5 = vld [vmem:[#allocation25_spill] sm:$0xff]  ;;  %v14691_v49 = vld [vmem:[#allocation47_spill] sm:$0xff] }
 0x1ac   : > { %v2124_v0 = vsel %vm1563_vm0, %v2119_v33, %v14684_v32  ;;  %v2791_v16 = vrot.slane %v8916_v51, 1  ;;  %v2792_v43 = vrot.slane %v12764_v7, 1  ;;  %v2664_v61 = vshll.u32 %v12768_v42, 16  ;;  %v14692_v24 = vld [vmem:[#allocation45_spill] sm:$0xff] }
 0x1ad   : > { %v2311_v50 = vsel %vm1820_vm9, %v14687_v28, %v14686_v21  ;;  %v2794_v25 = vrot.slane %v8917_v45, 1  ;;  %v2795_v30 = vrot.slane %v12770_v38, 1  ;;  %v2648_v9 = vsel %vm1563_vm0, %v2643_v36, %v2647_v59  ;;  %v14694_v28 = vld [vmem:[#allocation44_spill] sm:$0xff] }
 0x1ae   : > { %v12792_v60 = vsel %vm1820_vm9, %v2791_v16, %v2792_v43  ;;  %v14689_v22 = vshrl.u32 %v14688_v5, 16  ;;  %v2659_v51 = vrot.slane %v2657_v48, 1  ;;  %v2662_v32 = vshrl.u32 %v12768_v42, 16  ;;  %v1351_v16 = vld [vmem:[#allocation2 + $0xa8] sm:$0xe]  ;;  %v14695_v43 = vld [vmem:[#allocation26_spill] sm:$0xff] }
 0x1af   : > { %v12798_v33 = vsel %vm1820_vm9, %v2794_v25, %v2795_v30  ;;  %v14693_v21 = vrot.slane %v14692_v24, 1  ;;  %v14697_v25 = vld [vmem:[#allocation48_spill] sm:$0xff] }
 0x1b0   : > { %v2131_v39 = vor.u32 %v14690_v53, %v14689_v22  ;;  %v10902_v24 = vld [vmem:[#allocation2 + $0xa4] ss:$0 sps:$4 sm:$0x11]  }
 0x1b1   : > { %v9361_v15 = vpop.f32.mrb[4].mxu0  ;;  %3800 = vmatmul.mubr.bf16.gmra.mrb[108].mxu0 %v2124_v0  ;;  %3993 = vmatmul.mubr.bf16.gmra.mrb[92].mxu1 %v12610_v40  ;;  %v2666_v40 = vrot.slane %v2664_v61, 1 }
 0x1b2   : > { %v9362_v2 = vpop.f32.mrb[5].mxu0  ;;  %3807 = vmatprep.mubr.bf16.mxu0 %v2311_v50  ;;  %4000 = vmatprep.mubr.bf16.mxu1 %v2648_v9  ;;  %v2136_v59 = vsel %vm1563_vm0, %v2131_v39, %v14691_v49  ;;  %v2314_v50 = vsel %vm1820_vm9, %v14694_v28, %v14693_v21  ;;  %v10933_v9 = vld [vmem:[#allocation7 + $0x8] sm:$0xff]  }
 0x1b3   : > { %v12783_v31 = vadd.f32 %v9362_v2, %v9361_v15  ;;  %v9364_v4 = vpop.f32.mrb[6].mxu0  ;;  %v2655_v15 = vor.u32 %v2654_v14, %v2650_v44  ;;  %v12811_v44 = vcombine.low %v1385_v13, %v1386_v27  ;;  %v2667_v27 = vor.u32 %v2666_v40, %v2662_v32  ;;  %10357 = vmatprep.subr.bf16.mxu1 %v10933_v9  ;;  %v11175_v13 = vld [vmem:[#allocation2 + $0xac] sm:$0xf] }
 0x1b4   : > { %v9365_v3 = vpop.f32.mrb[7].mxu0  ;;  %v2681_v32 = vshll.u32 %v12770_v38, 16  ;;  %10358 = vmatpush3.bf16.msra.mxu1 %v10933_v9  ;;  %v1352_v9 = vld [vmem:[#allocation2 + $0xb4] sm:$0xe] }
 0x1b5   : > { %v12788_v41 = vadd.f32 %v9365_v3, %v9364_v4  ;;  %v2669_v4 = vshll.u32 %v12764_v7, 16  ;;  %v2660_v14 = vsel %vm1563_vm0, %v2655_v15, %v2659_v51  ;;  %v14696_v3 = vshrl.u32 %v14695_v43, 16 }
 0x1b6   : > { %v2676_v61 = vshll.u32 %v12811_v44, 16  ;;  %v2674_v39 = vshrl.u32 %v12811_v44, 16 }
 0x1b7   : > { %v2143_v30 = vor.u32 %v14697_v25, %v14696_v3  ;;  %v2671_v5 = vrot.slane %v2669_v4, 1 }
 0x1b9   : > { %v9367_v19 = vpop.f32.mrb[8].mxu0  ;;  %3808 = vmatmul.mubr.bf16.gmra.mrb[112].mxu0 %v2136_v59  ;;  %4001 = vmatmul.mubr.bf16.gmra.mrb[96].mxu1 %v12644_v54  ;;  %v2148_v22 = vsel %vm1563_vm0, %v2143_v30, %v12599_v17  ;;  %v14698_v54 = vld [vmem:[#allocation46_spill] sm:$0xff]  ;;  %v14700_v59 = vld [vmem:[#allocation49_spill] sm:$0xff]  ;;  %v2678_v17 = vrot.slane %v2676_v61, 1  ;;  %v2672_v28 = vsel %vm1563_vm0, %v2667_v27, %v2671_v5  ;;  %v2683_v61 = vrot.slane %v2681_v32, 1  ;;  %v14706_v32 = vld [vmem:[#allocation28_spill] sm:$0xff] }
 0x1ba   : > { %v9368_v36 = vpop.f32.mrb[9].mxu0  ;;  %3815 = vmatprep.mubr.bf16.mxu0 %v2314_v50  ;;  %4008 = vmatprep.mubr.bf16.mxu1 %v2660_v14  ;;  %v14699_v49 = vrot.slane %v14698_v54, 1  ;;  %v14701_v50 = vld [vmem:[#allocation27_spill] sm:$0xff] }
 0x1bb   : > { %v12804_v0 = vadd.f32 %v9368_v36, %v9367_v19  ;;  %v9370_v2 = vpop.f32.mrb[10].mxu0  ;;  %v8867_v19 = vcombine.low %v1351_v16, %v11175_v13  ;;  %v14702_v40 = vshrl.u32 %v14701_v50, 16  ;;  %v14704_v16 = vshll.u32 %v12232_v12, 16  ;;  %v11176_v50 = vld [vmem:[#allocation2 + $0xb8] sm:$0xf] }
 0x1bc   : > { %v9371_v45 = vpop.f32.mrb[11].mxu0  ;;  %v2317_v36 = vsel %vm1820_vm9, %v14700_v59, %v14699_v49  ;;  %v2679_v5 = vor.u32 %v2678_v17, %v2674_v39  ;;  %v2322_v59 = vrot.slane %v10902_v24, 1  ;;  %v10906_v39 = vld [vmem:[#allocation2 + $0xb0] ss:$0 sps:$4 sm:$0x11]  }
 0x1bd   : > { %v12813_v48 = vadd.f32 %v9371_v45, %v9370_v2  ;;  %v14703_v45 = vld [vmem:[#allocation50_spill] sm:$0xff]  ;;  %v2178_v43 = vrot.slane %v14704_v16, 1  ;;  %v12839_v38 = vrot.slane %v8867_v19, 1  ;;  %v14705_v19 = vrot.slane %v12597_v46, 1 }
 0x1be   : > { %v2155_v4 = vor.u32 %v14703_v45, %v14702_v40  ;;  %v2684_v17 = vsel %vm1563_vm0, %v2679_v5, %v2683_v61  ;;  %v8868_v40 = vcombine.low %v1352_v9, %v11176_v50  ;;  %v14707_v45 = vshrl.u32 %v12221_v34, 16  ;;  %v10934_v61 = vld [vmem:[#allocation7 + $0x10] sm:$0xff]  }
 0x1bf   : > { %10359 = vmatprep.subr.bf16.mxu1 %v10934_v61 }
 0x1c0   : > { %v2167_v46 = vor.u32 %v12635_v56, %v14707_v45  ;;  %v2327_v5 = vrot.slane %v8868_v40, 1  ;;  %10360 = vmatpush3.bf16.msra.mxu1 %v10934_v61 }
 0x1c1   : > { %v9373_v7 = vpop.f32.mrb[12].mxu0  ;;  %3816 = vmatmul.mubr.bf16.gmra.mrb[116].mxu0 %v2148_v22  ;;  %4009 = vmatmul.mubr.bf16.gmra.mrb[100].mxu1 %v12702_v11  ;;  %v2160_v22 = vsel %vm1563_vm0, %v2155_v4, %v12622_v23  ;;  %v2320_v11 = vsel %vm1820_vm9, %v12629_v1, %v14705_v19 }
 0x1c2   : > { %v9374_v53 = vpop.f32.mrb[13].mxu0  ;;  %3823 = vmatprep.mubr.bf16.mxu0 %v2317_v36  ;;  %4016 = vmatprep.mubr.bf16.mxu1 %v2672_v28  ;;  %v2172_v34 = vsel %vm1563_vm0, %v2167_v46, %v12646_v52  ;;  %v14709_v52 = vshrl.u32 %v12232_v12, 16 }
 0x1c3   : > { %v12824_v15 = vadd.f32 %v9374_v53, %v9373_v7  ;;  %v9376_v51 = vpop.f32.mrb[14].mxu0 }
 0x1c4   : > { %v9377_v2 = vpop.f32.mrb[15].mxu0 }
 0x1c5   : > { %v12831_v21 = vadd.f32 %v9377_v2, %v9376_v51  ;;  %v2181_v51 = vshll.u32 %v10902_v24, 16  ;;  %v2186_v2 = vshrl.u32 %v14706_v32, 16 }
 0x1c7   : > { %v9491_v14 = vpop.f32.mrb[0].mxu1  ;;  %v2183_v1 = vrot.slane %v2181_v51, 1 }
 0x1c8   : > { %v9492_v3 = vpop.f32.mrb[1].mxu1 }
 0x1c9   : > { %v9493_v25 = vadd.f32 %v9492_v3, %v9491_v14  ;;  %v9494_v30 = vpop.f32.mrb[2].mxu1  ;;  %v9379_v7 = vpop.f32.mrb[16].mxu0  ;;  %3824 = vmatmul.mubr.bf16.gmra.mrb[120].mxu0 %v2160_v22  ;;  %v14708_v14 = vshll.u32 %v14706_v32, 16  ;;  %4017 = vmatmul.mubr.bf16.gmra.mrb[104].mxu1 %v12768_v42  ;;  %v2323_v42 = vsel %vm1820_vm9, %v12641_v47, %v2322_v59  ;;  %v1353_v59 = vld [vmem:[#allocation2 + $0xc0] sm:$0xe] }
 0x1ca   : > { %v9495_v27 = vpop.f32.mrb[3].mxu1  ;;  %v9380_v53 = vpop.f32.mrb[17].mxu0  ;;  %3831 = vmatprep.mubr.bf16.mxu0 %v2320_v11  ;;  %4024 = vmatprep.mubr.bf16.mxu1 %v2684_v17  ;;  %v2179_v11 = vor.u32 %v2178_v43, %v14709_v52  ;;  %v14710_v17 = vld [vmem:[#allocation29_spill] sm:$0xff] }
 0x1cb   : > { %v9496_v13 = vadd.f32 %v9495_v27, %v9494_v30  ;;  %v9381_v54 = vadd.f32 %v9380_v53, %v9379_v7  ;;  %v9382_v49 = vpop.f32.mrb[18].mxu0  ;;  %v2190_v16 = vrot.slane %v14708_v14, 1  ;;  %v2198_v47 = vshrl.u32 %v14710_v17, 16 }
 0x1cc   : > { %v9383_v36 = vpop.f32.mrb[19].mxu0  ;;  %v2184_v50 = vsel %vm1563_vm0, %v2179_v11, %v2183_v1  ;;  %v11177_v1 = vld [vmem:[#allocation2 + $0xc4] sm:$0xf] }
 0x1cd   : > { %v9384_v28 = vadd.f32 %v9383_v36, %v9382_v49  ;;  %v12850_v23 = vadd.f32 %v9493_v25, %v9381_v54  ;;  %v2193_v54 = vshll.u32 %v10906_v39, 16  ;;  %v10909_v36 = vld [vmem:[#allocation2 + $0xbc] ss:$0 sps:$4 sm:$0x11]  }
 0x1cf   : > { %v9497_v4 = vpop.f32.mrb[4].mxu1  ;;  %v12858_v3 = vadd.f32 %v9496_v13, %v9384_v28  ;;  %v2325_v13 = vrot.slane %v10906_v39, 1  ;;  %v2195_v40 = vrot.slane %v2193_v54, 1 }
 0x1d0   : > { %v9498_v24 = vpop.f32.mrb[5].mxu1 }
 0x1d1   : > { %v9499_v30 = vadd.f32 %v9498_v24, %v9497_v4  ;;  %v9500_v25 = vpop.f32.mrb[6].mxu1  ;;  %v9385_v9 = vpop.f32.mrb[20].mxu0  ;;  %3832 = vmatmul.mubr.bf16.gmra.mrb[124].mxu0 %v2172_v34  ;;  %4025 = vmatmul.mubr.bf16.gmra.mrb[108].mxu1 %v12811_v44  ;;  %v2326_v12 = vsel %vm1820_vm9, %v12839_v38, %v2325_v13  ;;  %v8869_v34 = vcombine.low %v1353_v59, %v11177_v1  ;;  %v10935_v38 = vld [vmem:[#allocation7 + $0x18] sm:$0xff]  }
 0x1d2   : > { %v9501_v7 = vpop.f32.mrb[7].mxu1  ;;  %v9386_v56 = vpop.f32.mrb[21].mxu0  ;;  %3839 = vmatprep.mubr.bf16.mxu0 %v2323_v42  ;;  %v10913_v42 = vld [vmem:[#allocation2 + $0xc8] ss:$0 sps:$4 sm:$0x11]   ;;  %10361 = vmatprep.subr.bf16.mxu1 %v10935_v38 }
 0x1d3   : > { %v9502_v27 = vadd.f32 %v9501_v7, %v9500_v25  ;;  %v9387_v22 = vadd.f32 %v9386_v56, %v9385_v9  ;;  %v9388_v53 = vpop.f32.mrb[22].mxu0  ;;  %v2328_v25 = vrot.slane %v10909_v36, 1  ;;  %v2191_v9 = vor.u32 %v2190_v16, %v2186_v2  ;;  %10362 = vmatpush3.bf16.msra.mxu1 %v10935_v38 }
 0x1d4   : > { %v9389_v51 = vpop.f32.mrb[23].mxu0  ;;  %v2205_v7 = vshll.u32 %v10909_v36, 16  ;;  %v2330_v16 = vrot.slane %v8869_v34, 1 }
 0x1d5   : > { %v9390_v49 = vadd.f32 %v9389_v51, %v9388_v53  ;;  %v12864_v19 = vadd.f32 %v9499_v30, %v9387_v22  ;;  %v14711_v22 = vshll.u32 %v14710_v17, 16  ;;  %v2196_v51 = vsel %vm1563_vm0, %v2191_v9, %v2195_v40 }
 0x1d6   : > { %v2329_v2 = vsel %vm1820_vm9, %v2327_v5, %v2328_v25  ;;  %v2331_v5 = vrot.slane %v10913_v42, 1 }
 0x1d7   : > { %v12869_v32 = vadd.f32 %v9502_v27, %v9390_v49  ;;  %v2202_v53 = vrot.slane %v14711_v22, 1  ;;  %v2207_v49 = vrot.slane %v2205_v7, 1  ;;  %v11178_v7 = vld [vmem:[#allocation2 + $0x1c] sm:$0xf] }
 0x1d8   : > { %v2332_v9 = vsel %vm1820_vm9, %v2330_v16, %v2331_v5 }
 0x1d9   : > { %v9391_v28 = vpop.f32.mrb[24].mxu0  ;;  %3840 = vmatmul.mubr.bf16.gmra.mrb[128].mxu0 %v2184_v50 }
 0x1da   : > { %v9392_v39 = vpop.f32.mrb[25].mxu0  ;;  %v9503_v45 = vpop.f32.mrb[8].mxu1  ;;  %3847 = vmatprep.mubr.bf16.mxu0 %v2326_v12  ;;  %v1403_v12 = vld [vmem:[#allocation2 + $0x18] sm:$0xe] }
 0x1db   : > { %v9393_v46 = vadd.f32 %v9392_v39, %v9391_v28  ;;  %v9394_v4 = vpop.f32.mrb[26].mxu0  ;;  %v9504_v43 = vpop.f32.mrb[9].mxu1  ;;  %v14712_v28 = vld [vmem:[#allocation30_spill] sm:$0xff]  ;;  %v8902_v1 = vcombine.low %v1403_v12, %v11178_v7  ;;  %v11180_v12 = vld [vmem:[#allocation2 + $0x28] sm:$0xf] }
 0x1dc   : > { %v9395_v24 = vpop.f32.mrb[27].mxu0  ;;  %v9505_v44 = vadd.f32 %v9504_v43, %v9503_v45  ;;  %v9506_v14 = vpop.f32.mrb[10].mxu1  ;;  %v2210_v59 = vshrl.u32 %v14712_v28, 16  ;;  %v14713_v40 = vshll.u32 %v14712_v28, 16  ;;  %v1404_v28 = vld [vmem:[#allocation2 + $0x24] sm:$0xe] }
 0x1dd   : > { %v9396_v30 = vadd.f32 %v9395_v24, %v9394_v4  ;;  %v9507_v61 = vpop.f32.mrb[11].mxu1  ;;  %v11181_v7 = vld [vmem:[#allocation2 + $0x2c] ss:$0 sps:$4 sm:$0x11]  }
 0x1de   : > { %v9508_v56 = vadd.f32 %v9507_v61, %v9506_v14  ;;  %v12875_v27 = vadd.f32 %v9505_v44, %v9393_v46  ;;  %v2203_v46 = vor.u32 %v2202_v53, %v2198_v47  ;;  %v2214_v4 = vrot.slane %v14713_v40, 1 }
 0x1df   : > { %v2217_v14 = vshll.u32 %v10913_v42, 16 }
 0x1e0   : > { %v12879_v13 = vadd.f32 %v9508_v56, %v9396_v30  ;;  %v2208_v61 = vsel %vm1563_vm0, %v2203_v46, %v2207_v49  ;;  %v2215_v42 = vor.u32 %v2214_v4, %v2210_v59  ;;  %v2749_v49 = vrot.slane %v8902_v1, 1 }
 0x1e1   : > { %3848 = vmatmul.mubr.bf16.gmra.mrb[132].mxu0 %v2196_v51  ;;  %v2753_v1 = vrot.slane %v11181_v7, 1 }
 0x1e2   : > { %v9397_v54 = vpop.f32.mrb[28].mxu0  ;;  %v9509_v17 = vpop.f32.mrb[12].mxu1  ;;  %3855 = vmatprep.mubr.bf16.mxu0 %v2329_v2 }
 0x1e3   : > { %v9398_v52 = vpop.f32.mrb[29].mxu0  ;;  %v9510_v39 = vpop.f32.mrb[13].mxu1 }
 0x1e4   : > { %v9399_v11 = vadd.f32 %v9398_v52, %v9397_v54  ;;  %v9400_v36 = vpop.f32.mrb[30].mxu0  ;;  %v9511_v43 = vadd.f32 %v9510_v39, %v9509_v17  ;;  %v9512_v24 = vpop.f32.mrb[14].mxu1  ;;  %v2219_v54 = vrot.slane %v2217_v14, 1  ;;  %v10936_v39 = vld [vmem:[#allocation7 + $0x20] sm:$0xff]  }
 0x1e5   : > { %v9401_v50 = vpop.f32.mrb[31].mxu0  ;;  %v9513_v44 = vpop.f32.mrb[15].mxu1  ;;  %10363 = vmatprep.subr.bf16.mxu1 %v10936_v39 }
 0x1e6   : > { %v9402_v45 = vadd.f32 %v9401_v50, %v9400_v36  ;;  %v9514_v30 = vadd.f32 %v9513_v44, %v9512_v24  ;;  %v12886_v25 = vadd.f32 %v9511_v43, %v9399_v11  ;;  %v11179_v36 = vld [vmem:[#allocation2 + $0x20] ss:$0 sps:$4 sm:$0x11]   ;;  %v2220_v40 = vsel %vm1563_vm0, %v2215_v42, %v2219_v54  ;;  %10364 = vmatpush3.bf16.msra.mxu1 %v10936_v39 }
 0x1e7   : > { %v2750_v16 = vrot.slane %v11179_v36, 1  ;;  %v8903_v43 = vcombine.low %v1404_v28, %v11180_v12 }
 0x1e8   : > { %v12890_v34 = vadd.f32 %v9514_v30, %v9402_v45 }
 0x1e9   : > { %3856 = vmatmul.mubr.bf16.gmra.mrb[136].mxu0 %v2208_v61  ;;  %v2751_v4 = vsel %vm1820_vm9, %v2749_v49, %v2750_v16 }
 0x1ea   : > { %v9403_v47 = vpop.f32.mrb[32].mxu0  ;;  %v9515_v56 = vpop.f32.mrb[16].mxu1  ;;  %3863 = vmatprep.mubr.bf16.mxu0 %v2332_v9  ;;  %v2752_v9 = vrot.slane %v8903_v43, 1 }
 0x1eb   : > { %v9404_v22 = vpop.f32.mrb[33].mxu0  ;;  %v9516_v38 = vpop.f32.mrb[17].mxu1 }
 0x1ec   : > { %v9405_v53 = vadd.f32 %v9404_v22, %v9403_v47  ;;  %v9406_v51 = vpop.f32.mrb[34].mxu0  ;;  %v9517_v52 = vadd.f32 %v9516_v38, %v9515_v56  ;;  %v9518_v2 = vpop.f32.mrb[18].mxu1  ;;  %v2754_v54 = vsel %vm1820_vm9, %v2752_v9, %v2753_v1 }
 0x1ed   : > { %v9407_v11 = vpop.f32.mrb[35].mxu0  ;;  %v9519_v50 = vpop.f32.mrb[19].mxu1 }
 0x1ee   : > { %v9408_v17 = vadd.f32 %v9407_v11, %v9406_v51  ;;  %v12892_v45 = vadd.f32 %v9517_v52, %v9405_v53  ;;  %v9520_v46 = vadd.f32 %v9519_v50, %v9518_v2 }
 0x1f0   : > { %v12895_v59 = vadd.f32 %v9520_v46, %v9408_v17 }
 0x1f1   : > { %3864 = vmatmul.mubr.bf16.gmra.mrb[140].mxu0 %v2220_v40  ;;  %v10937_v40 = vld [vmem:[#allocation7 + $0x28] sm:$0xff]  }
 0x1f2   : > { %v9409_v24 = vpop.f32.mrb[36].mxu0  ;;  %10323 = vmatprep.mubr.bf16.mxu0 %v2751_v4  ;;  %10365 = vmatprep.subr.bf16.mxu1 %v10937_v40 }
 0x1f3   : > { %v9521_v5 = vpop.f32.mrb[20].mxu1  ;;  %v9410_v44 = vpop.f32.mrb[37].mxu0  ;;  %10366 = vmatpush3.bf16.msra.mxu1 %v10937_v40 }
 0x1f4   : > { %v9411_v14 = vadd.f32 %v9410_v44, %v9409_v24  ;;  %v9522_v30 = vpop.f32.mrb[21].mxu1  ;;  %v9412_v61 = vpop.f32.mrb[38].mxu0 }
 0x1f5   : > { %v9523_v47 = vadd.f32 %v9522_v30, %v9521_v5  ;;  %v9524_v56 = vpop.f32.mrb[22].mxu1  ;;  %v9413_v22 = vpop.f32.mrb[39].mxu0 }
 0x1f6   : > { %v9414_v53 = vadd.f32 %v9413_v22, %v9412_v61  ;;  %v9525_v38 = vpop.f32.mrb[23].mxu1 }
 0x1f7   : > { %v12898_v51 = vadd.f32 %v9523_v47, %v9411_v14  ;;  %v9526_v42 = vadd.f32 %v9525_v38, %v9524_v56 }
 0x1f9   : > { %v12901_v52 = vadd.f32 %v9526_v42, %v9414_v53  ;;  %10324 = vmatmul.mubr.bf16.vlgmr.msra.gmra.mrb[144].mxu0 %v2754_v54 }
 0x1fa   : > { %10327 = vmatprep.mubr.bf16.mxu0 %v12686_v26 }
 0x1fb   : > { %v9415_v2 = vpop.f32.mrb[40].mxu0  ;;  %v9527_v49 = vpop.f32.mrb[24].mxu1 }
 0x1fc   : > { %v9416_v11 = vpop.f32.mrb[41].mxu0  ;;  %v9528_v28 = vpop.f32.mrb[25].mxu1 }
 0x1fd   : > { %v9417_v36 = vadd.f32 %v9416_v11, %v9415_v2  ;;  %v9418_v16 = vpop.f32.mrb[42].mxu0  ;;  %v9529_v50 = vadd.f32 %v9528_v28, %v9527_v49  ;;  %v9530_v39 = vpop.f32.mrb[26].mxu1  ;;  %v10938_v28 = vld [vmem:[#allocation7 + $0x30] sm:$0xff]  }
 0x1fe   : > { %v9419_v17 = vpop.f32.mrb[43].mxu0  ;;  %v9531_v12 = vpop.f32.mrb[27].mxu1  ;;  %10367 = vmatprep.subr.bf16.mxu1 %v10938_v28 }
 0x1ff   : > { %v9420_v46 = vadd.f32 %v9419_v17, %v9418_v16  ;;  %v12904_v43 = vadd.f32 %v9529_v50, %v9417_v36  ;;  %v9532_v4 = vadd.f32 %v9531_v12, %v9530_v39  ;;  %10368 = vmatpush3.bf16.msra.mxu1 %v10938_v28 }
 0x201   : > { %v12906_v24 = vadd.f32 %v9532_v4, %v9420_v46  ;;  %10328 = vmatmul.mubr.bf16.gmra.mrb[148].mxu0 %v12695_v63 }
 0x202   : > { %10331 = vmatprep.mubr.bf16.mxu0 %v12699_v29 }
 0x203   : > { %v9421_v5 = vpop.f32.mrb[44].mxu0  ;;  %v9533_v44 = vpop.f32.mrb[28].mxu1 }
 0x204   : > { %v9422_v14 = vpop.f32.mrb[45].mxu0  ;;  %v9534_v30 = vpop.f32.mrb[29].mxu1 }
 0x205   : > { %v9423_v26 = vadd.f32 %v9422_v14, %v9421_v5  ;;  %v9424_v61 = vpop.f32.mrb[46].mxu0  ;;  %v9535_v9 = vadd.f32 %v9534_v30, %v9533_v44  ;;  %v9536_v7 = vpop.f32.mrb[30].mxu1 }
 0x206   : > { %v9425_v1 = vpop.f32.mrb[47].mxu0  ;;  %v9537_v56 = vpop.f32.mrb[31].mxu1 }
 0x207   : > { %v9426_v47 = vadd.f32 %v9425_v1, %v9424_v61  ;;  %v12910_v22 = vadd.f32 %v9535_v9, %v9423_v26  ;;  %v9538_v53 = vadd.f32 %v9537_v56, %v9536_v7 }
 0x209   : > { %v12912_v38 = vadd.f32 %v9538_v53, %v9426_v47  ;;  %10332 = vmatmul.mubr.bf16.gmra.mrb[152].mxu0 %v12708_v18 }
 0x20a   : > { %10335 = vmatprep.mubr.bf16.mxu0 %v12714_v10 }
 0x20b   : > { %v9427_v63 = vpop.f32.mrb[48].mxu0  ;;  %v9539_v42 = vpop.f32.mrb[32].mxu1 }
 0x20c   : > { %v9428_v54 = vpop.f32.mrb[49].mxu0  ;;  %v9540_v2 = vpop.f32.mrb[33].mxu1 }
 0x20d   : > { %v9429_v29 = vadd.f32 %v9428_v54, %v9427_v63  ;;  %v9430_v11 = vpop.f32.mrb[50].mxu0  ;;  %v9541_v49 = vadd.f32 %v9540_v2, %v9539_v42  ;;  %v9542_v36 = vpop.f32.mrb[34].mxu1  ;;  %v10939_v63 = vld [vmem:[#allocation7 + $0x38] sm:$0xff]  }
 0x20e   : > { %v9431_v16 = vpop.f32.mrb[51].mxu0  ;;  %v9543_v50 = vpop.f32.mrb[35].mxu1  ;;  %10369 = vmatprep.subr.bf16.mxu1 %v10939_v63 }
 0x20f   : > { %v9432_v17 = vadd.f32 %v9431_v16, %v9430_v11  ;;  %v12916_v39 = vadd.f32 %v9541_v49, %v9429_v29  ;;  %v9544_v46 = vadd.f32 %v9543_v50, %v9542_v36  ;;  %10370 = vmatpush3.bf16.msra.mxu1 %v10939_v63 }
 0x211   : > { %v12918_v18 = vadd.f32 %v9544_v46, %v9432_v17  ;;  %10336 = vmatmul.mubr.bf16.gmra.mrb[156].mxu0 %v12722_v20 }
 0x212   : > { %10339 = vmatprep.mubr.bf16.mxu0 %v12729_v58 }
 0x213   : > { %14714 = vst [vmem:[#allocation31_spill] sm:$0xff] %v12918_v18  ;;  %v9433_v40 = vpop.f32.mrb[52].mxu0  ;;  %v9545_v12 = vpop.f32.mrb[36].mxu1 }
 0x214   : > { %v9434_v10 = vpop.f32.mrb[53].mxu0  ;;  %v9546_v44 = vpop.f32.mrb[37].mxu1 }
 0x215   : > { %v9435_v4 = vadd.f32 %v9434_v10, %v9433_v40  ;;  %v9436_v5 = vpop.f32.mrb[54].mxu0  ;;  %v9547_v26 = vadd.f32 %v9546_v44, %v9545_v12  ;;  %v9548_v30 = vpop.f32.mrb[38].mxu1  ;;  %v6565_v10 = vld [vmem:[#allocation2 + $0x18] sm:$0xf] }
 0x216   : > { %v9437_v14 = vpop.f32.mrb[55].mxu0  ;;  %v9549_v9 = vpop.f32.mrb[39].mxu1  ;;  %v6641_v44 = vshll.u32 %v6565_v10, 16 }
 0x217   : > { %v9438_v61 = vadd.f32 %v9437_v14, %v9436_v5  ;;  %v12922_v7 = vadd.f32 %v9547_v26, %v9435_v4  ;;  %v9550_v1 = vadd.f32 %v9549_v9, %v9548_v30  ;;  %v6566_v4 = vld [vmem:[#allocation2 + $0x1c] sm:$0xf]  ;;  %v6638_v5 = vshrl.u32 %v6565_v10, 16 }
 0x219   : > { %14715 = vst [vmem:[#allocation36_spill] sm:$0xff] %v12922_v7  ;;  %v12924_v47 = vadd.f32 %v9550_v1, %v9438_v61  ;;  %10340 = vmatmul.mubr.bf16.gmra.mrb[160].mxu0 %v12732_v62  ;;  %v6562_v62 = vld [vmem:[#allocation2 + $0xc] sm:$0xf]  ;;  %v6564_v1 = vld [vmem:[#allocation2 + $0x14] sm:$0x1] }
 0x21a   : > { %10343 = vmatprep.mubr.bf16.mxu0 %v12738_v35  ;;  %v6563_v35 = vld [vmem:[#allocation2 + $0x10] sm:$0xf]  ;;  %v6614_v17 = vshrl.u32 %v6562_v62, 16  ;;  %v6617_v50 = vshll.u32 %v6562_v62, 16  ;;  %v6651_v62 = vshrl.u32 %v6566_v4, 16 }
 0x21b   : > { %14716 = vst [vmem:[#allocation32_spill] sm:$0xff] %v12924_v47  ;;  %v9439_v20 = vpop.f32.mrb[56].mxu0  ;;  %v6623_v46 = vshll.u32 %v6563_v35, 16  ;;  %v6627_v40 = vshrl.u32 %v6563_v35, 16 }
 0x21c   : > { %v9440_v58 = vpop.f32.mrb[57].mxu0  ;;  %v9551_v42 = vpop.f32.mrb[40].mxu1  ;;  %v6616_v26 = vrot.slane %v6614_v17, 4  ;;  %v6619_v30 = vrot.slane %v6617_v50, 5 }
 0x21d   : > { %v9441_v56 = vadd.f32 %v9440_v58, %v9439_v20  ;;  %v9442_v53 = vpop.f32.mrb[58].mxu0  ;;  %v9552_v29 = vpop.f32.mrb[41].mxu1  ;;  %v6625_v61 = vrot.slane %v6623_v46, 5  ;;  %v6629_v9 = vrot.slane %v6627_v40, 4  ;;  %v6640_v20 = vrot.slane %v6638_v5, 4 }
 0x21e   : > { %v9443_v54 = vpop.f32.mrb[59].mxu0  ;;  %v9553_v11 = vadd.f32 %v9552_v29, %v9551_v42  ;;  %v9554_v49 = vpop.f32.mrb[42].mxu1  ;;  %v6643_v58 = vrot.slane %v6641_v44, 5  ;;  %v6620_v42 = vor.u32 %v6619_v30, %v6616_v26  ;;  %v6633_v29 = vshll.u32 %v6564_v1, 16  ;;  %v6569_v1 = vld [vmem:[#allocation2 + $0x28] sm:$0xf] }
 0x21f   : > { %v9444_v2 = vadd.f32 %v9443_v54, %v9442_v53  ;;  %v9555_v36 = vpop.f32.mrb[43].mxu1  ;;  %v6630_v54 = vor.u32 %v6629_v9, %v6625_v61  ;;  %v6653_v9 = vrot.slane %v6651_v62, 4 }
 0x220   : > { %v12928_v16 = vadd.f32 %v9553_v11, %v9441_v56  ;;  %v9556_v28 = vadd.f32 %v9555_v36, %v9554_v49  ;;  %v6644_v36 = vor.u32 %v6643_v58, %v6640_v20  ;;  %v6621_v5 = vrot.slane %v6620_v42, 4 }
 0x221   : > { %10344 = vmatmul.mubr.bf16.gmra.mrb[164].mxu0 %v12744_v57  ;;  %v6631_v44 = vrot.slane %v6630_v54, 4  ;;  %v10940_v54 = vld [vmem:[#allocation10 + $0xc0] sm:$0xff]  }
 0x222   : > { %14717 = vst [vmem:[#allocation33_spill] sm:$0xff] %v12928_v16  ;;  %10347 = vmatprep.mubr.bf16.mxu0 %v12755_v8  ;;  %v12932_v12 = vadd.f32 %v9556_v28, %v9444_v2  ;;  %v6647_v8 = vshll.u32 %v6566_v4, 16  ;;  %v6567_v2 = vld [vmem:[#allocation2 + $0x20] sm:$0x1]  ;;  %v6645_v26 = vrot.slane %v6644_v36, 4  ;;  %v6626_v20 = vsel %vm12935_vm12, %v6621_v5, %v6625_v61  ;;  %9947 = vmatprep.subr.bf16.mxu1 %v10940_v54 }
 0x223   : > { %v6657_v35 = vshll.u32 %v6567_v2, 16  ;;  %v6671_v36 = vshll.u32 %v6569_v1, 16  ;;  %v6675_v61 = vshrl.u32 %v6569_v1, 16 }
 0x224   : > { %14718 = vst [vmem:[#allocation34_spill] sm:$0xff] %v12932_v12  ;;  %v9445_v14 = vpop.f32.mrb[60].mxu0  ;;  %v9557_v56 = vpop.f32.mrb[44].mxu1  ;;  %v6649_v28 = vrot.slane %v6647_v8, 5 }
 0x225   : > { %v9446_v57 = vpop.f32.mrb[61].mxu0  ;;  %v9558_v11 = vpop.f32.mrb[45].mxu1  ;;  %v6659_v58 = vrot.slane %v6657_v35, 5 }
 0x226   : > { %v9447_v53 = vadd.f32 %v9446_v57, %v9445_v14  ;;  %v9448_v63 = vpop.f32.mrb[62].mxu0  ;;  %v9559_v17 = vadd.f32 %v9558_v11, %v9557_v56  ;;  %v9560_v50 = vpop.f32.mrb[46].mxu1  ;;  %v6635_v14 = vrot.slane %v6633_v29, 5  ;;  %v6568_v57 = vld [vmem:[#allocation2 + $0x24] sm:$0xf] }
 0x227   : > { %v9449_v49 = vpop.f32.mrb[63].mxu0  ;;  %v9561_v40 = vpop.f32.mrb[47].mxu1  ;;  %v6662_v8 = vshrl.u32 %v6568_v57, 16  ;;  %v6665_v29 = vshll.u32 %v6568_v57, 16  ;;  %v6570_v11 = vld [vmem:[#allocation2 + $0x2c] sm:$0x1] }
 0x228   : > { %v9450_v46 = vadd.f32 %v9449_v49, %v9448_v63  ;;  %v12939_v30 = vadd.f32 %v9559_v17, %v9447_v53  ;;  %v9562_v4 = vadd.f32 %v9561_v40, %v9560_v50  ;;  %v6654_v53 = vor.u32 %v6653_v9, %v6649_v28  ;;  %v6571_v9 = vld [vmem:[#allocation2 + $0x30] sm:$0xf] }
 0x229   : > { %10348 = vmatmul.mubr.bf16.gmra.mrb[168].mxu0 %v12761_v37  ;;  %v6636_v37 = vsel %vm12935_vm12, %v6631_v44, %v6635_v14  ;;  %v6664_v49 = vrot.slane %v6662_v8, 4  ;;  %v6681_v40 = vshll.u32 %v6570_v11, 16  ;;  %v6673_v14 = vrot.slane %v6671_v36, 5  ;;  %v6572_v8 = vld [vmem:[#allocation2 + $0x34] sm:$0xf] }
 0x22a   : > { %14721 = vst [vmem:[#allocation35_spill] sm:$0xff] %v12939_v30  ;;  %10351 = vmatprep.mubr.bf16.mxu0 %v12792_v60  ;;  %v12946_v56 = vadd.f32 %v9562_v4, %v9450_v46  ;;  %v9168_v42 = vcombine.low %v6626_v20, %v6636_v37  ;;  %v6650_v60 = vsel %vm12935_vm12, %v6645_v26, %v6649_v28  ;;  %v6655_v35 = vrot.slane %v6654_v53, 4  ;;  %v10941_v37 = vld [vmem:[#allocation10 + $0x80] sm:$0xff]   ;;  %v6574_v11 = vld [vmem:[#allocation2 + $0x3c] sm:$0xf] }
 0x22b   : > { %v6667_v46 = vrot.slane %v6665_v29, 5  ;;  %v6677_v4 = vrot.slane %v6675_v61, 4  ;;  %v6683_v29 = vrot.slane %v6681_v40, 5  ;;  %v6686_v61 = vshrl.u32 %v6571_v9, 16  ;;  %v10942_v40 = vld [vmem:[#allocation10 + $0xc8] sm:$0xff]  }
 0x22c   : > { %14722 = vst [vmem:[#allocation37_spill] sm:$0xff] %v12946_v56  ;;  %v9467_v63 = vpop.f32.mrb[64].mxu0  ;;  %v9691_v50 = vpop.f32.mrb[48].mxu1  ;;  %10371 = vmatprep.mubr.bf16.mxu1 %v9168_v42  ;;  %v6660_v20 = vsel %vm12935_vm12, %v6655_v35, %v6659_v58  ;;  %v6699_v35 = vshrl.u32 %v6572_v8, 16  ;;  %v6713_v12 = vshll.u32 %v6574_v11, 16 }
 0x22d   : > { %v9468_v2 = vpop.f32.mrb[65].mxu0  ;;  %v9692_v44 = vpop.f32.mrb[49].mxu1  ;;  %v9169_v42 = vcombine.low %v6650_v60, %v6660_v20  ;;  %v6668_v53 = vor.u32 %v6667_v46, %v6664_v49  ;;  %v6678_v54 = vor.u32 %v6677_v4, %v6673_v14  ;;  %v6688_v60 = vrot.slane %v6686_v61, 4 }
 0x22e   : > { %v9469_v62 = vadd.f32 %v9468_v2, %v9467_v63  ;;  %v9470_v17 = vpop.f32.mrb[66].mxu0  ;;  %v12953_v26 = vadd.f32 %v9692_v44, %v9691_v50  ;;  %v9694_v1 = vpop.f32.mrb[50].mxu1  ;;  %v6573_v2 = vld [vmem:[#allocation2 + $0x38] sm:$0x1]  ;;  %v6695_v50 = vshll.u32 %v6572_v8, 16  ;;  %v6710_v44 = vshrl.u32 %v6574_v11, 16 }
 0x22f   : > { %v9471_v5 = vpop.f32.mrb[67].mxu0  ;;  %v9695_v63 = vpop.f32.mrb[51].mxu1  ;;  %10372 = vmatmul.mubr.bf16.vlgmr.msra.gmra.mrb[112].mxu1 %v9169_v42  ;;  %v6669_v58 = vrot.slane %v6668_v53, 4  ;;  %v6705_v46 = vshll.u32 %v6573_v2, 16  ;;  %v6577_v2 = vld [vmem:[#allocation2 + $0x48] sm:$0xf] }
 0x230   : > { %v12951_v57 = vadd.f32 %v9469_v62, %v12666_v6  ;;  %v9472_v28 = vadd.f32 %v9471_v5, %v9470_v17  ;;  %v12961_v36 = vadd.f32 %v9695_v63, %v9694_v1  ;;  %v6689_v62 = vshll.u32 %v6571_v9, 16  ;;  %9948 = vmatpush3.bf16.msra.mxu1 %v10941_v37 }
 0x231   : > { %10352 = vmatmul.mubr.bf16.gmra.mrb[172].mxu0 %v12798_v33  ;;  %v6679_v17 = vrot.slane %v6678_v54, 4  ;;  %v6575_v33 = vld [vmem:[#allocation2 + $0x40] sm:$0xf]  ;;  %v6701_v1 = vrot.slane %v6699_v35, 4  ;;  %v6707_v37 = vrot.slane %v6705_v46, 5  ;;  %9949 = vmatprep.subr.bf16.mxu1 %v10942_v40  ;;  %v6712_v30 = vrot.slane %v6710_v44, 4 }
 0x232   : > { %v12959_v6 = vadd.f32 %v9472_v28, %v12676_v55  ;;  %v6691_v49 = vrot.slane %v6689_v62, 5  ;;  %v6674_v55 = vsel %vm12935_vm12, %v6669_v58, %v6673_v14  ;;  %v6697_v28 = vrot.slane %v6695_v50, 5  ;;  %v6576_v54 = vld [vmem:[#allocation2 + $0x44] sm:$0x1] }
 0x233   : > { %v6684_v9 = vsel %vm12935_vm12, %v6679_v17, %v6683_v29  ;;  %v6719_v14 = vshll.u32 %v6575_v33, 16  ;;  %v6715_v40 = vrot.slane %v6713_v12, 5  ;;  %v6580_v12 = vld [vmem:[#allocation2 + $0x54] sm:$0xf] }
 0x234   : > { %v9473_v5 = vpop.f32.mrb[68].mxu0  ;;  %v9697_v8 = vpop.f32.mrb[52].mxu1  ;;  %v9170_v42 = vcombine.low %v6674_v55, %v6684_v9  ;;  %v6692_v53 = vor.u32 %v6691_v49, %v6688_v60  ;;  %v6702_v56 = vor.u32 %v6701_v1, %v6697_v28  ;;  %v6578_v60 = vld [vmem:[#allocation2 + $0x4c] sm:$0xf]  ;;  %v6723_v55 = vshrl.u32 %v6575_v33, 16 }
 0x235   : > { %v9474_v4 = vpop.f32.mrb[69].mxu0  ;;  %v9698_v62 = vpop.f32.mrb[53].mxu1  ;;  %v6729_v9 = vshll.u32 %v6576_v54, 16 }
 0x236   : > { %v9475_v20 = vadd.f32 %v9474_v4, %v9473_v5  ;;  %v9476_v63 = vpop.f32.mrb[70].mxu0  ;;  %v12970_v17 = vadd.f32 %v9698_v62, %v9697_v8  ;;  %v9700_v50 = vpop.f32.mrb[54].mxu1  ;;  %10375 = vmatprep.mubr.bf16.mxu1 %v9170_v42  ;;  %v6693_v35 = vrot.slane %v6692_v53, 4  ;;  %v10943_v5 = vld [vmem:[#allocation10 + $0x88] sm:$0xff]   ;;  %v6703_v46 = vrot.slane %v6702_v56, 4  ;;  %v10944_v62 = vld [vmem:[#allocation10 + $0xd0] sm:$0xff]  }
 0x237   : > { %v9477_v61 = vpop.f32.mrb[71].mxu0  ;;  %v9701_v49 = vpop.f32.mrb[55].mxu1  ;;  %v6721_v4 = vrot.slane %v6719_v14, 5  ;;  %9950 = vmatpush3.bf16.msra.mxu1 %v10943_v5  ;;  %v6579_v8 = vld [vmem:[#allocation2 + $0x50] sm:$0x1]  ;;  %v6734_v56 = vshrl.u32 %v6577_v2, 16 }
 0x238   : > { %v12968_v58 = vadd.f32 %v9475_v20, %v12783_v31  ;;  %v9478_v29 = vadd.f32 %v9477_v61, %v9476_v63  ;;  %v12975_v11 = vadd.f32 %v9701_v49, %v9700_v50  ;;  %v6698_v31 = vsel %vm12935_vm12, %v6693_v35, %v6697_v28  ;;  %9951 = vmatprep.subr.bf16.mxu1 %v10944_v62 }
 0x239   : > { %v6708_v1 = vsel %vm12935_vm12, %v6703_v46, %v6707_v37  ;;  %v6716_v20 = vor.u32 %v6715_v40, %v6712_v30  ;;  %v6725_v63 = vrot.slane %v6723_v55, 4  ;;  %v6731_v53 = vrot.slane %v6729_v9, 5 }
 0x23a   : > { %v12973_v44 = vadd.f32 %v9478_v29, %v12788_v41  ;;  %v9171_v33 = vcombine.low %v6698_v31, %v6708_v1  ;;  %v6737_v41 = vshll.u32 %v6577_v2, 16  ;;  %v6743_v61 = vshll.u32 %v6578_v60, 16 }
 0x23b   : > { %v6717_v29 = vrot.slane %v6716_v20, 4  ;;  %v6726_v50 = vor.u32 %v6725_v63, %v6721_v4  ;;  %v6736_v28 = vrot.slane %v6734_v56, 4  ;;  %v6747_v35 = vshrl.u32 %v6578_v60, 16 }
 0x23c   : > { %v9479_v42 = vpop.f32.mrb[72].mxu0  ;;  %v9703_v49 = vpop.f32.mrb[56].mxu1  ;;  %10376 = vmatmul.mubr.bf16.gmra.mrb[116].mxu1 %v9171_v33  ;;  %v6739_v30 = vrot.slane %v6737_v41, 5  ;;  %v6745_v37 = vrot.slane %v6743_v61, 5  ;;  %v6753_v46 = vshll.u32 %v6579_v8, 16  ;;  %v6758_v1 = vshrl.u32 %v6580_v12, 16 }
 0x23d   : > { %v9480_v14 = vpop.f32.mrb[73].mxu0  ;;  %v9704_v55 = vpop.f32.mrb[57].mxu1  ;;  %v6722_v2 = vsel %vm12935_vm12, %v6717_v29, %v6721_v4  ;;  %v6727_v31 = vrot.slane %v6726_v50, 4  ;;  %v6749_v9 = vrot.slane %v6747_v35, 4  ;;  %v10945_v33 = vld [vmem:[#allocation10 + $0x90] sm:$0xff]  }
 0x23e   : > { %v9481_v54 = vadd.f32 %v9480_v14, %v9479_v42  ;;  %v9482_v5 = vpop.f32.mrb[74].mxu0  ;;  %v12986_v63 = vadd.f32 %v9704_v55, %v9703_v49  ;;  %v9706_v56 = vpop.f32.mrb[58].mxu1  ;;  %v6740_v42 = vor.u32 %v6739_v30, %v6736_v28  ;;  %v6581_v41 = vld [vmem:[#allocation2 + $0x58] sm:$0xf]  ;;  %v6583_v8 = vld [vmem:[#allocation2 + $0x60] sm:$0xf]  ;;  %9952 = vmatpush3.bf16.msra.mxu1 %v10945_v33 }
 0x23f   : > { %v9483_v40 = vpop.f32.mrb[75].mxu0  ;;  %v9707_v61 = vpop.f32.mrb[59].mxu1  ;;  %v6732_v62 = vsel %vm12935_vm12, %v6727_v31, %v6731_v53  ;;  %v6750_v14 = vor.u32 %v6749_v9, %v6745_v37  ;;  %v6755_v4 = vrot.slane %v6753_v46, 5  ;;  %v6582_v29 = vld [vmem:[#allocation2 + $0x5c] sm:$0x1]  ;;  %v6760_v50 = vrot.slane %v6758_v1, 4 }
 0x240   : > { %v12984_v20 = vadd.f32 %v9481_v54, %v12804_v0  ;;  %v9484_v60 = vadd.f32 %v9483_v40, %v9482_v5  ;;  %v12993_v0 = vadd.f32 %v9707_v61, %v9706_v56  ;;  %v9172_v54 = vcombine.low %v6722_v2, %v6732_v62  ;;  %v6584_v55 = vld [vmem:[#allocation2 + $0x64] sm:$0xf] }
 0x241   : > { %v6741_v5 = vrot.slane %v6740_v42, 4  ;;  %v6751_v28 = vrot.slane %v6750_v14, 4  ;;  %v6761_v49 = vshll.u32 %v6580_v12, 16  ;;  %v6767_v30 = vshll.u32 %v6581_v41, 16 }
 0x242   : > { %v12991_v35 = vadd.f32 %v9484_v60, %v12813_v48  ;;  %v6771_v40 = vshrl.u32 %v6581_v41, 16  ;;  %10379 = vmatprep.mubr.bf16.mxu1 %v9172_v54  ;;  %v6777_v46 = vshll.u32 %v6582_v29, 16  ;;  %v6782_v31 = vshrl.u32 %v6583_v8, 16  ;;  %v10946_v48 = vld [vmem:[#allocation10 + $0xd8] sm:$0xff]  }
 0x243   : > { %v6746_v53 = vsel %vm12935_vm12, %v6741_v5, %v6745_v37  ;;  %v6785_v9 = vshll.u32 %v6583_v8, 16  ;;  %v6756_v2 = vsel %vm12935_vm12, %v6751_v28, %v6755_v4  ;;  %v6763_v60 = vrot.slane %v6761_v49, 5  ;;  %9953 = vmatprep.subr.bf16.mxu1 %v10946_v48  ;;  %v6585_v8 = vld [vmem:[#allocation2 + $0x68] sm:$0x1] }
 0x244   : > { %v9485_v16 = vpop.f32.mrb[76].mxu0  ;;  %v6769_v56 = vrot.slane %v6767_v30, 5  ;;  %v6773_v42 = vrot.slane %v6771_v40, 4  ;;  %v9709_v41 = vpop.f32.mrb[60].mxu1  ;;  %v9173_v61 = vcombine.low %v6746_v53, %v6756_v2  ;;  %v6779_v62 = vrot.slane %v6777_v46, 5  ;;  %v10947_v30 = vld [vmem:[#allocation10 + $0x98] sm:$0xff]  }
 0x245   : > { %v9486_v1 = vpop.f32.mrb[77].mxu0  ;;  %v6784_v14 = vrot.slane %v6782_v31, 4  ;;  %v9710_v37 = vpop.f32.mrb[61].mxu1  ;;  %v6764_v29 = vor.u32 %v6763_v60, %v6760_v50  ;;  %v6787_v47 = vrot.slane %v6785_v9, 5  ;;  %v6791_v7 = vshll.u32 %v6584_v55, 16  ;;  %9954 = vmatpush3.bf16.msra.mxu1 %v10947_v30 }
 0x246   : > { %v9487_v12 = vadd.f32 %v9486_v1, %v9485_v16  ;;  %v9488_v33 = vpop.f32.mrb[78].mxu0  ;;  %v6774_v5 = vor.u32 %v6773_v42, %v6769_v56  ;;  %v13002_v28 = vadd.f32 %v9710_v37, %v9709_v41  ;;  %v9712_v16 = vpop.f32.mrb[62].mxu1  ;;  %10380 = vmatmul.mubr.bf16.gmra.mrb[120].mxu1 %v9173_v61  ;;  %v6795_v49 = vshrl.u32 %v6584_v55, 16  ;;  %v6586_v40 = vld [vmem:[#allocation2 + $0x6c] sm:$0xf]  ;;  %v10948_v42 = vld [vmem:[#allocation10 + $0x40] sm:$0xff]  }
 0x247   : > { %v9489_v54 = vpop.f32.mrb[79].mxu0  ;;  %v9713_v53 = vpop.f32.mrb[63].mxu1  ;;  %v6765_v46 = vrot.slane %v6764_v29, 4  ;;  %v6788_v48 = vor.u32 %v6787_v47, %v6784_v14  ;;  %v6793_v50 = vrot.slane %v6791_v7, 5  ;;  %v6801_v2 = vshll.u32 %v6585_v8, 16  ;;  %9835 = vmatprep.subr.bf16.mxu0 %v10948_v42  ;;  %v10949_v37 = vld [vmem:[#allocation10] sm:$0xff]  }
 0x248   : > { %v13000_v18 = vadd.f32 %v9487_v12, %v12824_v15  ;;  %v9490_v4 = vadd.f32 %v9489_v54, %v9488_v33  ;;  %v6775_v31 = vrot.slane %v6774_v5, 4  ;;  %v13007_v9 = vadd.f32 %v9713_v53, %v9712_v16  ;;  %v6587_v60 = vld [vmem:[#allocation2 + $0x70] sm:$0xf]  ;;  %v6588_v41 = vld [vmem:[#allocation2 + $0x74] sm:$0x1]  ;;  %9836 = vmatpush3.bf16.msra.mxu0 %v10949_v37 }
 0x249   : > { %v6797_v15 = vrot.slane %v6795_v49, 4  ;;  %v6770_v55 = vsel %vm12935_vm12, %v6765_v46, %v6769_v56  ;;  %v6789_v33 = vrot.slane %v6788_v48, 4  ;;  %v6806_v47 = vshrl.u32 %v6586_v40, 16  ;;  %v6591_v37 = vld [vmem:[#allocation2 + $0x80] sm:$0x1] }
 0x24a   : > { %v13005_v1 = vadd.f32 %v9490_v4, %v12831_v21  ;;  %v6780_v12 = vsel %vm12935_vm12, %v6775_v31, %v6779_v62  ;;  %v6803_v14 = vrot.slane %v6801_v2, 5  ;;  %v6809_v54 = vshll.u32 %v6586_v40, 16  ;;  %v6589_v2 = vld [vmem:[#allocation2 + $0x78] sm:$0xf] }
 0x24b   : > { %v9174_v61 = vcombine.low %v6770_v55, %v6780_v12  ;;  %v6798_v21 = vor.u32 %v6797_v15, %v6793_v50  ;;  %v6794_v5 = vsel %vm12935_vm12, %v6789_v33, %v6793_v50  ;;  %v6808_v8 = vrot.slane %v6806_v47, 4  ;;  %v6590_v33 = vld [vmem:[#allocation2 + $0x7c] sm:$0xf] }
 0x24c   : > { %v9579_v7 = vpop.f32.mrb[80].mxu0  ;;  %v6815_v4 = vshll.u32 %v6587_v60, 16  ;;  %v6819_v56 = vshrl.u32 %v6587_v60, 16  ;;  %v9715_v62 = vpop.f32.mrb[64].mxu1  ;;  %v6811_v53 = vrot.slane %v6809_v54, 5  ;;  %v6825_v46 = vshll.u32 %v6588_v41, 16 }
 0x24d   : > { %v9580_v29 = vpop.f32.mrb[81].mxu0  ;;  %10383 = vmatprep.mubr.bf16.mxu1 %v9174_v61  ;;  %v6799_v30 = vrot.slane %v6798_v21, 4  ;;  %v9716_v48 = vpop.f32.mrb[65].mxu1  ;;  %v10952_v47 = vld [vmem:[#allocation10 + $0x48] sm:$0xff]  }
 0x24e   : > { %v9581_v16 = vadd.f32 %v9580_v29, %v9579_v7  ;;  %v9582_v49 = vpop.f32.mrb[82].mxu0  ;;  %v6817_v40 = vrot.slane %v6815_v4, 5  ;;  %v6821_v15 = vrot.slane %v6819_v56, 4  ;;  %v13016_v50 = vadd.f32 %v9716_v48, %v9715_v62  ;;  %v9718_v12 = vpop.f32.mrb[66].mxu1  ;;  %v10953_v29 = vld [vmem:[#allocation10 + $0x8] sm:$0xff]   ;;  %9837 = vmatprep.subr.bf16.mxu0 %v10952_v47 }
 0x24f   : > { %v9583_v31 = vpop.f32.mrb[83].mxu0  ;;  %v6804_v60 = vsel %vm12935_vm12, %v6799_v30, %v6803_v14  ;;  %v9719_v7 = vpop.f32.mrb[67].mxu1  ;;  %v6812_v41 = vor.u32 %v6811_v53, %v6808_v8  ;;  %v6827_v54 = vrot.slane %v6825_v46, 5  ;;  %v6839_v14 = vshll.u32 %v6590_v33, 16  ;;  %9838 = vmatpush3.bf16.msra.mxu0 %v10953_v29  ;;  %v6593_v29 = vld [vmem:[#allocation2 + $0x88] sm:$0xf] }
 0x250   : > { %v3746_v42 = vadd.f32 %v9581_v16, %v12951_v57  ;;  %v9584_v55 = vadd.f32 %v9583_v31, %v9582_v49  ;;  %v9175_v61 = vcombine.low %v6794_v5, %v6804_v60  ;;  %v6822_v21 = vor.u32 %v6821_v15, %v6817_v40  ;;  %v6592_v31 = vld [vmem:[#allocation2 + $0x84] sm:$0xf] }
 0x251   : > { %v13021_v56 = vadd.f32 %v9719_v7, %v9718_v12  ;;  %v6830_v57 = vshrl.u32 %v6589_v2, 16  ;;  %v6833_v16 = vshll.u32 %v6589_v2, 16  ;;  %v6813_v49 = vrot.slane %v6812_v41, 4 }
 0x252   : > { %v3749_v4 = vadd.f32 %v9584_v55, %v12959_v6  ;;  %10384 = vmatmul.mubr.bf16.gmra.mrb[124].mxu1 %v9175_v61  ;;  %v6823_v62 = vrot.slane %v6822_v21, 4  ;;  %v6843_v30 = vshrl.u32 %v6590_v33, 16  ;;  %v6849_v46 = vshll.u32 %v6591_v37, 16  ;;  %v10954_v6 = vld [vmem:[#allocation10 + $0x50] sm:$0xff]  }
 0x253   : > { %v6832_v8 = vrot.slane %v6830_v57, 4  ;;  %v6835_v53 = vrot.slane %v6833_v16, 5  ;;  %v13024_v48 = vadd.f32 %v12953_v26, %v3746_v42  ;;  %v6818_v2 = vsel %vm12935_vm12, %v6813_v49, %v6817_v40  ;;  %v10955_v33 = vld [vmem:[#allocation10 + $0x10] sm:$0xff]   ;;  %9839 = vmatprep.subr.bf16.mxu0 %v10954_v6 }
 0x254   : > { %v9585_v5 = vpop.f32.mrb[84].mxu0  ;;  %v6828_v55 = vsel %vm12935_vm12, %v6823_v62, %v6827_v54  ;;  %v6841_v12 = vrot.slane %v6839_v14, 5  ;;  %v6845_v60 = vrot.slane %v6843_v30, 4  ;;  %v9721_v61 = vpop.f32.mrb[68].mxu1  ;;  %v6851_v37 = vrot.slane %v6849_v46, 5  ;;  %9840 = vmatpush3.bf16.msra.mxu0 %v10955_v33 }
 0x255   : > { %v9586_v15 = vpop.f32.mrb[85].mxu0  ;;  %v9176_v41 = vcombine.low %v6818_v2, %v6828_v55  ;;  %v6836_v21 = vor.u32 %v6835_v53, %v6832_v8  ;;  %v9722_v42 = vpop.f32.mrb[69].mxu1  ;;  %v13031_v16 = vadd.f32 %v12961_v36, %v3749_v4  ;;  %v6854_v40 = vshrl.u32 %v6592_v31, 16  ;;  %v6594_v8 = vld [vmem:[#allocation2 + $0x8c] sm:$0x1] }
 0x256   : > { %v9587_v47 = vadd.f32 %v9586_v15, %v9585_v5  ;;  %v9588_v7 = vpop.f32.mrb[86].mxu0  ;;  %v6846_v57 = vor.u32 %v6845_v60, %v6841_v12  ;;  %v6857_v49 = vshll.u32 %v6592_v31, 16  ;;  %v13034_v14 = vadd.f32 %v9722_v42, %v9721_v61  ;;  %v9724_v30 = vpop.f32.mrb[70].mxu1  ;;  %v6595_v53 = vld [vmem:[#allocation2 + $0x90] sm:$0xf] }
 0x257   : > { %v9589_v26 = vpop.f32.mrb[87].mxu0  ;;  %10387 = vmatprep.mubr.bf16.mxu1 %v9176_v41  ;;  %v6837_v5 = vrot.slane %v6836_v21, 4  ;;  %v9725_v46 = vpop.f32.mrb[71].mxu1  ;;  %v6856_v15 = vrot.slane %v6854_v40, 4  ;;  %v6863_v55 = vshll.u32 %v6593_v29, 16  ;;  %v6867_v61 = vshrl.u32 %v6593_v29, 16 }
 0x258   : > { %v3754_v54 = vadd.f32 %v9587_v47, %v12968_v58  ;;  %v9590_v62 = vadd.f32 %v9589_v26, %v9588_v7  ;;  %v6847_v6 = vrot.slane %v6846_v57, 4  ;;  %v6859_v2 = vrot.slane %v6857_v49, 5  ;;  %v6596_v60 = vld [vmem:[#allocation2 + $0x94] sm:$0xf]  ;;  %v6597_v29 = vld [vmem:[#allocation2 + $0x98] sm:$0x1] }
 0x259   : > { %v13037_v4 = vadd.f32 %v9725_v46, %v9724_v30  ;;  %v6842_v58 = vsel %vm12935_vm12, %v6837_v5, %v6841_v12  ;;  %v6865_v7 = vrot.slane %v6863_v55, 5  ;;  %v10950_v26 = vld [vmem:[#allocation10 + $0xe0] sm:$0xff]   ;;  %v6873_v42 = vshll.u32 %v6594_v8, 16 }
 0x25a   : > { %v3757_v36 = vadd.f32 %v9590_v62, %v12973_v44  ;;  %v13040_v31 = vadd.f32 %v12970_v17, %v3754_v54  ;;  %v6852_v33 = vsel %vm12935_vm12, %v6847_v6, %v6851_v37  ;;  %v6860_v47 = vor.u32 %v6859_v2, %v6856_v15  ;;  %v10951_v40 = vld [vmem:[#allocation10 + $0xa0] sm:$0xff]   ;;  %9955 = vmatprep.subr.bf16.mxu1 %v10950_v26 }
 0x25b   : > { %v9177_v21 = vcombine.low %v6842_v58, %v6852_v33  ;;  %v6878_v57 = vshrl.u32 %v6595_v53, 16  ;;  %v6869_v54 = vrot.slane %v6867_v61, 4  ;;  %v6881_v12 = vshll.u32 %v6595_v53, 16  ;;  %9956 = vmatpush3.bf16.msra.mxu1 %v10951_v40 }
 0x25c   : > { %v9591_v41 = vpop.f32.mrb[88].mxu0  ;;  %v13047_v44 = vadd.f32 %v12975_v11, %v3757_v36  ;;  %v6861_v49 = vrot.slane %v6860_v47, 4  ;;  %v6887_v62 = vshll.u32 %v6596_v60, 16  ;;  %v9727_v37 = vpop.f32.mrb[72].mxu1  ;;  %v6875_v2 = vrot.slane %v6873_v42, 5  ;;  %v10958_v36 = vld [vmem:[#allocation10 + $0x58] sm:$0xff]  }
 0x25d   : > { %v9592_v17 = vpop.f32.mrb[89].mxu0  ;;  %10388 = vmatmul.mubr.bf16.gmra.mrb[128].mxu1 %v9177_v21  ;;  %v6880_v46 = vrot.slane %v6878_v57, 4  ;;  %v9728_v15 = vpop.f32.mrb[73].mxu1  ;;  %v6870_v11 = vor.u32 %v6869_v54, %v6865_v7  ;;  %v6883_v8 = vrot.slane %v6881_v12, 5  ;;  %v6891_v61 = vshrl.u32 %v6596_v60, 16  ;;  %v10956_v54 = vld [vmem:[#allocation10 + $0xe8] sm:$0xff]   ;;  %9841 = vmatprep.subr.bf16.mxu0 %v10958_v36 }
 0x25e   : > { %v9593_v30 = vadd.f32 %v9592_v17, %v9591_v41  ;;  %v9594_v5 = vpop.f32.mrb[90].mxu0  ;;  %v13049_v55 = vrot.slane %v6887_v62, 5  ;;  %v13052_v33 = vadd.f32 %v9728_v15, %v9727_v37  ;;  %v9730_v47 = vpop.f32.mrb[74].mxu1  ;;  %v10959_v41 = vld [vmem:[#allocation10 + $0x18] sm:$0xff]   ;;  %v6598_v21 = vld [vmem:[#allocation2 + $0x9c] sm:$0xf]  ;;  %v6866_v57 = vsel %vm12935_vm12, %v6861_v49, %v6865_v7  ;;  %9957 = vmatprep.subr.bf16.mxu1 %v10956_v54 }
 0x25f   : > { %v9595_v6 = vpop.f32.mrb[91].mxu0  ;;  %v9731_v26 = vpop.f32.mrb[75].mxu1  ;;  %v6871_v17 = vrot.slane %v6870_v11, 4  ;;  %v6884_v40 = vor.u32 %v6883_v8, %v6880_v46  ;;  %v6897_v42 = vshll.u32 %v6597_v29, 16  ;;  %v10957_v60 = vld [vmem:[#allocation10 + $0xa8] sm:$0xff]   ;;  %9842 = vmatpush3.bf16.msra.mxu0 %v10959_v41  ;;  %v6902_v29 = vshrl.u32 %v6598_v21, 16 }
 0x260   : > { %v3762_v58 = vadd.f32 %v9593_v30, %v12984_v20  ;;  %v9596_v53 = vadd.f32 %v9595_v6, %v9594_v5  ;;  %v13057_v62 = vadd.f32 %v9731_v26, %v9730_v47  ;;  %v6893_v20 = vrot.slane %v6891_v61, 4  ;;  %v6599_v5 = vld [vmem:[#allocation2 + $0xa0] sm:$0xf]  ;;  %v10960_v46 = vld [vmem:[#allocation10 + $0x60] sm:$0xff]   ;;  %v13064_v6 = vld [vmem:[#allocation2 + $0xa8] sm:$0xf]  ;;  %9958 = vmatpush3.bf16.msra.mxu1 %v10957_v60 }
 0x261   : > { %v6876_v37 = vsel %vm12935_vm12, %v6871_v17, %v6875_v2  ;;  %v6885_v7 = vrot.slane %v6884_v40, 4  ;;  %v6899_v49 = vrot.slane %v6897_v42, 5  ;;  %v6600_v8 = vld [vmem:[#allocation2 + $0xa4] sm:$0x1]  ;;  %v6905_v36 = vshll.u32 %v6598_v21, 16  ;;  %9843 = vmatprep.subr.bf16.mxu0 %v10960_v46 }
 0x262   : > { %v3765_v12 = vadd.f32 %v9596_v53, %v12991_v35  ;;  %v13060_v30 = vadd.f32 %v12986_v63, %v3762_v58  ;;  %v9178_v15 = vcombine.low %v6866_v57, %v6876_v37  ;;  %v6894_v11 = vor.u32 %v6893_v20, %v13049_v55  ;;  %v10961_v58 = vld [vmem:[#allocation10 + $0x20] sm:$0xff]  }
 0x263   : > { %v6904_v2 = vrot.slane %v6902_v29, 4  ;;  %v6911_v47 = vshll.u32 %v6599_v5, 16  ;;  %v6915_v61 = vshrl.u32 %v6599_v5, 16  ;;  %v6890_v57 = vsel %vm12935_vm12, %v6885_v7, %v13049_v55  ;;  %9844 = vmatpush3.bf16.msra.mxu0 %v10961_v58  ;;  %v6602_v55 = vld [vmem:[#allocation2 + $0xac] sm:$0xf]  ;;  %v10964_v7 = vld [vmem:[#allocation10 + $0x68] sm:$0xff]  }
 0x264   : > { %v9597_v35 = vpop.f32.mrb[92].mxu0  ;;  %v13068_v63 = vadd.f32 %v12993_v0, %v3765_v12  ;;  %v9733_v17 = vpop.f32.mrb[76].mxu1  ;;  %10391 = vmatprep.mubr.bf16.mxu1 %v9178_v15  ;;  %v6895_v40 = vrot.slane %v6894_v11, 4  ;;  %v6907_v42 = vrot.slane %v6905_v36, 5  ;;  %v6921_v20 = vshll.u32 %v6600_v8, 16  ;;  %v10965_v15 = vld [vmem:[#allocation10 + $0x28] sm:$0xff]   ;;  %9845 = vmatprep.subr.bf16.mxu0 %v10964_v7 }
 0x265   : > { %v9598_v53 = vpop.f32.mrb[93].mxu0  ;;  %v9734_v54 = vpop.f32.mrb[77].mxu1  ;;  %v6913_v21 = vrot.slane %v6911_v47, 5  ;;  %v6917_v12 = vrot.slane %v6915_v61, 4  ;;  %v6926_v60 = vshrl.u32 %v13064_v6, 16  ;;  %v10963_v7 = vld [vmem:[#allocation10 + $0xb0] sm:$0xff]  }
 0x266   : > { %14723 = vst [vmem:[#allocation38_spill] sm:$0xff] %v13068_v63  ;;  %v9599_v41 = vadd.f32 %v9598_v53, %v9597_v35  ;;  %v9600_v26 = vpop.f32.mrb[94].mxu0  ;;  %v13075_v29 = vadd.f32 %v9734_v54, %v9733_v17  ;;  %v9736_v46 = vpop.f32.mrb[78].mxu1  ;;  %v6900_v35 = vsel %vm12935_vm12, %v6895_v40, %v6899_v49  ;;  %v6908_v58 = vor.u32 %v6907_v42, %v6904_v2  ;;  %v6603_v8 = vld [vmem:[#allocation2 + $0xb0] sm:$0x1]  ;;  %v10966_v42 = vld [vmem:[#allocation10 + $0x70] sm:$0xff]  }
 0x267   : > { %v9601_v0 = vpop.f32.mrb[95].mxu0  ;;  %v9737_v11 = vpop.f32.mrb[79].mxu1  ;;  %v9179_v36 = vcombine.low %v6890_v57, %v6900_v35  ;;  %v6918_v53 = vor.u32 %v6917_v12, %v6913_v21  ;;  %v6923_v47 = vrot.slane %v6921_v20, 5  ;;  %v6604_v61 = vld [vmem:[#allocation2 + $0xb4] sm:$0xf]  ;;  %v6929_v2 = vshll.u32 %v13064_v6, 16  ;;  %9846 = vmatpush3.bf16.msra.mxu0 %v10965_v15 }
 0x268   : > { %v3770_v5 = vadd.f32 %v9599_v41, %v13000_v18  ;;  %v9602_v37 = vadd.f32 %v9601_v0, %v9600_v26  ;;  %v13080_v18 = vadd.f32 %v9737_v11, %v9736_v46  ;;  %v6928_v26 = vrot.slane %v6926_v60, 4  ;;  %v13085_v49 = vld [vmem:[#allocation2 + $0xb8] sm:$0xf]  ;;  %v10967_v60 = vld [vmem:[#allocation10 + $0x30] sm:$0xff]   ;;  %9847 = vmatprep.subr.bf16.mxu0 %v10966_v42 }
 0x269   : > { %10392 = vmatmul.mubr.bf16.gmra.mrb[132].mxu1 %v9179_v36  ;;  %v6909_v17 = vrot.slane %v6908_v58, 4  ;;  %v6919_v40 = vrot.slane %v6918_v53, 4  ;;  %v6935_v57 = vshll.u32 %v6602_v55, 16  ;;  %v6939_v54 = vshrl.u32 %v6602_v55, 16  ;;  %v4833_v58 = vld [vmem:[#allocation3] sm:$0xf] }
 0x26a   : > { %v3773_v63 = vadd.f32 %v9602_v37, %v13005_v1  ;;  %v13083_v41 = vadd.f32 %v13002_v28, %v3770_v5  ;;  %v6945_v12 = vshll.u32 %v6603_v8, 16  ;;  %v10962_v28 = vld [vmem:[#allocation10 + $0xf0] sm:$0xff]   ;;  %v6950_v20 = vshrl.u32 %v6604_v61, 16 }
 0x26b   : > { %v6914_v37 = vsel %vm12935_vm12, %v6909_v17, %v6913_v21  ;;  %v6924_v46 = vsel %vm12935_vm12, %v6919_v40, %v6923_v47  ;;  %v6931_v6 = vrot.slane %v6929_v2, 5  ;;  %v6937_v35 = vrot.slane %v6935_v57, 5  ;;  %9959 = vmatprep.subr.bf16.mxu1 %v10962_v28  ;;  %9848 = vmatpush3.bf16.msra.mxu0 %v10967_v60  ;;  %v13099_v28 = vld [vmem:[#allocation3 + $0x4] sm:$0xf] }
 0x26c   : > { %v9603_v0 = vpop.f32.mrb[96].mxu0  ;;  %v13089_v1 = vadd.f32 %v13007_v9, %v3773_v63  ;;  %v9739_v9 = vpop.f32.mrb[80].mxu1  ;;  %v9180_v63 = vcombine.low %v6914_v37, %v6924_v46  ;;  %v6941_v55 = vrot.slane %v6939_v54, 4  ;;  %v6947_v36 = vrot.slane %v6945_v12, 5  ;;  %9960 = vmatpush3.bf16.msra.mxu1 %v10963_v7  ;;  %v6606_v54 = vld [vmem:[#allocation2 + $0xbc] sm:$0x1] }
 0x26d   : > { %v9604_v5 = vpop.f32.mrb[97].mxu0  ;;  %v9740_v8 = vpop.f32.mrb[81].mxu1  ;;  %v6952_v21 = vrot.slane %v6950_v20, 4  ;;  %v6953_v17 = vshll.u32 %v6604_v61, 16  ;;  %v6959_v47 = vshll.u32 %v13085_v49, 16  ;;  %v10968_v12 = vld [vmem:[#allocation10 + $0xf8] sm:$0xff]   ;;  %v13104_v60 = vcombine.low %v4833_v58, %v13099_v28 }
 0x26e   : > { %14724 = vst [vmem:[#allocation39_spill] sm:$0xff] %v13089_v1  ;;  %v9605_v15 = vadd.f32 %v9604_v5, %v9603_v0  ;;  %v9606_v11 = vpop.f32.mrb[98].mxu0  ;;  %v6932_v1 = vor.u32 %v6931_v6, %v6928_v26  ;;  %v13097_v57 = vadd.f32 %v9740_v8, %v9739_v9  ;;  %v9742_v42 = vpop.f32.mrb[82].mxu1  ;;  %10395 = vmatprep.mubr.bf16.mxu1 %v9180_v63  ;;  %v6607_v61 = vld [vmem:[#allocation2 + $0xc0] sm:$0xf]  ;;  %v6963_v9 = vshrl.u32 %v13085_v49, 16 }
 0x26f   : > { %v9607_v53 = vpop.f32.mrb[99].mxu0  ;;  %v6942_v0 = vor.u32 %v6941_v55, %v6937_v35  ;;  %v9743_v5 = vpop.f32.mrb[83].mxu1  ;;  %v6955_v37 = vrot.slane %v6953_v17, 5  ;;  %v13101_v20 = vrot.slane %v6959_v47, 5  ;;  %9961 = vmatprep.subr.bf16.mxu1 %v10968_v12  ;;  %v6969_v63 = vshll.u32 %v6606_v54, 16  ;;  %v10970_v58 = vld [vmem:[#allocation10 + $0x78] sm:$0xff]  }
 0x270   : > { %v3778_v40 = vadd.f32 %v9605_v15, %v12850_v23  ;;  %v9608_v2 = vadd.f32 %v9607_v53, %v9606_v11  ;;  %v6933_v26 = vrot.slane %v6932_v1, 4  ;;  %v13107_v46 = vadd.f32 %v9743_v5, %v9742_v42  ;;  %v10969_v15 = vld [vmem:[#allocation10 + $0xb8] sm:$0xff]   ;;  %v6608_v55 = vld [vmem:[#allocation2 + $0xc4] sm:$0xf]  ;;  %9849 = vmatprep.subr.bf16.mxu0 %v10970_v58 }
 0x271   : > { %v6943_v6 = vrot.slane %v6942_v0, 4  ;;  %v6956_v11 = vor.u32 %v6955_v37, %v6952_v21  ;;  %v6974_v17 = vshrl.u32 %v6607_v61, 16  ;;  %v6977_v47 = vshll.u32 %v6607_v61, 16  ;;  %9962 = vmatpush3.bf16.msra.mxu1 %v10969_v15  ;;  %v4881_v0 = vld [vmem:[#allocation3] sm:$0xe] }
 0x272   : > { %v3781_v23 = vadd.f32 %v9608_v2, %v12858_v3  ;;  %v13110_v7 = vadd.f32 %v13016_v50, %v3778_v40  ;;  %v6938_v1 = vsel %vm12935_vm12, %v6933_v26, %v6937_v35  ;;  %v6609_v50 = vld [vmem:[#allocation2 + $0xc8] sm:$0x1]  ;;  %v6965_v42 = vrot.slane %v6963_v9, 4 }
 0x273   : > { %v6948_v3 = vsel %vm12935_vm12, %v6943_v6, %v6947_v36  ;;  %v10971_v40 = vld [vmem:[#allocation10 + $0x38] sm:$0xff]   ;;  %v6957_v21 = vrot.slane %v6956_v11, 4  ;;  %v6971_v49 = vrot.slane %v6969_v63, 5  ;;  %v6976_v26 = vrot.slane %v6974_v17, 4 }
 0x274   : > { %v9609_v53 = vpop.f32.mrb[100].mxu0  ;;  %v13118_v8 = vadd.f32 %v13021_v56, %v3781_v23  ;;  %v9181_v35 = vcombine.low %v6938_v1, %v6948_v3  ;;  %v9745_v5 = vpop.f32.mrb[84].mxu1  ;;  %v6979_v36 = vrot.slane %v6977_v47, 5  ;;  %v6983_v37 = vshll.u32 %v6608_v55, 16  ;;  %9850 = vmatpush3.bf16.msra.mxu0 %v10971_v40 }
 0x275   : > { %v9610_v2 = vpop.f32.mrb[101].mxu0  ;;  %v9746_v23 = vpop.f32.mrb[85].mxu1  ;;  %v6962_v61 = vsel %vm12935_vm12, %v6957_v21, %v13101_v20  ;;  %v6966_v6 = vor.u32 %v6965_v42, %v13101_v20  ;;  %v6987_v15 = vshrl.u32 %v6608_v55, 16  ;;  %v6993_v1 = vshll.u32 %v6609_v50, 16 }
 0x276   : > { %14725 = vst [vmem:[#allocation42_spill] sm:$0xff] %v13118_v8  ;;  %v9611_v54 = vadd.f32 %v9610_v2, %v9609_v53  ;;  %v9612_v12 = vpop.f32.mrb[102].mxu0  ;;  %10396 = vmatmul.mubr.bf16.gmra.mrb[136].mxu1 %v9181_v35  ;;  %v13125_v63 = vadd.f32 %v9746_v23, %v9745_v5  ;;  %v9748_v58 = vpop.f32.mrb[86].mxu1  ;;  %v6980_v53 = vor.u32 %v6979_v36, %v6976_v26  ;;  %v10973_v3 = vld [vmem:[#allocation3 + $0x8] ss:$0 sps:$4 sm:$0x11]  }
 0x277   : > { %v9613_v56 = vpop.f32.mrb[103].mxu0  ;;  %v9749_v17 = vpop.f32.mrb[87].mxu1  ;;  %v6967_v47 = vrot.slane %v6966_v6, 4  ;;  %v6985_v40 = vrot.slane %v6983_v37, 5  ;;  %v6989_v2 = vrot.slane %v6987_v15, 4  ;;  %v9056_v35 = vcombine.low %v4881_v0, %v13099_v28 }
 0x278   : > { %v3786_v11 = vadd.f32 %v9611_v54, %v12864_v19  ;;  %v9614_v9 = vadd.f32 %v9613_v56, %v9612_v12  ;;  %v13129_v8 = vadd.f32 %v9749_v17, %v9748_v58  ;;  %v6981_v19 = vrot.slane %v6980_v53, 4 }
 0x279   : > { %v6972_v55 = vsel %vm12935_vm12, %v6967_v47, %v6971_v49  ;;  %v6990_v50 = vor.u32 %v6989_v2, %v6985_v40  ;;  %v6995_v42 = vrot.slane %v6993_v1, 5  ;;  %v5171_v54 = vshrl.u32 %v13104_v60, 16 }
 0x27a   : > { %v3789_v21 = vadd.f32 %v9614_v9, %v12869_v32  ;;  %v13132_v20 = vadd.f32 %v13034_v14, %v3786_v11  ;;  %v9182_v28 = vcombine.low %v6962_v61, %v6972_v55  ;;  %v6986_v32 = vsel %vm12935_vm12, %v6981_v19, %v6985_v40 }
 0x27b   : > { %v5173_v0 = vshll.u32 %v13104_v60, 16  ;;  %v6991_v26 = vrot.slane %v6990_v50, 4  ;;  %v5178_v36 = vshll.u32 %v10973_v3, 16  ;;  %v5426_v37 = vrot.slane %v9056_v35, 1 }
 0x27c   : > { %v9615_v12 = vpop.f32.mrb[104].mxu0  ;;  %v13138_v5 = vadd.f32 %v13037_v4, %v3789_v21  ;;  %v5427_v56 = vrot.slane %v10973_v3, 1  ;;  %v9751_v6 = vpop.f32.mrb[88].mxu1  ;;  %10399 = vmatprep.mubr.bf16.mxu1 %v9182_v28 }
 0x27d   : > { %v9616_v14 = vpop.f32.mrb[105].mxu0  ;;  %v5175_v15 = vrot.slane %v5173_v0, 1  ;;  %v9752_v11 = vpop.f32.mrb[89].mxu1  ;;  %v6996_v4 = vsel %vm12935_vm12, %v6991_v26, %v6995_v42  ;;  %v5180_v61 = vrot.slane %v5178_v36, 1 }
 0x27e   : > { %v9617_v49 = vadd.f32 %v9616_v14, %v9615_v12  ;;  %v9618_v23 = vpop.f32.mrb[106].mxu0  ;;  %v13146_v9 = vsel %vm1820_vm9, %v5426_v37, %v5427_v56  ;;  %v13149_v17 = vadd.f32 %v9752_v11, %v9751_v6  ;;  %v9754_v3 = vpop.f32.mrb[90].mxu1  ;;  %v9183_v47 = vcombine.low %v6986_v32, %v6996_v4 }
 0x27f   : > { %v9619_v1 = vpop.f32.mrb[107].mxu0  ;;  %v9755_v40 = vpop.f32.mrb[91].mxu1  ;;  %v5176_v2 = vor.u32 %v5175_v15, %v5171_v54 }
 0x280   : > { %v3794_v58 = vadd.f32 %v9617_v49, %v12875_v27  ;;  %v9620_v53 = vadd.f32 %v9619_v1, %v9618_v23  ;;  %v13152_v21 = vadd.f32 %v9755_v40, %v9754_v3  ;;  %10400 = vmatmul.mubr.bf16.gmra.mrb[140].mxu1 %v9183_v47  ;;  %v10977_v49 = vld [vmem:[#allocation10 + $0x1c0] sm:$0xff]  }
 0x281   : > { %v5181_v19 = vsel %vm1563_vm0, %v5176_v2, %v5180_v61  ;;  %10171 = vmatprep.subr.bf16.mxu1 %v10977_v49 }
 0x282   : > { %v3797_v35 = vadd.f32 %v9620_v53, %v12879_v13  ;;  %v13155_v10 = vadd.f32 %v13052_v33, %v3794_v58  ;;  %7750 = vmatprep.mubr.bf16.mxu0 %v5181_v19 }
 0x283   : > { %7751 = vmatmul.mubr.bf16.vlgmr.msra.gmra.mrb[176].mxu0 %v13104_v60 }
 0x284   : > { %v9621_v55 = vpop.f32.mrb[108].mxu0  ;;  %v13159_v27 = vadd.f32 %v13057_v62, %v3797_v35  ;;  %v9757_v12 = vpop.f32.mrb[92].mxu1 }
 0x285   : > { %v9622_v50 = vpop.f32.mrb[109].mxu0  ;;  %v9758_v28 = vpop.f32.mrb[93].mxu1 }
 0x286   : > { %v9623_v42 = vadd.f32 %v9622_v50, %v9621_v55  ;;  %v9624_v54 = vpop.f32.mrb[110].mxu0  ;;  %v13163_v33 = vadd.f32 %v9758_v28, %v9757_v12  ;;  %v9760_v14 = vpop.f32.mrb[94].mxu1 }
 0x287   : > { %v9625_v13 = vpop.f32.mrb[111].mxu0  ;;  %v9761_v26 = vpop.f32.mrb[95].mxu1 }
 0x288   : > { %v3802_v32 = vadd.f32 %v9623_v42, %v12886_v25  ;;  %v9626_v0 = vadd.f32 %v9625_v13, %v9624_v54  ;;  %v13166_v62 = vadd.f32 %v9761_v26, %v9760_v14 }
 0x28a   : > { %v3805_v36 = vadd.f32 %v9626_v0, %v12890_v34  ;;  %v13169_v37 = vadd.f32 %v13075_v29, %v3802_v32 }
 0x28c   : > { %v9627_v60 = vpop.f32.mrb[112].mxu0  ;;  %v13172_v56 = vadd.f32 %v13080_v18, %v3805_v36  ;;  %v9763_v15 = vpop.f32.mrb[96].mxu1 }
 0x28d   : > { %v9628_v23 = vpop.f32.mrb[113].mxu0  ;;  %v9764_v11 = vpop.f32.mrb[97].mxu1 }
 0x28e   : > { %v9629_v6 = vadd.f32 %v9628_v23, %v9627_v60  ;;  %v9630_v25 = vpop.f32.mrb[114].mxu0  ;;  %v13175_v61 = vadd.f32 %v9764_v11, %v9763_v15  ;;  %v9766_v58 = vpop.f32.mrb[98].mxu1 }
 0x28f   : > { %v9631_v1 = vpop.f32.mrb[115].mxu0  ;;  %v9767_v29 = vpop.f32.mrb[99].mxu1 }
 0x290   : > { %v3810_v4 = vadd.f32 %v9629_v6, %v12892_v45  ;;  %v9632_v34 = vadd.f32 %v9631_v1, %v9630_v25  ;;  %v9768_v3 = vadd.f32 %v9767_v29, %v9766_v58 }
 0x292   : > { %v3813_v53 = vadd.f32 %v9632_v34, %v12895_v59  ;;  %v13179_v18 = vadd.f32 %v13097_v57, %v3810_v4 }
 0x294   : > { %v9633_v47 = vpop.f32.mrb[116].mxu0  ;;  %v13182_v40 = vadd.f32 %v13107_v46, %v3813_v53  ;;  %v9769_v55 = vpop.f32.mrb[100].mxu1 }
 0x295   : > { %v9634_v2 = vpop.f32.mrb[117].mxu0  ;;  %v9770_v50 = vpop.f32.mrb[101].mxu1 }
 0x296   : > { %v9635_v35 = vadd.f32 %v9634_v2, %v9633_v47  ;;  %v9636_v19 = vpop.f32.mrb[118].mxu0  ;;  %v9771_v12 = vadd.f32 %v9770_v50, %v9769_v55  ;;  %v9772_v13 = vpop.f32.mrb[102].mxu1 }
 0x297   : > { %v9637_v45 = vpop.f32.mrb[119].mxu0  ;;  %v9773_v59 = vpop.f32.mrb[103].mxu1 }
 0x298   : > { %v3818_v42 = vadd.f32 %v9635_v35, %v12898_v51  ;;  %v9638_v54 = vadd.f32 %v9637_v45, %v9636_v19  ;;  %v9774_v57 = vadd.f32 %v9773_v59, %v9772_v13 }
 0x29a   : > { %v3821_v28 = vadd.f32 %v9638_v54, %v12901_v52  ;;  %v13187_v32 = vadd.f32 %v13125_v63, %v3818_v42 }
 0x29c   : > { %v9639_v46 = vpop.f32.mrb[120].mxu0  ;;  %v13190_v0 = vadd.f32 %v13129_v8, %v3821_v28  ;;  %v9775_v60 = vpop.f32.mrb[104].mxu1 }
 0x29d   : > { %v9640_v14 = vpop.f32.mrb[121].mxu0  ;;  %v9776_v51 = vpop.f32.mrb[105].mxu1 }
 0x29e   : > { %v9641_v26 = vadd.f32 %v9640_v14, %v9639_v46  ;;  %v9642_v36 = vpop.f32.mrb[122].mxu0  ;;  %v9777_v25 = vadd.f32 %v9776_v51, %v9775_v60  ;;  %v9778_v15 = vpop.f32.mrb[106].mxu1  ;;  %v14726_v14 = vld [vmem:[#allocation31_spill] sm:$0xff] }
 0x29f   : > { %v9643_v49 = vpop.f32.mrb[123].mxu0  ;;  %v9779_v52 = vpop.f32.mrb[107].mxu1 }
 0x2a0   : > { %v3826_v23 = vadd.f32 %v9641_v26, %v12904_v43  ;;  %v9644_v6 = vadd.f32 %v9643_v49, %v9642_v36  ;;  %v9780_v63 = vadd.f32 %v9779_v52, %v9778_v15  ;;  %v14728_v52 = vld [vmem:[#allocation32_spill] sm:$0xff] }
 0x2a2   : > { %v3829_v1 = vadd.f32 %v9644_v6, %v12906_v24  ;;  %v13195_v11 = vadd.f32 %v13149_v17, %v3826_v23  ;;  %v14727_v23 = vld [vmem:[#allocation36_spill] sm:$0xff] }
 0x2a4   : > { %v9645_v8 = vpop.f32.mrb[124].mxu0  ;;  %v13198_v4 = vadd.f32 %v13152_v21, %v3829_v1  ;;  %v9781_v53 = vpop.f32.mrb[108].mxu1 }
 0x2a5   : > { %v9646_v34 = vpop.f32.mrb[125].mxu0  ;;  %v9782_v43 = vpop.f32.mrb[109].mxu1 }
 0x2a6   : > { %v9647_v58 = vadd.f32 %v9646_v34, %v9645_v8  ;;  %v9648_v29 = vpop.f32.mrb[126].mxu0  ;;  %v9783_v19 = vadd.f32 %v9782_v43, %v9781_v53  ;;  %v9784_v55 = vpop.f32.mrb[110].mxu1 }
 0x2a7   : > { %v9649_v47 = vpop.f32.mrb[127].mxu0  ;;  %v9785_v24 = vpop.f32.mrb[111].mxu1 }
 0x2a8   : > { %v3834_v2 = vadd.f32 %v9647_v58, %v12910_v22  ;;  %v9650_v35 = vadd.f32 %v9649_v47, %v9648_v29  ;;  %v9786_v17 = vadd.f32 %v9785_v24, %v9784_v55 }
 0x2aa   : > { %v3837_v45 = vadd.f32 %v9650_v35, %v12912_v38  ;;  %v13203_v50 = vadd.f32 %v13163_v33, %v3834_v2  ;;  %v14730_v2 = vld [vmem:[#allocation34_spill] sm:$0xff] }
 0x2ac   : > { %v9651_v21 = vpop.f32.mrb[128].mxu0  ;;  %v13206_v42 = vadd.f32 %v13166_v62, %v3837_v45 }
 0x2ad   : > { %v9652_v54 = vpop.f32.mrb[129].mxu0 }
 0x2ae   : > { %v9653_v13 = vadd.f32 %v9652_v54, %v9651_v21  ;;  %v9654_v59 = vpop.f32.mrb[130].mxu0 }
 0x2af   : > { %v9655_v28 = vpop.f32.mrb[131].mxu0 }
 0x2b0   : > { %v3842_v22 = vadd.f32 %v9653_v13, %v12916_v39  ;;  %v9656_v46 = vadd.f32 %v9655_v28, %v9654_v59 }
 0x2b2   : > { %v3845_v26 = vadd.f32 %v9656_v46, %v14726_v14  ;;  %v13211_v36 = vadd.f32 %v13175_v61, %v3842_v22  ;;  %v14732_v22 = vld [vmem:[#allocation37_spill] sm:$0xff] }
 0x2b4   : > { %v9657_v38 = vpop.f32.mrb[132].mxu0  ;;  %v13213_v60 = vadd.f32 %v9768_v3, %v3845_v26  ;;  %v14729_v3 = vld [vmem:[#allocation33_spill] sm:$0xff] }
 0x2b5   : > { %v9658_v33 = vpop.f32.mrb[133].mxu0 }
 0x2b6   : > { %v9659_v49 = vadd.f32 %v9658_v33, %v9657_v38  ;;  %v9660_v51 = vpop.f32.mrb[134].mxu0 }
 0x2b7   : > { %v9661_v62 = vpop.f32.mrb[135].mxu0 }
 0x2b8   : > { %v3850_v6 = vadd.f32 %v9659_v49, %v14727_v23  ;;  %v9662_v15 = vadd.f32 %v9661_v62, %v9660_v51  ;;  %v13242_v49 = vld [vmem:[%s14561_s6] ss:$0 sm:$0xff] }
 0x2ba   : > { %v3853_v1 = vadd.f32 %v9662_v15, %v14728_v52  ;;  %v13217_v8 = vadd.f32 %v9771_v12, %v3850_v6 }
 0x2bc   : > { %v9663_v39 = vpop.f32.mrb[136].mxu0  ;;  %v13219_v34 = vadd.f32 %v9774_v57, %v3853_v1  ;;  %v14731_v57 = vld [vmem:[#allocation35_spill] sm:$0xff] }
 0x2bd   : > { %v9664_v58 = vpop.f32.mrb[137].mxu0 }
 0x2be   : > { %v9665_v61 = vadd.f32 %v9664_v58, %v9663_v39  ;;  %v9666_v29 = vpop.f32.mrb[138].mxu0 }
 0x2bf   : > { %v9667_v53 = vpop.f32.mrb[139].mxu0 }
 0x2c0   : > { %v3858_v47 = vadd.f32 %v9665_v61, %v14729_v3  ;;  %v9668_v43 = vadd.f32 %v9667_v53, %v9666_v29 }
 0x2c2   : > { %v3861_v35 = vadd.f32 %v9668_v43, %v14730_v2  ;;  %v13223_v55 = vadd.f32 %v9777_v25, %v3858_v47  ;;  %v13234_v25 = vld [vmem:[%s14560_s5] ss:$0 sm:$0xff] }
 0x2c4   : > { %v9669_v24 = vpop.f32.mrb[140].mxu0  ;;  %v13225_v45 = vadd.f32 %v9780_v63, %v3861_v35 }
 0x2c5   : > { %v9670_v21 = vpop.f32.mrb[141].mxu0 }
 0x2c6   : > { %v9671_v12 = vadd.f32 %v9670_v21, %v9669_v24  ;;  %v9672_v54 = vpop.f32.mrb[142].mxu0 }
 0x2c7   : > { %v9673_v13 = vpop.f32.mrb[143].mxu0 }
 0x2c8   : > { %v3866_v59 = vadd.f32 %v9671_v12, %v14731_v57  ;;  %v9674_v28 = vadd.f32 %v9673_v13, %v9672_v54 }
 0x2ca   : > { %v3869_v46 = vadd.f32 %v9674_v28, %v14732_v22  ;;  %v13229_v14 = vadd.f32 %v9783_v19, %v3866_v59  ;;  %v11024_v59 = vld [vmem:[#allocation10 + $0x140] sm:$0xff]  }
 0x2cb   : > { %v11025_v28 = vld [vmem:[#allocation10 + $0x100] sm:$0xff]   ;;  %10059 = vmatprep.subr.bf16.mxu0 %v11024_v59 }
 0x2cc   : > { %v10325_v26 = vpop.f32.mrb[144].mxu0  ;;  %v13236_v38 = vadd.f32 %v9786_v17, %v3869_v46  ;;  %10060 = vmatpush3.bf16.msra.mxu0 %v11025_v28 }
 0x2cd   : > { %v4076_v63 = vadd.f32 %v10325_v26, %v13040_v31  ;;  %v4067_v33 = vpop.f32.mrb[145].mxu0 }
 0x2ce   : > { %v4068_v51 = vadd.f32 %v4067_v33, %v13024_v48  ;;  %v10326_v19 = vpop.f32.mrb[146].mxu0 }
 0x2cf   : > { %v4203_v62 = vmul.f32 %v13234_v25, %v4076_v63  ;;  %v4079_v23 = vadd.f32 %v10326_v19, %v13047_v44  ;;  %v4070_v6 = vpop.f32.mrb[147].mxu0 }
 0x2d0   : > { %v4201_v15 = vmul.f32 %v13234_v25, %v4068_v51  ;;  %v4071_v17 = vadd.f32 %v4070_v6, %v13031_v16 }
 0x2d1   : > { %v4242_v31 = vadd.f32 %v13242_v49, %v4203_v62  ;;  %v4204_v52 = vmul.f32 %v13234_v25, %v4079_v23 }
 0x2d2   : > { %v4240_v1 = vadd.f32 %v13242_v49, %v4201_v15  ;;  %v4202_v39 = vmul.f32 %v13234_v25, %v4071_v17 }
 0x2d3   : > { %v4274_v58 = vmax.f32 %v4242_v31, 0.0  ;;  %v4243_v48 = vadd.f32 %v13242_v49, %v4204_v52  ;;  %v4721_v52 = vld [vmem:[#allocation3 + $0xc] sm:$0xf] }
 0x2d4   : > { %v4272_v61 = vmax.f32 %v4240_v1, 0.0  ;;  %v4241_v29 = vadd.f32 %v13242_v49, %v4202_v39  ;;  %v10329_v44 = vpop.f32.mrb[148].mxu0 }
 0x2d5   : > { %v9307_v53 = vpack.c.bf16 %v4274_v58, %v4274_v58  ;;  %v4275_v3 = vmax.f32 %v4243_v48, 0.0  ;;  %v4092_v47 = vadd.f32 %v10329_v44, %v13083_v41  ;;  %v4083_v16 = vpop.f32.mrb[149].mxu0 }
 0x2d6   : > { %v9305_v43 = vpack.c.bf16 %v4272_v61, %v4272_v61  ;;  %v4273_v2 = vmax.f32 %v4241_v29, 0.0  ;;  %v4084_v35 = vadd.f32 %v4083_v16, %v13060_v30  ;;  %v10330_v24 = vpop.f32.mrb[150].mxu0  ;;  %v4728_v30 = vld [vmem:[#allocation3 + $0x18] sm:$0xf]  ;;  %v4732_v61 = vld [vmem:[#allocation3 + $0x20] sm:$0x1] }
 0x2d7   : > { %v4418_v21 = vshrl.u32 %v9307_v53, 16  ;;  %v4421_v12 = vshll.u32 %v9307_v53, 16  ;;  %v9308_v54 = vpack.c.bf16 %v4275_v3, %v4275_v3  ;;  %v4207_v13 = vmul.f32 %v13234_v25, %v4092_v47  ;;  %v4086_v57 = vpop.f32.mrb[151].mxu0 }
 0x2d8   : > { %v4401_v22 = vshrl.u32 %v9305_v43, 16  ;;  %v4404_v46 = vshll.u32 %v9305_v43, 16  ;;  %v9306_v26 = vpack.c.bf16 %v4273_v2, %v4273_v2  ;;  %v4205_v63 = vmul.f32 %v13234_v25, %v4084_v35  ;;  %v4725_v2 = vld [vmem:[#allocation3 + $0x14] sm:$0x1] }
 0x2d9   : > { %v4420_v41 = vrot.slane %v4418_v21, 7  ;;  %v4426_v33 = vshrl.u32 %v9308_v54, 16  ;;  %v4429_v51 = vshll.u32 %v9308_v54, 16  ;;  %v4246_v19 = vadd.f32 %v13242_v49, %v4207_v13 }
 0x2da   : > { %v4403_v62 = vrot.slane %v4401_v22, 7  ;;  %v4409_v23 = vshrl.u32 %v9306_v26, 16  ;;  %v4412_v6 = vshll.u32 %v9306_v26, 16  ;;  %v4244_v15 = vadd.f32 %v13242_v49, %v4205_v63 }
 0x2db   : > { %v4423_v17 = vor.u32 %v4421_v12, %v4420_v41  ;;  %v4424_v31 = vrot.slane %v4420_v41, 4  ;;  %v4428_v1 = vrot.slane %v4426_v33, 7  ;;  %v4278_v39 = vmax.f32 %v4246_v19, 0.0 }
 0x2dc   : > { %v4406_v58 = vor.u32 %v4404_v46, %v4403_v62  ;;  %v4407_v48 = vrot.slane %v4403_v62, 4  ;;  %v4411_v29 = vrot.slane %v4409_v23, 7  ;;  %v4276_v44 = vmax.f32 %v4244_v15, 0.0  ;;  %v10333_v53 = vpop.f32.mrb[152].mxu0  ;;  %v14736_v15 = vld [vmem:[#allocation39_spill] sm:$0xff] }
 0x2dd   : > { %v4729_v47 = vsel %vm11878_vm7, %v4423_v17, %v4728_v30  ;;  %v4431_v16 = vor.u32 %v4429_v51, %v4428_v1  ;;  %v4433_v43 = vrot.slane %v4428_v1, 4  ;;  %v9311_v35 = vpack.c.bf16 %v4278_v39, %v4278_v39  ;;  %v4099_v21 = vpop.f32.mrb[153].mxu0  ;;  %v4742_v39 = vld [vmem:[#allocation3 + $0x30] sm:$0xf] }
 0x2de   : > { %4730 = vst [vmem:[#allocation3 + $0x18] sm:$0xf] %v4729_v47  ;;  %v4722_v12 = vsel %vm11878_vm7, %v4406_v58, %v4721_v52  ;;  %v4414_v54 = vor.u32 %v4412_v6, %v4411_v29  ;;  %v4416_v13 = vrot.slane %v4411_v29, 4  ;;  %v9309_v59 = vpack.c.bf16 %v4276_v44, %v4276_v44  ;;  %v10334_v28 = vpop.f32.mrb[154].mxu0  ;;  %v14738_v29 = vld [vmem:[#allocation42_spill] sm:$0xff] }
 0x2df   : > { %4723 = vst [vmem:[#allocation3 + $0xc] sm:$0xf] %v4722_v12  ;;  %v4432_v46 = vsel %vm11857_vm3, %v4424_v31, %v4431_v16  ;;  %v4733_v63 = vsel %vm11885_vm8, %v4433_v43, %v4732_v61  ;;  %v4452_v41 = vshrl.u32 %v9311_v35, 16  ;;  %v4455_v33 = vshll.u32 %v9311_v35, 16  ;;  %v4102_v51 = vpop.f32.mrb[155].mxu0  ;;  %v14737_v31 = vld [vmem:[#allocation38_spill] sm:$0xff] }
 0x2e0   : > { %4731 = vst [vmem:[#allocation3 + $0x1c] sm:$0xf] %v4432_v46  ;;  %4734 = vst [vmem:[#allocation3 + $0x20] sm:$0x1] %v4733_v63  ;;  %v4415_v19 = vsel %vm11857_vm3, %v4407_v48, %v4414_v54  ;;  %v4726_v30 = vsel %vm11885_vm8, %v4416_v13, %v4725_v2  ;;  %v4435_v62 = vshrl.u32 %v9309_v59, 16  ;;  %v4438_v23 = vshll.u32 %v9309_v59, 16 }
 0x2e1   : > { %4724 = vst [vmem:[#allocation3 + $0x10] sm:$0xf] %v4415_v19  ;;  %4727 = vst [vmem:[#allocation3 + $0x14] sm:$0x1] %v4726_v30  ;;  %v13273_v6 = vrot.slane %v4452_v41, 7  ;;  %v4095_v17 = vadd.f32 %v10330_v24, %v14736_v15  ;;  %v4087_v52 = vadd.f32 %v4086_v57, %v14737_v31  ;;  %v4108_v1 = vadd.f32 %v10333_v53, %v13132_v20 }
 0x2e2   : > { %v13278_v58 = vrot.slane %v4435_v62, 7  ;;  %v4100_v48 = vadd.f32 %v4099_v21, %v13110_v7  ;;  %v4111_v61 = vadd.f32 %v10334_v28, %v13138_v5  ;;  %v4103_v44 = vadd.f32 %v4102_v51, %v14738_v29  ;;  %v4735_v43 = vld [vmem:[#allocation3 + $0x24] sm:$0xf] }
 0x2e3   : > { %v4457_v47 = vor.u32 %v4455_v33, %v13273_v6  ;;  %v4458_v16 = vrot.slane %v13273_v6, 4  ;;  %v4208_v24 = vmul.f32 %v13234_v25, %v4095_v17  ;;  %v4206_v57 = vmul.f32 %v13234_v25, %v4087_v52  ;;  %v11039_v29 = vld [vmem:[#allocation10 + $0x108] sm:$0xff]  }
 0x2e4   : > { %v4440_v20 = vor.u32 %v4438_v23, %v13278_v58  ;;  %v4441_v53 = vrot.slane %v13278_v58, 4  ;;  %v4211_v2 = vmul.f32 %v13234_v25, %v4108_v1  ;;  %v4209_v7 = vmul.f32 %v13234_v25, %v4100_v48  ;;  %v10337_v5 = vpop.f32.mrb[156].mxu0  ;;  %v11038_v23 = vld [vmem:[#allocation10 + $0x148] sm:$0xff]  }
 0x2e5   : > { %v4743_v35 = vsel %vm11878_vm7, %v4457_v47, %v4742_v39  ;;  %v4247_v21 = vadd.f32 %v13242_v49, %v4208_v24  ;;  %v4245_v12 = vadd.f32 %v13242_v49, %v4206_v57  ;;  %v4212_v54 = vmul.f32 %v13234_v25, %v4111_v61  ;;  %v4115_v13 = vpop.f32.mrb[157].mxu0  ;;  %10061 = vmatprep.subr.bf16.mxu0 %v11038_v23 }
 0x2e6   : > { %4744 = vst [vmem:[#allocation3 + $0x30] sm:$0xf] %v4743_v35  ;;  %v4736_v59 = vsel %vm11878_vm7, %v4440_v20, %v4735_v43  ;;  %v4250_v28 = vadd.f32 %v13242_v49, %v4211_v2  ;;  %v4248_v46 = vadd.f32 %v13242_v49, %v4209_v7  ;;  %v4210_v63 = vmul.f32 %v13234_v25, %v4103_v44  ;;  %v13301_v41 = vpop.f32.mrb[158].mxu0  ;;  %v4746_v7 = vld [vmem:[#allocation3 + $0x38] sm:$0x1] }
 0x2e7   : > { %4737 = vst [vmem:[#allocation3 + $0x24] sm:$0xf] %v4736_v59  ;;  %v4279_v33 = vmax.f32 %v4247_v21, 0.0  ;;  %v4277_v51 = vmax.f32 %v4245_v12, 0.0  ;;  %v4251_v19 = vadd.f32 %v13242_v49, %v4212_v54  ;;  %v4124_v30 = vadd.f32 %v10337_v5, %v13169_v37  ;;  %v13305_v62 = vpop.f32.mrb[159].mxu0  ;;  %10062 = vmatpush3.bf16.msra.mxu0 %v11039_v29 }
 0x2e8   : > { %v4282_v15 = vmax.f32 %v4250_v28, 0.0  ;;  %v4280_v17 = vmax.f32 %v4248_v46, 0.0  ;;  %v4249_v31 = vadd.f32 %v13242_v49, %v4210_v63  ;;  %v4116_v52 = vadd.f32 %v4115_v13, %v13155_v10  ;;  %v4739_v5 = vld [vmem:[#allocation3 + $0x2c] sm:$0x1] }
 0x2e9   : > { %v9312_v1 = vpack.c.bf16 %v4279_v33, %v4279_v33  ;;  %v9310_v39 = vpack.c.bf16 %v4277_v51, %v4277_v51  ;;  %v4283_v48 = vmax.f32 %v4251_v19, 0.0  ;;  %v4215_v61 = vmul.f32 %v13234_v25, %v4124_v30  ;;  %v4756_v51 = vld [vmem:[#allocation3 + $0x48] sm:$0xf] }
 0x2ea   : > { %v9315_v44 = vpack.c.bf16 %v4282_v15, %v4282_v15  ;;  %v9313_v47 = vpack.c.bf16 %v4280_v17, %v4280_v17  ;;  %v4281_v43 = vmax.f32 %v4249_v31, 0.0  ;;  %v4213_v37 = vmul.f32 %v13234_v25, %v4116_v52 }
 0x2eb   : > { %v4460_v24 = vshrl.u32 %v9312_v1, 16  ;;  %v4463_v57 = vshll.u32 %v9312_v1, 16  ;;  %v4443_v20 = vshrl.u32 %v9310_v39, 16  ;;  %v4446_v2 = vshll.u32 %v9310_v39, 16  ;;  %v4749_v39 = vld [vmem:[#allocation3 + $0x3c] sm:$0xf] }
 0x2ec   : > { %v4486_v10 = vshrl.u32 %v9315_v44, 16  ;;  %v4489_v35 = vshll.u32 %v9315_v44, 16  ;;  %v4469_v21 = vshrl.u32 %v9313_v47, 16  ;;  %v4472_v12 = vshll.u32 %v9313_v47, 16  ;;  %v13311_v54 = vpop.f32.mrb[160].mxu0 }
 0x2ed   : > { %v4462_v13 = vrot.slane %v4460_v24, 7  ;;  %v4445_v59 = vrot.slane %v4443_v20, 7  ;;  %v9316_v28 = vpack.c.bf16 %v4283_v48, %v4283_v48  ;;  %v9314_v46 = vpack.c.bf16 %v4281_v43, %v4281_v43  ;;  %v13313_v63 = vpop.f32.mrb[161].mxu0  ;;  %v4898_v24 = vld [vmem:[#allocation3 + $0x10] sm:$0xf] }
 0x2ee   : > { %v13315_v33 = vrot.slane %v4486_v10, 7  ;;  %v13317_v19 = vrot.slane %v4469_v21, 7  ;;  %v4254_v30 = vadd.f32 %v13242_v49, %v4215_v61  ;;  %v4252_v23 = vadd.f32 %v13242_v49, %v4213_v37  ;;  %v13321_v15 = vpop.f32.mrb[162].mxu0 }
 0x2ef   : > { %v4465_v17 = vor.u32 %v4463_v57, %v4462_v13  ;;  %v4467_v31 = vrot.slane %v4462_v13, 4  ;;  %v4448_v52 = vor.u32 %v4446_v2, %v4445_v59  ;;  %v4450_v1 = vrot.slane %v4445_v59, 4  ;;  %v13323_v48 = vpop.f32.mrb[163].mxu0  ;;  %v10980_v59 = vld [vmem:[#allocation10 + $0x180] sm:$0xff]  }
 0x2f0   : > { %v4491_v29 = vor.u32 %v4489_v35, %v13315_v33  ;;  %v4474_v44 = vor.u32 %v4472_v12, %v13317_v19  ;;  %v4492_v6 = vrot.slane %v13315_v33, 4  ;;  %v4494_v58 = vshrl.u32 %v9316_v28, 16  ;;  %v4760_v35 = vld [vmem:[#allocation3 + $0x50] sm:$0x1] }
 0x2f1   : > { %v4466_v61 = vsel %vm11857_vm3, %v4458_v16, %v4465_v17  ;;  %v4747_v47 = vsel %vm11885_vm8, %v4467_v31, %v4746_v7  ;;  %v4449_v43 = vsel %vm11857_vm3, %v4441_v53, %v4448_v52  ;;  %v4740_v37 = vsel %vm11885_vm8, %v4450_v1, %v4739_v5  ;;  %v4897_v5 = vld [vmem:[#allocation3 + $0xc] sm:$0xf] }
 0x2f2   : > { %4745 = vst [vmem:[#allocation3 + $0x34] sm:$0xf] %v4466_v61  ;;  %4748 = vst [vmem:[#allocation3 + $0x38] sm:$0x1] %v4747_v47  ;;  %v4757_v16 = vsel %vm11878_vm7, %v4491_v29, %v4756_v51  ;;  %v4750_v57 = vsel %vm11878_vm7, %v4474_v44, %v4749_v39  ;;  %v4497_v53 = vshll.u32 %v9316_v28, 16  ;;  %v4477_v20 = vshrl.u32 %v9314_v46, 16 }
 0x2f3   : > { %4738 = vst [vmem:[#allocation3 + $0x28] sm:$0xf] %v4449_v43  ;;  %4741 = vst [vmem:[#allocation3 + $0x2c] sm:$0x1] %v4740_v37  ;;  %v4286_v2 = vmax.f32 %v4254_v30, 0.0  ;;  %v4284_v7 = vmax.f32 %v4252_v23, 0.0  ;;  %v4127_v21 = vadd.f32 %v13301_v41, %v13172_v56  ;;  %v4119_v12 = vadd.f32 %v13305_v62, %v13159_v27 }
 0x2f4   : > { %4758 = vst [vmem:[#allocation3 + $0x48] sm:$0xf] %v4757_v16  ;;  %4751 = vst [vmem:[#allocation3 + $0x3c] sm:$0xf] %v4750_v57  ;;  %v4496_v10 = vrot.slane %v4494_v58, 7  ;;  %v13348_v13 = vcombine.low %v4897_v5, %v4898_v24  ;;  %v13350_v33 = vpop.f32.mrb[164].mxu0 }
 0x2f5   : > { %v4479_v51 = vrot.slane %v4477_v20, 7  ;;  %v4480_v17 = vshll.u32 %v9314_v46, 16  ;;  %v9319_v28 = vpack.c.bf16 %v4286_v2, %v4286_v2  ;;  %v9317_v31 = vpack.c.bf16 %v4284_v7, %v4284_v7  ;;  %v13352_v30 = vpop.f32.mrb[165].mxu0  ;;  %v10991_v23 = vld [vmem:[#allocation10 + $0x1c8] sm:$0xff]   ;;  %v11052_v47 = vld [vmem:[#allocation10 + $0x150] sm:$0xff]  }
 0x2f6   : > { %v4499_v52 = vor.u32 %v4497_v53, %v4496_v10  ;;  %v4501_v1 = vrot.slane %v4496_v10, 4  ;;  %v4753_v39 = vld [vmem:[#allocation3 + $0x44] sm:$0x1]  ;;  %v4216_v56 = vmul.f32 %v13234_v25, %v4127_v21  ;;  %v4214_v41 = vmul.f32 %v13234_v25, %v4119_v12  ;;  %7911 = vmatprep.mubr.bf16.mxu1 %v13348_v13  ;;  %v13357_v27 = vpop.f32.mrb[166].mxu0  ;;  %v11053_v43 = vld [vmem:[#allocation10 + $0x110] sm:$0xff]   ;;  %10063 = vmatprep.subr.bf16.mxu0 %v11052_v47 }
 0x2f7   : > { %v4475_v62 = vrot.slane %v13317_v19, 4  ;;  %v4482_v29 = vor.u32 %v4480_v17, %v4479_v51  ;;  %v4484_v46 = vrot.slane %v4479_v51, 4  ;;  %v4520_v44 = vshrl.u32 %v9319_v28, 16  ;;  %7912 = vmatmul.mubr.bf16.vlgmr.msra.gmra.mrb[144].mxu1 %v13146_v9  ;;  %v13361_v61 = vpop.f32.mrb[167].mxu0  ;;  %v10994_v58 = vld [vmem:[#allocation10 + $0x188] sm:$0xff]   ;;  %10064 = vmatpush3.bf16.msra.mxu0 %v11053_v43 }
 0x2f8   : > { %v4500_v37 = vsel %vm11857_vm3, %v4492_v6, %v4499_v52  ;;  %v4761_v24 = vsel %vm11885_vm8, %v4501_v1, %v4760_v35  ;;  %v4523_v16 = vshll.u32 %v9319_v28, 16  ;;  %v4503_v57 = vshrl.u32 %v9317_v31, 16  ;;  %10172 = vmatpush3.bf16.msra.mxu1 %v10980_v59  ;;  %v11003_v6 = vld [vmem:[#allocation10 + $0x1d0] sm:$0xff]   ;;  %v4770_v2 = vld [vmem:[#allocation3 + $0x60] sm:$0xf] }
 0x2f9   : > { %4759 = vst [vmem:[#allocation3 + $0x4c] sm:$0xf] %v4500_v37  ;;  %4762 = vst [vmem:[#allocation3 + $0x50] sm:$0x1] %v4761_v24  ;;  %v4483_v19 = vsel %vm11857_vm3, %v4475_v62, %v4482_v29  ;;  %v4754_v9 = vsel %vm11885_vm8, %v4484_v46, %v4753_v39  ;;  %v13371_v53 = vrot.slane %v4520_v44, 7  ;;  %v4255_v20 = vadd.f32 %v13242_v49, %v4216_v56  ;;  %v11006_v52 = vld [vmem:[#allocation10 + $0x190] sm:$0xff]  }
 0x2fa   : > { %10173 = vmatprep.subr.bf16.mxu1 %v10991_v23  ;;  %4752 = vst [vmem:[#allocation3 + $0x40] sm:$0xf] %v4483_v19  ;;  %4755 = vst [vmem:[#allocation3 + $0x44] sm:$0x1] %v4754_v9  ;;  %v13374_v7 = vrot.slane %v4503_v57, 7  ;;  %v4506_v5 = vshll.u32 %v9317_v31, 16  ;;  %v4253_v10 = vadd.f32 %v13242_v49, %v4214_v41  ;;  %v4140_v59 = vadd.f32 %v13311_v54, %v13187_v32 }
 0x2fb   : > { %v4525_v35 = vor.u32 %v4523_v16, %v13371_v53  ;;  %v4763_v21 = vld [vmem:[#allocation3 + $0x54] sm:$0xf]  ;;  %v4287_v12 = vmax.f32 %v4255_v20, 0.0  ;;  %v4900_v51 = vld [vmem:[#allocation3 + $0x1c] sm:$0xf]  ;;  %v4132_v56 = vadd.f32 %v13313_v63, %v13179_v18  ;;  %v4526_v47 = vrot.slane %v13371_v53, 4 }
 0x2fc   : > { %v4508_v17 = vor.u32 %v4506_v5, %v13374_v7  ;;  %v4285_v28 = vmax.f32 %v4253_v10, 0.0  ;;  %v13381_v23 = vpop.f32.mrb[168].mxu0  ;;  %10174 = vmatpush3.bf16.msra.mxu1 %v10994_v58  ;;  %v4219_v39 = vmul.f32 %v13234_v25, %v4140_v59  ;;  %v4899_v41 = vld [vmem:[#allocation3 + $0x18] sm:$0xf]  ;;  %v11015_v32 = vld [vmem:[#allocation10 + $0x1d8] sm:$0xff]   ;;  %v4509_v16 = vrot.slane %v13374_v7, 4 }
 0x2fd   : > { %v4771_v31 = vsel %vm11878_vm7, %v4525_v35, %v4770_v2  ;;  %v9320_v1 = vpack.c.bf16 %v4287_v12, %v4287_v12  ;;  %v13388_v62 = vpop.f32.mrb[169].mxu0  ;;  %10175 = vmatprep.subr.bf16.mxu1 %v11003_v6  ;;  %v13392_v46 = vcombine.low %v4899_v41, %v4900_v51  ;;  %v4217_v63 = vmul.f32 %v13234_v25, %v4132_v56  ;;  %v13399_v37 = vld [vmem:[#allocation3 + $0x10] sm:$0xf]  ;;  %v4835_v9 = vld [vmem:[#allocation3 + $0xc] sm:$0xf]  ;;  %v11029_v7 = vld [vmem:[#allocation10 + $0x1e0] sm:$0xff]  }
 0x2fe   : > { %4772 = vst [vmem:[#allocation3 + $0x60] sm:$0xf] %v4771_v31  ;;  %v4764_v54 = vsel %vm11878_vm7, %v4508_v17, %v4763_v21  ;;  %v9318_v29 = vpack.c.bf16 %v4285_v28, %v4285_v28  ;;  %v13394_v44 = vpop.f32.mrb[170].mxu0  ;;  %v4258_v18 = vadd.f32 %v13242_v49, %v4219_v39  ;;  %v4143_v19 = vadd.f32 %v13321_v15, %v13190_v0  ;;  %v11018_v53 = vld [vmem:[#allocation10 + $0x198] sm:$0xff]   ;;  %v4774_v35 = vld [vmem:[#allocation3 + $0x68] sm:$0x1] }
 0x2ff   : > { %4765 = vst [vmem:[#allocation3 + $0x54] sm:$0xf] %v4764_v54  ;;  %v4528_v43 = vshrl.u32 %v9320_v1, 16  ;;  %v13401_v24 = vpop.f32.mrb[171].mxu0  ;;  %v4531_v57 = vshll.u32 %v9320_v1, 16  ;;  %7919 = vmatprep.mubr.bf16.mxu1 %v13392_v46  ;;  %v4256_v2 = vadd.f32 %v13242_v49, %v4217_v63  ;;  %v4135_v5 = vadd.f32 %v13323_v48, %v13182_v40  ;;  %v11032_v56 = vld [vmem:[#allocation10 + $0x1a0] sm:$0xff]  }
 0x300   : > { %v4511_v58 = vshrl.u32 %v9318_v29, 16  ;;  %10176 = vmatpush3.bf16.msra.mxu1 %v11006_v52  ;;  %v4290_v6 = vmax.f32 %v4258_v18, 0.0  ;;  %v13410_v10 = vld [vmem:[#allocation3 + $0x14] ss:$0 sps:$4 sm:$0x11]   ;;  %v4514_v12 = vshll.u32 %v9318_v29, 16  ;;  %v4220_v59 = vmul.f32 %v13234_v25, %v4143_v19 }
 0x301   : > { %v4530_v20 = vrot.slane %v4528_v43, 7  ;;  %10177 = vmatprep.subr.bf16.mxu1 %v11015_v32  ;;  %v13414_v0 = vcombine.low %v4835_v9, %v13399_v37  ;;  %v4767_v17 = vld [vmem:[#allocation3 + $0x5c] sm:$0x1]  ;;  %v4288_v52 = vmax.f32 %v4256_v2, 0.0  ;;  %v4218_v48 = vmul.f32 %v13234_v25, %v4135_v5  ;;  %v11043_v18 = vld [vmem:[#allocation10 + $0x1e8] sm:$0xff]  }
 0x302   : > { %v4513_v21 = vrot.slane %v4511_v58, 7  ;;  %v9323_v28 = vpack.c.bf16 %v4290_v6, %v4290_v6  ;;  %v4259_v40 = vadd.f32 %v13242_v49, %v4220_v59  ;;  %v5190_v29 = vshll.u32 %v13410_v10, 16  ;;  %v11046_v59 = vld [vmem:[#allocation10 + $0x1a8] sm:$0xff]  }
 0x303   : > { %v4533_v15 = vor.u32 %v4531_v57, %v4530_v20  ;;  %v4535_v51 = vrot.slane %v4530_v20, 4  ;;  %v9321_v58 = vpack.c.bf16 %v4288_v52, %v4288_v52  ;;  %v4784_v20 = vld [vmem:[#allocation3 + $0x78] sm:$0xf]  ;;  %v4257_v6 = vadd.f32 %v13242_v49, %v4218_v48  ;;  %v11057_v52 = vld [vmem:[#allocation10 + $0x1f0] sm:$0xff]  }
 0x304   : > { %v4516_v31 = vor.u32 %v4514_v12, %v4513_v21  ;;  %v4518_v1 = vrot.slane %v4513_v21, 4  ;;  %v13418_v39 = vpop.f32.mrb[172].mxu0  ;;  %10178 = vmatpush3.bf16.msra.mxu1 %v11018_v53  ;;  %v4554_v54 = vshrl.u32 %v9323_v28, 16  ;;  %v4557_v53 = vshll.u32 %v9323_v28, 16  ;;  %v13440_v12 = vld [vmem:[#allocation3 + $0x1c] sm:$0xf] }
 0x305   : > { %v4534_v41 = vsel %vm11857_vm3, %v4526_v47, %v4533_v15  ;;  %v4775_v32 = vsel %vm11885_vm8, %v4535_v51, %v4774_v35  ;;  %v13425_v43 = vpop.f32.mrb[173].mxu0  ;;  %10179 = vmatprep.subr.bf16.mxu1 %v11029_v7  ;;  %v4291_v47 = vmax.f32 %v4259_v40, 0.0  ;;  %v5185_v2 = vshll.u32 %v13414_v0, 16 }
 0x306   : > { %4773 = vst [vmem:[#allocation3 + $0x64] sm:$0xf] %v4534_v41  ;;  %4776 = vst [vmem:[#allocation3 + $0x68] sm:$0x1] %v4775_v32  ;;  %v4517_v63 = vsel %vm11857_vm3, %v4509_v16, %v4516_v31  ;;  %v4768_v57 = vsel %vm11885_vm8, %v4518_v1, %v4767_v17  ;;  %v13431_v19 = vpop.f32.mrb[174].mxu0  ;;  %v13433_v9 = vrot.slane %v4554_v54, 7  ;;  %v4156_v41 = vadd.f32 %v13350_v33, %v13203_v50 }
 0x307   : > { %4766 = vst [vmem:[#allocation3 + $0x58] sm:$0xf] %v4517_v63  ;;  %4769 = vst [vmem:[#allocation3 + $0x5c] sm:$0x1] %v4768_v57  ;;  %v13437_v5 = vpop.f32.mrb[175].mxu0  ;;  %v4537_v16 = vshrl.u32 %v9321_v58, 16  ;;  %v9324_v35 = vpack.c.bf16 %v4291_v47, %v4291_v47 }
 0x308   : > { %v4540_v7 = vshll.u32 %v9321_v58, 16  ;;  %v5183_v21 = vshrl.u32 %v13414_v0, 16  ;;  %10180 = vmatpush3.bf16.msra.mxu1 %v11032_v56  ;;  %v4559_v15 = vor.u32 %v4557_v53, %v13433_v9  ;;  %v4289_v51 = vmax.f32 %v4257_v6, 0.0  ;;  %v11066_v31 = vld [vmem:[#allocation10 + $0x158] sm:$0xff]   ;;  %v4837_v32 = vld [vmem:[#allocation3 + $0x18] sm:$0xf] }
 0x309   : > { %v5187_v17 = vrot.slane %v5185_v2, 1  ;;  %v5192_v28 = vrot.slane %v5190_v29, 1  ;;  %10181 = vmatprep.subr.bf16.mxu1 %v11043_v18  ;;  %v4560_v1 = vrot.slane %v13433_v9, 4  ;;  %v13444_v40 = vrot.slane %v4537_v16, 7  ;;  %v11067_v54 = vld [vmem:[#allocation10 + $0x118] sm:$0xff]   ;;  %10065 = vmatprep.subr.bf16.mxu0 %v11066_v31  ;;  %v11060_v33 = vld [vmem:[#allocation10 + $0x1b0] sm:$0xff]  }
 0x30a   : > { %v4562_v48 = vshrl.u32 %v9324_v35, 16  ;;  %v4785_v56 = vsel %vm11878_vm7, %v4559_v15, %v4784_v20  ;;  %v4777_v63 = vld [vmem:[#allocation3 + $0x6c] sm:$0xf]  ;;  %v9322_v57 = vpack.c.bf16 %v4289_v51, %v4289_v51  ;;  %v13451_v29 = vcombine.low %v4837_v32, %v13440_v12  ;;  %v13453_v18 = vld [vmem:[#allocation3 + $0x20] ss:$0 sps:$4 sm:$0x11]   ;;  %10066 = vmatpush3.bf16.msra.mxu0 %v11067_v54 }
 0x30b   : > { %v5188_v58 = vor.u32 %v5187_v17, %v5183_v21  ;;  %4786 = vst [vmem:[#allocation3 + $0x78] sm:$0xf] %v4785_v56  ;;  %v4542_v47 = vor.u32 %v4540_v7, %v13444_v40  ;;  %v4565_v53 = vshll.u32 %v9324_v35, 16  ;;  %v4223_v50 = vmul.f32 %v13234_v25, %v4156_v41  ;;  %v4788_v6 = vld [vmem:[#allocation3 + $0x80] sm:$0x1]  ;;  %v11068_v15 = vld [vmem:[#allocation10 + $0x160] sm:$0xff]  }
 0x30c   : > { %v4564_v9 = vrot.slane %v4562_v48, 7  ;;  %10182 = vmatpush3.bf16.msra.mxu1 %v11046_v59  ;;  %v4543_v20 = vrot.slane %v13444_v40, 4  ;;  %v4545_v2 = vshrl.u32 %v9322_v57, 16  ;;  %v4548_v16 = vshll.u32 %v9322_v57, 16  ;;  %v4882_v59 = vld [vmem:[#allocation3 + $0xc] sm:$0xe]  ;;  %10067 = vmatprep.subr.bf16.mxu0 %v11068_v15 }
 0x30d   : > { %v5193_v21 = vsel %vm1563_vm0, %v5188_v58, %v5192_v28  ;;  %10183 = vmatprep.subr.bf16.mxu1 %v11057_v52  ;;  %v4778_v51 = vsel %vm11878_vm7, %v4542_v47, %v4777_v63  ;;  %v4262_v35 = vadd.f32 %v13242_v49, %v4223_v50  ;;  %v11072_v31 = vld [vmem:[#allocation10 + $0x120] sm:$0xff]   ;;  %v5197_v40 = vshll.u32 %v13451_v29, 16  ;;  %v11073_v41 = vld [vmem:[#allocation10 + $0x1f8] sm:$0xff]   ;;  %v4901_v15 = vld [vmem:[#allocation3 + $0x24] sm:$0xf] }
 0x30e   : > { %v4567_v7 = vor.u32 %v4565_v53, %v4564_v9  ;;  %v4569_v17 = vrot.slane %v4564_v9, 4  ;;  %7758 = vmatprep.mubr.bf16.mxu0 %v5193_v21  ;;  %4779 = vst [vmem:[#allocation3 + $0x6c] sm:$0xf] %v4778_v51  ;;  %v4547_v48 = vrot.slane %v4545_v2, 7  ;;  %v5202_v28 = vshll.u32 %v13453_v18, 16  ;;  %10068 = vmatpush3.bf16.msra.mxu0 %v11072_v31 }
 0x30f   : > { %7759 = vmatmul.mubr.bf16.gmra.mrb[180].mxu0 %v13414_v0  ;;  %v9057_v52 = vcombine.low %v4882_v59, %v13399_v37  ;;  %v4781_v56 = vld [vmem:[#allocation3 + $0x74] sm:$0x1]  ;;  %v4294_v63 = vmax.f32 %v4262_v35, 0.0  ;;  %v5430_v57 = vrot.slane %v13410_v10, 1  ;;  %v5195_v37 = vshrl.u32 %v13451_v29, 16 }
 0x310   : > { %v4568_v32 = vsel %vm11857_vm3, %v4560_v1, %v4567_v7  ;;  %v4789_v54 = vsel %vm11885_vm8, %v4569_v17, %v4788_v6  ;;  %10184 = vmatpush3.bf16.msra.mxu1 %v11060_v33  ;;  %v11076_v0 = vld [vmem:[#allocation10 + $0x1b8] sm:$0xff]   ;;  %v4550_v58 = vor.u32 %v4548_v16, %v4547_v48  ;;  %v4552_v47 = vrot.slane %v4547_v48, 4  ;;  %v4902_v53 = vld [vmem:[#allocation3 + $0x28] sm:$0xf]  ;;  %v11077_v1 = vld [vmem:[#allocation10 + $0x168] sm:$0xff]  }
 0x311   : > { %4787 = vst [vmem:[#allocation3 + $0x7c] sm:$0xf] %v4568_v32  ;;  %4790 = vst [vmem:[#allocation3 + $0x80] sm:$0x1] %v4789_v54  ;;  %v5199_v9 = vrot.slane %v5197_v40, 1  ;;  %10185 = vmatprep.subr.bf16.mxu1 %v11073_v41  ;;  %v9327_v50 = vpack.c.bf16 %v4294_v63, %v4294_v63  ;;  %v5429_v2 = vrot.slane %v9057_v52, 1  ;;  %v4148_v6 = vadd.f32 %v13352_v30, %v13195_v11 }
 0x312   : > { %v4551_v10 = vsel %vm11857_vm3, %v4543_v20, %v4550_v58  ;;  %v4782_v33 = vsel %vm11885_vm8, %v4552_v47, %v4781_v56  ;;  %v5204_v16 = vrot.slane %v5202_v28, 1  ;;  %v13478_v51 = vld [vmem:[#allocation3 + $0x28] sm:$0xf]  ;;  %10069 = vmatprep.subr.bf16.mxu0 %v11077_v1  ;;  %v13482_v11 = vcombine.low %v4901_v15, %v4902_v53  ;;  %v4839_v30 = vld [vmem:[#allocation3 + $0x24] sm:$0xf]  ;;  %v11085_v53 = vld [vmem:[#allocation10 + $0x178] sm:$0xff]  }
 0x313   : > { %v5200_v21 = vor.u32 %v5199_v9, %v5195_v37  ;;  %4780 = vst [vmem:[#allocation3 + $0x70] sm:$0xf] %v4551_v10  ;;  %4783 = vst [vmem:[#allocation3 + $0x74] sm:$0x1] %v4782_v33  ;;  %v4588_v7 = vshrl.u32 %v9327_v50, 16  ;;  %v5431_v17 = vsel %vm1820_vm9, %v5429_v2, %v5430_v57  ;;  %v4221_v35 = vmul.f32 %v13234_v25, %v4148_v6  ;;  %v11078_v28 = vld [vmem:[#allocation10 + $0x128] sm:$0xff]  }
 0x314   : > { %10186 = vmatpush3.bf16.msra.mxu1 %v11076_v0  ;;  %v4591_v20 = vshll.u32 %v9327_v50, 16  ;;  %v4159_v31 = vadd.f32 %v13357_v27, %v13206_v42  ;;  %v4151_v48 = vadd.f32 %v13361_v61, %v13198_v4  ;;  %v13489_v40 = vld [vmem:[#allocation3 + $0x2c] ss:$0 sps:$4 sm:$0x11]   ;;  %v4172_v54 = vadd.f32 %v13381_v23, %v13217_v8  ;;  %v4883_v42 = vld [vmem:[#allocation3 + $0x18] sm:$0xe]  ;;  %10070 = vmatpush3.bf16.msra.mxu0 %v11078_v28 }
 0x315   : > { %v5205_v59 = vsel %vm1563_vm0, %v5200_v21, %v5204_v16  ;;  %7920 = vmatmul.mubr.bf16.gmra.mrb[148].mxu1 %v5431_v17  ;;  %v11079_v52 = vld [vmem:[#allocation10 + $0x170] sm:$0xff]   ;;  %v13491_v41 = vrot.slane %v4588_v7, 7  ;;  %v4260_v32 = vadd.f32 %v13242_v49, %v4221_v35  ;;  %v13498_v56 = vcombine.low %v4839_v30, %v13478_v51  ;;  %v4798_v27 = vld [vmem:[#allocation3 + $0x90] sm:$0xf]  ;;  %v4904_v21 = vld [vmem:[#allocation3 + $0x34] sm:$0xf] }
 0x316   : > { %7766 = vmatprep.mubr.bf16.mxu0 %v5205_v59  ;;  %7927 = vmatprep.mubr.bf16.mxu1 %v13482_v11  ;;  %v4224_v4 = vmul.f32 %v13234_v25, %v4159_v31  ;;  %v4222_v61 = vmul.f32 %v13234_v25, %v4151_v48  ;;  %v9058_v63 = vcombine.low %v4883_v42, %v13440_v12  ;;  %v11081_v8 = vld [vmem:[#allocation10 + $0x130] sm:$0xff]   ;;  %v5214_v9 = vshll.u32 %v13489_v40, 16  ;;  %v11086_v35 = vld [vmem:[#allocation10 + $0x138] sm:$0xff]  }
 0x317   : > { %7767 = vmatmul.mubr.bf16.gmra.mrb[184].mxu0 %v13451_v29  ;;  %v4593_v57 = vor.u32 %v4591_v20, %v13491_v41  ;;  %v4292_v0 = vmax.f32 %v4260_v32, 0.0  ;;  %v4227_v58 = vmul.f32 %v13234_v25, %v4172_v54  ;;  %v5209_v37 = vshll.u32 %v13498_v56, 16  ;;  %10071 = vmatprep.subr.bf16.mxu0 %v11079_v52  ;;  %v4903_v31 = vld [vmem:[#allocation3 + $0x30] sm:$0xf]  ;;  %v11088_v54 = vld [vmem:[#allocation10 + $0x200] sm:$0xff]  }
 0x318   : > { %v4263_v23 = vadd.f32 %v13242_v49, %v4224_v4  ;;  %v4261_v47 = vadd.f32 %v13242_v49, %v4222_v61  ;;  %v5207_v50 = vshrl.u32 %v13498_v56, 16  ;;  %v5432_v33 = vrot.slane %v9058_v63, 1  ;;  %10072 = vmatpush3.bf16.msra.mxu0 %v11081_v8  ;;  %10403 = vmatprep.subr.bf16.mxu1 %v11088_v54 }
 0x319   : > { %v4799_v12 = vsel %vm11878_vm7, %v4593_v57, %v4798_v27  ;;  %v9325_v29 = vpack.c.bf16 %v4292_v0, %v4292_v0  ;;  %v4266_v1 = vadd.f32 %v13242_v49, %v4227_v58  ;;  %v5211_v10 = vrot.slane %v5209_v37, 1  ;;  %10073 = vmatprep.subr.bf16.mxu0 %v11085_v53  ;;  %v4802_v0 = vld [vmem:[#allocation3 + $0x98] sm:$0x1] }
 0x31a   : > { %4800 = vst [vmem:[#allocation3 + $0x90] sm:$0xf] %v4799_v12  ;;  %v4295_v2 = vmax.f32 %v4263_v23, 0.0  ;;  %v4293_v6 = vmax.f32 %v4261_v47, 0.0  ;;  %v5433_v17 = vrot.slane %v13453_v18, 1  ;;  %v4164_v49 = vadd.f32 %v13388_v62, %v13211_v36 }
 0x31b   : > { %v4571_v16 = vshrl.u32 %v9325_v29, 16  ;;  %v4574_v15 = vshll.u32 %v9325_v29, 16  ;;  %v4298_v7 = vmax.f32 %v4266_v1, 0.0  ;;  %v5212_v59 = vor.u32 %v5211_v10, %v5207_v50  ;;  %v4791_v18 = vld [vmem:[#allocation3 + $0x84] sm:$0xf] }
 0x31c   : > { %v9328_v30 = vpack.c.bf16 %v4295_v2, %v4295_v2  ;;  %v9326_v20 = vpack.c.bf16 %v4293_v6, %v4293_v6  ;;  %v5434_v52 = vsel %vm1820_vm9, %v5432_v33, %v5433_v17  ;;  %v13518_v32 = vcombine.low %v4903_v31, %v4904_v21  ;;  %10074 = vmatpush3.bf16.msra.mxu0 %v11086_v35  ;;  %v4795_v23 = vld [vmem:[#allocation3 + $0x8c] sm:$0x1]  ;;  %v4812_v29 = vld [vmem:[#allocation3 + $0xa8] sm:$0xf]  ;;  %v4884_v31 = vld [vmem:[#allocation3 + $0x24] sm:$0xe] }
 0x31d   : > { %v4573_v48 = vrot.slane %v4571_v16, 7  ;;  %v9331_v28 = vpack.c.bf16 %v4298_v7, %v4298_v7  ;;  %v4594_v42 = vrot.slane %v13491_v41, 4  ;;  %v5216_v61 = vrot.slane %v5214_v9, 1  ;;  %7928 = vmatmul.mubr.bf16.gmra.mrb[152].mxu1 %v5434_v52  ;;  %v13529_v10 = vld [vmem:[#allocation3 + $0x38] ss:$0 sps:$4 sm:$0x11]  }
 0x31e   : > { %v4596_v27 = vshrl.u32 %v9328_v30, 16  ;;  %v4579_v4 = vshrl.u32 %v9326_v20, 16  ;;  %v4599_v57 = vshll.u32 %v9328_v30, 16  ;;  %v4582_v36 = vshll.u32 %v9326_v20, 16  ;;  %7935 = vmatprep.mubr.bf16.mxu1 %v13518_v32  ;;  %v13535_v33 = vld [vmem:[%s14561_s6] ss:$0 sm:$0xff] }
 0x31f   : > { %v4576_v63 = vor.u32 %v4574_v15, %v4573_v48  ;;  %v4622_v62 = vshrl.u32 %v9331_v28, 16  ;;  %v5217_v47 = vsel %vm1563_vm0, %v5212_v59, %v5216_v61  ;;  %v4225_v41 = vmul.f32 %v13234_v25, %v4164_v49  ;;  %v13540_v15 = vld [vmem:[#allocation3 + $0x34] sm:$0xf]  ;;  %v4841_v30 = vld [vmem:[#allocation3 + $0x30] sm:$0xf] }
 0x320   : > { %v4598_v58 = vrot.slane %v4596_v27, 7  ;;  %v4581_v8 = vrot.slane %v4579_v4, 7  ;;  %v4577_v37 = vrot.slane %v4573_v48, 4  ;;  %v4625_v12 = vshll.u32 %v9331_v28, 16  ;;  %7774 = vmatprep.mubr.bf16.mxu0 %v5217_v47  ;;  %v13555_v20 = vld [vmem:[%s14560_s5] ss:$0 sm:$0xff] }
 0x321   : > { %v4792_v9 = vsel %vm11878_vm7, %v4576_v63, %v4791_v18  ;;  %v13526_v53 = vrot.slane %v4622_v62, 7  ;;  %7775 = vmatmul.mubr.bf16.gmra.mrb[188].mxu0 %v13498_v56  ;;  %v4264_v21 = vadd.f32 %v13535_v33, %v4225_v41  ;;  %v4175_v16 = vadd.f32 %v13394_v44, %v13219_v34 }
 0x322   : > { %4793 = vst [vmem:[#allocation3 + $0x84] sm:$0xf] %v4792_v9  ;;  %v4601_v1 = vor.u32 %v4599_v57, %v4598_v58  ;;  %v4603_v50 = vrot.slane %v4598_v58, 4  ;;  %v4584_v2 = vor.u32 %v4582_v36, %v4581_v8  ;;  %v4586_v6 = vrot.slane %v4581_v8, 4  ;;  %v13569_v57 = vld [vmem:[#allocation3 + $0x40] sm:$0xf] }
 0x323   : > { %v4627_v25 = vor.u32 %v4625_v12, %v13526_v53  ;;  %v4296_v44 = vmax.f32 %v4264_v21, 0.0  ;;  %v4228_v59 = vmul.f32 %v13555_v20, %v4175_v16  ;;  %v4167_v49 = vadd.f32 %v13401_v24, %v13213_v60  ;;  %v4805_v9 = vld [vmem:[#allocation3 + $0x9c] sm:$0xf] }
 0x324   : > { %v4602_v7 = vsel %vm11857_vm3, %v4594_v42, %v4601_v1  ;;  %v4803_v56 = vsel %vm11885_vm8, %v4603_v50, %v4802_v0  ;;  %v4585_v17 = vsel %vm11857_vm3, %v4577_v37, %v4584_v2  ;;  %v4796_v35 = vsel %vm11885_vm8, %v4586_v6, %v4795_v23 }
 0x325   : > { %4801 = vst [vmem:[#allocation3 + $0x94] sm:$0xf] %v4602_v7  ;;  %4804 = vst [vmem:[#allocation3 + $0x98] sm:$0x1] %v4803_v56  ;;  %v4813_v34 = vsel %vm11878_vm7, %v4627_v25, %v4812_v29  ;;  %v4188_v48 = vadd.f32 %v13418_v39, %v13229_v14  ;;  %v9028_v28 = vcombine.low %v4841_v30, %v13540_v15  ;;  %v5226_v52 = vshll.u32 %v13529_v10, 16 }
 0x326   : > { %4794 = vst [vmem:[#allocation3 + $0x88] sm:$0xf] %v4585_v17  ;;  %4797 = vst [vmem:[#allocation3 + $0x8c] sm:$0x1] %v4796_v35  ;;  %v9059_v54 = vcombine.low %v4884_v31, %v13478_v51  ;;  %v9329_v42 = vpack.c.bf16 %v4296_v44, %v4296_v44  ;;  %v4267_v18 = vadd.f32 %v13535_v33, %v4228_v59  ;;  %v5436_v4 = vrot.slane %v13489_v40, 1 }
 0x327   : > { %4814 = vst [vmem:[#allocation3 + $0xa8] sm:$0xf] %v4813_v34  ;;  %v4226_v27 = vmul.f32 %v13555_v20, %v4167_v49  ;;  %v4231_v60 = vmul.f32 %v13555_v20, %v4188_v48  ;;  %v5219_v24 = vshrl.u32 %v9028_v28, 16  ;;  %v5221_v61 = vshll.u32 %v9028_v28, 16  ;;  %v4905_v40 = vld [vmem:[#allocation3 + $0x3c] sm:$0xf] }
 0x328   : > { %v5228_v63 = vrot.slane %v5226_v52, 1  ;;  %v4605_v14 = vshrl.u32 %v9329_v42, 16  ;;  %v4608_v39 = vshll.u32 %v9329_v42, 16  ;;  %v4299_v0 = vmax.f32 %v4267_v18, 0.0  ;;  %v4816_v17 = vld [vmem:[#allocation3 + $0xb0] sm:$0x1] }
 0x329   : > { %v4265_v36 = vadd.f32 %v13535_v33, %v4226_v27  ;;  %v4270_v51 = vadd.f32 %v13535_v33, %v4231_v60  ;;  %v5223_v62 = vrot.slane %v5221_v61, 1  ;;  %v5435_v58 = vrot.slane %v9059_v54, 1  ;;  %v4809_v52 = vld [vmem:[#allocation3 + $0xa4] sm:$0x1]  ;;  %v13594_v60 = vld [vmem:[#allocation3 + $0x40] sm:$0xf] }
 0x32a   : > { %v4180_v8 = vadd.f32 %v13425_v43, %v13223_v55  ;;  %v4607_v23 = vrot.slane %v4605_v14, 7  ;;  %v9332_v47 = vpack.c.bf16 %v4299_v0, %v4299_v0  ;;  %v13576_v37 = vcombine.low %v4905_v40, %v13569_v57 }
 0x32b   : > { %v4297_v41 = vmax.f32 %v4265_v36, 0.0  ;;  %v4302_v12 = vmax.f32 %v4270_v51, 0.0  ;;  %v5224_v29 = vor.u32 %v5223_v62, %v5219_v24  ;;  %v5437_v1 = vsel %vm1820_vm9, %v5435_v58, %v5436_v4  ;;  %v4826_v4 = vld [vmem:[#allocation3 + $0xc0] sm:$0xf]  ;;  %v4843_v36 = vld [vmem:[#allocation3 + $0x3c] sm:$0xf] }
 0x32c   : > { %v4229_v50 = vmul.f32 %v13555_v20, %v4180_v8  ;;  %v4610_v2 = vor.u32 %v4608_v39, %v4607_v23  ;;  %v4630_v6 = vshrl.u32 %v9332_v47, 16  ;;  %7936 = vmatmul.mubr.bf16.gmra.mrb[156].mxu1 %v5437_v1  ;;  %v4633_v56 = vshll.u32 %v9332_v47, 16  ;;  %v13597_v39 = vld [vmem:[#allocation3 + $0x44] ss:$0 sps:$4 sm:$0x11]  }
 0x32d   : > { %v9330_v25 = vpack.c.bf16 %v4297_v41, %v4297_v41  ;;  %v9335_v21 = vpack.c.bf16 %v4302_v12, %v4302_v12  ;;  %v5229_v55 = vsel %vm1563_vm0, %v5224_v29, %v5228_v63  ;;  %7943 = vmatprep.mubr.bf16.mxu1 %v13576_v37  ;;  %v4628_v35 = vrot.slane %v13526_v53, 4  ;;  %v4885_v47 = vld [vmem:[#allocation3 + $0x30] sm:$0xe]  ;;  %v4819_v41 = vld [vmem:[#allocation3 + $0xb4] sm:$0xf] }
 0x32e   : > { %v4268_v43 = vadd.f32 %v13535_v33, %v4229_v50  ;;  %v4806_v16 = vsel %vm11878_vm7, %v4610_v2, %v4805_v9  ;;  %v4632_v7 = vrot.slane %v4630_v6, 7  ;;  %7782 = vmatprep.mubr.bf16.mxu0 %v5229_v55  ;;  %v4191_v18 = vadd.f32 %v13431_v19, %v13236_v38 }
 0x32f   : > { %4807 = vst [vmem:[#allocation3 + $0x9c] sm:$0xf] %v4806_v16  ;;  %v4613_v30 = vshrl.u32 %v9330_v25, 16  ;;  %v4656_v34 = vshrl.u32 %v9335_v21, 16  ;;  %7783 = vmatmul.mubr.bf16.gmra.mrb[192].mxu0 %v9028_v28  ;;  %v4616_v49 = vshll.u32 %v9330_v25, 16  ;;  %v4659_v42 = vshll.u32 %v9335_v21, 16 }
 0x330   : > { %v4635_v44 = vor.u32 %v4633_v56, %v4632_v7  ;;  %v4637_v59 = vrot.slane %v4632_v7, 4  ;;  %v4300_v31 = vmax.f32 %v4268_v43, 0.0  ;;  %v4611_v24 = vrot.slane %v4607_v23, 4  ;;  %v13618_v25 = vld [vmem:[#allocation3 + $0x4c] sm:$0xf] }
 0x331   : > { %v4615_v48 = vrot.slane %v4613_v30, 7  ;;  %v13586_v54 = vrot.slane %v4656_v34, 7  ;;  %v4232_v19 = vmul.f32 %v13555_v20, %v4191_v18  ;;  %v4183_v0 = vadd.f32 %v13437_v5, %v13225_v45  ;;  %v13628_v34 = vld [vmem:[#allocation3 + $0x50] ss:$0 sps:$4 sm:$0x11]  }
 0x332   : > { %v4636_v27 = vsel %vm11857_vm3, %v4628_v35, %v4635_v44  ;;  %v4817_v53 = vsel %vm11885_vm8, %v4637_v59, %v4816_v17  ;;  %v9333_v28 = vpack.c.bf16 %v4300_v31, %v4300_v31  ;;  %v9029_v8 = vcombine.low %v4843_v36, %v13594_v60  ;;  %v4845_v17 = vld [vmem:[#allocation3 + $0x48] sm:$0xf] }
 0x333   : > { %4815 = vst [vmem:[#allocation3 + $0xac] sm:$0xf] %v4636_v27  ;;  %4818 = vst [vmem:[#allocation3 + $0xb0] sm:$0x1] %v4817_v53  ;;  %v4618_v61 = vor.u32 %v4616_v49, %v4615_v48  ;;  %v4620_v63 = vrot.slane %v4615_v48, 4  ;;  %v4661_v14 = vor.u32 %v4659_v42, %v13586_v54  ;;  %v4271_v45 = vadd.f32 %v13535_v33, %v4232_v19 }
 0x334   : > { %v4639_v38 = vshrl.u32 %v9333_v28, 16  ;;  %v4642_v23 = vshll.u32 %v9333_v28, 16  ;;  %v4230_v5 = vmul.f32 %v13555_v20, %v4183_v0  ;;  %v5233_v9 = vshll.u32 %v9029_v8, 16  ;;  %v13620_v20 = vld [vmem:[#allocation3 + $0x4c] sm:$0xf] }
 0x335   : > { %v4619_v51 = vsel %vm11857_vm3, %v4611_v24, %v4618_v61  ;;  %v4810_v62 = vsel %vm11885_vm8, %v4620_v63, %v4809_v52  ;;  %v4827_v58 = vsel %vm11878_vm7, %v4661_v14, %v4826_v4  ;;  %v5238_v12 = vshll.u32 %v13597_v39, 16  ;;  %v4886_v49 = vld [vmem:[#allocation3 + $0x3c] sm:$0xe]  ;;  %v4830_v31 = vld [vmem:[#allocation3 + $0xc8] sm:$0x1] }
 0x336   : > { %4808 = vst [vmem:[#allocation3 + $0xa0] sm:$0xf] %v4619_v51  ;;  %4811 = vst [vmem:[#allocation3 + $0xa4] sm:$0x1] %v4810_v62  ;;  %v13609_v40 = vrot.slane %v4639_v38, 7  ;;  %v9060_v29 = vcombine.low %v4885_v47, %v13540_v15  ;;  %v5439_v1 = vrot.slane %v13529_v10, 1  ;;  %v4269_v6 = vadd.f32 %v13535_v33, %v4230_v5 }
 0x337   : > { %4828 = vst [vmem:[#allocation3 + $0xc0] sm:$0xf] %v4827_v58  ;;  %v4303_v2 = vmax.f32 %v4271_v45, 0.0  ;;  %v5231_v21 = vshrl.u32 %v9029_v8, 16  ;;  %v5235_v55 = vrot.slane %v5233_v9, 1  ;;  %v5240_v35 = vrot.slane %v5238_v12, 1 }
 0x338   : > { %v4644_v50 = vor.u32 %v4642_v23, %v13609_v40  ;;  %v5438_v43 = vrot.slane %v9060_v29, 1  ;;  %v4301_v56 = vmax.f32 %v4269_v6, 0.0  ;;  %v4907_v15 = vld [vmem:[#allocation3 + $0x48] sm:$0xf]  ;;  %v9030_v3 = vcombine.low %v4845_v17, %v13620_v20  ;;  %v13634_v42 = vld [vmem:[#allocation3 + $0x58] sm:$0xf] }
 0x339   : > { %v9336_v7 = vpack.c.bf16 %v4303_v2, %v4303_v2  ;;  %v5236_v10 = vor.u32 %v5235_v55, %v5231_v21  ;;  %v13626_v33 = vcombine.low %v4907_v15, %v13618_v25  ;;  %v9061_v52 = vcombine.low %v4886_v49, %v13594_v60  ;;  %v4823_v24 = vld [vmem:[#allocation3 + $0xbc] sm:$0x1]  ;;  %v4847_v38 = vld [vmem:[#allocation3 + $0x54] sm:$0xf]  ;;  %v13639_v51 = vld [vmem:[#allocation3 + $0x58] sm:$0xf] }
 0x33a   : > { %v4820_v16 = vsel %vm11878_vm7, %v4644_v50, %v4819_v41  ;;  %v5440_v30 = vsel %vm1820_vm9, %v5438_v43, %v5439_v1  ;;  %v9334_v59 = vpack.c.bf16 %v4301_v56, %v4301_v56  ;;  %v4662_v18 = vrot.slane %v13586_v54, 4  ;;  %v13643_v45 = vld [vmem:[#allocation3 + $0x5c] ss:$0 sps:$4 sm:$0x11]   ;;  %v4909_v9 = vld [vmem:[#allocation3 + $0x54] sm:$0xf] }
 0x33b   : > { %4821 = vst [vmem:[#allocation3 + $0xb4] sm:$0xf] %v4820_v16  ;;  %v4664_v44 = vshrl.u32 %v9336_v7, 16  ;;  %7944 = vmatmul.mubr.bf16.gmra.mrb[160].mxu1 %v5440_v30  ;;  %v5241_v48 = vsel %vm1563_vm0, %v5236_v10, %v5240_v35  ;;  %v4667_v53 = vshll.u32 %v9336_v7, 16  ;;  %v5245_v61 = vshll.u32 %v9030_v3, 16 }
 0x33c   : > { %7951 = vmatprep.mubr.bf16.mxu1 %v13626_v33  ;;  %v4647_v4 = vshrl.u32 %v9334_v59, 16  ;;  %7790 = vmatprep.mubr.bf16.mxu0 %v5241_v48  ;;  %v4650_v28 = vshll.u32 %v9334_v59, 16  ;;  %v5250_v63 = vshll.u32 %v13628_v34, 16  ;;  %v5441_v14 = vrot.slane %v9061_v52, 1  ;;  %v4887_v1 = vld [vmem:[#allocation3 + $0x48] sm:$0xe] }
 0x33d   : > { %v4666_v27 = vrot.slane %v4664_v44, 7  ;;  %7791 = vmatmul.mubr.bf16.gmra.mrb[196].mxu0 %v9029_v8  ;;  %v5442_v60 = vrot.slane %v13597_v39, 1  ;;  %v4645_v54 = vrot.slane %v13609_v40, 4  ;;  %v5243_v62 = vshrl.u32 %v9030_v3, 16  ;;  %v13657_v21 = vld [vmem:[#allocation3 + $0x64] sm:$0xf] }
 0x33e   : > { %v4649_v36 = vrot.slane %v4647_v4, 7  ;;  %v5247_v58 = vrot.slane %v5245_v61, 1  ;;  %v9031_v23 = vcombine.low %v4847_v38, %v13634_v42  ;;  %v5252_v12 = vrot.slane %v5250_v63, 1  ;;  %v13663_v7 = vld [vmem:[#allocation3 + $0x68] ss:$0 sps:$4 sm:$0x11]  }
 0x33f   : > { %v4669_v19 = vor.u32 %v4667_v53, %v4666_v27  ;;  %v4671_v0 = vrot.slane %v4666_v27, 4  ;;  %v5443_v40 = vsel %vm1820_vm9, %v5441_v14, %v5442_v60  ;;  %v13651_v29 = vcombine.low %v4909_v9, %v13639_v51  ;;  %v4849_v56 = vld [vmem:[#allocation3 + $0x60] sm:$0xf]  ;;  %v4912_v10 = vld [vmem:[#allocation3 + $0x64] sm:$0xf] }
 0x340   : > { %v4652_v47 = vor.u32 %v4650_v28, %v4649_v36  ;;  %v4654_v41 = vrot.slane %v4649_v36, 4  ;;  %v5248_v39 = vor.u32 %v5247_v58, %v5243_v62  ;;  %v5257_v6 = vshll.u32 %v9031_v23, 16  ;;  %v4911_v59 = vld [vmem:[#allocation3 + $0x60] sm:$0xf]  ;;  %v13667_v49 = vld [vmem:[#allocation3 + $0x70] sm:$0xf] }
 0x341   : > { %v4670_v8 = vsel %vm11857_vm3, %v4662_v18, %v4669_v19  ;;  %v4831_v5 = vsel %vm11885_vm8, %v4671_v0, %v4830_v31  ;;  %v5262_v43 = vshll.u32 %v13643_v45, 16  ;;  %v9062_v16 = vcombine.low %v4887_v1, %v13620_v20  ;;  %v4888_v18 = vld [vmem:[#allocation3 + $0x54] sm:$0xe]  ;;  %v4851_v4 = vld [vmem:[#allocation3 + $0x6c] sm:$0xf] }
 0x342   : > { %4829 = vst [vmem:[#allocation3 + $0xc4] sm:$0xf] %v4670_v8  ;;  %4832 = vst [vmem:[#allocation3 + $0xc8] sm:$0x1] %v4831_v5  ;;  %v4653_v50 = vsel %vm11857_vm3, %v4645_v54, %v4652_v47  ;;  %v4824_v2 = vsel %vm11885_vm8, %v4654_v41, %v4823_v24  ;;  %v5253_v55 = vsel %vm1563_vm0, %v5248_v39, %v5252_v12  ;;  %v5255_v22 = vshrl.u32 %v9031_v23, 16 }
 0x343   : > { %7952 = vmatmul.mubr.bf16.gmra.mrb[164].mxu1 %v5443_v40  ;;  %4822 = vst [vmem:[#allocation3 + $0xb8] sm:$0xf] %v4653_v50  ;;  %4825 = vst [vmem:[#allocation3 + $0xbc] sm:$0x1] %v4824_v2  ;;  %7798 = vmatprep.mubr.bf16.mxu0 %v5253_v55  ;;  %v5259_v26 = vrot.slane %v5257_v6, 1  ;;  %v5444_v15 = vrot.slane %v9062_v16, 1  ;;  %v9032_v35 = vcombine.low %v4849_v56, %v13657_v21 }
 0x344   : > { %7959 = vmatprep.mubr.bf16.mxu1 %v13651_v29  ;;  %v5445_v17 = vrot.slane %v13628_v34, 1  ;;  %v5264_v44 = vrot.slane %v5262_v43, 1  ;;  %v5274_v20 = vshll.u32 %v13663_v7, 16  ;;  %v13671_v52 = vcombine.low %v4911_v59, %v4912_v10  ;;  %v13676_v24 = vld [vmem:[#allocation3 + $0x7c] sm:$0xf] }
 0x345   : > { %7799 = vmatmul.mubr.bf16.gmra.mrb[200].mxu0 %v9030_v3  ;;  %v5260_v30 = vor.u32 %v5259_v26, %v5255_v22  ;;  %v5269_v31 = vshll.u32 %v9032_v35, 16  ;;  %v5267_v34 = vshrl.u32 %v9032_v35, 16  ;;  %v9063_v53 = vcombine.low %v4888_v18, %v13634_v42  ;;  %v13679_v14 = vld [vmem:[#allocation3 + $0x74] ss:$0 sps:$4 sm:$0x11]  }
 0x346   : > { %v5446_v3 = vsel %vm1820_vm9, %v5444_v15, %v5445_v17  ;;  %v9033_v28 = vcombine.low %v4851_v4, %v13667_v49  ;;  %v5276_v63 = vrot.slane %v5274_v20, 1  ;;  %v5448_v36 = vrot.slane %v13643_v45, 1  ;;  %v4853_v42 = vld [vmem:[#allocation3 + $0x78] sm:$0xf]  ;;  %v4914_v60 = vld [vmem:[#allocation3 + $0x70] sm:$0xf] }
 0x347   : > { %v5265_v48 = vsel %vm1563_vm0, %v5260_v30, %v5264_v44  ;;  %v5271_v27 = vrot.slane %v5269_v31, 1  ;;  %v5447_v0 = vrot.slane %v9063_v53, 1  ;;  %v4889_v62 = vld [vmem:[#allocation3 + $0x60] sm:$0xe]  ;;  %v9034_v58 = vcombine.low %v4853_v42, %v13676_v24  ;;  %v4913_v47 = vld [vmem:[#allocation3 + $0x6c] sm:$0xf] }
 0x348   : > { %7806 = vmatprep.mubr.bf16.mxu0 %v5265_v48  ;;  %v5281_v38 = vshll.u32 %v9033_v28, 16  ;;  %v5279_v8 = vshrl.u32 %v9033_v28, 16  ;;  %v5286_v5 = vshll.u32 %v13679_v14, 16  ;;  %v9064_v41 = vcombine.low %v4889_v62, %v13657_v21  ;;  %v13689_v45 = vld [vmem:[#allocation3 + $0x88] sm:$0xf] }
 0x349   : > { %v5272_v61 = vor.u32 %v5271_v27, %v5267_v34  ;;  %v13687_v9 = vcombine.low %v4913_v47, %v4914_v60  ;;  %v5293_v12 = vshll.u32 %v9034_v58, 16  ;;  %v13692_v1 = vld [vmem:[#allocation3 + $0x80] ss:$0 sps:$4 sm:$0x11]   ;;  %v4855_v2 = vld [vmem:[#allocation3 + $0x84] sm:$0xf] }
 0x34a   : > { %v5283_v54 = vrot.slane %v5281_v38, 1  ;;  %v5288_v40 = vrot.slane %v5286_v5, 1  ;;  %v5450_v50 = vrot.slane %v9064_v41, 1  ;;  %v5451_v21 = vrot.slane %v13663_v7, 1  ;;  %v4916_v55 = vld [vmem:[#allocation3 + $0x7c] sm:$0xf] }
 0x34b   : > { %7960 = vmatmul.mubr.bf16.gmra.mrb[168].mxu1 %v5446_v3  ;;  %v5277_v19 = vsel %vm1563_vm0, %v5272_v61, %v5276_v63  ;;  %v5295_v43 = vrot.slane %v5293_v12, 1  ;;  %v13697_v16 = vcombine.low %v4855_v2, %v13689_v45  ;;  %v4915_v22 = vld [vmem:[#allocation3 + $0x78] sm:$0xf]  ;;  %v5291_v26 = vshrl.u32 %v9034_v58, 16  ;;  %v4890_v17 = vld [vmem:[#allocation3 + $0x6c] sm:$0xe] }
 0x34c   : > { %7967 = vmatprep.mubr.bf16.mxu1 %v13671_v52  ;;  %v5284_v39 = vor.u32 %v5283_v54, %v5279_v8  ;;  %v5298_v56 = vshll.u32 %v13692_v1, 16  ;;  %v13700_v15 = vcombine.low %v4915_v22, %v4916_v55  ;;  %v5452_v10 = vsel %vm1820_vm9, %v5450_v50, %v5451_v21  ;;  %v13705_v44 = vld [vmem:[#allocation3 + $0x94] sm:$0xf]  ;;  %v13708_v31 = vld [vmem:[#allocation3 + $0x8c] ss:$0 sps:$4 sm:$0x11]  }
 0x34d   : > { %7807 = vmatmul.mubr.bf16.gmra.mrb[204].mxu0 %v9031_v23  ;;  %v5449_v23 = vsel %vm1820_vm9, %v5447_v0, %v5448_v36  ;;  %v9065_v30 = vcombine.low %v4890_v17, %v13667_v49  ;;  %v5305_v7 = vshll.u32 %v13697_v16, 16  ;;  %v5454_v20 = vrot.slane %v13679_v14, 1  ;;  %v4857_v48 = vld [vmem:[#allocation3 + $0x90] sm:$0xf]  ;;  %v4918_v34 = vld [vmem:[#allocation3 + $0x88] sm:$0xf] }
 0x34e   : > { %7814 = vmatprep.mubr.bf16.mxu0 %v5277_v19  ;;  %v5289_v6 = vsel %vm1563_vm0, %v5284_v39, %v5288_v40  ;;  %v5300_v59 = vrot.slane %v5298_v56, 1  ;;  %v13713_v49 = vcombine.low %v4857_v48, %v13705_v44  ;;  %v4917_v53 = vld [vmem:[#allocation3 + $0x84] sm:$0xf]  ;;  %v5303_v4 = vshrl.u32 %v13697_v16, 16  ;;  %v4891_v38 = vld [vmem:[#allocation3 + $0x78] sm:$0xe] }
 0x34f   : > { %v5453_v3 = vrot.slane %v9065_v30, 1  ;;  %v5307_v27 = vrot.slane %v5305_v7, 1  ;;  %v5310_v61 = vshll.u32 %v13708_v31, 16  ;;  %v13717_v63 = vcombine.low %v4917_v53, %v4918_v34  ;;  %v13722_v36 = vld [vmem:[#allocation3 + $0xa0] sm:$0xf] }
 0x350   : > { %v9066_v19 = vcombine.low %v4891_v38, %v13676_v24  ;;  %v5317_v0 = vshll.u32 %v13713_v49, 16  ;;  %v13725_v60 = vld [vmem:[#allocation3 + $0x98] ss:$0 sps:$4 sm:$0x11]   ;;  %v5457_v54 = vrot.slane %v13692_v1, 1  ;;  %v5315_v39 = vshrl.u32 %v13713_v49, 16 }
 0x351   : > { %v5455_v14 = vsel %vm1820_vm9, %v5453_v3, %v5454_v20  ;;  %v5312_v42 = vrot.slane %v5310_v61, 1  ;;  %v4859_v62 = vld [vmem:[#allocation3 + $0x9c] sm:$0xf]  ;;  %v4920_v47 = vld [vmem:[#allocation3 + $0x94] sm:$0xf]  ;;  %v5322_v12 = vshll.u32 %v13725_v60, 16 }
 0x352   : > { %v5456_v5 = vrot.slane %v9066_v19, 1  ;;  %v5319_v41 = vrot.slane %v5317_v0, 1  ;;  %v13730_v24 = vcombine.low %v4859_v62, %v13722_v36  ;;  %v4892_v50 = vld [vmem:[#allocation3 + $0x84] sm:$0xe]  ;;  %v13741_v55 = vld [vmem:[#allocation3 + $0xac] sm:$0xf] }
 0x353   : > { %7968 = vmatmul.mubr.bf16.gmra.mrb[172].mxu1 %v5449_v23  ;;  %v4919_v23 = vld [vmem:[#allocation3 + $0x90] sm:$0xf]  ;;  %v9067_v2 = vcombine.low %v4892_v50, %v13689_v45  ;;  %v13739_v21 = vld [vmem:[#allocation3 + $0xa4] ss:$0 sps:$4 sm:$0x11]   ;;  %v5463_v0 = vrot.slane %v13725_v60, 1 }
 0x354   : > { %7975 = vmatprep.mubr.bf16.mxu1 %v13687_v9  ;;  %v13734_v40 = vcombine.low %v4919_v23, %v4920_v47  ;;  %v5458_v1 = vsel %vm1820_vm9, %v5456_v5, %v5457_v54  ;;  %v4861_v56 = vld [vmem:[#allocation3 + $0xa8] sm:$0xf]  ;;  %v5334_v48 = vshll.u32 %v13739_v21, 16  ;;  %v4921_v3 = vld [vmem:[#allocation3 + $0x9c] sm:$0xf] }
 0x355   : > { %7815 = vmatmul.mubr.bf16.gmra.mrb[208].mxu0 %v9032_v35  ;;  %v5296_v35 = vor.u32 %v5295_v43, %v5291_v26  ;;  %v5324_v43 = vrot.slane %v5322_v12, 1  ;;  %v5460_v26 = vrot.slane %v13708_v31, 1  ;;  %v13752_v30 = vcombine.low %v4861_v56, %v13741_v55  ;;  %v13765_v61 = vld [vmem:[#allocation3 + $0xb8] sm:$0xf]  ;;  %v4863_v19 = vld [vmem:[#allocation3 + $0xb4] sm:$0xf] }
 0x356   : > { %7822 = vmatprep.mubr.bf16.mxu0 %v5289_v6  ;;  %v5329_v6 = vshll.u32 %v13730_v24, 16  ;;  %v13744_v22 = vpop.f32.mrb[176].mxu0  ;;  %v5327_v31 = vshrl.u32 %v13730_v24, 16  ;;  %v5336_v38 = vrot.slane %v5334_v48, 1  ;;  %v13774_v62 = vcombine.low %v4863_v19, %v13765_v61  ;;  %v4894_v23 = vld [vmem:[#allocation3 + $0x9c] sm:$0xe] }
 0x357   : > { %v5301_v18 = vsel %vm1563_vm0, %v5296_v35, %v5300_v59  ;;  %v13747_v17 = vpop.f32.mrb[177].mxu0  ;;  %v4922_v59 = vld [vmem:[#allocation3 + $0xa0] sm:$0xf]  ;;  %v5339_v5 = vshrl.u32 %v13752_v30, 16  ;;  %v9069_v12 = vcombine.low %v4894_v23, %v13722_v36 }
 0x358   : > { %v5331_v35 = vrot.slane %v5329_v6, 1  ;;  %v13754_v7 = vpop.f32.mrb[178].mxu0  ;;  %v5353_v60 = vshll.u32 %v13774_v62, 16  ;;  %v5466_v6 = vrot.slane %v13739_v21, 1  ;;  %v5351_v36 = vshrl.u32 %v13774_v62, 16 }
 0x359   : > { %v13756_v20 = vpop.f32.mrb[179].mxu0 }
 0x35a   : > { %v5332_v53 = vor.u32 %v5331_v35, %v5327_v31  ;;  %v4895_v35 = vld [vmem:[#allocation3 + $0xa8] sm:$0xe] }
 0x35b   : > { %7976 = vmatmul.mubr.bf16.gmra.mrb[176].mxu1 %v5452_v10  ;;  %v5459_v10 = vrot.slane %v9067_v2, 1  ;;  %v5465_v2 = vrot.slane %v9069_v12, 1  ;;  %v9070_v48 = vcombine.low %v4895_v35, %v13741_v55  ;;  %v4928_v55 = vld [vmem:[#allocation3 + $0xc4] sm:$0xf]  ;;  %v5635_v35 = vshrl.u32 %v13348_v13, 16 }
 0x35c   : > { %7983 = vmatprep.mubr.bf16.mxu1 %v13700_v15 }
 0x35d   : > { %7823 = vmatmul.mubr.bf16.gmra.mrb[212].mxu0 %v9033_v28  ;;  %v5308_v28 = vor.u32 %v5307_v27, %v5303_v4  ;;  %v5461_v34 = vsel %vm1820_vm9, %v5459_v10, %v5460_v26  ;;  %v13762_v27 = vcombine.low %v4921_v3, %v4922_v59  ;;  %v5341_v4 = vshll.u32 %v13752_v30, 16  ;;  %v4926_v26 = vld [vmem:[#allocation3 + $0xb8] sm:$0xf]  ;;  %v4925_v10 = vld [vmem:[#allocation3 + $0xb4] sm:$0xf] }
 0x35e   : > { %7830 = vmatprep.mubr.bf16.mxu0 %v5301_v18  ;;  %v4893_v18 = vld [vmem:[#allocation3 + $0x90] sm:$0xe]  ;;  %v5467_v59 = vsel %vm1820_vm9, %v5465_v2, %v5466_v6  ;;  %v13794_v31 = vcombine.low %v4925_v10, %v4926_v26  ;;  %v13823_v10 = vld [vmem:[#allocation3 + $0x20] ss:$0 sps:$4 sm:$0x11]  }
 0x35f   : > { %v5313_v8 = vsel %vm1563_vm0, %v5308_v28, %v5312_v42  ;;  %v4924_v42 = vld [vmem:[#allocation3 + $0xac] sm:$0xf]  ;;  %v5343_v54 = vrot.slane %v5341_v4, 1 }
 0x363   : > { %7984 = vmatmul.mubr.bf16.gmra.mrb[180].mxu1 %v5455_v14  ;;  %v13768_v14 = vld [vmem:[#allocation3 + $0xb0] ss:$0 sps:$4 sm:$0x11]  }
 0x364   : > { %7991 = vmatprep.mubr.bf16.mxu1 %v13717_v63  ;;  %v5346_v47 = vshll.u32 %v13768_v14, 16  ;;  %v5469_v19 = vrot.slane %v13768_v14, 1 }
 0x365   : > { %7831 = vmatmul.mubr.bf16.gmra.mrb[216].mxu0 %v9034_v58  ;;  %v5320_v58 = vor.u32 %v5319_v41, %v5315_v39  ;;  %v5344_v39 = vor.u32 %v5343_v54, %v5339_v5  ;;  %v5637_v54 = vshll.u32 %v13348_v13, 16  ;;  %v4896_v5 = vld [vmem:[#allocation3 + $0xb4] sm:$0xe]  ;;  %v5685_v13 = vshll.u32 %v13576_v37, 16 }
 0x366   : > { %7838 = vmatprep.mubr.bf16.mxu0 %v5313_v8  ;;  %v4923_v8 = vld [vmem:[#allocation3 + $0xa8] sm:$0xf]  ;;  %v5348_v50 = vrot.slane %v5346_v47, 1  ;;  %v13810_v47 = vld [vmem:[#allocation3 + $0x20] ss:$0 sps:$4 sm:$0x11]   ;;  %v9071_v23 = vcombine.low %v4896_v5, %v13765_v61 }
 0x367   : > { %v5325_v45 = vsel %vm1563_vm0, %v5320_v58, %v5324_v43  ;;  %v13778_v41 = vcombine.low %v4923_v8, %v4924_v42  ;;  %v5355_v43 = vrot.slane %v5353_v60, 1  ;;  %v13805_v42 = vld [vmem:[#allocation3 + $0x28] sm:$0xf]  ;;  %v6106_v6 = vshll.u32 %v13810_v47, 16 }
 0x368   : > { %v5349_v58 = vsel %vm1563_vm0, %v5344_v39, %v5348_v50  ;;  %v4964_v39 = vld [vmem:[#allocation3 + $0x24] sm:$0xf]  ;;  %v5639_v50 = vrot.slane %v5637_v54, 1  ;;  %v5471_v61 = vrot.slane %v9071_v23, 1 }
 0x369   : > { %v13815_v60 = vcombine.low %v4964_v39, %v13805_v42  ;;  %v13845_v39 = vld [vmem:[#allocation3 + $0x34] sm:$0xf] }
 0x36b   : > { %7992 = vmatmul.mubr.bf16.gmra.mrb[184].mxu1 %v5458_v1  ;;  %v13784_v1 = vld [vmem:[#allocation3 + $0xbc] ss:$0 sps:$4 sm:$0x11]  }
 0x36c   : > { %7999 = vmatprep.mubr.bf16.mxu1 %v13734_v40  ;;  %v5358_v56 = vshll.u32 %v13784_v1, 16 }
 0x36d   : > { %7839 = vmatmul.mubr.bf16.gmra.mrb[220].mxu0 %v13697_v16  ;;  %v9068_v16 = vcombine.low %v4893_v18, %v13705_v44  ;;  %v5337_v44 = vsel %vm1563_vm0, %v5332_v53, %v5336_v38  ;;  %v4962_v18 = vld [vmem:[#allocation3 + $0x18] sm:$0xf]  ;;  %v11184_v53 = vld [vmem:[#allocation3 + $0x10] sm:$0xf] }
 0x36e   : > { %7846 = vmatprep.mubr.bf16.mxu0 %v5325_v45  ;;  %v13791_v45 = vld [vmem:[#allocation3 + $0x1c] sm:$0xf]  ;;  %v5360_v3 = vrot.slane %v5358_v56, 1 }
 0x36f   : > { %v5462_v28 = vrot.slane %v9068_v16, 1  ;;  %v13798_v21 = vcombine.low %v4962_v18, %v13791_v45  ;;  %v4945_v16 = vld [vmem:[#allocation3 + $0xc] sm:$0xe]  ;;  %v5649_v18 = vshll.u32 %v13392_v46, 16 }
 0x370   : > { %v9104_v4 = vcombine.low %v4945_v16, %v11184_v53  ;;  %v13830_v16 = vld [vmem:[#allocation3 + $0x34] sm:$0xf]  ;;  %v5640_v53 = vor.u32 %v5639_v50, %v5635_v35 }
 0x371   : > { %v6099_v2 = vshrl.u32 %v13798_v21, 16  ;;  %v5651_v50 = vrot.slane %v5649_v18, 1  ;;  %v4949_v18 = vld [vmem:[#allocation3 + $0x3c] sm:$0xe] }
 0x373   : > { %8000 = vmatmul.mubr.bf16.gmra.mrb[188].mxu1 %v5461_v34  ;;  %v11082_v34 = vld [vmem:[#allocation3 + $0x14] ss:$0 sps:$4 sm:$0x11]  }
 0x374   : > { %8007 = vmatprep.mubr.bf16.mxu1 %v13762_v27  ;;  %v5891_v14 = vrot.slane %v11082_v34, 1 }
 0x375   : > { %7847 = vmatmul.mubr.bf16.gmra.mrb[224].mxu0 %v13713_v49  ;;  %v5464_v49 = vsel %vm1820_vm9, %v5462_v28, %v5463_v0  ;;  %v5468_v28 = vrot.slane %v9070_v48, 1  ;;  %v4927_v0 = vld [vmem:[#allocation3 + $0xc0] sm:$0xf]  ;;  %v6113_v48 = vshll.u32 %v13815_v60, 16 }
 0x376   : > { %7854 = vmatprep.mubr.bf16.mxu0 %v5337_v44  ;;  %v6101_v44 = vshll.u32 %v13798_v21, 16  ;;  %v13808_v8 = vcombine.low %v4927_v0, %v4928_v55  ;;  %v13837_v55 = vld [vmem:[#allocation3 + $0x40] sm:$0xf]  ;;  %v13839_v0 = vld [vmem:[#allocation3 + $0x30] sm:$0xe] }
 0x378   : > { %v6103_v12 = vrot.slane %v6101_v44, 1  ;;  %v4947_v44 = vld [vmem:[#allocation3 + $0x24] sm:$0xe] }
 0x37b   : > { %8008 = vmatmul.mubr.bf16.gmra.mrb[192].mxu1 %v5464_v49  ;;  %v5890_v49 = vrot.slane %v9104_v4, 1  ;;  %v13832_v4 = vld [vmem:[#allocation3 + $0x2c] ss:$0 sps:$4 sm:$0x11]  }
 0x37c   : > { %8015 = vmatprep.mubr.bf16.mxu1 %v13778_v41 }
 0x37d   : > { %7855 = vmatmul.mubr.bf16.gmra.mrb[228].mxu0 %v13730_v24  ;;  %v5356_v24 = vor.u32 %v5355_v43, %v5351_v36  ;;  %v11185_v43 = vld [vmem:[#allocation3 + $0x1c] sm:$0xf]  ;;  %v5472_v36 = vrot.slane %v13784_v1, 1  ;;  %v5892_v56 = vsel %vm1820_vm9, %v5890_v49, %v5891_v14  ;;  %v6108_v1 = vrot.slane %v6106_v6, 1  ;;  %v11186_v49 = vld [vmem:[#allocation3 + $0x28] sm:$0xf] }
 0x37e   : > { %7862 = vmatprep.mubr.bf16.mxu0 %v5349_v58  ;;  %v4946_v58 = vld [vmem:[#allocation3 + $0x18] sm:$0xe]  ;;  %v9106_v14 = vcombine.low %v4947_v44, %v11186_v49  ;;  %v13875_v44 = vld [vmem:[#allocation3 + $0x48] sm:$0xe] }
 0x37f   : > { %v5361_v38 = vsel %vm1563_vm0, %v5356_v24, %v5360_v3  ;;  %v9105_v26 = vcombine.low %v4946_v58, %v11185_v43  ;;  %v6104_v24 = vor.u32 %v6103_v12, %v6099_v2  ;;  %v5661_v3 = vshll.u32 %v13482_v11, 16  ;;  %v13849_v58 = vld [vmem:[#allocation3 + $0x2c] ss:$0 sps:$4 sm:$0x11]   ;;  %v4968_v2 = vld [vmem:[#allocation3 + $0x3c] sm:$0xf] }
 0x380   : > { %v9107_v12 = vcombine.low %v13839_v0, %v13845_v39  ;;  %v6111_v43 = vshrl.u32 %v13815_v60, 16 }
 0x381   : > { %v6109_v54 = vsel %vm1563_vm0, %v6104_v24, %v6108_v1  ;;  %v5654_v24 = vshll.u32 %v13823_v10, 16 }
 0x383   : > { %8016 = vmatmul.mubr.bf16.gmra.mrb[196].mxu1 %v5467_v59  ;;  %v5642_v59 = vshll.u32 %v11082_v34, 16  ;;  %v5473_v34 = vsel %vm1820_vm9, %v5471_v61, %v5472_v36  ;;  %v13854_v61 = vld [vmem:[#allocation3 + $0x38] ss:$0 sps:$4 sm:$0x11]   ;;  %v13857_v36 = vcombine.low %v4968_v2, %v13837_v55 }
 0x384   : > { %8023 = vmatprep.mubr.bf16.mxu1 %v13794_v31  ;;  %v6130_v49 = vshll.u32 %v13854_v61, 16 }
 0x385   : > { %7863 = vmatmul.mubr.bf16.gmra.mrb[232].mxu0 %v13752_v30  ;;  %v5470_v30 = vsel %vm1820_vm9, %v5468_v28, %v5469_v19  ;;  %v5893_v28 = vrot.slane %v9105_v26, 1  ;;  %v5894_v19 = vrot.slane %v13823_v10, 1  ;;  %v5644_v5 = vrot.slane %v5642_v59, 1 }
 0x386   : > { %7870 = vmatprep.mubr.bf16.mxu0 %v5361_v38  ;;  %v4966_v38 = vld [vmem:[#allocation3 + $0x30] sm:$0xf]  ;;  %v6118_v26 = vshll.u32 %v13832_v4, 16  ;;  %v5647_v59 = vshrl.u32 %v13392_v46, 16  ;;  %v5697_v46 = vshll.u32 %v13626_v33, 16 }
 0x387   : > { %v13843_v23 = vcombine.low %v4966_v38, %v13830_v16  ;;  %v5645_v6 = vsel %vm1563_vm0, %v5640_v53, %v5644_v5  ;;  %v5895_v35 = vsel %vm1820_vm9, %v5893_v28, %v5894_v19  ;;  %v13867_v38 = vadd.f32 %v13747_v17, %v13744_v22  ;;  %v4970_v19 = vld [vmem:[#allocation3 + $0x48] sm:$0xf]  ;;  %v13878_v5 = vld [vmem:[#allocation3 + $0x38] ss:$0 sps:$4 sm:$0x11]   ;;  %v11095_v22 = vld [vmem:[#allocation10 + $0x208] sm:$0xff]  }
 0x388   : > { %v5652_v10 = vor.u32 %v5651_v50, %v5647_v59  ;;  %v5896_v28 = vrot.slane %v9106_v14, 1  ;;  %v6120_v0 = vrot.slane %v6118_v26, 1  ;;  %v6137_v17 = vshll.u32 %v13857_v36, 16  ;;  %v13888_v14 = vld [vmem:[#allocation3 + $0x44] ss:$0 sps:$4 sm:$0x11]  }
 0x389   : > { %v6125_v53 = vshll.u32 %v13843_v23, 16  ;;  %v13895_v26 = vrot.slane %v5697_v46, 1  ;;  %v5663_v59 = vrot.slane %v5661_v3, 1  ;;  %v6132_v46 = vrot.slane %v6130_v49, 1  ;;  %v13909_v3 = vld [vmem:[#allocation3 + $0x54] sm:$0xe] }
 0x38a   : > { %v5671_v49 = vshrl.u32 %v13518_v32, 16 }
 0x38b   : > { %8024 = vmatmul.mubr.bf16.gmra.mrb[200].mxu1 %v5470_v30  ;;  %v6115_v30 = vrot.slane %v6113_v48, 1  ;;  %v13862_v48 = vld [vmem:[#allocation3 + $0x4c] sm:$0xf] }
 0x38c   : > { %8031 = vmatprep.mubr.bf16.mxu1 %v13808_v8 }
 0x38d   : > { %7871 = vmatmul.mubr.bf16.gmra.mrb[236].mxu0 %v13774_v62  ;;  %v5673_v62 = vshll.u32 %v13518_v32, 16  ;;  %v6116_v1 = vor.u32 %v6115_v30, %v6111_v43  ;;  %v5656_v30 = vrot.slane %v5654_v24, 1  ;;  %v11098_v43 = vld [vmem:[#allocation3 + $0x44] ss:$0 sps:$4 sm:$0x11]  }
 0x38e   : > { %8072 = vmatprep.mubr.bf16.mxu0 %v5892_v56  ;;  %v5687_v56 = vrot.slane %v5685_v13, 1  ;;  %v13871_v13 = vadd.f32 %v13756_v20, %v13754_v7  ;;  %v13882_v7 = vcombine.low %v4970_v19, %v13862_v48  ;;  %v13901_v24 = vld [vmem:[#allocation3 + $0x50] ss:$0 sps:$4 sm:$0x11]   ;;  %v5899_v19 = vrot.slane %v9107_v12, 1 }
 0x38f   : > { %v6121_v2 = vsel %vm1563_vm0, %v6116_v1, %v6120_v0  ;;  %v6139_v1 = vrot.slane %v6137_v17, 1  ;;  %v6142_v17 = vshll.u32 %v13888_v14, 16  ;;  %v5690_v12 = vshll.u32 %v11098_v43, 16  ;;  %v13921_v32 = vld [vmem:[#allocation3 + $0x50] ss:$0 sps:$4 sm:$0x11]  }
 0x390   : > { %v6367_v39 = vrot.slane %v13901_v24, 1 }
 0x393   : > { %8032 = vmatmul.mubr.bf16.gmra.mrb[204].mxu1 %v5473_v34  ;;  %v5683_v34 = vshrl.u32 %v13576_v37, 16  ;;  %v9108_v37 = vcombine.low %v4949_v18, %v13569_v57  ;;  %v11188_v57 = vld [vmem:[#allocation10 + $0x200] sm:$0xff]   ;;  %v6123_v18 = vshrl.u32 %v13843_v23, 16 }
 0x394   : > { %8233 = vmatprep.mubr.bf16.mxu1 %v6109_v54  ;;  %v5897_v54 = vrot.slane %v13849_v58, 1 }
 0x395   : > { %8073 = vmatmul.mubr.bf16.vlgmr.msra.gmra.mrb[240].mxu0 %v5645_v6  ;;  %v13884_v20 = vor.u32 %v5687_v56, %v5683_v34  ;;  %v6127_v6 = vrot.slane %v6125_v53, 1  ;;  %v5657_v56 = vsel %vm1563_vm0, %v5652_v10, %v5656_v30  ;;  %v6149_v53 = vshll.u32 %v13882_v7, 16  ;;  %v11102_v34 = vld [vmem:[#allocation10 + $0x210] sm:$0xff]  }
 0x396   : > { %8080 = vmatprep.mubr.bf16.mxu0 %v5895_v35  ;;  %v5659_v35 = vshrl.u32 %v13482_v11, 16  ;;  %v5666_v10 = vshll.u32 %v13849_v58, 16  ;;  %v5675_v11 = vrot.slane %v5673_v62, 1  ;;  %v5678_v58 = vshll.u32 %v13878_v5, 16 }
 0x397   : > { %v6128_v0 = vor.u32 %v6127_v6, %v6123_v18  ;;  %v4972_v6 = vld [vmem:[#allocation3 + $0x54] sm:$0xf] }
 0x398   : > { %v5664_v30 = vor.u32 %v5663_v59, %v5659_v35  ;;  %v11109_v18 = vld [vmem:[#allocation10 + $0x218] sm:$0xff]   ;;  %v5668_v50 = vrot.slane %v5666_v10, 1  ;;  %v5676_v35 = vor.u32 %v5675_v11, %v5671_v49  ;;  %v6144_v59 = vrot.slane %v6142_v17, 1  ;;  %v5010_v49 = vld [vmem:[#allocation3 + $0x18] sm:$0xe] }
 0x399   : > { %v5680_v11 = vrot.slane %v5678_v58, 1  ;;  %v11116_v17 = vld [vmem:[#allocation10 + $0x220] sm:$0xff]  }
 0x39b   : > { %8234 = vmatmul.mubr.bf16.vlgmr.msra.gmra.mrb[208].mxu1 %v13798_v21  ;;  %v5898_v21 = vsel %vm1820_vm9, %v5896_v28, %v5897_v54  ;;  %v5900_v28 = vrot.slane %v13878_v5, 1  ;;  %v6135_v54 = vshrl.u32 %v13857_v36, 16  ;;  %v6133_v5 = vsel %vm1563_vm0, %v6128_v0, %v6132_v46 }
 0x39c   : > { %8241 = vmatprep.mubr.bf16.mxu1 %v6121_v2  ;;  %10404 = vmatpush3.bf16.msra.mxu1 %v11188_v57  ;;  %v13916_v2 = vld [vmem:[#allocation3 + $0x58] sm:$0xf]  ;;  %v5902_v57 = vrot.slane %v9108_v37, 1  ;;  %v6147_v37 = vshrl.u32 %v13882_v7, 16 }
 0x39d   : > { %10405 = vmatprep.subr.bf16.mxu1 %v11095_v22  ;;  %8081 = vmatmul.mubr.bf16.gmra.mrb[244].mxu0 %v5657_v56  ;;  %v6140_v62 = vor.u32 %v6139_v1, %v6135_v54  ;;  %v5903_v56 = vrot.slane %v11098_v43, 1  ;;  %v13927_v43 = vcombine.low %v4972_v6, %v13916_v2  ;;  %v13929_v1 = vld [vmem:[#allocation3 + $0x5c] ss:$0 sps:$4 sm:$0x11]   ;;  %v5901_v10 = vsel %vm1820_vm9, %v5899_v19, %v5900_v28  ;;  %v5011_v28 = vld [vmem:[#allocation3 + $0x24] sm:$0xe] }
 0x39e   : > { %8088 = vmatprep.mubr.bf16.mxu0 %v5898_v21  ;;  %v6151_v21 = vrot.slane %v6149_v53, 1  ;;  %v5669_v53 = vsel %vm1563_vm0, %v5664_v30, %v5668_v50  ;;  %v5692_v54 = vrot.slane %v5690_v12, 1  ;;  %v9152_v6 = vcombine.low %v5010_v49, %v13791_v45  ;;  %v13969_v49 = vld [vmem:[#allocation3 + $0x7c] sm:$0xf]  ;;  %v5018_v45 = vld [vmem:[#allocation3 + $0x78] sm:$0xe] }
 0x39f   : > { %v13935_v46 = vsel %vm1820_vm9, %v5902_v57, %v5903_v56  ;;  %v14739_v30 = vcombine.low %v13875_v44, %v13618_v25  ;;  %v5012_v57 = vld [vmem:[#allocation3 + $0x30] sm:$0xe]  ;;  %v4974_v56 = vld [vmem:[#allocation3 + $0x60] sm:$0xf]  ;;  %v6358_v25 = vrot.slane %v13832_v4, 1 }
 0x3a0   : > { %10406 = vmatpush3.bf16.msra.mxu1 %v11095_v22  ;;  %v6154_v22 = vshll.u32 %v13901_v24, 16  ;;  %v6152_v0 = vor.u32 %v6151_v21, %v6147_v37  ;;  %v13941_v19 = vsel %vm1563_vm0, %v13884_v20, %v5692_v54  ;;  %v4975_v21 = vld [vmem:[#allocation3 + $0x64] sm:$0xf]  ;;  %v13952_v20 = vld [vmem:[#allocation3 + $0x68] ss:$0 sps:$4 sm:$0x11]   ;;  %v9154_v44 = vcombine.low %v5012_v57, %v13830_v16 }
 0x3a1   : > { %10407 = vmatprep.subr.bf16.mxu1 %v11102_v34  ;;  %v13947_v58 = vrot.slane %v14739_v30, 1  ;;  %v11123_v54 = vld [vmem:[#allocation10 + $0x228] sm:$0xff]   ;;  %v13971_v4 = vld [vmem:[#allocation3 + $0x8c] ss:$0 sps:$4 sm:$0x11]   ;;  %v13978_v30 = vcombine.low %v4974_v56, %v4975_v21 }
 0x3a2   : > { %v6156_v50 = vrot.slane %v6154_v22, 1  ;;  %v9153_v22 = vcombine.low %v5011_v28, %v13805_v42  ;;  %v5014_v28 = vld [vmem:[#allocation3 + $0x48] sm:$0xe]  ;;  %v14000_v24 = vld [vmem:[#allocation3 + $0xa0] sm:$0xf] }
 0x3a3   : > { %8242 = vmatmul.mubr.bf16.gmra.mrb[212].mxu1 %v13815_v60  ;;  %v6145_v60 = vsel %vm1563_vm0, %v6140_v62, %v6144_v59  ;;  %v5013_v59 = vld [vmem:[#allocation3 + $0x3c] sm:$0xe]  ;;  %v13980_v57 = vld [vmem:[#allocation3 + $0x88] sm:$0xf]  ;;  %v14013_v12 = vld [vmem:[#allocation3 + $0xac] sm:$0xf] }
 0x3a4   : > { %8249 = vmatprep.mubr.bf16.mxu1 %v6133_v5  ;;  %10408 = vmatpush3.bf16.msra.mxu1 %v11102_v34  ;;  %v5681_v5 = vsel %vm1563_vm0, %v5676_v35, %v5680_v11  ;;  %v6355_v34 = vrot.slane %v13810_v47, 1  ;;  %v13954_v35 = vld [vmem:[#allocation3 + $0x74] ss:$0 sps:$4 sm:$0x11]   ;;  %v6354_v47 = vrot.slane %v9152_v6, 1  ;;  %v13960_v37 = vsel %vm1563_vm0, %v6152_v0, %v6156_v50 }
 0x3a5   : > { %10409 = vmatprep.subr.bf16.mxu1 %v11109_v18  ;;  %8089 = vmatmul.mubr.bf16.gmra.mrb[248].mxu0 %v5669_v53  ;;  %v6161_v53 = vshll.u32 %v13927_v43, 16  ;;  %v13965_v11 = vld [vmem:[#allocation3 + $0x80] ss:$0 sps:$4 sm:$0x11]   ;;  %v9155_v42 = vcombine.low %v5013_v59, %v13837_v55  ;;  %v6357_v0 = vrot.slane %v9153_v22, 1  ;;  %v6360_v6 = vrot.slane %v9154_v44, 1 }
 0x3a6   : > { %8096 = vmatprep.mubr.bf16.mxu0 %v5901_v10  ;;  %v13963_v10 = vld [vmem:[#allocation3 + $0x70] sm:$0xf]  ;;  %v13974_v16 = vsel %vm1820_vm9, %v6354_v47, %v6355_v34  ;;  %v6364_v50 = vrot.slane %v13888_v14, 1  ;;  %v9156_v59 = vcombine.low %v5014_v28, %v13862_v48  ;;  %v5015_v34 = vld [vmem:[#allocation3 + $0x54] sm:$0xe]  ;;  %v6370_v44 = vrot.slane %v13929_v1, 1 }
 0x3a7   : > { %14740 = vst [vmem:[#allocation40_spill] sm:$0xff] %v13974_v16  ;;  %v6363_v55 = vrot.slane %v9155_v42, 1  ;;  %v13986_v47 = vld [vmem:[#allocation3 + $0x94] sm:$0xf]  ;;  %v9157_v22 = vcombine.low %v5015_v34, %v13916_v2  ;;  %v5016_v48 = vld [vmem:[#allocation3 + $0x60] sm:$0xe] }
 0x3a8   : > { %10410 = vmatpush3.bf16.msra.mxu1 %v11109_v18  ;;  %v6361_v18 = vrot.slane %v13854_v61, 1  ;;  %v13982_v61 = vld [vmem:[#allocation3 + $0x98] ss:$0 sps:$4 sm:$0x11]   ;;  %v13998_v42 = vrot.slane %v6161_v53, 1  ;;  %v6373_v34 = vrot.slane %v13952_v20, 1 }
 0x3a9   : > { %10411 = vmatprep.subr.bf16.mxu1 %v11116_v17  ;;  %v13988_v14 = vld [vmem:[#allocation3 + $0xa4] ss:$0 sps:$4 sm:$0x11]   ;;  %v14005_v28 = vsel %vm1820_vm9, %v6363_v55, %v6364_v50  ;;  %v6369_v2 = vrot.slane %v9157_v22, 1  ;;  %v6376_v62 = vrot.slane %v13954_v35, 1  ;;  %v9160_v55 = vcombine.low %v5018_v45, %v13969_v49 }
 0x3aa   : > { %v13994_v56 = vsel %vm1820_vm9, %v6360_v6, %v6361_v18  ;;  %14743 = vst [vmem:[#allocation43_spill] sm:$0xff] %v14005_v28  ;;  %v5017_v18 = vld [vmem:[#allocation3 + $0x6c] sm:$0xe]  ;;  %v14007_v6 = vld [vmem:[#allocation3 + $0xbc] ss:$0 sps:$4 sm:$0x11]  }
 0x3ab   : > { %8250 = vmatmul.mubr.bf16.gmra.mrb[216].mxu1 %v13843_v23  ;;  %v13991_v23 = vsel %vm1820_vm9, %v6357_v0, %v6358_v25  ;;  %14742 = vst [vmem:[#allocation25_spill] sm:$0xff] %v13994_v56  ;;  %v6366_v25 = vrot.slane %v9156_v59, 1  ;;  %v9158_v0 = vcombine.low %v5016_v48, %v4975_v21  ;;  %v9159_v53 = vcombine.low %v5017_v18, %v13963_v10  ;;  %v14015_v50 = vld [vmem:[#allocation3 + $0xc8] ss:$0 sps:$4 sm:$0x11]  }
 0x3ac   : > { %8257 = vmatprep.mubr.bf16.mxu1 %v6145_v60  ;;  %10412 = vmatpush3.bf16.msra.mxu1 %v11116_v17  ;;  %14741 = vst [vmem:[#allocation41_spill] sm:$0xff] %v13991_v23  ;;  %v14002_v60 = vld [vmem:[#allocation3 + $0xb0] ss:$0 sps:$4 sm:$0x11]   ;;  %v11130_v17 = vld [vmem:[#allocation10 + $0x230] sm:$0xff]   ;;  %v6379_v59 = vrot.slane %v13965_v11, 1  ;;  %v14025_v18 = vsel %vm1820_vm9, %v6369_v2, %v6370_v44 }
 0x3ad   : > { %10413 = vmatprep.subr.bf16.mxu1 %v11123_v54  ;;  %8097 = vmatmul.mubr.bf16.gmra.mrb[252].mxu0 %v5681_v5  ;;  %v14018_v21 = vsel %vm1820_vm9, %v6366_v25, %v6367_v39  ;;  %v6372_v5 = vrot.slane %v9158_v0, 1  ;;  %v5019_v22 = vld [vmem:[#allocation3 + $0x84] sm:$0xe]  ;;  %v14022_v48 = vld [vmem:[#allocation3 + $0xb8] sm:$0xf]  ;;  %14745 = vst [vmem:[#allocation45_spill] sm:$0xff] %v14025_v18 }
 0x3ae   : > { %8104 = vmatprep.mubr.bf16.mxu0 %v13935_v46  ;;  %14744 = vst [vmem:[#allocation47_spill] sm:$0xff] %v14018_v21  ;;  %v6375_v46 = vrot.slane %v9159_v53, 1  ;;  %v9161_v28 = vcombine.low %v5019_v22, %v13980_v57  ;;  %v6382_v56 = vrot.slane %v13971_v4, 1  ;;  %v5020_v23 = vld [vmem:[#allocation3 + $0x90] sm:$0xe]  ;;  %v6378_v45 = vrot.slane %v9160_v55, 1 }
 0x3af   : > { %v11137_v39 = vld [vmem:[#allocation10 + $0x238] sm:$0xff]   ;;  %v14030_v25 = vsel %vm1820_vm9, %v6372_v5, %v6373_v34  ;;  %v9162_v0 = vcombine.low %v5020_v23, %v13986_v47  ;;  %v5021_v21 = vld [vmem:[#allocation3 + $0x9c] sm:$0xe]  ;;  %v14034_v16 = vld [vmem:[#allocation3 + $0xc4] sm:$0xf]  ;;  %v6388_v22 = vrot.slane %v13988_v14, 1 }
 0x3b0   : > { %10414 = vmatpush3.bf16.msra.mxu1 %v11123_v54  ;;  %14746 = vst [vmem:[#allocation44_spill] sm:$0xff] %v14030_v25  ;;  %v6385_v54 = vrot.slane %v13982_v61, 1  ;;  %v14037_v44 = vsel %vm1820_vm9, %v6375_v46, %v6376_v62  ;;  %v6381_v2 = vrot.slane %v9161_v28, 1  ;;  %v9163_v53 = vcombine.low %v5021_v21, %v14000_v24  ;;  %v5022_v18 = vld [vmem:[#allocation3 + $0xa8] sm:$0xe] }
 0x3b1   : > { %10415 = vmatprep.subr.bf16.mxu1 %v11130_v17  ;;  %v14043_v34 = vsel %vm1820_vm9, %v6378_v45, %v6379_v59  ;;  %v6384_v23 = vrot.slane %v9162_v0, 1  ;;  %v9164_v5 = vcombine.low %v5022_v18, %v14013_v12  ;;  %v6391_v55 = vrot.slane %v14002_v60, 1  ;;  %v5023_v25 = vld [vmem:[#allocation3 + $0xb4] sm:$0xe]  ;;  %v5024_v46 = vld [vmem:[#allocation3 + $0xc0] sm:$0xe] }
 0x3b2   : > { %v14049_v62 = vsel %vm1820_vm9, %v6381_v2, %v6382_v56  ;;  %v6387_v28 = vrot.slane %v9163_v53, 1  ;;  %v9165_v21 = vcombine.low %v5023_v25, %v14022_v48  ;;  %v9166_v45 = vcombine.low %v5024_v46, %v14034_v16  ;;  %v11105_v25 = vld [vmem:[#allocation3 + $0x5c] ss:$0 sps:$4 sm:$0x11]  }
 0x3b3   : > { %8258 = vmatmul.mubr.bf16.gmra.mrb[220].mxu1 %v13857_v36  ;;  %v6394_v36 = vrot.slane %v14007_v6, 1  ;;  %v14054_v59 = vsel %vm1820_vm9, %v6384_v23, %v6385_v54  ;;  %v6390_v18 = vrot.slane %v9164_v5, 1  ;;  %v6397_v0 = vrot.slane %v14015_v50, 1 }
 0x3b4   : > { %8265 = vmatprep.mubr.bf16.mxu1 %v13960_v37  ;;  %10416 = vmatpush3.bf16.msra.mxu1 %v11130_v17  ;;  %v5702_v37 = vshll.u32 %v13921_v32, 16  ;;  %v14747_v56 = vrot.slane %v13921_v32, 1  ;;  %v14065_v2 = vsel %vm1820_vm9, %v6387_v28, %v6388_v22  ;;  %v6393_v54 = vrot.slane %v9165_v21, 1 }
 0x3b5   : > { %10417 = vmatprep.subr.bf16.mxu1 %v11137_v39  ;;  %8105 = vmatmul.mubr.bf16.gmra.mrb[0].mxu0 %v13941_v19  ;;  %v14748_v53 = vshrl.u32 %v13927_v43, 16  ;;  %v6173_v5 = vshll.u32 %v13978_v30, 16  ;;  %v14072_v19 = vsel %vm1820_vm9, %v6390_v18, %v6391_v55  ;;  %v6396_v46 = vrot.slane %v9166_v45, 1  ;;  %v4976_v45 = vld [vmem:[#allocation3 + $0x6c] sm:$0xf] }
 0x3b6   : > { %v5907_v17 = vsel %vm1820_vm9, %v13947_v58, %v14747_v56  ;;  %v14075_v32 = vsel %vm1820_vm9, %v6393_v54, %v6394_v36  ;;  %v14749_v58 = vshrl.u32 %v13626_v33, 16  ;;  %v5709_v28 = vshll.u32 %v13651_v29, 16  ;;  %v4952_v54 = vld [vmem:[#allocation3 + $0x60] sm:$0xe] }
 0x3b7   : > { %8112 = vmatprep.mubr.bf16.mxu0 %v5907_v17  ;;  %v6164_v23 = vor.u32 %v13998_v42, %v14748_v53  ;;  %v14750_v21 = vshll.u32 %v13929_v1, 16  ;;  %v14084_v42 = vsel %vm1820_vm9, %v6396_v46, %v6397_v0  ;;  %v14751_v55 = vcombine.low %v13909_v3, %v13639_v51  ;;  %v11189_v3 = vld [vmem:[#allocation3 + $0x64] sm:$0xf] }
 0x3b8   : > { %10418 = vmatpush3.bf16.msra.mxu1 %v11137_v39  ;;  %v5700_v22 = vor.u32 %v13895_v26, %v14749_v58  ;;  %v5909_v39 = vrot.slane %v11105_v25, 1  ;;  %v5704_v36 = vrot.slane %v5702_v37, 1  ;;  %v6175_v26 = vrot.slane %v6173_v5, 1  ;;  %v11108_v37 = vld [vmem:[#allocation3 + $0x68] ss:$0 sps:$4 sm:$0x11]  }
 0x3b9   : > { %v6168_v56 = vrot.slane %v14750_v21, 1  ;;  %v5908_v18 = vrot.slane %v14751_v55, 1  ;;  %v14092_v17 = vcombine.low %v4976_v45, %v13963_v10  ;;  %v5711_v1 = vrot.slane %v5709_v28, 1 }
 0x3ba   : > { %v5705_v0 = vsel %vm1563_vm0, %v5700_v22, %v5704_v36  ;;  %v6171_v53 = vshrl.u32 %v13978_v30, 16  ;;  %v6178_v51 = vshll.u32 %v13952_v20, 16  ;;  %v9111_v46 = vcombine.low %v4952_v54, %v11189_v3  ;;  %v4978_v20 = vld [vmem:[#allocation3 + $0x78] sm:$0xf]  ;;  %v4953_v36 = vld [vmem:[#allocation3 + $0x6c] sm:$0xe] }
 0x3bb   : > { %8266 = vmatmul.mubr.bf16.gmra.mrb[224].mxu1 %v13882_v7  ;;  %v6169_v33 = vsel %vm1563_vm0, %v6164_v23, %v6168_v56  ;;  %v5910_v7 = vsel %vm1820_vm9, %v5908_v18, %v5909_v39  ;;  %v5707_v23 = vshrl.u32 %v13651_v29, 16  ;;  %v5714_v5 = vshll.u32 %v11105_v25, 16  ;;  %v11190_v54 = vld [vmem:[#allocation3 + $0x70] sm:$0xf] }
 0x3bc   : > { %8273 = vmatprep.mubr.bf16.mxu1 %v6169_v33  ;;  %v6176_v10 = vor.u32 %v6175_v26, %v6171_v53  ;;  %v6185_v58 = vshll.u32 %v14092_v17, 16  ;;  %v5721_v22 = vshll.u32 %v13671_v52, 16  ;;  %v6180_v21 = vrot.slane %v6178_v51, 1  ;;  %v11112_v51 = vld [vmem:[#allocation3 + $0x74] ss:$0 sps:$4 sm:$0x11]  }
 0x3bd   : > { %8113 = vmatmul.mubr.bf16.gmra.mrb[4].mxu0 %v5705_v0  ;;  %v5712_v28 = vor.u32 %v5711_v1, %v5707_v23  ;;  %v5911_v56 = vrot.slane %v9111_v46, 1  ;;  %v5912_v55 = vrot.slane %v11108_v37, 1  ;;  %v5716_v45 = vrot.slane %v5714_v5, 1 }
 0x3be   : > { %8120 = vmatprep.mubr.bf16.mxu0 %v5910_v7  ;;  %v6181_v18 = vsel %vm1563_vm0, %v6176_v10, %v6180_v21  ;;  %v6187_v39 = vrot.slane %v6185_v58, 1  ;;  %v14104_v29 = vcombine.low %v4978_v20, %v13969_v49  ;;  %v5723_v25 = vrot.slane %v5721_v22, 1 }
 0x3bf   : > { %v5717_v33 = vsel %vm1563_vm0, %v5712_v28, %v5716_v45  ;;  %v6183_v26 = vshrl.u32 %v14092_v17, 16  ;;  %v6190_v1 = vshll.u32 %v13954_v35, 16  ;;  %v9112_v0 = vcombine.low %v4953_v36, %v11190_v54  ;;  %v4980_v35 = vld [vmem:[#allocation3 + $0x84] sm:$0xf]  ;;  %v4954_v36 = vld [vmem:[#allocation3 + $0x78] sm:$0xe] }
 0x3c0   : > { %v5726_v53 = vshll.u32 %v11108_v37, 16  ;;  %v5719_v3 = vshrl.u32 %v13671_v52, 16  ;;  %v6197_v46 = vshll.u32 %v14104_v29, 16  ;;  %v5733_v23 = vshll.u32 %v13687_v9, 16  ;;  %v11191_v54 = vld [vmem:[#allocation3 + $0x7c] sm:$0xf] }
 0x3c1   : > { %v6188_v49 = vor.u32 %v6187_v39, %v6183_v26  ;;  %v6192_v58 = vrot.slane %v6190_v1, 1  ;;  %v5914_v37 = vrot.slane %v9112_v0, 1  ;;  %v5915_v20 = vrot.slane %v11112_v51, 1 }
 0x3c2   : > { %v5724_v10 = vor.u32 %v5723_v25, %v5719_v3  ;;  %v5728_v21 = vrot.slane %v5726_v53, 1  ;;  %v6199_v45 = vrot.slane %v6197_v46, 1  ;;  %v5735_v25 = vrot.slane %v5733_v23, 1 }
 0x3c3   : > { %8274 = vmatmul.mubr.bf16.gmra.mrb[228].mxu1 %v13927_v43  ;;  %v5913_v43 = vsel %vm1820_vm9, %v5911_v56, %v5912_v55  ;;  %v14114_v56 = vcombine.low %v4980_v35, %v13980_v57  ;;  %v6193_v55 = vsel %vm1563_vm0, %v6188_v49, %v6192_v58  ;;  %v6195_v26 = vshrl.u32 %v14104_v29, 16  ;;  %v14136_v35 = vld [vmem:[#allocation3 + $0xd4] ss:$0 sps:$4 sm:$0x11]  }
 0x3c4   : > { %8281 = vmatprep.mubr.bf16.mxu1 %v6181_v18  ;;  %v6202_v57 = vshll.u32 %v13965_v11, 16  ;;  %v9113_v0 = vcombine.low %v4954_v36, %v11191_v54  ;;  %v5916_v53 = vsel %vm1820_vm9, %v5914_v37, %v5915_v20  ;;  %v5025_v37 = vld [vmem:[#allocation3 + $0xcc] sm:$0xe]  ;;  %v4955_v20 = vld [vmem:[#allocation3 + $0x84] sm:$0xe] }
 0x3c5   : > { %8121 = vmatmul.mubr.bf16.gmra.mrb[8].mxu0 %v5717_v33  ;;  %v5729_v33 = vsel %vm1563_vm0, %v5724_v10, %v5728_v21  ;;  %v6200_v3 = vor.u32 %v6199_v45, %v6195_v26  ;;  %v6209_v49 = vshll.u32 %v14114_v56, 16  ;;  %v4982_v10 = vld [vmem:[#allocation3 + $0x90] sm:$0xf]  ;;  %v6400_v45 = vrot.slane %v14136_v35, 1 }
 0x3c6   : > { %8128 = vmatprep.mubr.bf16.mxu0 %v5913_v43  ;;  %v11115_v43 = vld [vmem:[#allocation3 + $0x80] ss:$0 sps:$4 sm:$0x11]   ;;  %v6204_v11 = vrot.slane %v6202_v57, 1  ;;  %v14134_v58 = vcombine.low %v4982_v10, %v13986_v47  ;;  %v14139_v21 = vld [vmem:[#allocation3 + $0xd0] sm:$0xf] }
 0x3c7   : > { %v5743_v47 = vshrl.u32 %v13700_v15, 16  ;;  %v5750_v26 = vshll.u32 %v11115_v43, 16 }
 0x3c8   : > { %v6219_v10 = vshrl.u32 %v14134_v58, 16 }
 0x3ca   : > { %v9963_v7 = vpop.f32.mrb[144].mxu1 }
 0x3cb   : > { %v9964_v5 = vpop.f32.mrb[145].mxu1  ;;  %8282 = vmatmul.mubr.bf16.gmra.mrb[232].mxu1 %v13978_v30  ;;  %v5731_v30 = vshrl.u32 %v13687_v9, 16  ;;  %v6205_v9 = vsel %vm1563_vm0, %v6200_v3, %v6204_v11 }
 0x3cc   : > { %v9965_v28 = vadd.f32 %v9964_v5, %v9963_v7  ;;  %v9966_v22 = vpop.f32.mrb[146].mxu1  ;;  %8289 = vmatprep.mubr.bf16.mxu1 %v6193_v55  ;;  %v5745_v7 = vshll.u32 %v13700_v15, 16  ;;  %v5918_v5 = vrot.slane %v11115_v43, 1  ;;  %v9167_v55 = vcombine.low %v5025_v37, %v14139_v21 }
 0x3cd   : > { %v9967_v52 = vpop.f32.mrb[147].mxu1  ;;  %8129 = vmatmul.mubr.bf16.gmra.mrb[12].mxu0 %v5729_v33  ;;  %v5736_v46 = vor.u32 %v5735_v25, %v5731_v30  ;;  %v11119_v33 = vld [vmem:[#allocation3 + $0x8c] ss:$0 sps:$4 sm:$0x11]   ;;  %v6221_v30 = vshll.u32 %v14134_v58, 16  ;;  %v5755_v37 = vshrl.u32 %v13717_v63, 16 }
 0x3ce   : > { %v14119_v18 = vadd.f32 %v9965_v28, %v13867_v38  ;;  %v9968_v39 = vadd.f32 %v9967_v52, %v9966_v22  ;;  %v5738_v38 = vshll.u32 %v11112_v51, 16  ;;  %8136 = vmatprep.mubr.bf16.mxu0 %v5916_v53  ;;  %v6211_v51 = vrot.slane %v6209_v49, 1  ;;  %v4984_v53 = vld [vmem:[#allocation3 + $0x9c] sm:$0xf] }
 0x3cf   : > { %v5747_v28 = vrot.slane %v5745_v7, 1  ;;  %v6207_v52 = vshrl.u32 %v14114_v56, 16  ;;  %v6399_v54 = vrot.slane %v9167_v55, 1  ;;  %v5921_v49 = vrot.slane %v11119_v33, 1 }
 0x3d0   : > { %v14125_v1 = vadd.f32 %v9968_v39, %v13871_v13  ;;  %v5740_v23 = vrot.slane %v5738_v38, 1  ;;  %v5917_v13 = vrot.slane %v9113_v0, 1  ;;  %v11192_v39 = vld [vmem:[#allocation3 + $0x88] sm:$0xf]  ;;  %v5752_v7 = vrot.slane %v5750_v26, 1 }
 0x3d1   : > { %v9114_v25 = vcombine.low %v4955_v20, %v11192_v39  ;;  %v6212_v57 = vor.u32 %v6211_v51, %v6207_v52  ;;  %v5748_v0 = vor.u32 %v5747_v28, %v5743_v47  ;;  %v14150_v3 = vsel %vm1820_vm9, %v6399_v54, %v6400_v45  ;;  %v11193_v51 = vld [vmem:[#allocation3 + $0x94] sm:$0xf] }
 0x3d2   : > { %v5741_v22 = vsel %vm1563_vm0, %v5736_v46, %v5740_v23  ;;  %v5919_v36 = vsel %vm1820_vm9, %v5917_v13, %v5918_v5  ;;  %v14153_v46 = vcombine.low %v4984_v53, %v14000_v24  ;;  %v6223_v11 = vrot.slane %v6221_v30, 1  ;;  %v4956_v13 = vld [vmem:[#allocation3 + $0x90] sm:$0xe]  ;;  %v4986_v30 = vld [vmem:[#allocation3 + $0xa8] sm:$0xf] }
 0x3d3   : > { %8290 = vmatmul.mubr.bf16.gmra.mrb[236].mxu1 %v14092_v17  ;;  %v6214_v17 = vshll.u32 %v13971_v4, 16  ;;  %v5757_v4 = vshll.u32 %v13717_v63, 16  ;;  %v5920_v15 = vrot.slane %v9114_v25, 1  ;;  %v5753_v5 = vsel %vm1563_vm0, %v5748_v0, %v5752_v7 }
 0x3d4   : > { %8297 = vmatprep.mubr.bf16.mxu1 %v6205_v9  ;;  %v6226_v9 = vshll.u32 %v13982_v61, 16  ;;  %v9115_v28 = vcombine.low %v4956_v13, %v11193_v51  ;;  %v5762_v20 = vshll.u32 %v11119_v33, 16  ;;  %v6224_v52 = vor.u32 %v6223_v11, %v6219_v10  ;;  %v11194_v11 = vld [vmem:[#allocation3 + $0xa0] sm:$0xf] }
 0x3d5   : > { %8137 = vmatmul.mubr.bf16.gmra.mrb[16].mxu0 %v5741_v22  ;;  %v6216_v38 = vrot.slane %v6214_v17, 1  ;;  %v5759_v23 = vrot.slane %v5757_v4, 1  ;;  %v5922_v24 = vsel %vm1820_vm9, %v5920_v15, %v5921_v49  ;;  %v11122_v22 = vld [vmem:[#allocation3 + $0x98] ss:$0 sps:$4 sm:$0x11]   ;;  %v5769_v47 = vshll.u32 %v13734_v40, 16 }
 0x3d6   : > { %8144 = vmatprep.mubr.bf16.mxu0 %v5919_v36  ;;  %v6228_v39 = vrot.slane %v6226_v9, 1  ;;  %v5923_v36 = vrot.slane %v9115_v28, 1  ;;  %v5924_v26 = vrot.slane %v11122_v22, 1  ;;  %v5764_v0 = vrot.slane %v5762_v20, 1  ;;  %v4957_v49 = vld [vmem:[#allocation3 + $0x9c] sm:$0xe] }
 0x3d7   : > { %v6217_v43 = vsel %vm1563_vm0, %v6212_v57, %v6216_v38  ;;  %v5760_v45 = vor.u32 %v5759_v23, %v5755_v37  ;;  %v14167_v33 = vcombine.low %v4986_v30, %v14013_v12  ;;  %v6231_v38 = vshrl.u32 %v14153_v46, 16  ;;  %v11126_v12 = vld [vmem:[#allocation3 + $0xa4] ss:$0 sps:$4 sm:$0x11]  }
 0x3d8   : > { %v6229_v63 = vsel %vm1563_vm0, %v6224_v52, %v6228_v39  ;;  %v6238_v53 = vshll.u32 %v13988_v14, 16  ;;  %v5771_v15 = vrot.slane %v5769_v47, 1  ;;  %v9116_v23 = vcombine.low %v4957_v49, %v11194_v11 }
 0x3d9   : > { %v5765_v7 = vsel %vm1563_vm0, %v5760_v45, %v5764_v0  ;;  %v5925_v13 = vsel %vm1820_vm9, %v5923_v36, %v5924_v26  ;;  %v5767_v9 = vshrl.u32 %v13734_v40, 16  ;;  %v6245_v51 = vshll.u32 %v14167_v33, 16  ;;  %v4988_v26 = vld [vmem:[#allocation3 + $0xb4] sm:$0xf] }
 0x3da   : > { %v6240_v37 = vrot.slane %v6238_v53, 1  ;;  %v5927_v36 = vrot.slane %v11126_v12, 1  ;;  %v14183_v0 = vcombine.low %v4988_v26, %v14022_v48  ;;  %v6250_v49 = vshll.u32 %v14002_v60, 16  ;;  %v11129_v48 = vld [vmem:[#allocation3 + $0xb0] ss:$0 sps:$4 sm:$0x11]  }
 0x3db   : > { %8298 = vmatmul.mubr.bf16.gmra.mrb[240].mxu1 %v14104_v29  ;;  %v6233_v29 = vshll.u32 %v14153_v46, 16  ;;  %v6247_v30 = vrot.slane %v6245_v51, 1  ;;  %v4959_v26 = vld [vmem:[#allocation3 + $0xb4] sm:$0xe] }
 0x3dc   : > { %8305 = vmatprep.mubr.bf16.mxu1 %v6217_v43  ;;  %v6252_v51 = vrot.slane %v6250_v49, 1  ;;  %v4992_v49 = vld [vmem:[#allocation3 + $0xcc] sm:$0xf] }
 0x3dd   : > { %8145 = vmatmul.mubr.bf16.gmra.mrb[20].mxu0 %v5753_v5  ;;  %v6235_v57 = vrot.slane %v6233_v29, 1  ;;  %v5781_v29 = vshll.u32 %v13762_v27, 16 }
 0x3de   : > { %8152 = vmatprep.mubr.bf16.mxu0 %v5922_v24 }
 0x3df   : > { %v6236_v5 = vor.u32 %v6235_v57, %v6231_v38  ;;  %v4958_v38 = vld [vmem:[#allocation3 + $0xa8] sm:$0xe] }
 0x3e1   : > { %v6241_v40 = vsel %vm1563_vm0, %v6236_v5, %v6240_v37 }
 0x3e2   : > { %v9857_v17 = vpop.f32.mrb[180].mxu0 }
 0x3e3   : > { %v9858_v55 = vpop.f32.mrb[181].mxu0  ;;  %8306 = vmatmul.mubr.bf16.gmra.mrb[244].mxu1 %v14114_v56  ;;  %v5774_v56 = vshll.u32 %v11122_v22, 16 }
 0x3e4   : > { %v9859_v61 = vadd.f32 %v9858_v55, %v9857_v17  ;;  %v9860_v25 = vpop.f32.mrb[182].mxu0  ;;  %8313 = vmatprep.mubr.bf16.mxu1 %v6229_v63  ;;  %v5772_v17 = vor.u32 %v5771_v15, %v5767_v9  ;;  %v5783_v63 = vrot.slane %v5781_v29, 1  ;;  %v6243_v15 = vshrl.u32 %v14167_v33, 16 }
 0x3e5   : > { %v9861_v54 = vpop.f32.mrb[183].mxu0  ;;  %8153 = vmatmul.mubr.bf16.gmra.mrb[24].mxu0 %v5765_v7  ;;  %v5776_v39 = vrot.slane %v5774_v56, 1  ;;  %v5779_v7 = vshrl.u32 %v13762_v27, 16  ;;  %v6257_v56 = vshll.u32 %v14183_v0, 16  ;;  %v4990_v27 = vld [vmem:[#allocation3 + $0xc0] sm:$0xf] }
 0x3e6   : > { %v9862_v4 = vadd.f32 %v9861_v54, %v9860_v25  ;;  %8160 = vmatprep.mubr.bf16.mxu0 %v5925_v13  ;;  %v5926_v25 = vrot.slane %v9116_v23, 1  ;;  %v6248_v23 = vor.u32 %v6247_v30, %v6243_v15  ;;  %v5930_v29 = vrot.slane %v11129_v48, 1 }
 0x3e7   : > { %v5777_v53 = vsel %vm1563_vm0, %v5772_v17, %v5776_v39  ;;  %v5784_v5 = vor.u32 %v5783_v63, %v5779_v7  ;;  %v14193_v37 = vcombine.low %v4990_v27, %v14034_v16  ;;  %v5791_v39 = vshrl.u32 %v13778_v41, 16 }
 0x3e8   : > { %v9969_v43 = vpop.f32.mrb[148].mxu1  ;;  %v5928_v11 = vsel %vm1820_vm9, %v5926_v25, %v5927_v36  ;;  %v6255_v16 = vshrl.u32 %v14183_v0, 16  ;;  %v5798_v7 = vshll.u32 %v11129_v48, 16  ;;  %v6274_v27 = vshll.u32 %v14015_v50, 16 }
 0x3e9   : > { %v9970_v10 = vpop.f32.mrb[149].mxu1 }
 0x3ea   : > { %v9971_v14 = vadd.f32 %v9970_v10, %v9969_v43  ;;  %v9972_v28 = vpop.f32.mrb[150].mxu1  ;;  %v9863_v24 = vpop.f32.mrb[184].mxu0  ;;  %v11195_v43 = vld [vmem:[#allocation3 + $0xac] sm:$0xf]  ;;  %v5793_v10 = vshll.u32 %v13778_v41, 16 }
 0x3eb   : > { %v9973_v20 = vpop.f32.mrb[151].mxu1  ;;  %v9864_v52 = vpop.f32.mrb[185].mxu0  ;;  %8314 = vmatmul.mubr.bf16.gmra.mrb[248].mxu1 %v14134_v58  ;;  %v9117_v58 = vcombine.low %v4958_v38, %v11195_v43  ;;  %v11133_v41 = vld [vmem:[#allocation3 + $0xbc] ss:$0 sps:$4 sm:$0x11]  }
 0x3ec   : > { %v14176_v22 = vadd.f32 %v9971_v14, %v9859_v61  ;;  %v9974_v55 = vadd.f32 %v9973_v20, %v9972_v28  ;;  %v9865_v45 = vadd.f32 %v9864_v52, %v9863_v24  ;;  %v9866_v47 = vpop.f32.mrb[186].mxu0  ;;  %8321 = vmatprep.mubr.bf16.mxu1 %v6241_v40  ;;  %v6253_v20 = vsel %vm1563_vm0, %v6248_v23, %v6252_v51  ;;  %v4960_v51 = vld [vmem:[#allocation3 + $0xc0] sm:$0xe] }
 0x3ed   : > { %v9867_v57 = vpop.f32.mrb[187].mxu0  ;;  %8161 = vmatmul.mubr.bf16.gmra.mrb[28].mxu0 %v5777_v53  ;;  %v5929_v24 = vrot.slane %v9117_v58, 1  ;;  %v6259_v52 = vrot.slane %v6257_v56, 1  ;;  %v5795_v40 = vrot.slane %v5793_v10, 1  ;;  %v6269_v58 = vshll.u32 %v14193_v37, 16 }
 0x3ee   : > { %v14180_v54 = vadd.f32 %v9974_v55, %v9862_v4  ;;  %v9868_v61 = vadd.f32 %v9867_v57, %v9866_v47  ;;  %v5786_v4 = vshll.u32 %v11126_v12, 16  ;;  %8168 = vmatprep.mubr.bf16.mxu0 %v5928_v11  ;;  %v6262_v57 = vshll.u32 %v14007_v6, 16 }
 0x3ef   : > { %v5931_v53 = vsel %vm1820_vm9, %v5929_v24, %v5930_v29  ;;  %v6260_v43 = vor.u32 %v6259_v52, %v6255_v16  ;;  %v5805_v6 = vshll.u32 %v13794_v31, 16  ;;  %v14209_v23 = vcombine.low %v4992_v49, %v14139_v21  ;;  %v11197_v24 = vld [vmem:[#allocation3 + $0xc4] sm:$0xf] }
 0x3f0   : > { %v9975_v13 = vpop.f32.mrb[152].mxu1  ;;  %v5788_v28 = vrot.slane %v5786_v4, 1  ;;  %v6264_v11 = vrot.slane %v6262_v57, 1  ;;  %v6271_v48 = vrot.slane %v6269_v58, 1  ;;  %v9119_v29 = vcombine.low %v4960_v51, %v11197_v24 }
 0x3f1   : > { %v9976_v9 = vpop.f32.mrb[153].mxu1  ;;  %v6281_v21 = vshll.u32 %v14209_v23, 16  ;;  %v5810_v52 = vshll.u32 %v11133_v41, 16 }
 0x3f2   : > { %v9977_v60 = vadd.f32 %v9976_v9, %v9975_v13  ;;  %v9978_v14 = vpop.f32.mrb[154].mxu1  ;;  %v5789_v25 = vsel %vm1563_vm0, %v5784_v5, %v5788_v28  ;;  %v5933_v13 = vrot.slane %v11133_v41, 1  ;;  %v5800_v5 = vrot.slane %v5798_v7, 1 }
 0x3f3   : > { %v9979_v12 = vpop.f32.mrb[155].mxu1  ;;  %8322 = vmatmul.mubr.bf16.gmra.mrb[252].mxu1 %v14153_v46  ;;  %v6265_v10 = vsel %vm1563_vm0, %v6260_v43, %v6264_v11  ;;  %v5807_v9 = vrot.slane %v5805_v6, 1  ;;  %v5803_v28 = vshrl.u32 %v13794_v31, 16  ;;  %v6279_v31 = vshrl.u32 %v14209_v23, 16 }
 0x3f4   : > { %v14197_v17 = vadd.f32 %v9977_v60, %v9865_v45  ;;  %v9980_v55 = vadd.f32 %v9979_v12, %v9978_v14  ;;  %v9869_v47 = vpop.f32.mrb[188].mxu0  ;;  %8329 = vmatprep.mubr.bf16.mxu1 %v6253_v20  ;;  %v11196_v45 = vld [vmem:[#allocation3 + $0xb8] sm:$0xf]  ;;  %v6267_v14 = vshrl.u32 %v14193_v37, 16  ;;  %v6283_v57 = vrot.slane %v6281_v21, 1 }
 0x3f5   : > { %v9870_v36 = vpop.f32.mrb[189].mxu0  ;;  %v9118_v38 = vcombine.low %v4959_v26, %v11196_v45  ;;  %8169 = vmatmul.mubr.bf16.gmra.mrb[32].mxu0 %v5789_v25  ;;  %v11136_v20 = vld [vmem:[#allocation3 + $0xc8] ss:$0 sps:$4 sm:$0x11]   ;;  %v5812_v49 = vrot.slane %v5810_v52, 1 }
 0x3f6   : > { %v14203_v46 = vadd.f32 %v9980_v55, %v9868_v61  ;;  %v9871_v30 = vadd.f32 %v9870_v36, %v9869_v47  ;;  %v9872_v63 = vpop.f32.mrb[190].mxu0  ;;  %8176 = vmatprep.mubr.bf16.mxu0 %v5931_v53  ;;  %v5796_v61 = vor.u32 %v5795_v40, %v5791_v39  ;;  %v6272_v55 = vor.u32 %v6271_v48, %v6267_v14 }
 0x3f7   : > { %v9873_v15 = vpop.f32.mrb[191].mxu0  ;;  %v5932_v56 = vrot.slane %v9118_v38, 1  ;;  %v5808_v39 = vor.u32 %v5807_v9, %v5803_v28  ;;  %v5817_v40 = vshll.u32 %v13808_v8, 16  ;;  %v6276_v36 = vrot.slane %v6274_v27, 1 }
 0x3f8   : > { %v9874_v4 = vadd.f32 %v9873_v15, %v9872_v63  ;;  %v5801_v60 = vsel %vm1563_vm0, %v5796_v61, %v5800_v5  ;;  %v6286_v63 = vshll.u32 %v14136_v35, 16  ;;  %v5935_v53 = vrot.slane %v9119_v29, 1 }
 0x3f9   : > { %v5936_v41 = vrot.slane %v11136_v20, 1  ;;  %v6277_v7 = vsel %vm1563_vm0, %v6272_v55, %v6276_v36  ;;  %v5819_v6 = vrot.slane %v5817_v40, 1  ;;  %v5813_v35 = vsel %vm1563_vm0, %v5808_v39, %v5812_v49 }
 0x3fb   : > { %8330 = vmatmul.mubr.bf16.gmra.mrb[0].mxu1 %v14167_v33  ;;  %v5934_v33 = vsel %vm1820_vm9, %v5932_v56, %v5933_v13  ;;  %v6284_v56 = vor.u32 %v6283_v57, %v6279_v31  ;;  %v6288_v13 = vrot.slane %v6286_v63, 1  ;;  %v5937_v5 = vsel %vm1820_vm9, %v5935_v53, %v5936_v41  ;;  %v14753_v63 = vld [vmem:[#allocation41_spill] sm:$0xff] }
 0x3fc   : > { %8337 = vmatprep.mubr.bf16.mxu1 %v6265_v10  ;;  %v5815_v10 = vshrl.u32 %v13808_v8, 16  ;;  %v14754_v41 = vld [vmem:[#allocation25_spill] sm:$0xff] }
 0x3fd   : > { %8177 = vmatmul.mubr.bf16.gmra.mrb[36].mxu0 %v5801_v60  ;;  %v6289_v9 = vsel %vm1563_vm0, %v6284_v56, %v6288_v13 }
 0x3fe   : > { %8184 = vmatprep.mubr.bf16.mxu0 %v5934_v33  ;;  %v5820_v48 = vor.u32 %v5819_v6, %v5815_v10 }
 0x3ff   : > { %v9981_v12 = vpop.f32.mrb[156].mxu1 }
 0x400   : > { %v9982_v47 = vpop.f32.mrb[157].mxu1 }
 0x401   : > { %v9983_v25 = vadd.f32 %v9982_v47, %v9981_v12  ;;  %v9984_v50 = vpop.f32.mrb[158].mxu1 }
 0x402   : > { %v9985_v26 = vpop.f32.mrb[159].mxu1  ;;  %v9875_v16 = vpop.f32.mrb[192].mxu0 }
 0x403   : > { %v14222_v45 = vadd.f32 %v9983_v25, %v9871_v30  ;;  %v9986_v38 = vadd.f32 %v9985_v26, %v9984_v50  ;;  %v9876_v15 = vpop.f32.mrb[193].mxu0  ;;  %8338 = vmatmul.mubr.bf16.gmra.mrb[4].mxu1 %v14183_v0  ;;  %v5822_v0 = vshll.u32 %v11136_v20, 16 }
 0x404   : > { %v9877_v43 = vadd.f32 %v9876_v15, %v9875_v16  ;;  %v9878_v58 = vpop.f32.mrb[194].mxu0  ;;  %8345 = vmatprep.mubr.bf16.mxu1 %v6277_v7 }
 0x405   : > { %v14226_v61 = vadd.f32 %v9986_v38, %v9874_v4  ;;  %v9879_v11 = vpop.f32.mrb[195].mxu0  ;;  %8185 = vmatmul.mubr.bf16.gmra.mrb[40].mxu0 %v5813_v35  ;;  %v5824_v51 = vrot.slane %v5822_v0, 1 }
 0x406   : > { %v9880_v30 = vadd.f32 %v9879_v11, %v9878_v58  ;;  %8192 = vmatprep.mubr.bf16.mxu0 %v5937_v5  ;;  %v14755_v5 = vld [vmem:[#allocation43_spill] sm:$0xff] }
 0x407   : > { %v5825_v4 = vsel %vm1563_vm0, %v5820_v48, %v5824_v51 }
 0x40b   : > { %8346 = vmatmul.mubr.bf16.gmra.mrb[8].mxu1 %v14193_v37  ;;  %v14752_v37 = vld [vmem:[#allocation40_spill] sm:$0xff] }
 0x40c   : > { %8353 = vmatprep.mubr.bf16.mxu1 %v6289_v9  ;;  %v14756_v9 = vld [vmem:[#allocation47_spill] sm:$0xff] }
 0x40d   : > { %8193 = vmatmul.mubr.bf16.gmra.mrb[44].mxu0 %v5825_v4 }
 0x40e   : > { %v9987_v60 = vpop.f32.mrb[160].mxu1 }
 0x40f   : > { %v9988_v14 = vpop.f32.mrb[161].mxu1 }
 0x410   : > { %v9989_v27 = vadd.f32 %v9988_v14, %v9987_v60  ;;  %v9990_v21 = vpop.f32.mrb[162].mxu1  ;;  %v9881_v24 = vpop.f32.mrb[196].mxu0 }
 0x411   : > { %v9991_v28 = vpop.f32.mrb[163].mxu1  ;;  %v9882_v33 = vpop.f32.mrb[197].mxu0 }
 0x412   : > { %v14234_v29 = vadd.f32 %v9989_v27, %v9877_v43  ;;  %v9992_v8 = vadd.f32 %v9991_v28, %v9990_v21  ;;  %v9883_v12 = vadd.f32 %v9882_v33, %v9881_v24  ;;  %v9884_v20 = vpop.f32.mrb[198].mxu0 }
 0x413   : > { %8354 = vmatmul.mubr.bf16.gmra.mrb[12].mxu1 %v14209_v23  ;;  %v9885_v55 = vpop.f32.mrb[199].mxu0 }
 0x414   : > { %v14237_v52 = vadd.f32 %v9992_v8, %v9880_v30  ;;  %10419 = vmatprep.mubr.bf16.mxu1 %v14752_v37  ;;  %v9886_v47 = vadd.f32 %v9885_v55, %v9884_v20  ;;  %v14757_v20 = vld [vmem:[#allocation45_spill] sm:$0xff] }
 0x416   : > { %v9993_v39 = vpop.f32.mrb[164].mxu1 }
 0x417   : > { %v9994_v40 = vpop.f32.mrb[165].mxu1 }
 0x418   : > { %v9995_v25 = vadd.f32 %v9994_v40, %v9993_v39  ;;  %v9996_v50 = vpop.f32.mrb[166].mxu1  ;;  %v9887_v26 = vpop.f32.mrb[200].mxu0  ;;  %v14758_v39 = vld [vmem:[#allocation44_spill] sm:$0xff] }
 0x419   : > { %v9997_v36 = vpop.f32.mrb[167].mxu1  ;;  %v9888_v57 = vpop.f32.mrb[201].mxu0 }
 0x41a   : > { %v14240_v16 = vadd.f32 %v9995_v25, %v9883_v12  ;;  %v9998_v31 = vadd.f32 %v9997_v36, %v9996_v50  ;;  %v9889_v23 = vadd.f32 %v9888_v57, %v9887_v26  ;;  %v9890_v38 = vpop.f32.mrb[202].mxu0 }
 0x41b   : > { %10420 = vmatmul.mubr.bf16.vlgmr.msra.gmra.mrb[112].mxu1 %v14753_v63  ;;  %v9891_v15 = vpop.f32.mrb[203].mxu0 }
 0x41c   : > { %v14243_v53 = vadd.f32 %v9998_v31, %v9886_v47  ;;  %10423 = vmatprep.mubr.bf16.mxu1 %v14754_v41  ;;  %v9892_v49 = vadd.f32 %v9891_v15, %v9890_v38 }
 0x41e   : > { %v9999_v7 = vpop.f32.mrb[168].mxu1 }
 0x41f   : > { %v10000_v43 = vpop.f32.mrb[169].mxu1 }
 0x420   : > { %v10001_v58 = vadd.f32 %v10000_v43, %v9999_v7  ;;  %v10002_v6 = vpop.f32.mrb[170].mxu1  ;;  %v9893_v35 = vpop.f32.mrb[204].mxu0 }
 0x421   : > { %v10003_v11 = vpop.f32.mrb[171].mxu1  ;;  %v9894_v13 = vpop.f32.mrb[205].mxu0 }
 0x422   : > { %v14246_v30 = vadd.f32 %v10001_v58, %v9889_v23  ;;  %v10004_v56 = vadd.f32 %v10003_v11, %v10002_v6  ;;  %v9895_v10 = vadd.f32 %v9894_v13, %v9893_v35  ;;  %v9896_v0 = vpop.f32.mrb[206].mxu0 }
 0x423   : > { %10424 = vmatmul.mubr.bf16.gmra.mrb[116].mxu1 %v14755_v5  ;;  %v9897_v51 = vpop.f32.mrb[207].mxu0 }
 0x424   : > { %v14249_v48 = vadd.f32 %v10004_v56, %v9892_v49  ;;  %10427 = vmatprep.mubr.bf16.mxu1 %v14756_v9  ;;  %v9898_v4 = vadd.f32 %v9897_v51, %v9896_v0 }
 0x426   : > { %v10005_v60 = vpop.f32.mrb[172].mxu1 }
 0x427   : > { %v10006_v14 = vpop.f32.mrb[173].mxu1 }
 0x428   : > { %v10007_v27 = vadd.f32 %v10006_v14, %v10005_v60  ;;  %v10008_v21 = vpop.f32.mrb[174].mxu1  ;;  %v9899_v24 = vpop.f32.mrb[208].mxu0 }
 0x429   : > { %v10009_v28 = vpop.f32.mrb[175].mxu1  ;;  %v9900_v12 = vpop.f32.mrb[209].mxu0 }
 0x42a   : > { %v14252_v8 = vadd.f32 %v10007_v27, %v9895_v10  ;;  %v10010_v33 = vadd.f32 %v10009_v28, %v10008_v21  ;;  %v9901_v37 = vadd.f32 %v9900_v12, %v9899_v24  ;;  %v9902_v55 = vpop.f32.mrb[210].mxu0 }
 0x42b   : > { %10428 = vmatmul.mubr.bf16.gmra.mrb[120].mxu1 %v14757_v20  ;;  %v9903_v40 = vpop.f32.mrb[211].mxu0 }
 0x42c   : > { %v14255_v47 = vadd.f32 %v10010_v33, %v9898_v4  ;;  %10431 = vmatprep.mubr.bf16.mxu1 %v14758_v39  ;;  %v9904_v25 = vadd.f32 %v9903_v40, %v9902_v55 }
 0x42e   : > { %v10011_v50 = vpop.f32.mrb[176].mxu1 }
 0x42f   : > { %v10012_v36 = vpop.f32.mrb[177].mxu1 }
 0x430   : > { %v10013_v26 = vadd.f32 %v10012_v36, %v10011_v50  ;;  %v10014_v31 = vpop.f32.mrb[178].mxu1  ;;  %v9905_v63 = vpop.f32.mrb[212].mxu0 }
 0x431   : > { %v10015_v57 = vpop.f32.mrb[179].mxu1  ;;  %v9906_v41 = vpop.f32.mrb[213].mxu0 }
 0x432   : > { %v14258_v23 = vadd.f32 %v10013_v26, %v9901_v37  ;;  %v10016_v38 = vadd.f32 %v10015_v57, %v10014_v31  ;;  %v9907_v15 = vadd.f32 %v9906_v41, %v9905_v63  ;;  %v9908_v49 = vpop.f32.mrb[214].mxu0 }
 0x433   : > { %10432 = vmatmul.mubr.bf16.gmra.mrb[124].mxu1 %v14037_v44  ;;  %v9909_v43 = vpop.f32.mrb[215].mxu0 }
 0x434   : > { %v14261_v7 = vadd.f32 %v10016_v38, %v9904_v25  ;;  %10435 = vmatprep.mubr.bf16.mxu1 %v14043_v34  ;;  %v9910_v58 = vadd.f32 %v9909_v43, %v9908_v49 }
 0x436   : > { %v10017_v6 = vpop.f32.mrb[180].mxu1 }
 0x437   : > { %v10018_v11 = vpop.f32.mrb[181].mxu1 }
 0x438   : > { %v10019_v35 = vadd.f32 %v10018_v11, %v10017_v6  ;;  %v10020_v56 = vpop.f32.mrb[182].mxu1  ;;  %v9911_v5 = vpop.f32.mrb[216].mxu0 }
 0x439   : > { %v10021_v13 = vpop.f32.mrb[183].mxu1  ;;  %v9912_v9 = vpop.f32.mrb[217].mxu0 }
 0x43a   : > { %v14264_v10 = vadd.f32 %v10019_v35, %v9907_v15  ;;  %v10022_v0 = vadd.f32 %v10021_v13, %v10020_v56  ;;  %v9913_v44 = vadd.f32 %v9912_v9, %v9911_v5  ;;  %v9914_v51 = vpop.f32.mrb[218].mxu0 }
 0x43b   : > { %10436 = vmatmul.mubr.bf16.gmra.mrb[128].mxu1 %v14049_v62  ;;  %v9915_v34 = vpop.f32.mrb[219].mxu0 }
 0x43c   : > { %v14267_v4 = vadd.f32 %v10022_v0, %v9910_v58  ;;  %10439 = vmatprep.mubr.bf16.mxu1 %v14054_v59  ;;  %v9916_v60 = vadd.f32 %v9915_v34, %v9914_v51 }
 0x43e   : > { %v10023_v14 = vpop.f32.mrb[184].mxu1 }
 0x43f   : > { %v10024_v27 = vpop.f32.mrb[185].mxu1 }
 0x440   : > { %v10025_v21 = vadd.f32 %v10024_v27, %v10023_v14  ;;  %v10026_v28 = vpop.f32.mrb[186].mxu1  ;;  %v9917_v33 = vpop.f32.mrb[220].mxu0 }
 0x441   : > { %v10027_v24 = vpop.f32.mrb[187].mxu1  ;;  %v9918_v37 = vpop.f32.mrb[221].mxu0 }
 0x442   : > { %v14270_v12 = vadd.f32 %v10025_v21, %v9913_v44  ;;  %v10028_v20 = vadd.f32 %v10027_v24, %v10026_v28  ;;  %v9919_v62 = vadd.f32 %v9918_v37, %v9917_v33  ;;  %v9920_v55 = vpop.f32.mrb[222].mxu0 }
 0x443   : > { %10440 = vmatmul.mubr.bf16.gmra.mrb[132].mxu1 %v14065_v2  ;;  %v9921_v59 = vpop.f32.mrb[223].mxu0 }
 0x444   : > { %v14273_v39 = vadd.f32 %v10028_v20, %v9916_v60  ;;  %10443 = vmatprep.mubr.bf16.mxu1 %v14072_v19  ;;  %v9922_v40 = vadd.f32 %v9921_v59, %v9920_v55 }
 0x446   : > { %v10029_v25 = vpop.f32.mrb[188].mxu1 }
 0x447   : > { %v10030_v50 = vpop.f32.mrb[189].mxu1 }
 0x448   : > { %v10031_v36 = vadd.f32 %v10030_v50, %v10029_v25  ;;  %v10032_v26 = vpop.f32.mrb[190].mxu1  ;;  %v9923_v57 = vpop.f32.mrb[224].mxu0 }
 0x449   : > { %v10033_v31 = vpop.f32.mrb[191].mxu1  ;;  %v9924_v41 = vpop.f32.mrb[225].mxu0 }
 0x44a   : > { %v14276_v63 = vadd.f32 %v10031_v36, %v9919_v62  ;;  %v10034_v38 = vadd.f32 %v10033_v31, %v10032_v26  ;;  %v9925_v2 = vadd.f32 %v9924_v41, %v9923_v57  ;;  %v9926_v15 = vpop.f32.mrb[226].mxu0 }
 0x44b   : > { %10444 = vmatmul.mubr.bf16.gmra.mrb[136].mxu1 %v14075_v32  ;;  %v9927_v19 = vpop.f32.mrb[227].mxu0 }
 0x44c   : > { %v14279_v49 = vadd.f32 %v10034_v38, %v9922_v40  ;;  %10447 = vmatprep.mubr.bf16.mxu1 %v14084_v42  ;;  %v9928_v43 = vadd.f32 %v9927_v19, %v9926_v15 }
 0x44e   : > { %v10035_v58 = vpop.f32.mrb[192].mxu1 }
 0x44f   : > { %v10036_v6 = vpop.f32.mrb[193].mxu1 }
 0x450   : > { %v10037_v11 = vadd.f32 %v10036_v6, %v10035_v58  ;;  %v10038_v35 = vpop.f32.mrb[194].mxu1  ;;  %v9929_v13 = vpop.f32.mrb[228].mxu0 }
 0x451   : > { %v10039_v56 = vpop.f32.mrb[195].mxu1  ;;  %v9930_v9 = vpop.f32.mrb[229].mxu0 }
 0x452   : > { %v14282_v5 = vadd.f32 %v10037_v11, %v9925_v2  ;;  %v10040_v0 = vadd.f32 %v10039_v56, %v10038_v35  ;;  %v9931_v32 = vadd.f32 %v9930_v9, %v9929_v13  ;;  %v9932_v44 = vpop.f32.mrb[230].mxu0 }
 0x453   : > { %10448 = vmatmul.mubr.bf16.gmra.mrb[140].mxu1 %v14150_v3  ;;  %v9933_v34 = vpop.f32.mrb[231].mxu0 }
 0x454   : > { %v14285_v51 = vadd.f32 %v10040_v0, %v9928_v43  ;;  %v9934_v42 = vadd.f32 %v9933_v34, %v9932_v44 }
 0x456   : > { %v10041_v60 = vpop.f32.mrb[196].mxu1 }
 0x457   : > { %v10042_v14 = vpop.f32.mrb[197].mxu1 }
 0x458   : > { %v10043_v27 = vadd.f32 %v10042_v14, %v10041_v60  ;;  %v10044_v21 = vpop.f32.mrb[198].mxu1  ;;  %v9935_v24 = vpop.f32.mrb[232].mxu0 }
 0x459   : > { %v10045_v28 = vpop.f32.mrb[199].mxu1  ;;  %v9936_v37 = vpop.f32.mrb[233].mxu0 }
 0x45a   : > { %v14287_v33 = vadd.f32 %v10043_v27, %v9931_v32  ;;  %v10046_v20 = vadd.f32 %v10045_v28, %v10044_v21  ;;  %v9937_v62 = vadd.f32 %v9936_v37, %v9935_v24  ;;  %v9938_v55 = vpop.f32.mrb[234].mxu0 }
 0x45b   : > { %v9939_v3 = vpop.f32.mrb[235].mxu0 }
 0x45c   : > { %v14289_v59 = vadd.f32 %v10046_v20, %v9934_v42  ;;  %v9940_v40 = vadd.f32 %v9939_v3, %v9938_v55 }
 0x45e   : > { %v10047_v25 = vpop.f32.mrb[200].mxu1 }
 0x45f   : > { %v10048_v50 = vpop.f32.mrb[201].mxu1 }
 0x460   : > { %v10049_v36 = vadd.f32 %v10048_v50, %v10047_v25  ;;  %v10050_v26 = vpop.f32.mrb[202].mxu1  ;;  %v9941_v57 = vpop.f32.mrb[236].mxu0 }
 0x461   : > { %v10051_v31 = vpop.f32.mrb[203].mxu1  ;;  %v9942_v2 = vpop.f32.mrb[237].mxu0 }
 0x462   : > { %v14291_v38 = vadd.f32 %v10049_v36, %v9937_v62  ;;  %v10052_v41 = vadd.f32 %v10051_v31, %v10050_v26  ;;  %v9943_v15 = vadd.f32 %v9942_v2, %v9941_v57  ;;  %v9944_v19 = vpop.f32.mrb[238].mxu0 }
 0x463   : > { %v9945_v58 = vpop.f32.mrb[239].mxu0 }
 0x464   : > { %v14293_v43 = vadd.f32 %v10052_v41, %v9940_v40  ;;  %v9946_v6 = vadd.f32 %v9945_v58, %v9944_v19 }
 0x466   : > { %v10053_v11 = vpop.f32.mrb[204].mxu1 }
 0x467   : > { %v10054_v35 = vpop.f32.mrb[205].mxu1 }
 0x468   : > { %v10055_v56 = vadd.f32 %v10054_v35, %v10053_v11  ;;  %v10056_v13 = vpop.f32.mrb[206].mxu1  ;;  %v10075_v9 = vpop.f32.mrb[240].mxu0 }
 0x469   : > { %v10057_v0 = vpop.f32.mrb[207].mxu1  ;;  %v10076_v34 = vpop.f32.mrb[241].mxu0 }
 0x46a   : > { %v14295_v32 = vadd.f32 %v10055_v56, %v9943_v15  ;;  %v10058_v44 = vadd.f32 %v10057_v0, %v10056_v13  ;;  %v10077_v42 = vadd.f32 %v10076_v34, %v10075_v9  ;;  %v10078_v60 = vpop.f32.mrb[242].mxu0 }
 0x46b   : > { %v10079_v27 = vpop.f32.mrb[243].mxu0 }
 0x46c   : > { %v14297_v14 = vadd.f32 %v10058_v44, %v9946_v6  ;;  %v10472_v21 = vadd.f32 %v14119_v18, %v10077_v42  ;;  %v10080_v28 = vadd.f32 %v10079_v27, %v10078_v60 }
 0x46e   : > { %v10187_v24 = vpop.f32.mrb[208].mxu1  ;;  %v10480_v37 = vadd.f32 %v14125_v1, %v10080_v28 }
 0x46f   : > { %v10188_v20 = vpop.f32.mrb[209].mxu1 }
 0x470   : > { %v10189_v62 = vadd.f32 %v10188_v20, %v10187_v24  ;;  %v10190_v55 = vpop.f32.mrb[210].mxu1  ;;  %v10081_v40 = vpop.f32.mrb[244].mxu0 }
 0x471   : > { %v10191_v3 = vpop.f32.mrb[211].mxu1  ;;  %v10082_v50 = vpop.f32.mrb[245].mxu0 }
 0x472   : > { %v10192_v25 = vadd.f32 %v10191_v3, %v10190_v55  ;;  %v14301_v36 = vadd.f32 %v10472_v21, %v10189_v62  ;;  %v10083_v26 = vadd.f32 %v10082_v50, %v10081_v40  ;;  %v10084_v31 = vpop.f32.mrb[246].mxu0 }
 0x473   : > { %v10085_v57 = vpop.f32.mrb[247].mxu0 }
 0x474   : > { %v14303_v41 = vadd.f32 %v10480_v37, %v10192_v25  ;;  %v10468_v18 = vadd.f32 %v14176_v22, %v10083_v26  ;;  %v10086_v2 = vadd.f32 %v10085_v57, %v10084_v31 }
 0x476   : > { %v10193_v15 = vpop.f32.mrb[212].mxu1  ;;  %v10476_v1 = vadd.f32 %v14180_v54, %v10086_v2 }
 0x477   : > { %v10194_v19 = vpop.f32.mrb[213].mxu1 }
 0x478   : > { %v10195_v58 = vadd.f32 %v10194_v19, %v10193_v15  ;;  %v10196_v6 = vpop.f32.mrb[214].mxu1  ;;  %v10087_v35 = vpop.f32.mrb[248].mxu0 }
 0x479   : > { %v10197_v11 = vpop.f32.mrb[215].mxu1  ;;  %v10088_v13 = vpop.f32.mrb[249].mxu0 }
 0x47a   : > { %v10198_v56 = vadd.f32 %v10197_v11, %v10196_v6  ;;  %v14307_v0 = vadd.f32 %v10468_v18, %v10195_v58  ;;  %v10089_v9 = vadd.f32 %v10088_v13, %v10087_v35  ;;  %v10090_v44 = vpop.f32.mrb[250].mxu0 }
 0x47b   : > { %v10091_v34 = vpop.f32.mrb[251].mxu0 }
 0x47c   : > { %v14309_v42 = vadd.f32 %v10476_v1, %v10198_v56  ;;  %v10488_v22 = vadd.f32 %v14197_v17, %v10089_v9  ;;  %v10092_v60 = vadd.f32 %v10091_v34, %v10090_v44 }
 0x47e   : > { %v10199_v27 = vpop.f32.mrb[216].mxu1  ;;  %v10496_v54 = vadd.f32 %v14203_v46, %v10092_v60 }
 0x47f   : > { %v10200_v21 = vpop.f32.mrb[217].mxu1 }
 0x480   : > { %v10201_v28 = vadd.f32 %v10200_v21, %v10199_v27  ;;  %v10202_v24 = vpop.f32.mrb[218].mxu1  ;;  %v10093_v37 = vpop.f32.mrb[252].mxu0 }
 0x481   : > { %v10203_v20 = vpop.f32.mrb[219].mxu1  ;;  %v10094_v55 = vpop.f32.mrb[253].mxu0 }
 0x482   : > { %v10204_v62 = vadd.f32 %v10203_v20, %v10202_v24  ;;  %v14313_v3 = vadd.f32 %v10488_v22, %v10201_v28  ;;  %v10095_v40 = vadd.f32 %v10094_v55, %v10093_v37  ;;  %v10096_v25 = vpop.f32.mrb[254].mxu0 }
 0x483   : > { %v10097_v50 = vpop.f32.mrb[255].mxu0 }
 0x484   : > { %v14315_v26 = vadd.f32 %v10496_v54, %v10204_v62  ;;  %v10484_v17 = vadd.f32 %v14222_v45, %v10095_v40  ;;  %v10098_v31 = vadd.f32 %v10097_v50, %v10096_v25 }
 0x486   : > { %v10205_v57 = vpop.f32.mrb[220].mxu1  ;;  %v10492_v46 = vadd.f32 %v14226_v61, %v10098_v31 }
 0x487   : > { %v10206_v18 = vpop.f32.mrb[221].mxu1 }
 0x488   : > { %v10207_v2 = vadd.f32 %v10206_v18, %v10205_v57  ;;  %v10208_v15 = vpop.f32.mrb[222].mxu1  ;;  %v10099_v1 = vpop.f32.mrb[0].mxu0 }
 0x489   : > { %v10209_v19 = vpop.f32.mrb[223].mxu1  ;;  %v10100_v6 = vpop.f32.mrb[1].mxu0 }
 0x48a   : > { %v10210_v58 = vadd.f32 %v10209_v19, %v10208_v15  ;;  %v14319_v11 = vadd.f32 %v10484_v17, %v10207_v2  ;;  %v10101_v35 = vadd.f32 %v10100_v6, %v10099_v1  ;;  %v10102_v56 = vpop.f32.mrb[2].mxu0 }
 0x48b   : > { %v10103_v13 = vpop.f32.mrb[3].mxu0 }
 0x48c   : > { %v14321_v9 = vadd.f32 %v10492_v46, %v10210_v58  ;;  %v10504_v45 = vadd.f32 %v14234_v29, %v10101_v35  ;;  %v10104_v44 = vadd.f32 %v10103_v13, %v10102_v56 }
 0x48e   : > { %v10211_v34 = vpop.f32.mrb[224].mxu1  ;;  %v10512_v61 = vadd.f32 %v14237_v52, %v10104_v44 }
 0x48f   : > { %v10212_v22 = vpop.f32.mrb[225].mxu1 }
 0x490   : > { %v10213_v60 = vadd.f32 %v10212_v22, %v10211_v34  ;;  %v10214_v27 = vpop.f32.mrb[226].mxu1  ;;  %v10105_v54 = vpop.f32.mrb[4].mxu0 }
 0x491   : > { %v10215_v21 = vpop.f32.mrb[227].mxu1  ;;  %v10106_v24 = vpop.f32.mrb[5].mxu0 }
 0x492   : > { %v10216_v28 = vadd.f32 %v10215_v21, %v10214_v27  ;;  %v14325_v20 = vadd.f32 %v10504_v45, %v10213_v60  ;;  %v10107_v37 = vadd.f32 %v10106_v24, %v10105_v54  ;;  %v10108_v62 = vpop.f32.mrb[6].mxu0 }
 0x493   : > { %v10109_v55 = vpop.f32.mrb[7].mxu0 }
 0x494   : > { %v14327_v40 = vadd.f32 %v10512_v61, %v10216_v28  ;;  %v10500_v29 = vadd.f32 %v14240_v16, %v10107_v37  ;;  %v10110_v25 = vadd.f32 %v10109_v55, %v10108_v62 }
 0x496   : > { %v10217_v50 = vpop.f32.mrb[228].mxu1  ;;  %v10508_v52 = vadd.f32 %v14243_v53, %v10110_v25 }
 0x497   : > { %v10218_v17 = vpop.f32.mrb[229].mxu1 }
 0x498   : > { %v10219_v31 = vadd.f32 %v10218_v17, %v10217_v50  ;;  %v10220_v57 = vpop.f32.mrb[230].mxu1  ;;  %v10111_v46 = vpop.f32.mrb[8].mxu0 }
 0x499   : > { %v10221_v18 = vpop.f32.mrb[231].mxu1  ;;  %v10112_v15 = vpop.f32.mrb[9].mxu0 }
 0x49a   : > { %v10222_v2 = vadd.f32 %v10221_v18, %v10220_v57  ;;  %v14331_v19 = vadd.f32 %v10500_v29, %v10219_v31  ;;  %v10113_v1 = vadd.f32 %v10112_v15, %v10111_v46  ;;  %v10114_v58 = vpop.f32.mrb[10].mxu0 }
 0x49b   : > { %v10115_v6 = vpop.f32.mrb[11].mxu0 }
 0x49c   : > { %v14333_v35 = vadd.f32 %v10508_v52, %v10222_v2  ;;  %v10520_v16 = vadd.f32 %v14246_v30, %v10113_v1  ;;  %v10116_v56 = vadd.f32 %v10115_v6, %v10114_v58 }
 0x49e   : > { %v10223_v13 = vpop.f32.mrb[232].mxu1  ;;  %v10528_v53 = vadd.f32 %v14249_v48, %v10116_v56 }
 0x49f   : > { %v10224_v45 = vpop.f32.mrb[233].mxu1 }
 0x4a0   : > { %v10225_v44 = vadd.f32 %v10224_v45, %v10223_v13  ;;  %v10226_v34 = vpop.f32.mrb[234].mxu1  ;;  %v10117_v61 = vpop.f32.mrb[12].mxu0 }
 0x4a1   : > { %v10227_v22 = vpop.f32.mrb[235].mxu1  ;;  %v10118_v27 = vpop.f32.mrb[13].mxu0 }
 0x4a2   : > { %v10228_v60 = vadd.f32 %v10227_v22, %v10226_v34  ;;  %v14337_v21 = vadd.f32 %v10520_v16, %v10225_v44  ;;  %v10119_v54 = vadd.f32 %v10118_v27, %v10117_v61  ;;  %v10120_v28 = vpop.f32.mrb[14].mxu0 }
 0x4a3   : > { %v10121_v24 = vpop.f32.mrb[15].mxu0 }
 0x4a4   : > { %v14339_v37 = vadd.f32 %v10528_v53, %v10228_v60  ;;  %v10516_v30 = vadd.f32 %v14252_v8, %v10119_v54  ;;  %v10122_v62 = vadd.f32 %v10121_v24, %v10120_v28 }
 0x4a6   : > { %v10229_v55 = vpop.f32.mrb[236].mxu1  ;;  %v10524_v48 = vadd.f32 %v14255_v47, %v10122_v62 }
 0x4a7   : > { %v10230_v29 = vpop.f32.mrb[237].mxu1 }
 0x4a8   : > { %v10231_v25 = vadd.f32 %v10230_v29, %v10229_v55  ;;  %v10232_v50 = vpop.f32.mrb[238].mxu1  ;;  %v10123_v52 = vpop.f32.mrb[16].mxu0 }
 0x4a9   : > { %v10233_v17 = vpop.f32.mrb[239].mxu1  ;;  %v10124_v57 = vpop.f32.mrb[17].mxu0 }
 0x4aa   : > { %v10234_v31 = vadd.f32 %v10233_v17, %v10232_v50  ;;  %v14343_v18 = vadd.f32 %v10516_v30, %v10231_v25  ;;  %v10125_v46 = vadd.f32 %v10124_v57, %v10123_v52  ;;  %v10126_v2 = vpop.f32.mrb[18].mxu0 }
 0x4ab   : > { %v10127_v15 = vpop.f32.mrb[19].mxu0 }
 0x4ac   : > { %v14345_v8 = vadd.f32 %v10524_v48, %v10234_v31  ;;  %v10536_v1 = vadd.f32 %v14258_v23, %v10125_v46  ;;  %v10128_v58 = vadd.f32 %v10127_v15, %v10126_v2 }
 0x4ae   : > { %v10235_v47 = vpop.f32.mrb[240].mxu1  ;;  %v10544_v16 = vadd.f32 %v14261_v7, %v10128_v58 }
 0x4af   : > { %v10236_v6 = vpop.f32.mrb[241].mxu1 }
 0x4b0   : > { %v10237_v56 = vadd.f32 %v10236_v6, %v10235_v47  ;;  %v10238_v13 = vpop.f32.mrb[242].mxu1  ;;  %v10129_v53 = vpop.f32.mrb[20].mxu0 }
 0x4b1   : > { %v10239_v45 = vpop.f32.mrb[243].mxu1  ;;  %v10130_v44 = vpop.f32.mrb[21].mxu0 }
 0x4b2   : > { %v10240_v23 = vadd.f32 %v10239_v45, %v10238_v13  ;;  %v14360_v34 = vadd.f32 %v10536_v1, %v10237_v56 }
 0x4b3   : > { %11325 = shalt.err (!%p11322_p4)
}
 0x4b4   : > { %s11326_s17 = scalar_lea.hbm %s14355_s20, 4096  ;;  %s11330_s26 = scalar_lea.hbm %s14564_s9, 8192 }
 0x4b5   : > { %p11327_p9 = scmp.ne.s32.totalorder %s14355_s20, %s11326_s17  ;;  %p11331_p8 = scmp.lt.u32.totalorder %s14355_s20, %s14564_s9 }
 0x4b6   : > { %p11332_p13 = scmp.lt.u32.totalorder %s11330_s26, %s11326_s17  ;;  %p11334_p10 = scmp.lt.u32.totalorder %s11326_s17, %s14355_s20 }
 0x4b7   : > { %p11328_p0 = pnand %p11327_p9, %p11637_p5 }
 0x4b8   : > { %p11333_p6 = por %p11332_p13, %p11331_p8 }
 0x4b9   : > { %p11329_p11 = pneg %p11328_p0 }
 0x4ba   : > { %p11335_p3 = por %p11334_p10, %p11333_p6 }
 0x4bc   : > { %p11336_p7 = pnand %p11335_p3, %p11329_p11 }
 0x4be   : > { %11339 = shalt.err (!%p11336_p7)
}
 0x4bf   : > { %s11430_s25 = smov 128   ;;  %s11431_s15 = smov 8   ;;  %v10131_v7 = vadd.f32 %v10130_v44, %v10129_v53  ;;  %v10132_v22 = vpop.f32.mrb[22].mxu0  ;;  %v14389_v60 = vadd.f32 %v10544_v16, %v10240_v23  ;;  %v10241_v28 = vpop.f32.mrb[244].mxu1 }
 0x4c0   : > { %10642 = dma.vmem_to_hbm [thread:$0]  (%p11637_p5), %s14358_s8, 4096, %s14355_s20, %s8561_s30, %s11430_s25, %s11430_s25, %s11431_s15   ;;  %v10133_v61 = vpop.f32.mrb[23].mxu0  ;;  %v10242_v24 = vpop.f32.mrb[245].mxu1 }
 0x4c1   : > { %v10532_v27 = vadd.f32 %v14264_v10, %v10131_v7  ;;  %v10134_v54 = vadd.f32 %v10133_v61, %v10132_v22  ;;  %v10243_v62 = vadd.f32 %v10242_v24, %v10241_v28  ;;  %v10244_v55 = vpop.f32.mrb[246].mxu1  ;;  %v10135_v48 = vpop.f32.mrb[24].mxu0  ;;  %s14436_s20 = scalar_lea.vmem [#allocation12], %s11688_s24  ;;  %s14759_s19 = sld [smem:[#allocation51_spill]] }
 0x4c2   : > { %v10245_v29 = vpop.f32.mrb[247].mxu1  ;;  %v10136_v50 = vpop.f32.mrb[25].mxu0  ;;  %s8574_s24 = sshll.u32 %s14436_s20, 4  ;;  %s8556_s18 = scalar_lea.sflag [#allocation6], %s11685_s29  ;;  %s14506_s24 = int_to_ptr.vmem [resolvable:$true] %s8574_s24 }
 0x4c3   : > { %v10540_v30 = vadd.f32 %v14267_v4, %v10134_v54  ;;  %v10246_v25 = vadd.f32 %v10245_v29, %v10244_v55  ;;  %v14393_v17 = vadd.f32 %v10532_v27, %v10243_v62  ;;  %v10137_v52 = vadd.f32 %v10136_v50, %v10135_v48  ;;  %v10138_v31 = vpop.f32.mrb[26].mxu0  ;;  %v10247_v15 = vpop.f32.mrb[248].mxu1  ;;  %s11340_s23 = scalar_lea.vmem %s14506_s24, 4096  ;;  %s11432_s26 = smov [#allocation12]  }
 0x4c4   : > { %v10139_v57 = vpop.f32.mrb[27].mxu0  ;;  %v10248_v1 = vpop.f32.mrb[249].mxu1  ;;  %p11341_p12 = scmp.ne.s32.totalorder %s14506_s24, %s11340_s23  ;;  %s11344_s13 = sshll.u32 %s11432_s26, 4  ;;  %s11345_s13 = int_to_ptr.vmem [resolvable:$false] %s11344_s13 }
 0x4c5   : > { %v14395_v46 = vadd.f32 %v10540_v30, %v10246_v25  ;;  %v10552_v10 = vadd.f32 %v14270_v12, %v10137_v52  ;;  %v10140_v2 = vadd.f32 %v10139_v57, %v10138_v31  ;;  %v10249_v58 = vadd.f32 %v10248_v1, %v10247_v15  ;;  %v10250_v47 = vpop.f32.mrb[250].mxu1  ;;  %v10141_v16 = vpop.f32.mrb[28].mxu0  ;;  %s11346_s21 = scalar_lea.vmem %s11345_s13, 8192  ;;  %p11347_p4 = scmp.lt.s32.totalorder %s14506_s24, %s11345_s13 }
 0x4c6   : > { %v10251_v6 = vpop.f32.mrb[251].mxu1  ;;  %v10142_v13 = vpop.f32.mrb[29].mxu0  ;;  %p11342_p1 = pnand %p11341_p12, %p11637_p5  ;;  %p11348_p9 = scmp.lt.s32.totalorder %s11346_s21, %s11340_s23 }
 0x4c7   : > { %v10560_v4 = vadd.f32 %v14273_v39, %v10140_v2  ;;  %v10252_v56 = vadd.f32 %v10251_v6, %v10250_v47  ;;  %v14399_v45 = vadd.f32 %v10552_v10, %v10249_v58  ;;  %v10143_v53 = vadd.f32 %v10142_v13, %v10141_v16  ;;  %v10144_v23 = vpop.f32.mrb[30].mxu0  ;;  %v10253_v61 = vpop.f32.mrb[252].mxu1  ;;  %s14504_s17 = scalar_lea.hbm %s14759_s19, %s9337_s22 }
 0x4c8   : > { %v10145_v44 = vpop.f32.mrb[31].mxu0  ;;  %v10254_v27 = vpop.f32.mrb[253].mxu1  ;;  %p11343_p2 = pneg %p11342_p1  ;;  %p11349_p0 = por %p11348_p9, %p11347_p4 }
 0x4c9   : > { %v14401_v7 = vadd.f32 %v10560_v4, %v10252_v56  ;;  %v10548_v12 = vadd.f32 %v14276_v63, %v10143_v53  ;;  %v10146_v22 = vadd.f32 %v10145_v44, %v10144_v23  ;;  %v10255_v54 = vadd.f32 %v10254_v27, %v10253_v61  ;;  %v10256_v28 = vpop.f32.mrb[254].mxu1  ;;  %v10147_v30 = vpop.f32.mrb[32].mxu0 }
 0x4ca   : > { %v10257_v24 = vpop.f32.mrb[255].mxu1  ;;  %v10148_v55 = vpop.f32.mrb[33].mxu0  ;;  %p11350_p11 = pnand %p11349_p0, %p11343_p2 }
 0x4cb   : > { %v10556_v39 = vadd.f32 %v14279_v49, %v10146_v22  ;;  %v10258_v62 = vadd.f32 %v10257_v24, %v10256_v28  ;;  %v14405_v29 = vadd.f32 %v10548_v12, %v10255_v54  ;;  %v10149_v48 = vadd.f32 %v10148_v55, %v10147_v30  ;;  %v10150_v25 = vpop.f32.mrb[34].mxu0 }
 0x4cc   : > { %v10151_v50 = vpop.f32.mrb[35].mxu0 }
 0x4cd   : > { %v14407_v52 = vadd.f32 %v10556_v39, %v10258_v62  ;;  %v10568_v63 = vadd.f32 %v14282_v5, %v10149_v48  ;;  %v10152_v31 = vadd.f32 %v10151_v50, %v10150_v25 }
 0x4ce   : > { %v10259_v57 = vpop.f32.mrb[0].mxu1 }
 0x4cf   : > { %v10260_v10 = vpop.f32.mrb[1].mxu1  ;;  %v10576_v49 = vadd.f32 %v14285_v51, %v10152_v31 }
 0x4d0   : > { %v10261_v2 = vadd.f32 %v10260_v10, %v10259_v57  ;;  %v10262_v15 = vpop.f32.mrb[2].mxu1  ;;  %v10153_v4 = vpop.f32.mrb[36].mxu0 }
 0x4d1   : > { %v10263_v1 = vpop.f32.mrb[3].mxu1  ;;  %v10154_v47 = vpop.f32.mrb[37].mxu0 }
 0x4d2   : > { %v10264_v58 = vadd.f32 %v10263_v1, %v10262_v15  ;;  %v14411_v6 = vadd.f32 %v10568_v63, %v10261_v2  ;;  %v10155_v16 = vadd.f32 %v10154_v47, %v10153_v4  ;;  %v10156_v56 = vpop.f32.mrb[38].mxu0 }
 0x4d3   : > { %v10157_v13 = vpop.f32.mrb[39].mxu0 }
 0x4d4   : > { %v14413_v53 = vadd.f32 %v10576_v49, %v10264_v58  ;;  %v10564_v5 = vadd.f32 %v14287_v33, %v10155_v16  ;;  %v10158_v23 = vadd.f32 %v10157_v13, %v10156_v56 }
 0x4d6   : > { %v10265_v44 = vpop.f32.mrb[4].mxu1  ;;  %v10572_v51 = vadd.f32 %v14289_v59, %v10158_v23 }
 0x4d7   : > { %v10266_v12 = vpop.f32.mrb[5].mxu1 }
 0x4d8   : > { %v10267_v22 = vadd.f32 %v10266_v12, %v10265_v44  ;;  %v10268_v61 = vpop.f32.mrb[6].mxu1  ;;  %v10159_v39 = vpop.f32.mrb[40].mxu0 }
 0x4d9   : > { %v10269_v27 = vpop.f32.mrb[7].mxu1  ;;  %v10160_v28 = vpop.f32.mrb[41].mxu0 }
 0x4da   : > { %v10270_v54 = vadd.f32 %v10269_v27, %v10268_v61  ;;  %v14417_v24 = vadd.f32 %v10564_v5, %v10267_v22  ;;  %v10161_v30 = vadd.f32 %v10160_v28, %v10159_v39  ;;  %v10162_v62 = vpop.f32.mrb[42].mxu0 }
 0x4db   : > { %v10163_v55 = vpop.f32.mrb[43].mxu0 }
 0x4dc   : > { %v14419_v48 = vadd.f32 %v10572_v51, %v10270_v54  ;;  %v10584_v33 = vadd.f32 %v14291_v38, %v10161_v30  ;;  %v10164_v25 = vadd.f32 %v10163_v55, %v10162_v62 }
 0x4de   : > { %v10271_v50 = vpop.f32.mrb[8].mxu1  ;;  %v10592_v59 = vadd.f32 %v14293_v43, %v10164_v25 }
 0x4df   : > { %v10272_v63 = vpop.f32.mrb[9].mxu1 }
 0x4e0   : > { %v10273_v31 = vadd.f32 %v10272_v63, %v10271_v50  ;;  %v10274_v57 = vpop.f32.mrb[10].mxu1  ;;  %v10165_v49 = vpop.f32.mrb[44].mxu0 }
 0x4e1   : > { %v10275_v10 = vpop.f32.mrb[11].mxu1  ;;  %v10166_v15 = vpop.f32.mrb[45].mxu0 }
 0x4e2   : > { %v10276_v2 = vadd.f32 %v10275_v10, %v10274_v57  ;;  %v14423_v1 = vadd.f32 %v10584_v33, %v10273_v31  ;;  %v10167_v4 = vadd.f32 %v10166_v15, %v10165_v49  ;;  %v10168_v58 = vpop.f32.mrb[46].mxu0 }
 0x4e3   : > { %v10169_v47 = vpop.f32.mrb[47].mxu0 }
 0x4e4   : > { %v14425_v16 = vadd.f32 %v10592_v59, %v10276_v2  ;;  %v10580_v38 = vadd.f32 %v14295_v32, %v10167_v4  ;;  %v10170_v56 = vadd.f32 %v10169_v47, %v10168_v58 }
 0x4e6   : > { %v10277_v13 = vpop.f32.mrb[12].mxu1  ;;  %v10588_v43 = vadd.f32 %v14297_v14, %v10170_v56 }
 0x4e7   : > { %v10278_v5 = vpop.f32.mrb[13].mxu1 }
 0x4e8   : > { %v10279_v23 = vadd.f32 %v10278_v5, %v10277_v13  ;;  %v10280_v44 = vpop.f32.mrb[14].mxu1 }
 0x4e9   : > { %v10281_v12 = vpop.f32.mrb[15].mxu1 }
 0x4ea   : > { %v10282_v51 = vadd.f32 %v10281_v12, %v10280_v44  ;;  %v14429_v22 = vadd.f32 %v10580_v38, %v10279_v23 }
 0x4ec   : > { %v14431_v61 = vadd.f32 %v10588_v43, %v10282_v51 }
 0x4ee   : > { %v10421_v27 = vpop.f32.mrb[112].mxu1 }
 0x4ef   : > { %v10470_v39 = vadd.f32 %v14307_v0, %v10421_v27  ;;  %v8396_v54 = vpop.f32.mrb[113].mxu1 }
 0x4f0   : > { %v10474_v32 = vadd.f32 %v14301_v36, %v8396_v54  ;;  %v10422_v28 = vpop.f32.mrb[114].mxu1 }
 0x4f1   : > { %8525 = vst [vmem:[%s14436_s20 + $0x10] sm:$0xff] %v10470_v39  ;;  %v10478_v14 = vadd.f32 %v14309_v42, %v10422_v28  ;;  %v8399_v30 = vpop.f32.mrb[115].mxu1 }
 0x4f2   : > { %8523 = vst [vmem:[%s14436_s20] sm:$0xff] %v10474_v32  ;;  %v10482_v0 = vadd.f32 %v14303_v41, %v8399_v30 }
 0x4f3   : > { %8526 = vst [vmem:[%s14436_s20 + $0x18] sm:$0xff] %v10478_v14 }
 0x4f4   : > { %8524 = vst [vmem:[%s14436_s20 + $0x8] sm:$0xff] %v10482_v0 }
 0x4f6   : > { %v10425_v36 = vpop.f32.mrb[116].mxu1 }
 0x4f7   : > { %v10486_v62 = vadd.f32 %v14319_v11, %v10425_v36  ;;  %v8412_v55 = vpop.f32.mrb[117].mxu1 }
 0x4f8   : > { %v10490_v33 = vadd.f32 %v14313_v3, %v8412_v55  ;;  %v10426_v25 = vpop.f32.mrb[118].mxu1 }
 0x4f9   : > { %8529 = vst [vmem:[%s14436_s20 + $0x30] sm:$0xff] %v10486_v62  ;;  %v10494_v42 = vadd.f32 %v14321_v9, %v10426_v25  ;;  %v8415_v50 = vpop.f32.mrb[119].mxu1 }
 0x4fa   : > { %8527 = vst [vmem:[%s14436_s20 + $0x20] sm:$0xff] %v10490_v33  ;;  %v10498_v41 = vadd.f32 %v14315_v26, %v8415_v50 }
 0x4fb   : > { %8530 = vst [vmem:[%s14436_s20 + $0x38] sm:$0xff] %v10494_v42 }
 0x4fc   : > { %8528 = vst [vmem:[%s14436_s20 + $0x28] sm:$0xff] %v10498_v41 }
 0x4fe   : > { %v10429_v63 = vpop.f32.mrb[120].mxu1 }
 0x4ff   : > { %v10502_v11 = vadd.f32 %v14331_v19, %v10429_v63  ;;  %v8428_v59 = vpop.f32.mrb[121].mxu1 }
 0x500   : > { %v10506_v3 = vadd.f32 %v14325_v20, %v8428_v59  ;;  %v10430_v31 = vpop.f32.mrb[122].mxu1 }
 0x501   : > { %8533 = vst [vmem:[%s14436_s20 + $0x50] sm:$0xff] %v10502_v11  ;;  %v10510_v9 = vadd.f32 %v14333_v35, %v10430_v31  ;;  %v8431_v57 = vpop.f32.mrb[123].mxu1 }
 0x502   : > { %8531 = vst [vmem:[%s14436_s20 + $0x40] sm:$0xff] %v10506_v3  ;;  %v10514_v26 = vadd.f32 %v14327_v40, %v8431_v57 }
 0x503   : > { %8534 = vst [vmem:[%s14436_s20 + $0x58] sm:$0xff] %v10510_v9 }
 0x504   : > { %8532 = vst [vmem:[%s14436_s20 + $0x48] sm:$0xff] %v10514_v26 }
 0x506   : > { %v10433_v10 = vpop.f32.mrb[124].mxu1 }
 0x507   : > { %v10518_v19 = vadd.f32 %v14343_v18, %v10433_v10  ;;  %v8444_v49 = vpop.f32.mrb[125].mxu1 }
 0x508   : > { %v10522_v20 = vadd.f32 %v14337_v21, %v8444_v49  ;;  %v10434_v2 = vpop.f32.mrb[126].mxu1 }
 0x509   : > { %8537 = vst [vmem:[%s14436_s20 + $0x70] sm:$0xff] %v10518_v19  ;;  %v10526_v35 = vadd.f32 %v14345_v8, %v10434_v2  ;;  %v8447_v15 = vpop.f32.mrb[127].mxu1 }
 0x50a   : > { %8535 = vst [vmem:[%s14436_s20 + $0x60] sm:$0xff] %v10522_v20  ;;  %v10530_v40 = vadd.f32 %v14339_v37, %v8447_v15 }
 0x50b   : > { %8538 = vst [vmem:[%s14436_s20 + $0x78] sm:$0xff] %v10526_v35 }
 0x50c   : > { %8536 = vst [vmem:[%s14436_s20 + $0x68] sm:$0xff] %v10530_v40 }
 0x50e   : > { %v10437_v4 = vpop.f32.mrb[128].mxu1 }
 0x50f   : > { %v10534_v18 = vadd.f32 %v14393_v17, %v10437_v4  ;;  %v8460_v58 = vpop.f32.mrb[129].mxu1 }
 0x510   : > { %v10538_v21 = vadd.f32 %v14360_v34, %v8460_v58  ;;  %v10438_v47 = vpop.f32.mrb[130].mxu1 }
 0x511   : > { %8541 = vst [vmem:[%s14436_s20 + $0x90] sm:$0xff] %v10534_v18  ;;  %v10542_v8 = vadd.f32 %v14395_v46, %v10438_v47  ;;  %v8463_v38 = vpop.f32.mrb[131].mxu1 }
 0x512   : > { %8539 = vst [vmem:[%s14436_s20 + $0x80] sm:$0xff] %v10538_v21  ;;  %v10546_v37 = vadd.f32 %v14389_v60, %v8463_v38 }
 0x513   : > { %8542 = vst [vmem:[%s14436_s20 + $0x98] sm:$0xff] %v10542_v8 }
 0x514   : > { %8540 = vst [vmem:[%s14436_s20 + $0x88] sm:$0xff] %v10546_v37 }
 0x516   : > { %v10441_v56 = vpop.f32.mrb[132].mxu1 }
 0x517   : > { %v10550_v17 = vadd.f32 %v14405_v29, %v10441_v56  ;;  %v8476_v13 = vpop.f32.mrb[133].mxu1 }
 0x518   : > { %v10554_v34 = vadd.f32 %v14399_v45, %v8476_v13  ;;  %v10442_v5 = vpop.f32.mrb[134].mxu1 }
 0x519   : > { %8545 = vst [vmem:[%s14436_s20 + $0xb0] sm:$0xff] %v10550_v17  ;;  %v10558_v46 = vadd.f32 %v14407_v52, %v10442_v5  ;;  %v8479_v43 = vpop.f32.mrb[135].mxu1 }
 0x51a   : > { %8543 = vst [vmem:[%s14436_s20 + $0xa0] sm:$0xff] %v10554_v34  ;;  %v10562_v60 = vadd.f32 %v14401_v7, %v8479_v43 }
 0x51b   : > { %8546 = vst [vmem:[%s14436_s20 + $0xb8] sm:$0xff] %v10558_v46 }
 0x51c   : > { %8544 = vst [vmem:[%s14436_s20 + $0xa8] sm:$0xff] %v10562_v60 }
 0x51e   : > { %v10445_v23 = vpop.f32.mrb[136].mxu1 }
 0x51f   : > { %v10566_v29 = vadd.f32 %v14417_v24, %v10445_v23  ;;  %v8492_v44 = vpop.f32.mrb[137].mxu1 }
 0x520   : > { %v10570_v45 = vadd.f32 %v14411_v6, %v8492_v44  ;;  %v10446_v12 = vpop.f32.mrb[138].mxu1 }
 0x521   : > { %8549 = vst [vmem:[%s14436_s20 + $0xd0] sm:$0xff] %v10566_v29  ;;  %v10574_v52 = vadd.f32 %v14419_v48, %v10446_v12  ;;  %v8495_v51 = vpop.f32.mrb[139].mxu1 }
 0x522   : > { %8547 = vst [vmem:[%s14436_s20 + $0xc0] sm:$0xff] %v10570_v45  ;;  %v10578_v7 = vadd.f32 %v14413_v53, %v8495_v51 }
 0x523   : > { %8550 = vst [vmem:[%s14436_s20 + $0xd8] sm:$0xff] %v10574_v52 }
 0x524   : > { %8548 = vst [vmem:[%s14436_s20 + $0xc8] sm:$0xff] %v10578_v7 }
 0x526   : > { %v10449_v24 = vpop.f32.mrb[140].mxu1 }
 0x527   : > { %v10582_v27 = vadd.f32 %v14429_v22, %v10449_v24  ;;  %v8508_v39 = vpop.f32.mrb[141].mxu1 }
 0x528   : > { %v10586_v6 = vadd.f32 %v14423_v1, %v8508_v39  ;;  %v10450_v54 = vpop.f32.mrb[142].mxu1 }
 0x529   : > { %8553 = vst [vmem:[%s14436_s20 + $0xf0] sm:$0xff] %v10582_v27  ;;  %v10590_v48 = vadd.f32 %v14431_v61, %v10450_v54  ;;  %v8511_v32 = vpop.f32.mrb[143].mxu1 }
 0x52a   : > { %8551 = vst [vmem:[%s14436_s20 + $0xe0] sm:$0xff] %v10586_v6  ;;  %v10594_v53 = vadd.f32 %v14425_v16, %v8511_v32 }
 0x52b   : > { %8554 = vst [vmem:[%s14436_s20 + $0xf8] sm:$0xff] %v10590_v48 }
 0x52c   : > { %8552 = vst [vmem:[%s14436_s20 + $0xe8] sm:$0xff] %v10594_v53 }
 0x52d   : > { %11353 = shalt.err (!%p11350_p11)
}
 0x52e   : > { %s11354_s22 = scalar_lea.hbm %s14504_s17, 4096  ;;  %s11358_s8 = scalar_lea.hbm %s14759_s19, 8192 }
 0x52f   : > { %p11355_p8 = scmp.ne.s32.totalorder %s14504_s17, %s11354_s22  ;;  %p11359_p10 = scmp.lt.u32.totalorder %s14504_s17, %s14759_s19 }
 0x530   : > { %p11360_p3 = scmp.lt.u32.totalorder %s11358_s8, %s11354_s22  ;;  %p11362_p12 = scmp.lt.u32.totalorder %s11354_s22, %s14504_s17 }
 0x531   : > { %p11356_p13 = pnand %p11355_p8, %p11637_p5 }
 0x532   : > { %p11361_p7 = por %p11360_p3, %p11359_p10 }
 0x533   : > { %p11357_p6 = pneg %p11356_p13 }
 0x534   : > { %p11363_p1 = por %p11362_p12, %p11361_p7 }
 0x536   : > { %p11364_p2 = pnand %p11363_p1, %p11357_p6 }
 0x538   : > { %11367 = shalt.err (!%p11364_p2)
}
 0x539   : > { %10641 = dma.vmem_to_hbm [thread:$0]  (%p11637_p5), %s14506_s24, 4096, %s14504_s17, %s8556_s18, %s11430_s25, %s11430_s25, %s11431_s15  }
 0x53a PF: > { %s14760_s23 = sld [smem:[#allocation20_spill]]  ;;  %s14761_s13 = sld [smem:[#allocation21_spill]] }
 0x53b   : > { %p14763_p9 = scmp.ge.s32.totalorder %s11418_s12, 2 }
 0x540   : > { %s8605_s21 = sand.u32 1, %s14760_s23   ;;  %p14762_p4 = scmp.ne.s32.totalorder %s14761_s13, 0 }
 0x541   : > { %s8606_s22 = scalar_lea.sflag [#allocation6], %s8605_s21 }
 0x542   : > { %p10660_p0 = pnand %p14763_p9, %p14762_p4 }
 0x544   : > { %11397 = dma.done.wait (!%p10660_p0), %s8606_s22, 4096  }
 0x545   : > { %11399 = vsyncadd (!%p10660_p0), %s8606_s22, 4294963200  ;;  %s8615_s27 = scalar_lea.sflag [#allocation14], %s8605_s21 }
 0x546   : > { %11401 = dma.done.wait (!%p10660_p0), %s8615_s27, 4096  }
 0x547   : > { %11403 = vsyncadd (!%p10660_p0), %s8615_s27, 4294963200  ;;  %p28_p5 = scmp.ge.s32.totalorder %s11623_s14, 4   ;;  %s14764_s30 = smov %s11410_s10 }
 0x548   : > { %s14765_s10 = smov %s11414_s11  ;;  %s14766_s11 = smov %s11633_s16 }
 0x549   : > { %s14767_s12 = smov %s11623_s14  ;;  %30 = sbr.rel (!%p28_p5) target bundleno = 11 (0xb), region = 130 }
 0x550   :  { %8620 = vsyncpa [#allocation5], 1 }
 0x551   :  { %8622 = vsyncpa [#allocation5 + $0x1], 1 }
 0x552   :  { %8623 = vsyncpa [#allocation8], 1 }
 0x553   :  { %8624 = vsyncpa [#allocation11], 1 }
 0x554   :  { %8625 = vsyncpa [#allocation6], 1 }
 0x555   :  { %8627 = vsyncpa [#allocation6 + $0x1], 1 }
 0x556   :  { %8628 = vsyncpa [#allocation14], 1 }
 0x557   :  { %8630 = vsyncpa [#allocation14 + $0x1], 1 }

</bundles_post_ra>
